<compile_context>
chip_gen: v7x
topology: tpu7x:2x2x1
jax: 0.10.0
libtpu: 0.0.40
codegen_flags: <defaults>
</compile_context>

<pallas_src>
import jax
import jax.numpy as jnp
from jax.experimental import pallas as pl
from jax.experimental.pallas import tpu as pltpu

CHANNELS_IN = 5
HIDDEN = 32
FEAT = 2048
TILE_P_MAX = 1024                      # pixels (lanes) per grid step
VMEM_LIMIT_BYTES = 48 * 1024 * 1024    # > v5e 16 MiB default, < v7x 64 MiB physical


def _pix_kernel(x_ref, w1_ref, b1_ref, w2_ref, b2_ref,
                wh1_ref, bh1_ref, wh2_ref, bh2_ref,
                head_ref, merged_ref):
    # Channel-major layout: rows = channels (sublanes), cols = pixels (lanes).
    x_t = x_ref[0]                                         # (C, TILE_P) f32

    # Fused first layer (block-diagonal color/spatial 1x1 convs) + ReLU.
    # K=5 is tiny -> keep f32 operands for accuracy; cost is negligible.
    h1 = jnp.dot(w1_ref[...], x_t,
                 preferred_element_type=jnp.float32) + b1_ref[...]
    h1 = jnp.maximum(h1, 0.0)                              # (2*HIDDEN, TILE_P)

    # Fused second layer -> merged features, emitted directly in NCHW layout.
    # bf16 operands (weights pre-cast in the wrapper), f32 accumulation.
    merged_t = jnp.dot(w2_ref[...], h1.astype(jnp.bfloat16),
                       preferred_element_type=jnp.float32) + b2_ref[...]
    merged_ref[0] = merged_t                               # (FEAT, TILE_P) f32

    # head_net: ReLU -> Conv(2048->32) -> ReLU -> Conv(32->1)
    h = jnp.dot(wh1_ref[...],
                jnp.maximum(merged_t, 0.0).astype(jnp.bfloat16),
                preferred_element_type=jnp.float32) + bh1_ref[...]
    h = jnp.maximum(h, 0.0)                                # (HIDDEN, TILE_P)
    # 1-output-channel conv as VPU multiply + sublane reduction; lane-dense
    # so the store is an unmasked full-vreg vst (except the boundary tile).
    head_ref[0] = jnp.sum(h * wh2_ref[...], axis=0, keepdims=True) + bh2_ref[...]


def _full_spec(shape):
    # Whole (small) weight array resident every grid step.
    nd = len(shape)
    return pl.BlockSpec(shape, lambda p, n, _nd=nd: (0,) * _nd)


@jax.jit
def pix_transform_net_forward(x_nchw, params):
    """x_nchw: [N, channels_in, H, W] float32.

    Returns (head [N,1,H,W], merged [N,2048,H,W]) exactly as the PyTorch module.
    """
    N, C, H, W = x_nchw.shape
    assert C == CHANNELS_IN

    (wc1, bc1, wc2, bc2, ws1, bs1, ws2, bs2, wh1, bh1, wh2, bh2) = params

    # --- Fuse the two branch MLPs and pre-transpose into channel-major layout.
    # First layer: block-diagonal (color in top-left, spatial in bottom-right).
    w1 = jnp.zeros((C, 2 * HIDDEN), jnp.float32)
    w1 = w1.at[: C - 2, :HIDDEN].set(wc1)                  # color branch
    w1 = w1.at[C - 2:, HIDDEN:].set(ws1)                   # spatial branch
    w1_t = w1.T                                            # (64, C) f32
    b1_c = jnp.concatenate([bc1, bs1], axis=1).T           # (64, 1)
    # Second layer: stacked -> one K=64 matmul; bf16 operands, f32 accumulate.
    w2_t = jnp.concatenate([wc2, ws2], axis=0).T.astype(jnp.bfloat16)  # (FEAT, 64)
    b2_c = (bc2 + bs2).T                                   # (FEAT, 1) f32
    wh1_t = wh1.T.astype(jnp.bfloat16)                     # (HIDDEN, FEAT)
    bh1_c = bh1.T                                          # (HIDDEN, 1)
    wh2_c = wh2                                            # (HIDDEN, 1)
    bh2_s = bh2                                            # (1, 1)

    hw = H * W
    tile_p = min(TILE_P_MAX, ((hw + 127) // 128) * 128)
    grid_p = pl.cdiv(hw, tile_p)

    # NCHW -> (N, C, H*W) is a free reshape (no data movement). No padding:
    # Pallas masks the writeback of the partial boundary tile, so the merged
    # tensor is written to HBM exactly once (no pad-then-slice copy).
    x = x_nchw.reshape(N, C, hw)

    # Pixel-tile axis leads so megacore (v7x 2-TC) splits it even when N == 1.
    grid = (grid_p, N)

    in_specs = [
        pl.BlockSpec((1, C, tile_p), lambda p, n: (n, 0, p)),
        _full_spec(w1_t.shape), _full_spec(b1_c.shape),
        _full_spec(w2_t.shape), _full_spec(b2_c.shape),
        _full_spec(wh1_t.shape), _full_spec(bh1_c.shape),
        _full_spec(wh2_c.shape), _full_spec(bh2_s.shape),
    ]
    out_specs = [
        pl.BlockSpec((1, 1, tile_p), lambda p, n: (n, 0, p)),
        pl.BlockSpec((1, FEAT, tile_p), lambda p, n: (n, 0, p)),
    ]
    out_shape = [
        jax.ShapeDtypeStruct((N, 1, hw), jnp.float32),
        jax.ShapeDtypeStruct((N, FEAT, hw), jnp.float32),
    ]

    # Advisory cost estimate: the kernel is dominated by the merged writeback.
    flops = 2 * N * hw * (C * 2 * HIDDEN + 2 * HIDDEN * FEAT + FEAT * HIDDEN + HIDDEN)
    weight_bytes = (2 * (FEAT * 2 * HIDDEN + HIDDEN * FEAT)            # bf16 weights
                    + 4 * (2 * HIDDEN * C + 2 * HIDDEN + FEAT + HIDDEN + HIDDEN + 1))
    bytes_accessed = 4 * N * hw * (C + FEAT + 1) + weight_bytes
    cost = pl.CostEstimate(flops=flops, transcendentals=0,
                           bytes_accessed=bytes_accessed)

    head_flat, merged_flat = pl.pallas_call(
        _pix_kernel,
        out_shape=out_shape,
        grid_spec=pltpu.PrefetchScalarGridSpec(
            num_scalar_prefetch=0,
            grid=grid,
            in_specs=in_specs,
            out_specs=out_specs,
        ),
        compiler_params=pltpu.CompilerParams(
            dimension_semantics=("parallel", "parallel"),
            vmem_limit_bytes=VMEM_LIMIT_BYTES,
        ),
        cost_estimate=cost,
    )(x, w1_t, b1_c, w2_t, b2_c, wh1_t, bh1_c, wh2_c, bh2_s)

    # Outputs already in NCHW layout; only a free reshape remains.
    head = head_flat.reshape(N, 1, H, W)
    merged = merged_flat.reshape(N, FEAT, H, W)
    return head, merged


def init_params(key):
    """Deterministic parameter init. Weights stored as [in, out] (i.e. transposed
    PyTorch Conv2d [out, in, 1, 1] squeezed); biases stored as [1, out]."""
    keys = jax.random.split(key, 12)

    def w(k, cin, cout):
        return (0.05 * jax.random.normal(k, (cin, cout))).astype(jnp.float32)

    def b(k, cout):
        return (0.05 * jax.random.normal(k, (1, cout))).astype(jnp.float32)

    # color_net: Conv(channels_in-2 -> 32), Conv(32 -> 2048)
    wc1 = w(keys[0], CHANNELS_IN - 2, HIDDEN); bc1 = b(keys[1], HIDDEN)
    wc2 = w(keys[2], HIDDEN, FEAT);            bc2 = b(keys[3], FEAT)
    # spatial_net: Conv(2 -> 32), Conv(32 -> 2048)
    ws1 = w(keys[4], 2, HIDDEN);               bs1 = b(keys[5], HIDDEN)
    ws2 = w(keys[6], HIDDEN, FEAT);            bs2 = b(keys[7], FEAT)
    # head_net: Conv(2048 -> 32), Conv(32 -> 1)
    wh1 = w(keys[8], FEAT, HIDDEN);            bh1 = b(keys[9], HIDDEN)
    wh2 = w(keys[10], HIDDEN, 1);              bh2 = b(keys[11], 1)
    return (wc1, bc1, wc2, bc2, ws1, bs1, ws2, bs2, wh1, bh1, wh2, bh2)


def reference_forward(x_nchw, params):
    """Pure-JAX f32 reference mirroring the PyTorch module (1x1 convs = per-pixel MLP)."""
    (wc1, bc1, wc2, bc2, ws1, bs1, ws2, bs2, wh1, bh1, wh2, bh2) = params
    N, C, H, W = x_nchw.shape
    x = jnp.transpose(x_nchw, (0, 2, 3, 1)).reshape(N * H * W, C)
    xc, xs = x[:, : C - 2], x[:, C - 2:]
    ms = jnp.maximum(xs @ ws1 + bs1, 0.0) @ ws2 + bs2
    mc = jnp.maximum(xc @ wc1 + bc1, 0.0) @ wc2 + bc2
    merged = ms + mc
    h = jnp.maximum(merged, 0.0)
    h = jnp.maximum(h @ wh1 + bh1, 0.0)
    head = h @ wh2 + bh2
    head = jnp.transpose(head.reshape(N, H, W, 1), (0, 3, 1, 2))
    merged = jnp.transpose(merged.reshape(N, H, W, FEAT), (0, 3, 1, 2))
    return head, merged


if __name__ == "__main__":
    key = jax.random.PRNGKey(0)
    k_x, k_p = jax.random.split(key)
    params = init_params(k_p)

    # Tolerances are relaxed vs the f32 reference because the two big matmuls
    # use bf16 operands (f32 accumulation).
    ATOL = RTOL = 2e-2

    # Primary small test.
    N, C, H, W = 2, CHANNELS_IN, 16, 16
    x = jax.random.normal(k_x, (N, C, H, W), dtype=jnp.float32)
    head, merged = pix_transform_net_forward(x, params)
    jax.block_until_ready((head, merged))
    head_ref, merged_ref = reference_forward(x, params)
    assert head.shape == (N, 1, H, W)
    assert merged.shape == (N, FEAT, H, W)
    assert jnp.allclose(head, head_ref, atol=ATOL, rtol=RTOL)
    assert jnp.allclose(merged, merged_ref, atol=ATOL, rtol=RTOL)

    # Boundary test: H*W not a multiple of the pixel tile (1155 pixels ->
    # one full 1024-lane tile + one masked partial tile), now that the
    # pad-then-slice path is gone.
    N2, H2, W2 = 1, 33, 35
    x2 = jax.random.normal(jax.random.PRNGKey(1), (N2, CHANNELS_IN, H2, W2),
                           dtype=jnp.float32)
    head2, merged2 = pix_transform_net_forward(x2, params)
    jax.block_until_ready((head2, merged2))
    head2_ref, merged2_ref = reference_forward(x2, params)
    assert jnp.allclose(head2, head2_ref, atol=ATOL, rtol=RTOL)
    assert jnp.allclose(merged2, merged2_ref, atol=ATOL, rtol=RTOL)

    print("KERNEL_OK")
</pallas_src>

<mosaic_0001>
module attributes {stable_mosaic.version = 11 : i64} {
  func.func @_pix_kernel(%arg0: i32, %arg1: i32, %arg2: memref<1x5x256xf32, #tpu.memory_space<vmem>>, %arg3: memref<64x5xf32, #tpu.memory_space<vmem>>, %arg4: memref<64x1xf32, #tpu.memory_space<vmem>>, %arg5: memref<2048x64xbf16, #tpu.memory_space<vmem>>, %arg6: memref<2048x1xf32, #tpu.memory_space<vmem>>, %arg7: memref<32x2048xbf16, #tpu.memory_space<vmem>>, %arg8: memref<32x1xf32, #tpu.memory_space<vmem>>, %arg9: memref<32x1xf32, #tpu.memory_space<vmem>>, %arg10: memref<1x1xf32, #tpu.memory_space<vmem>>, %arg11: memref<1x1x256xf32, #tpu.memory_space<vmem>>, %arg12: memref<1x2048x256xf32, #tpu.memory_space<vmem>>) attributes {dimension_semantics = [#tpu.dimension_semantics<parallel>, #tpu.dimension_semantics<parallel>], iteration_bounds = array<i64: 1, 2>, scalar_prefetch = 0 : i64, scratch_operands = 0 : i64, tpu.core_type = #tpu.core_type<tc>, window_params = [{transform_indices = @transform_0, window_bounds = array<i64: 1, 5, 256>}, {pipeline_mode = #tpu.pipeline_mode<synchronous>, transform_indices = @transform_1, window_bounds = array<i64: 64, 5>}, {pipeline_mode = #tpu.pipeline_mode<synchronous>, transform_indices = @transform_2, window_bounds = array<i64: 64, 1>}, {pipeline_mode = #tpu.pipeline_mode<synchronous>, transform_indices = @transform_3, window_bounds = array<i64: 2048, 64>}, {pipeline_mode = #tpu.pipeline_mode<synchronous>, transform_indices = @transform_4, window_bounds = array<i64: 2048, 1>}, {pipeline_mode = #tpu.pipeline_mode<synchronous>, transform_indices = @transform_5, window_bounds = array<i64: 32, 2048>}, {pipeline_mode = #tpu.pipeline_mode<synchronous>, transform_indices = @transform_6, window_bounds = array<i64: 32, 1>}, {pipeline_mode = #tpu.pipeline_mode<synchronous>, transform_indices = @transform_7, window_bounds = array<i64: 32, 1>}, {pipeline_mode = #tpu.pipeline_mode<synchronous>, transform_indices = @transform_8, window_bounds = array<i64: 1, 1>}, {transform_indices = @transform_9, window_bounds = array<i64: 1, 1, 256>}, {transform_indices = @transform_10, window_bounds = array<i64: 1, 2048, 256>}]} {
    %c0 = arith.constant 0 : index
    %c0_0 = arith.constant 0 : index
    %c0_1 = arith.constant 0 : index
    %0 = vector.load %arg2[%c0, %c0_0, %c0_1] : memref<1x5x256xf32, #tpu.memory_space<vmem>>, vector<1x5x256xf32>
    %1 = vector.shape_cast %0 : vector<1x5x256xf32> to vector<5x256xf32>
    %c0_2 = arith.constant 0 : index
    %c0_3 = arith.constant 0 : index
    %2 = vector.load %arg3[%c0_2, %c0_3] : memref<64x5xf32, #tpu.memory_space<vmem>>, vector<64x5xf32>
    %cst = arith.constant dense<0.000000e+00> : vector<64x256xf32>
    %3 = tpu.matmul %2, %1, %cst {dimension_numbers = #tpu.dot_dimension_numbers<[1], [0], [0], [1], [0, 0, 1, 1], [], []>} : vector<64x5xf32>, vector<5x256xf32>, vector<64x256xf32> -> vector<64x256xf32>
    %c0_4 = arith.constant 0 : index
    %c0_5 = arith.constant 0 : index
    %4 = vector.load %arg4[%c0_4, %c0_5] : memref<64x1xf32, #tpu.memory_space<vmem>>, vector<64x1xf32>
    %5 = vector.broadcast %4 : vector<64x1xf32> to vector<64x256xf32>
    %6 = arith.addf %3, %5 : vector<64x256xf32>
    %cst_6 = arith.constant 0.000000e+00 : f32
    %7 = vector.broadcast %cst_6 : f32 to vector<64x256xf32>
    %8 = arith.maximumf %6, %7 : vector<64x256xf32>
    %c0_7 = arith.constant 0 : index
    %c0_8 = arith.constant 0 : index
    %9 = vector.load %arg5[%c0_7, %c0_8] : memref<2048x64xbf16, #tpu.memory_space<vmem>>, vector<2048x64xbf16>
    %10 = arith.truncf %8 : vector<64x256xf32> to vector<64x256xbf16>
    %cst_9 = arith.constant dense<0.000000e+00> : vector<2048x256xf32>
    %11 = tpu.matmul %9, %10, %cst_9 {dimension_numbers = #tpu.dot_dimension_numbers<[1], [0], [0], [1], [0, 0, 1, 1], [], []>} : vector<2048x64xbf16>, vector<64x256xbf16>, vector<2048x256xf32> -> vector<2048x256xf32>
    %c0_10 = arith.constant 0 : index
    %c0_11 = arith.constant 0 : index
    %12 = vector.load %arg6[%c0_10, %c0_11] : memref<2048x1xf32, #tpu.memory_space<vmem>>, vector<2048x1xf32>
    %13 = vector.broadcast %12 : vector<2048x1xf32> to vector<2048x256xf32>
    %14 = arith.addf %11, %13 : vector<2048x256xf32>
    %c0_12 = arith.constant 0 : index
    %c0_13 = arith.constant 0 : index
    %c0_14 = arith.constant 0 : index
    %15 = vector.load %arg12[%c0_12, %c0_13, %c0_14] : memref<1x2048x256xf32, #tpu.memory_space<vmem>>, vector<1x2048x256xf32>
    %16 = vector.shape_cast %15 : vector<1x2048x256xf32> to vector<2048x256xf32>
    %17 = vector.shape_cast %14 : vector<2048x256xf32> to vector<1x2048x256xf32>
    tpu.vector_store %arg12[%c0_12, %c0_13, %c0_14], %17 {strides = array<i32>} : memref<1x2048x256xf32, #tpu.memory_space<vmem>>, vector<1x2048x256xf32>,
    %c0_15 = arith.constant 0 : index
    %c0_16 = arith.constant 0 : index
    %18 = vector.load %arg7[%c0_15, %c0_16] : memref<32x2048xbf16, #tpu.memory_space<vmem>>, vector<32x2048xbf16>
    %cst_17 = arith.constant 0.000000e+00 : f32
    %19 = vector.broadcast %cst_17 : f32 to vector<2048x256xf32>
    %20 = arith.maximumf %14, %19 : vector<2048x256xf32>
    %21 = arith.truncf %20 : vector<2048x256xf32> to vector<2048x256xbf16>
    %cst_18 = arith.constant dense<0.000000e+00> : vector<32x256xf32>
    %22 = tpu.matmul %18, %21, %cst_18 {dimension_numbers = #tpu.dot_dimension_numbers<[1], [0], [0], [1], [0, 0, 1, 1], [], []>} : vector<32x2048xbf16>, vector<2048x256xbf16>, vector<32x256xf32> -> vector<32x256xf32>
    %c0_19 = arith.constant 0 : index
    %c0_20 = arith.constant 0 : index
    %23 = vector.load %arg8[%c0_19, %c0_20] : memref<32x1xf32, #tpu.memory_space<vmem>>, vector<32x1xf32>
    %24 = vector.broadcast %23 : vector<32x1xf32> to vector<32x256xf32>
    %25 = arith.addf %22, %24 : vector<32x256xf32>
    %cst_21 = arith.constant 0.000000e+00 : f32
    %26 = vector.broadcast %cst_21 : f32 to vector<32x256xf32>
    %27 = arith.maximumf %25, %26 : vector<32x256xf32>
    %c0_22 = arith.constant 0 : index
    %c0_23 = arith.constant 0 : index
    %28 = vector.load %arg9[%c0_22, %c0_23] : memref<32x1xf32, #tpu.memory_space<vmem>>, vector<32x1xf32>
    %29 = vector.broadcast %28 : vector<32x1xf32> to vector<32x256xf32>
    %30 = arith.mulf %27, %29 : vector<32x256xf32>
    %cst_24 = arith.constant dense<0.000000e+00> : vector<256xf32>
    %31 = vector.multi_reduction <add>, %30, %cst_24 [0] : vector<32x256xf32> to vector<256xf32>
    %32 = vector.shape_cast %31 : vector<256xf32> to vector<1x256xf32>
    %c0_25 = arith.constant 0 : index
    %c0_26 = arith.constant 0 : index
    %33 = vector.load %arg10[%c0_25, %c0_26] : memref<1x1xf32, #tpu.memory_space<vmem>>, vector<1x1xf32>
    %34 = vector.broadcast %33 : vector<1x1xf32> to vector<1x256xf32>
    %35 = arith.addf %32, %34 : vector<1x256xf32>
    %c0_27 = arith.constant 0 : index
    %c0_28 = arith.constant 0 : index
    %c0_29 = arith.constant 0 : index
    %36 = vector.load %arg11[%c0_27, %c0_28, %c0_29] : memref<1x1x256xf32, #tpu.memory_space<vmem>>, vector<1x1x256xf32>
    %37 = vector.shape_cast %36 : vector<1x1x256xf32> to vector<1x256xf32>
    %38 = vector.shape_cast %35 : vector<1x256xf32> to vector<1x1x256xf32>
    tpu.vector_store %arg11[%c0_27, %c0_28, %c0_29], %38 {strides = array<i32>} : memref<1x1x256xf32, #tpu.memory_space<vmem>>, vector<1x1x256xf32>,
    return
  }
  func.func @transform_0(%arg0: i32, %arg1: i32) -> (i32, i32, i32) {
    %c0_i32 = arith.constant 0 : i32
    %c0_i32_0 = arith.constant 0 : i32
    return %arg1, %c0_i32, %arg0 : i32, i32, i32
  }
  func.func @transform_1(%arg0: i32, %arg1: i32) -> (i32, i32) {
    %c0_i32 = arith.constant 0 : i32
    %c0_i32_0 = arith.constant 0 : i32
    %c0_i32_1 = arith.constant 0 : i32
    return %c0_i32, %c0_i32_0 : i32, i32
  }
  func.func @transform_2(%arg0: i32, %arg1: i32) -> (i32, i32) {
    %c0_i32 = arith.constant 0 : i32
    %c0_i32_0 = arith.constant 0 : i32
    %c0_i32_1 = arith.constant 0 : i32
    return %c0_i32, %c0_i32_0 : i32, i32
  }
  func.func @transform_3(%arg0: i32, %arg1: i32) -> (i32, i32) {
    %c0_i32 = arith.constant 0 : i32
    %c0_i32_0 = arith.constant 0 : i32
    %c0_i32_1 = arith.constant 0 : i32
    return %c0_i32, %c0_i32_0 : i32, i32
  }
  func.func @transform_4(%arg0: i32, %arg1: i32) -> (i32, i32) {
    %c0_i32 = arith.constant 0 : i32
    %c0_i32_0 = arith.constant 0 : i32
    %c0_i32_1 = arith.constant 0 : i32
    return %c0_i32, %c0_i32_0 : i32, i32
  }
  func.func @transform_5(%arg0: i32, %arg1: i32) -> (i32, i32) {
    %c0_i32 = arith.constant 0 : i32
    %c0_i32_0 = arith.constant 0 : i32
    %c0_i32_1 = arith.constant 0 : i32
    return %c0_i32, %c0_i32_0 : i32, i32
  }
  func.func @transform_6(%arg0: i32, %arg1: i32) -> (i32, i32) {
    %c0_i32 = arith.constant 0 : i32
    %c0_i32_0 = arith.constant 0 : i32
    %c0_i32_1 = arith.constant 0 : i32
    return %c0_i32, %c0_i32_0 : i32, i32
  }
  func.func @transform_7(%arg0: i32, %arg1: i32) -> (i32, i32) {
    %c0_i32 = arith.constant 0 : i32
    %c0_i32_0 = arith.constant 0 : i32
    %c0_i32_1 = arith.constant 0 : i32
    return %c0_i32, %c0_i32_0 : i32, i32
  }
  func.func @transform_8(%arg0: i32, %arg1: i32) -> (i32, i32) {
    %c0_i32 = arith.constant 0 : i32
    %c0_i32_0 = arith.constant 0 : i32
    %c0_i32_1 = arith.constant 0 : i32
    return %c0_i32, %c0_i32_0 : i32, i32
  }
  func.func @transform_9(%arg0: i32, %arg1: i32) -> (i32, i32, i32) {
    %c0_i32 = arith.constant 0 : i32
    %c0_i32_0 = arith.constant 0 : i32
    return %arg1, %c0_i32, %arg0 : i32, i32, i32
  }
  func.func @transform_10(%arg0: i32, %arg1: i32) -> (i32, i32, i32) {
    %c0_i32 = arith.constant 0 : i32
    %c0_i32_0 = arith.constant 0 : i32
    return %arg1, %c0_i32, %arg0 : i32, i32, i32
  }
}

</mosaic_0001>

<bundles_post_ra>
// kernel: pix_transform_net_forward.1
= control target key start
LH: loop header
LB: loop body
LE: loop exit
PB: predicated region body
PF: predicated region fallthrough
CT: control target
= control target key end

     0   :  { %s7551_s15 = smov 0   ;;  %s7553_s16 = smov 0   ;;  %s10861_s0 = inlined_call_operand.vmem [shape: f32[2,5,256], index: 0, kind: input, shape index: {}]   ;;  %s10862_s1 = inlined_call_operand.vmem [shape: f32[64,5], index: 1, kind: input, shape index: {}]   ;;  %s10863_s2 = inlined_call_operand.vmem [shape: f32[64,1], index: 2, kind: input, shape index: {}]   ;;  %s10864_s3 = inlined_call_operand.vmem [shape: bf16[2048,64], index: 3, kind: input, shape index: {}]   ;;  %s10865_s4 = inlined_call_operand.vmem [shape: f32[2048,1], index: 4, kind: input, shape index: {}]   ;;  %s10866_s5 = inlined_call_operand.vmem [shape: bf16[32,2048], index: 5, kind: input, shape index: {}]   ;;  %s10867_s6 = inlined_call_operand.vmem [shape: f32[32,1], index: 6, kind: input, shape index: {}]   ;;  %s10868_s7 = inlined_call_operand.vmem [shape: f32[32,1], index: 7, kind: input, shape index: {}]   ;;  %s10869_s8 = inlined_call_operand.<no memory space> [shape: f32[1,1], index: 8, kind: input, shape index: {}]   ;;  %s10870_s9 = inlined_call_operand.vmem [shape: f32[2,1,256], index: 9, kind: output, shape index: {0}]   ;;  %s10871_s10 = inlined_call_operand.vmem [shape: f32[2,2048,256], index: 10, kind: output, shape index: {1}]  }
   0x1   :  { %v16_v0 = vstv %s10869_s8  ;;  %s7555_s17 = smov 0  }
   0x2   :  { %17 = vst [vmem:[#allocation2] sm:$0x1] %v16_v0 }
   0x3 LB: > { %s32_s8 = sadd.s32 1, %s7484_s16  ;;  %p6929_p0 = scmp.ge.s32.totalorder %s7488_s17, 1  ;;  %s7488_s17 = sphi %s7555_s17, %s23_s17   ;;  %s7484_s16 = sphi %s7553_s16, %s11296_s16   ;;  %s7480_s15 = sphi %s7551_s15, %s11295_s15  }
   0x4   : > { %p33_p1 = scmp.ge.s32.totalorder %s32_s8, 2  ;;  %p340_p2 = scmp.lt.s32.totalorder %s7488_s17, 3 }
   0x6   : > { %s11298_s8 = smov (%p33_p1, %s32_s8), 0  ;;  %p341_p3 = pnand %p6929_p0, %p340_p2 }
   0x8   : > { %344 = sbr.rel (%p341_p3) target bundleno = 1505 (0x5e1), region = 56 }
   0xf   : > { %v436_v1 = vld [vmem:[%s10863_s2 + $0x10] sm:$0xff]  ;;  %v434_v2 = vld [vmem:[%s10863_s2] sm:$0xff]  ;;  %p395_p4 = scmp.lt.s32.totalorder %s7480_s15, 1  ;;  %v10872_v3 = vmov 0   ;;  %v437_v4 = vld [vmem:[%s10863_s2 + $0x18] sm:$0xff]  ;;  %v7491_v6 = vmov 0.0  }
  0x10   : > { %7337 = vset.pattern.permute.xlu1 %v10872_v3  ;;  %7336 = vset.pattern.permute.xlu0 %v10872_v3  ;;  %v435_v5 = vld [vmem:[%s10863_s2 + $0x8] sm:$0xff]  ;;  %vm507_vm0 = vcmask 1044480   ;;  %v426_v9 = vld [vmem:[%s10862_s1] sm:$0xff]  ;;  %vm482_vm1 = vcmask 39936   ;;  %v441_v13 = vld [vmem:[%s10863_s2 + $0x38] sm:$0xff]  ;;  %vm3083_vm2 = vcmask 523264  }
  0x11   : > { %454 = vperm.xlu1 %7337, %v436_v1   ;;  %444 = vperm.xlu0 %7336, %v434_v2   ;;  %s11300_s15 = smov (!%p395_p4, %s7480_s15), 1  ;;  %v439_v10 = vld [vmem:[%s10863_s2 + $0x28] sm:$0xff]  ;;  %v438_v11 = vld [vmem:[%s10863_s2 + $0x20] sm:$0xff]  ;;  %v440_v14 = vld [vmem:[%s10863_s2 + $0x30] sm:$0xff] }
  0x12   : > { %578 = vmatprep.mubr.f32.mxu0 %v7491_v6  ;;  %3830 = vmatprep.mubr.bf16.mxu1 %v10872_v3  ;;  %s7235_s26 = sshll.u32 %s11300_s15, 4  ;;  %v427_v12 = vld [vmem:[%s10862_s1 + $0x8] sm:$0xff]  ;;  %v428_v15 = vld [vmem:[%s10862_s1 + $0x10] sm:$0xff]  ;;  %v907_v17 = vld [vmem:[%s10865_s4] sm:$0xff]  ;;  %s7236_s23 = sshll.u32 %s11300_s15, 12 }
  0x13   : > { %s402_s29 = scalar_lea.vmem %s10861_s0, %s7235_s26  ;;  %v908_v16 = vld [vmem:[%s10865_s4 + $0x8] sm:$0xff]  ;;  %v429_v18 = vld [vmem:[%s10862_s1 + $0x18] sm:$0xff]  ;;  %v909_v20 = vld [vmem:[%s10865_s4 + $0x10] sm:$0xff]  ;;  %s8929_s26 = scalar_lea.vmem %s10871_s10, %s7236_s23 }
  0x14   : > { %v425_v7 = vld [vmem:[%s402_s29 + $0x8] sm:$0x1f]  ;;  %v424_v8 = vld [vmem:[%s402_s29] sm:$0x1f]  ;;  %v910_v19 = vld [vmem:[%s10865_s4 + $0x18] sm:$0xff] }
  0x15   : > { %459 = vperm.xlu1 %7337, %v437_v4   ;;  %449 = vperm.xlu0 %7336, %v435_v5   ;;  %v430_v21 = vld [vmem:[%s10862_s1 + $0x20] sm:$0xff]  ;;  %v912_v22 = vld [vmem:[%s10865_s4 + $0x28] sm:$0xff]  ;;  %v914_v25 = vld [vmem:[%s10865_s4 + $0x38] sm:$0xff] }
  0x16   : > { %6935 = vmatprep.subr.msk.mxu0 %vm507_vm0, %v425_v7  ;;  %v911_v23 = vld [vmem:[%s10865_s4 + $0x20] sm:$0xff]  ;;  %v431_v24 = vld [vmem:[%s10862_s1 + $0x28] sm:$0xff]  ;;  %v913_v26 = vld [vmem:[%s10865_s4 + $0x30] sm:$0xff] }
  0x17   : > { %6936 = vmatpush1.msk.msra.mxu0 %vm507_vm0, %v424_v8  ;;  %v432_v27 = vld [vmem:[%s10862_s1 + $0x30] sm:$0xff]  ;;  %v916_v28 = vld [vmem:[%s10865_s4 + $0x48] sm:$0xff]  ;;  %v915_v29 = vld [vmem:[%s10865_s4 + $0x40] sm:$0xff] }
  0x18   : > { %6937 = vmatmul.mubr.msk.f32.vlgmr.msra.gmra.mrb[0].mxu0 %vm482_vm1, %v426_v9  ;;  %v433_v30 = vld [vmem:[%s10862_s1 + $0x38] sm:$0xff]  ;;  %v917_v32 = vld [vmem:[%s10865_s4 + $0x50] sm:$0xff]  ;;  %v920_v33 = vld [vmem:[%s10865_s4 + $0x68] sm:$0xff] }
  0x19   : > { %469 = vperm.xlu1 %7337, %v439_v10   ;;  %464 = vperm.xlu0 %7336, %v438_v11   ;;  %v918_v31 = vld [vmem:[%s10865_s4 + $0x58] sm:$0xff]  ;;  %v919_v34 = vld [vmem:[%s10865_s4 + $0x60] sm:$0xff]  ;;  %v921_v36 = vld [vmem:[%s10865_s4 + $0x70] sm:$0xff] }
  0x1a   : > { %584 = vmatprep.mubr.f32.mxu0 %v7491_v6  ;;  %v922_v35 = vld [vmem:[%s10865_s4 + $0x78] sm:$0xff]  ;;  %v924_v37 = vld [vmem:[%s10865_s4 + $0x88] sm:$0xff]  ;;  %v923_v38 = vld [vmem:[%s10865_s4 + $0x80] sm:$0xff] }
  0x1b   : > { %v926_v39 = vld [vmem:[%s10865_s4 + $0x98] sm:$0xff]  ;;  %v925_v40 = vld [vmem:[%s10865_s4 + $0x90] sm:$0xff]  ;;  %v928_v41 = vld [vmem:[%s10865_s4 + $0xa8] sm:$0xff] }
  0x1c   : > { %6938 = vmatmul.mubr.msk.f32.gmra.mrb[2].mxu0 %vm482_vm1, %v427_v12  ;;  %v927_v42 = vld [vmem:[%s10865_s4 + $0xa0] sm:$0xff]  ;;  %v930_v43 = vld [vmem:[%s10865_s4 + $0xb8] sm:$0xff]  ;;  %v929_v44 = vld [vmem:[%s10865_s4 + $0xb0] sm:$0xff] }
  0x1d   : > { %479 = vperm.xlu1 %7337, %v441_v13   ;;  %474 = vperm.xlu0 %7336, %v440_v14   ;;  %v932_v45 = vld [vmem:[%s10865_s4 + $0xc8] sm:$0xff]  ;;  %v931_v46 = vld [vmem:[%s10865_s4 + $0xc0] sm:$0xff]  ;;  %v934_v47 = vld [vmem:[%s10865_s4 + $0xd8] sm:$0xff] }
  0x1e   : > { %590 = vmatprep.mubr.f32.mxu0 %v7491_v6  ;;  %v933_v48 = vld [vmem:[%s10865_s4 + $0xd0] sm:$0xff]  ;;  %v936_v49 = vld [vmem:[%s10865_s4 + $0xe8] sm:$0xff]  ;;  %v935_v50 = vld [vmem:[%s10865_s4 + $0xe0] sm:$0xff] }
  0x1f   : > { %v938_v51 = vld [vmem:[%s10865_s4 + $0xf8] sm:$0xff]  ;;  %v937_v52 = vld [vmem:[%s10865_s4 + $0xf0] sm:$0xff]  ;;  %v940_v53 = vld [vmem:[%s10865_s4 + $0x108] sm:$0xff] }
  0x20   : > { %6939 = vmatmul.mubr.msk.f32.gmra.mrb[4].mxu0 %vm482_vm1, %v428_v15  ;;  %v939_v54 = vld [vmem:[%s10865_s4 + $0x100] sm:$0xff]  ;;  %v942_v55 = vld [vmem:[%s10865_s4 + $0x118] sm:$0xff]  ;;  %v941_v56 = vld [vmem:[%s10865_s4 + $0x110] sm:$0xff] }
  0x21   : > { %1170 = vperm.xlu1 %7337, %v908_v16   ;;  %1165 = vperm.xlu0 %7336, %v907_v17   ;;  %v944_v57 = vld [vmem:[%s10865_s4 + $0x128] sm:$0xff]  ;;  %v943_v58 = vld [vmem:[%s10865_s4 + $0x120] sm:$0xff]  ;;  %v946_v59 = vld [vmem:[%s10865_s4 + $0x138] sm:$0xff] }
  0x22   : > { %596 = vmatprep.mubr.f32.mxu0 %v7491_v6  ;;  %v945_v60 = vld [vmem:[%s10865_s4 + $0x130] sm:$0xff]  ;;  %v948_v61 = vld [vmem:[%s10865_s4 + $0x148] sm:$0xff]  ;;  %v947_v62 = vld [vmem:[%s10865_s4 + $0x140] sm:$0xff] }
  0x23   : > { %v950_v63 = vld [vmem:[%s10865_s4 + $0x158] sm:$0xff]  ;;  %v949_v0 = vld [vmem:[%s10865_s4 + $0x150] sm:$0xff]  ;;  %v952_v1 = vld [vmem:[%s10865_s4 + $0x168] sm:$0xff] }
  0x24   : > { %6940 = vmatmul.mubr.msk.f32.gmra.mrb[6].mxu0 %vm482_vm1, %v429_v18  ;;  %v951_v2 = vld [vmem:[%s10865_s4 + $0x160] sm:$0xff]  ;;  %v954_v4 = vld [vmem:[%s10865_s4 + $0x178] sm:$0xff]  ;;  %v953_v5 = vld [vmem:[%s10865_s4 + $0x170] sm:$0xff] }
  0x25   : > { %1180 = vperm.xlu1 %7337, %v910_v19   ;;  %1175 = vperm.xlu0 %7336, %v909_v20   ;;  %v955_v7 = vld [vmem:[%s10865_s4 + $0x180] sm:$0xff]  ;;  %v958_v8 = vld [vmem:[%s10865_s4 + $0x198] sm:$0xff]  ;;  %v957_v9 = vld [vmem:[%s10865_s4 + $0x190] sm:$0xff] }
  0x26   : > { %602 = vmatprep.mubr.f32.mxu0 %v7491_v6  ;;  %v960_v10 = vld [vmem:[%s10865_s4 + $0x1a8] sm:$0xff]  ;;  %v959_v11 = vld [vmem:[%s10865_s4 + $0x1a0] sm:$0xff]  ;;  %v962_v12 = vld [vmem:[%s10865_s4 + $0x1b8] sm:$0xff] }
  0x27   : > { %v961_v13 = vld [vmem:[%s10865_s4 + $0x1b0] sm:$0xff]  ;;  %v964_v14 = vld [vmem:[%s10865_s4 + $0x1c8] sm:$0xff]  ;;  %v963_v15 = vld [vmem:[%s10865_s4 + $0x1c0] sm:$0xff] }
  0x28   : > { %6941 = vmatmul.mubr.msk.f32.gmra.mrb[8].mxu0 %vm482_vm1, %v430_v21  ;;  %v966_v18 = vld [vmem:[%s10865_s4 + $0x1d8] sm:$0xff]  ;;  %v965_v19 = vld [vmem:[%s10865_s4 + $0x1d0] sm:$0xff] }
  0x29   : > { %1190 = vperm.xlu1 %7337, %v912_v22   ;;  %1185 = vperm.xlu0 %7336, %v911_v23   ;;  %v968_v22 = vld [vmem:[%s10865_s4 + $0x1e8] sm:$0xff]  ;;  %v967_v23 = vld [vmem:[%s10865_s4 + $0x1e0] sm:$0xff] }
  0x2a   : > { %608 = vmatprep.mubr.f32.mxu0 %v7491_v6 }
  0x2c   : > { %6942 = vmatmul.mubr.msk.f32.gmra.mrb[10].mxu0 %vm482_vm1, %v431_v24 }
  0x2d   : > { %1200 = vperm.xlu1 %7337, %v914_v25   ;;  %1195 = vperm.xlu0 %7336, %v913_v26   ;;  %v970_v26 = vld [vmem:[%s10865_s4 + $0x1f8] sm:$0xff] }
  0x2e   : > { %614 = vmatprep.mubr.f32.mxu0 %v7491_v6 }
  0x30   : > { %6943 = vmatmul.mubr.msk.f32.gmra.mrb[12].mxu0 %vm482_vm1, %v432_v27  ;;  %v969_v27 = vld [vmem:[%s10865_s4 + $0x1f0] sm:$0xff] }
  0x31   : > { %1210 = vperm.xlu1 %7337, %v916_v28   ;;  %1205 = vperm.xlu0 %7336, %v915_v29  }
  0x32   : > { %620 = vmatprep.mubr.f32.mxu0 %v7491_v6  ;;  %v956_v6 = vld [vmem:[%s10865_s4 + $0x188] sm:$0xff] }
  0x34   : > { %6944 = vmatmul.mubr.msk.f32.gmra.mrb[14].mxu0 %vm482_vm1, %v433_v30  ;;  %v972_v30 = vld [vmem:[%s10865_s4 + $0x208] sm:$0xff] }
  0x35   : > { %1220 = vperm.xlu1 %7337, %v918_v31   ;;  %1215 = vperm.xlu0 %7336, %v917_v32   ;;  %v971_v31 = vld [vmem:[%s10865_s4 + $0x200] sm:$0xff] }
  0x36   : > { %3500 = vmatprep.mubr.bf16.mxu0 %v10872_v3 }
  0x39   : > { %1230 = vperm.xlu1 %7337, %v920_v33   ;;  %1225 = vperm.xlu0 %7336, %v919_v34   ;;  %v974_v34 = vld [vmem:[%s10865_s4 + $0x218] sm:$0xff] }
  0x3d   : > { %1240 = vperm.xlu1 %7337, %v922_v35   ;;  %1235 = vperm.xlu0 %7336, %v921_v36   ;;  %v973_v35 = vld [vmem:[%s10865_s4 + $0x210] sm:$0xff] }
  0x41   : > { %1250 = vperm.xlu1 %7337, %v924_v37   ;;  %1245 = vperm.xlu0 %7336, %v923_v38   ;;  %v976_v38 = vld [vmem:[%s10865_s4 + $0x228] sm:$0xff] }
  0x45   : > { %1260 = vperm.xlu1 %7337, %v926_v39   ;;  %1255 = vperm.xlu0 %7336, %v925_v40   ;;  %v975_v39 = vld [vmem:[%s10865_s4 + $0x220] sm:$0xff] }
  0x49   : > { %1270 = vperm.xlu1 %7337, %v928_v41   ;;  %1265 = vperm.xlu0 %7336, %v927_v42   ;;  %v978_v42 = vld [vmem:[%s10865_s4 + $0x238] sm:$0xff] }
  0x4d   : > { %1280 = vperm.xlu1 %7337, %v930_v43   ;;  %1275 = vperm.xlu0 %7336, %v929_v44   ;;  %v977_v43 = vld [vmem:[%s10865_s4 + $0x230] sm:$0xff] }
  0x51   : > { %1290 = vperm.xlu1 %7337, %v932_v45   ;;  %1285 = vperm.xlu0 %7336, %v931_v46   ;;  %v980_v46 = vld [vmem:[%s10865_s4 + $0x248] sm:$0xff] }
  0x55   : > { %1300 = vperm.xlu1 %7337, %v934_v47   ;;  %1295 = vperm.xlu0 %7336, %v933_v48   ;;  %v979_v47 = vld [vmem:[%s10865_s4 + $0x240] sm:$0xff] }
  0x59   : > { %1310 = vperm.xlu1 %7337, %v936_v49   ;;  %1305 = vperm.xlu0 %7336, %v935_v50   ;;  %v982_v50 = vld [vmem:[%s10865_s4 + $0x258] sm:$0xff] }
  0x5d   : > { %1320 = vperm.xlu1 %7337, %v938_v51   ;;  %1315 = vperm.xlu0 %7336, %v937_v52   ;;  %v981_v51 = vld [vmem:[%s10865_s4 + $0x250] sm:$0xff] }
  0x61   : > { %1330 = vperm.xlu1 %7337, %v940_v53   ;;  %1325 = vperm.xlu0 %7336, %v939_v54   ;;  %v984_v54 = vld [vmem:[%s10865_s4 + $0x268] sm:$0xff] }
  0x65   : > { %1340 = vperm.xlu1 %7337, %v942_v55   ;;  %1335 = vperm.xlu0 %7336, %v941_v56   ;;  %v983_v55 = vld [vmem:[%s10865_s4 + $0x260] sm:$0xff] }
  0x69   : > { %1350 = vperm.xlu1 %7337, %v944_v57   ;;  %1345 = vperm.xlu0 %7336, %v943_v58   ;;  %v986_v58 = vld [vmem:[%s10865_s4 + $0x278] sm:$0xff] }
  0x6d   : > { %1360 = vperm.xlu1 %7337, %v946_v59   ;;  %1355 = vperm.xlu0 %7336, %v945_v60   ;;  %v985_v59 = vld [vmem:[%s10865_s4 + $0x270] sm:$0xff] }
  0x71   : > { %1370 = vperm.xlu1 %7337, %v948_v61   ;;  %1365 = vperm.xlu0 %7336, %v947_v62   ;;  %v988_v62 = vld [vmem:[%s10865_s4 + $0x288] sm:$0xff] }
  0x75   : > { %1380 = vperm.xlu1 %7337, %v950_v63   ;;  %1375 = vperm.xlu0 %7336, %v949_v0   ;;  %v987_v63 = vld [vmem:[%s10865_s4 + $0x280] sm:$0xff] }
  0x79   : > { %1390 = vperm.xlu1 %7337, %v952_v1   ;;  %1385 = vperm.xlu0 %7336, %v951_v2   ;;  %v990_v2 = vld [vmem:[%s10865_s4 + $0x298] sm:$0xff] }
  0x7d   : > { %1400 = vperm.xlu1 %7337, %v954_v4   ;;  %1395 = vperm.xlu0 %7336, %v953_v5   ;;  %v989_v4 = vld [vmem:[%s10865_s4 + $0x290] sm:$0xff] }
  0x81   : > { %1410 = vperm.xlu1 %7337, %v956_v6   ;;  %1405 = vperm.xlu0 %7336, %v955_v7   ;;  %v992_v7 = vld [vmem:[%s10865_s4 + $0x2a8] sm:$0xff] }
  0x85   : > { %1420 = vperm.xlu1 %7337, %v958_v8   ;;  %1415 = vperm.xlu0 %7336, %v957_v9   ;;  %v991_v8 = vld [vmem:[%s10865_s4 + $0x2a0] sm:$0xff] }
  0x89   : > { %1430 = vperm.xlu1 %7337, %v960_v10   ;;  %1425 = vperm.xlu0 %7336, %v959_v11   ;;  %v994_v11 = vld [vmem:[%s10865_s4 + $0x2b8] sm:$0xff] }
  0x8d   : > { %1440 = vperm.xlu1 %7337, %v962_v12   ;;  %1435 = vperm.xlu0 %7336, %v961_v13   ;;  %v993_v12 = vld [vmem:[%s10865_s4 + $0x2b0] sm:$0xff] }
  0x90   : > { %v7817_v16 = vpop.permute.xlu1 %454  ;;  %v7819_v17 = vpop.permute.xlu0 %444 }
  0x91   : > { %1450 = vperm.xlu1 %7337, %v964_v14   ;;  %1445 = vperm.xlu0 %7336, %v963_v15   ;;  %v996_v15 = vld [vmem:[%s10865_s4 + $0x2c8] sm:$0xff] }
  0x94   : > { %v7827_v20 = vpop.permute.xlu1 %459  ;;  %v7829_v21 = vpop.permute.xlu0 %449 }
  0x95   : > { %1460 = vperm.xlu1 %7337, %v966_v18   ;;  %1455 = vperm.xlu0 %7336, %v965_v19   ;;  %v995_v18 = vld [vmem:[%s10865_s4 + $0x2c0] sm:$0xff] }
  0x98   : > { %v7837_v24 = vpop.permute.xlu1 %469  ;;  %v7839_v25 = vpop.permute.xlu0 %464 }
  0x99   : > { %1470 = vperm.xlu1 %7337, %v968_v22   ;;  %1465 = vperm.xlu0 %7336, %v967_v23   ;;  %v998_v23 = vld [vmem:[%s10865_s4 + $0x2d8] sm:$0xff] }
  0x9c   : > { %v7847_v28 = vpop.permute.xlu1 %479  ;;  %v7849_v29 = vpop.permute.xlu0 %474 }
  0x9d   : > { %1480 = vperm.xlu1 %7337, %v970_v26   ;;  %1475 = vperm.xlu0 %7336, %v969_v27   ;;  %v997_v26 = vld [vmem:[%s10865_s4 + $0x2d0] sm:$0xff] }
  0xa0   : > { %v7857_v32 = vpop.permute.xlu1 %1170  ;;  %v7859_v33 = vpop.permute.xlu0 %1165 }
  0xa1   : > { %1490 = vperm.xlu1 %7337, %v972_v30   ;;  %1485 = vperm.xlu0 %7336, %v971_v31   ;;  %v1000_v31 = vld [vmem:[%s10865_s4 + $0x2e8] sm:$0xff] }
  0xa4   : > { %v7867_v36 = vpop.permute.xlu1 %1180  ;;  %v7869_v37 = vpop.permute.xlu0 %1175 }
  0xa5   : > { %1500 = vperm.xlu1 %7337, %v974_v34   ;;  %1495 = vperm.xlu0 %7336, %v973_v35   ;;  %v999_v34 = vld [vmem:[%s10865_s4 + $0x2e0] sm:$0xff] }
  0xa8   : > { %v7877_v40 = vpop.permute.xlu1 %1190  ;;  %v7879_v41 = vpop.permute.xlu0 %1185 }
  0xa9   : > { %1510 = vperm.xlu1 %7337, %v976_v38   ;;  %1505 = vperm.xlu0 %7336, %v975_v39   ;;  %v1002_v39 = vld [vmem:[%s10865_s4 + $0x2f8] sm:$0xff] }
  0xac   : > { %v7887_v44 = vpop.permute.xlu1 %1200  ;;  %v7889_v45 = vpop.permute.xlu0 %1195 }
  0xad   : > { %1520 = vperm.xlu1 %7337, %v978_v42   ;;  %1515 = vperm.xlu0 %7336, %v977_v43   ;;  %v1001_v42 = vld [vmem:[%s10865_s4 + $0x2f0] sm:$0xff] }
  0xb0   : > { %v7897_v48 = vpop.permute.xlu1 %1210  ;;  %v7899_v49 = vpop.permute.xlu0 %1205 }
  0xb1   : > { %1530 = vperm.xlu1 %7337, %v980_v46   ;;  %1525 = vperm.xlu0 %7336, %v979_v47   ;;  %v1004_v47 = vld [vmem:[%s10865_s4 + $0x308] sm:$0xff] }
  0xb4   : > { %v7907_v52 = vpop.permute.xlu1 %1220  ;;  %v7909_v53 = vpop.permute.xlu0 %1215 }
  0xb5   : > { %1540 = vperm.xlu1 %7337, %v982_v50   ;;  %1535 = vperm.xlu0 %7336, %v981_v51   ;;  %v1003_v50 = vld [vmem:[%s10865_s4 + $0x300] sm:$0xff] }
  0xb8   : > { %v7917_v56 = vpop.permute.xlu1 %1230  ;;  %v7919_v57 = vpop.permute.xlu0 %1225 }
  0xb9   : > { %1550 = vperm.xlu1 %7337, %v984_v54   ;;  %1545 = vperm.xlu0 %7336, %v983_v55   ;;  %v1006_v55 = vld [vmem:[%s10865_s4 + $0x318] sm:$0xff] }
  0xbc   : > { %v7927_v60 = vpop.permute.xlu1 %1240  ;;  %v7929_v61 = vpop.permute.xlu0 %1235 }
  0xbd   : > { %1560 = vperm.xlu1 %7337, %v986_v58   ;;  %1555 = vperm.xlu0 %7336, %v985_v59   ;;  %v1005_v58 = vld [vmem:[%s10865_s4 + $0x310] sm:$0xff] }
  0xc0   : > { %v7937_v0 = vpop.permute.xlu1 %1250  ;;  %v7939_v1 = vpop.permute.xlu0 %1245 }
  0xc1   : > { %1570 = vperm.xlu1 %7337, %v988_v62   ;;  %1565 = vperm.xlu0 %7336, %v987_v63   ;;  %v1008_v63 = vld [vmem:[%s10865_s4 + $0x328] sm:$0xff] }
  0xc4   : > { %v7947_v5 = vpop.permute.xlu1 %1260  ;;  %v7949_v6 = vpop.permute.xlu0 %1255 }
  0xc5   : > { %1580 = vperm.xlu1 %7337, %v990_v2   ;;  %1575 = vperm.xlu0 %7336, %v989_v4   ;;  %v1007_v2 = vld [vmem:[%s10865_s4 + $0x320] sm:$0xff] }
  0xc8   : > { %v7957_v9 = vpop.permute.xlu1 %1270  ;;  %v7959_v10 = vpop.permute.xlu0 %1265 }
  0xc9   : > { %1590 = vperm.xlu1 %7337, %v992_v7   ;;  %1585 = vperm.xlu0 %7336, %v991_v8   ;;  %v1010_v8 = vld [vmem:[%s10865_s4 + $0x338] sm:$0xff] }
  0xcc   : > { %v7967_v13 = vpop.permute.xlu1 %1280  ;;  %v7969_v14 = vpop.permute.xlu0 %1275 }
  0xcd   : > { %10994 = vst [vmem:[#allocation3_spill] sm:$0xff] %v7967_v13  ;;  %1600 = vperm.xlu1 %7337, %v994_v11   ;;  %1595 = vperm.xlu0 %7336, %v993_v12   ;;  %v1009_v11 = vld [vmem:[%s10865_s4 + $0x330] sm:$0xff] }
  0xd0   : > { %v7977_v19 = vpop.permute.xlu1 %1290  ;;  %v7979_v22 = vpop.permute.xlu0 %1285 }
  0xd1   : > { %10995 = vst [vmem:[#allocation4_spill] sm:$0xff] %v7977_v19  ;;  %10996 = vst [vmem:[#allocation5_spill] sm:$0xff] %v7979_v22  ;;  %1610 = vperm.xlu1 %7337, %v996_v15   ;;  %1605 = vperm.xlu0 %7336, %v995_v18  }
  0xd4   : > { %v7987_v27 = vpop.permute.xlu1 %1300  ;;  %v7989_v30 = vpop.permute.xlu0 %1295 }
  0xd5   : > { %10997 = vst [vmem:[#allocation6_spill] sm:$0xff] %v7987_v27  ;;  %10998 = vst [vmem:[#allocation7_spill] sm:$0xff] %v7989_v30  ;;  %1620 = vperm.xlu1 %7337, %v998_v23   ;;  %1615 = vperm.xlu0 %7336, %v997_v26  }
  0xd8   : > { %v7997_v35 = vpop.permute.xlu1 %1310  ;;  %v7999_v38 = vpop.permute.xlu0 %1305 }
  0xd9   : > { %10999 = vst [vmem:[#allocation8_spill] sm:$0xff] %v7997_v35  ;;  %11000 = vst [vmem:[#allocation9_spill] sm:$0xff] %v7999_v38  ;;  %1630 = vperm.xlu1 %7337, %v1000_v31   ;;  %1625 = vperm.xlu0 %7336, %v999_v34   ;;  %v1012_v31 = vld [vmem:[%s10865_s4 + $0x348] sm:$0xff]  ;;  %v1011_v34 = vld [vmem:[%s10865_s4 + $0x340] sm:$0xff] }
  0xda   : > { %v1065_v35 = vld [vmem:[%s10865_s4 + $0x4f0] sm:$0xff] }
  0xdc   : > { %v8007_v43 = vpop.permute.xlu1 %1320  ;;  %v8009_v46 = vpop.permute.xlu0 %1315 }
  0xdd   : > { %11001 = vst [vmem:[#allocation10_spill] sm:$0xff] %v8007_v43  ;;  %11002 = vst [vmem:[#allocation11_spill] sm:$0xff] %v8009_v46  ;;  %1640 = vperm.xlu1 %7337, %v1002_v39   ;;  %1635 = vperm.xlu0 %7336, %v1001_v42   ;;  %v7356_v46 = vld [vmem:[%s10864_s3 + $0x48] sm:$0xff]  }
  0xe0   : > { %v8017_v51 = vpop.permute.xlu1 %1330  ;;  %v8019_v54 = vpop.permute.xlu0 %1325 }
  0xe1   : > { %11003 = vst [vmem:[#allocation12_spill] sm:$0xff] %v8017_v51  ;;  %11004 = vst [vmem:[#allocation13_spill] sm:$0xff] %v8019_v54  ;;  %1650 = vperm.xlu1 %7337, %v1004_v47   ;;  %1645 = vperm.xlu0 %7336, %v1003_v50   ;;  %v1061_v51 = vld [vmem:[%s10865_s4 + $0x4d0] sm:$0xff] }
  0xe4   : > { %v8027_v59 = vpop.permute.xlu1 %1340  ;;  %v8029_v62 = vpop.permute.xlu0 %1335 }
  0xe5   : > { %11005 = vst [vmem:[#allocation14_spill] sm:$0xff] %v8027_v59  ;;  %11006 = vst [vmem:[#allocation15_spill] sm:$0xff] %v8029_v62  ;;  %1660 = vperm.xlu1 %7337, %v1006_v55   ;;  %1655 = vperm.xlu0 %7336, %v1005_v58   ;;  %v7354_v62 = vld [vmem:[%s10864_s3 + $0x40] sm:$0xff]  }
  0xe8   : > { %v8037_v4 = vpop.permute.xlu1 %1350  ;;  %v8039_v7 = vpop.permute.xlu0 %1345 }
  0xe9   : > { %11007 = vst [vmem:[#allocation16_spill] sm:$0xff] %v8037_v4  ;;  %11008 = vst [vmem:[#allocation17_spill] sm:$0xff] %v8039_v7  ;;  %1670 = vperm.xlu1 %7337, %v1008_v63   ;;  %1665 = vperm.xlu0 %7336, %v1007_v2   ;;  %v1057_v4 = vld [vmem:[%s10865_s4 + $0x4b0] sm:$0xff] }
  0xeb   : > { %v580_v12 = vpop.f32.mrb[0].mxu0 }
  0xec   : > { %v8047_v15 = vpop.permute.xlu1 %1360  ;;  %v8049_v18 = vpop.permute.xlu0 %1355  ;;  %v581_v26 = vadd.f32 %v580_v12, %v7819_v17 }
  0xed   : > { %11009 = vst [vmem:[#allocation18_spill] sm:$0xff] %v8047_v15  ;;  %11010 = vst [vmem:[#allocation19_spill] sm:$0xff] %v8049_v18  ;;  %v582_v23 = vpop.f32.mrb[1].mxu0  ;;  %1680 = vperm.xlu1 %7337, %v1010_v8   ;;  %1675 = vperm.xlu0 %7336, %v1009_v11   ;;  %v1014_v11 = vld [vmem:[%s10865_s4 + $0x358] sm:$0xff] }
  0xee   : > { %v583_v42 = vadd.f32 %v582_v23, %v7819_v17  ;;  %v627_v63 = vmax.f32 %v581_v26, 0.0  ;;  %v1013_v17 = vld [vmem:[%s10865_s4 + $0x350] sm:$0xff]  ;;  %v7352_v18 = vld [vmem:[%s10864_s3 + $0x38] sm:$0xff]  }
  0xef   : > { %v586_v39 = vpop.f32.mrb[2].mxu0 }
  0xf0   : > { %v587_v47 = vadd.f32 %v586_v39, %v7829_v21  ;;  %v8060_v50 = vpop.permute.xlu1 %1370  ;;  %v8062_v55 = vpop.permute.xlu0 %1365  ;;  %v628_v23 = vmax.f32 %v583_v42, 0.0  ;;  %v1015_v42 = vld [vmem:[%s10865_s4 + $0x360] sm:$0xff] }
  0xf1   : > { %11011 = vst [vmem:[#allocation20_spill] sm:$0xff] %v8060_v50  ;;  %11012 = vst [vmem:[#allocation21_spill] sm:$0xff] %v8062_v55  ;;  %v588_v58 = vpop.f32.mrb[3].mxu0  ;;  %1690 = vperm.xlu1 %7337, %v1012_v31   ;;  %1685 = vperm.xlu0 %7336, %v1011_v34  }
  0xf2   : > { %v629_v2 = vmax.f32 %v587_v47, 0.0  ;;  %v589_v8 = vadd.f32 %v588_v58, %v7829_v21  ;;  %v1016_v58 = vld [vmem:[%s10865_s4 + $0x368] sm:$0xff] }
  0xf3   : > { %v592_v12 = vpop.f32.mrb[4].mxu0 }
  0xf4   : > { %v899_v39 = vpack.c.bf16 %v629_v2, %v627_v63  ;;  %v630_v3 = vmax.f32 %v589_v8, 0.0  ;;  %v8071_v50 = vpop.permute.xlu1 %1380  ;;  %v8073_v31 = vpop.permute.xlu0 %1375  ;;  %v593_v34 = vadd.f32 %v592_v12, %v7817_v16 }
  0xf5   : > { %11013 = vst [vmem:[#allocation22_spill] sm:$0xff] %v8071_v50  ;;  %11014 = vst [vmem:[#allocation23_spill] sm:$0xff] %v8073_v31  ;;  %v594_v26 = vpop.f32.mrb[5].mxu0  ;;  %1700 = vperm.xlu1 %7337, %v1014_v11   ;;  %1695 = vperm.xlu0 %7336, %v1013_v17   ;;  %v1053_v31 = vld [vmem:[%s10865_s4 + $0x490] sm:$0xff] }
  0xf6   : > { %v900_v21 = vpack.c.bf16 %v630_v3, %v628_v23  ;;  %v595_v63 = vadd.f32 %v594_v26, %v7817_v16  ;;  %v631_v17 = vmax.f32 %v593_v34, 0.0  ;;  %v1018_v16 = vld [vmem:[%s10865_s4 + $0x378] sm:$0xff]  ;;  %v1017_v26 = vld [vmem:[%s10865_s4 + $0x370] sm:$0xff] }
  0xf7   : > { %v598_v47 = vpop.f32.mrb[6].mxu0 }
  0xf8   : > { %v599_v2 = vadd.f32 %v598_v47, %v7827_v20  ;;  %3468 = vmatprep.subr.bf16.mxu0 %v900_v21  ;;  %7237 = vmatprep.subr.bf16.mxu1 %v900_v21  ;;  %v8084_v8 = vpop.permute.xlu1 %1390  ;;  %v8086_v3 = vpop.permute.xlu0 %1385  ;;  %v632_v21 = vmax.f32 %v595_v63, 0.0  ;;  %v1019_v63 = vld [vmem:[%s10865_s4 + $0x380] sm:$0xff] }
  0xf9   : > { %11015 = vst [vmem:[#allocation24_spill] sm:$0xff] %v8084_v8  ;;  %11016 = vst [vmem:[#allocation25_spill] sm:$0xff] %v8086_v3  ;;  %v600_v11 = vpop.f32.mrb[7].mxu0  ;;  %3469 = vmatpush1.bf16.msra.mxu0 %v899_v39  ;;  %7241 = vmatpush1.bf16.msra.mxu1 %v899_v39 }
  0xfa   : > { %v633_v12 = vmax.f32 %v599_v2, 0.0  ;;  %v601_v23 = vadd.f32 %v600_v11, %v7827_v20  ;;  %1710 = vperm.xlu1 %7337, %v1016_v58   ;;  %1705 = vperm.xlu0 %7336, %v1015_v42   ;;  %v1020_v2 = vld [vmem:[%s10865_s4 + $0x388] sm:$0xff] }
  0xfb   : > { %v604_v50 = vpop.f32.mrb[8].mxu0 }
  0xfc   : > { %v901_v47 = vpack.c.bf16 %v633_v12, %v631_v17  ;;  %v634_v8 = vmax.f32 %v601_v23, 0.0  ;;  %v8095_v3 = vpop.permute.xlu1 %1400  ;;  %v8097_v39 = vpop.permute.xlu0 %1395  ;;  %v605_v58 = vadd.f32 %v604_v50, %v7839_v25 }
  0xfd   : > { %11017 = vst [vmem:[#allocation26_spill] sm:$0xff] %v8095_v3  ;;  %11018 = vst [vmem:[#allocation27_spill] sm:$0xff] %v8097_v39  ;;  %v606_v34 = vpop.f32.mrb[9].mxu0  ;;  %v7350_v39 = vld [vmem:[%s10864_s3 + $0x30] sm:$0xff]  }
  0xfe   : > { %v902_v20 = vpack.c.bf16 %v634_v8, %v632_v21  ;;  %1720 = vperm.xlu1 %7337, %v1018_v16   ;;  %1715 = vperm.xlu0 %7336, %v1017_v26   ;;  %v607_v11 = vadd.f32 %v606_v34, %v7839_v25  ;;  %v635_v23 = vmax.f32 %v605_v58, 0.0  ;;  %v1022_v25 = vld [vmem:[%s10865_s4 + $0x398] sm:$0xff]  ;;  %v1021_v34 = vld [vmem:[%s10865_s4 + $0x390] sm:$0xff] }
  0xff   : > { %v610_v42 = vpop.f32.mrb[10].mxu0 }
 0x100   : > { %v611_v17 = vadd.f32 %v610_v42, %v7837_v24  ;;  %3470 = vmatprep.subr.bf16.mxu0 %v902_v20  ;;  %7238 = vmatprep.subr.bf16.mxu1 %v902_v20  ;;  %v8108_v8 = vpop.permute.xlu1 %1410  ;;  %v8110_v50 = vpop.permute.xlu0 %1405  ;;  %v636_v20 = vmax.f32 %v607_v11, 0.0  ;;  %v1023_v11 = vld [vmem:[%s10865_s4 + $0x3a0] sm:$0xff] }
 0x101   : > { %11019 = vst [vmem:[#allocation28_spill] sm:$0xff] %v8108_v8  ;;  %11020 = vst [vmem:[#allocation29_spill] sm:$0xff] %v8110_v50  ;;  %v612_v12 = vpop.f32.mrb[11].mxu0  ;;  %3471 = vmatpush1.bf16.msra.mxu0 %v901_v47  ;;  %7242 = vmatpush1.bf16.msra.mxu1 %v901_v47 }
 0x102   : > { %v637_v16 = vmax.f32 %v611_v17, 0.0  ;;  %v613_v26 = vadd.f32 %v612_v12, %v7837_v24  ;;  %1730 = vperm.xlu1 %7337, %v1020_v2   ;;  %1725 = vperm.xlu0 %7336, %v1019_v63   ;;  %v1024_v17 = vld [vmem:[%s10865_s4 + $0x3a8] sm:$0xff] }
 0x103   : > { %v616_v21 = vpop.f32.mrb[12].mxu0 }
 0x104   : > { %v903_v42 = vpack.c.bf16 %v637_v16, %v635_v23  ;;  %v638_v8 = vmax.f32 %v613_v26, 0.0  ;;  %v8119_v50 = vpop.permute.xlu1 %1420  ;;  %v8121_v47 = vpop.permute.xlu0 %1415  ;;  %v617_v2 = vadd.f32 %v616_v21, %v7849_v29 }
 0x105   : > { %11021 = vst [vmem:[#allocation30_spill] sm:$0xff] %v8119_v50  ;;  %11022 = vst [vmem:[#allocation31_spill] sm:$0xff] %v8121_v47  ;;  %v618_v58 = vpop.f32.mrb[13].mxu0  ;;  %v1049_v50 = vld [vmem:[%s10865_s4 + $0x470] sm:$0xff] }
 0x106   : > { %v904_v24 = vpack.c.bf16 %v638_v8, %v636_v20  ;;  %1740 = vperm.xlu1 %7337, %v1022_v25   ;;  %1735 = vperm.xlu0 %7336, %v1021_v34   ;;  %v619_v12 = vadd.f32 %v618_v58, %v7849_v29  ;;  %v639_v21 = vmax.f32 %v617_v2, 0.0  ;;  %v1026_v29 = vld [vmem:[%s10865_s4 + $0x3b8] sm:$0xff]  ;;  %v1025_v20 = vld [vmem:[%s10865_s4 + $0x3b0] sm:$0xff] }
 0x107   : > { %v622_v63 = vpop.f32.mrb[14].mxu0 }
 0x108   : > { %v623_v23 = vadd.f32 %v622_v63, %v7847_v28  ;;  %3472 = vmatprep.subr.bf16.mxu0 %v904_v24  ;;  %7239 = vmatprep.subr.bf16.mxu1 %v904_v24  ;;  %v8132_v8 = vpop.permute.xlu1 %1430  ;;  %v8134_v16 = vpop.permute.xlu0 %1425  ;;  %v640_v58 = vmax.f32 %v619_v12, 0.0 }
 0x109   : > { %11023 = vst [vmem:[#allocation32_spill] sm:$0xff] %v8132_v8  ;;  %11024 = vst [vmem:[#allocation33_spill] sm:$0xff] %v8134_v16  ;;  %v624_v26 = vpop.f32.mrb[15].mxu0  ;;  %3473 = vmatpush1.bf16.msra.mxu0 %v903_v42  ;;  %7243 = vmatpush1.bf16.msra.mxu1 %v903_v42  ;;  %v7348_v16 = vld [vmem:[%s10864_s3 + $0x28] sm:$0xff]  }
 0x10a   : > { %v641_v25 = vmax.f32 %v623_v23, 0.0  ;;  %v625_v34 = vadd.f32 %v624_v26, %v7847_v28  ;;  %1750 = vperm.xlu1 %7337, %v1024_v17   ;;  %1745 = vperm.xlu0 %7336, %v1023_v11   ;;  %v1028_v28 = vld [vmem:[%s10865_s4 + $0x3c8] sm:$0xff]  ;;  %v1027_v17 = vld [vmem:[%s10865_s4 + $0x3c0] sm:$0xff] }
 0x10b   : > { %v7338_v23 = vld [vmem:[%s10864_s3] sm:$0xff]   ;;  %v7339_v26 = vld [vmem:[%s10864_s3 + $0x108] sm:$0xff]  }
 0x10c   : > { %v905_v24 = vpack.c.bf16 %v641_v25, %v639_v21  ;;  %v642_v63 = vmax.f32 %v625_v34, 0.0  ;;  %v8143_v8 = vpop.permute.xlu1 %1440  ;;  %v8145_v42 = vpop.permute.xlu0 %1435  ;;  %v1030_v21 = vld [vmem:[%s10865_s4 + $0x3d8] sm:$0xff]  ;;  %v1029_v25 = vld [vmem:[%s10865_s4 + $0x3d0] sm:$0xff] }
 0x10d   : > { %11025 = vst [vmem:[#allocation34_spill] sm:$0xff] %v8143_v8  ;;  %11026 = vst [vmem:[#allocation35_spill] sm:$0xff] %v8145_v42 }
 0x10e   : > { %v906_v2 = vpack.c.bf16 %v642_v63, %v640_v58  ;;  %1760 = vperm.xlu1 %7337, %v1026_v29   ;;  %1755 = vperm.xlu0 %7336, %v1025_v20   ;;  %v11031_v20 = vmov 0   ;;  %v1032_v58 = vld [vmem:[%s10865_s4 + $0x3e8] sm:$0xff] }
 0x110   : > { %3474 = vmatprep.subr.bf16.mxu0 %v906_v2  ;;  %7240 = vmatprep.subr.bf16.mxu1 %v906_v2  ;;  %v8153_v11 = vpop.permute.xlu1 %1450  ;;  %v8155_v12 = vpop.permute.xlu0 %1445 }
 0x111   : > { %11027 = vst [vmem:[#allocation36_spill] sm:$0xff] %v8153_v11  ;;  %11028 = vst [vmem:[#allocation37_spill] sm:$0xff] %v8155_v12  ;;  %3475 = vmatpush1.bf16.msra.mxu0 %v905_v24  ;;  %7244 = vmatpush1.bf16.msra.mxu1 %v905_v24  ;;  %v1031_v24 = vld [vmem:[%s10865_s4 + $0x3e0] sm:$0xff]  ;;  %v1045_v12 = vld [vmem:[%s10865_s4 + $0x450] sm:$0xff] }
 0x112   : > { %1770 = vperm.xlu1 %7337, %v1028_v28   ;;  %1765 = vperm.xlu0 %7336, %v1027_v17   ;;  %v7340_v28 = vld [vmem:[%s10864_s3 + $0x8] sm:$0xff]   ;;  %v7341_v17 = vld [vmem:[%s10864_s3 + $0x110] sm:$0xff]   ;;  %v7346_v11 = vld [vmem:[%s10864_s3 + $0x20] sm:$0xff]  }
 0x114   : > { %7073 = vmatmul.mubr.msk.bf16.vlgmr.msra.gmra.mrb[16].mxu0 %vm3083_vm2, %v7338_v23  ;;  %7106 = vmatmul.mubr.msk.bf16.vlgmr.msra.gmra.mrb[0].mxu1 %vm3083_vm2, %v7339_v26  ;;  %v8171_v34 = vpop.permute.xlu1 %1460  ;;  %v8173_v29 = vpop.permute.xlu0 %1455  ;;  %v1034_v23 = vld [vmem:[%s10865_s4 + $0x3f8] sm:$0xff]  ;;  %v1033_v26 = vld [vmem:[%s10865_s4 + $0x3f0] sm:$0xff] }
 0x115   : > { %11029 = vst [vmem:[#allocation38_spill] sm:$0xff] %v8171_v34  ;;  %11030 = vst [vmem:[#allocation39_spill] sm:$0xff] %v8173_v29  ;;  %3510 = vmatprep.mubr.bf16.mxu0 %v11031_v20  ;;  %3840 = vmatprep.mubr.bf16.mxu1 %v11031_v20 }
 0x116   : > { %1780 = vperm.xlu1 %7337, %v1030_v21   ;;  %1775 = vperm.xlu0 %7336, %v1029_v25  }
 0x118   : > { %v8183_v63 = vpop.permute.xlu1 %1470  ;;  %v8185_v2 = vpop.permute.xlu0 %1465 }
 0x119   : > { %11032 = vst [vmem:[#allocation40_spill] sm:$0xff] %v8183_v63  ;;  %11033 = vst [vmem:[#allocation41_spill] sm:$0xff] %v8185_v2  ;;  %v7344_v63 = vld [vmem:[%s10864_s3 + $0x18] sm:$0xff]   ;;  %v1041_v2 = vld [vmem:[%s10865_s4 + $0x430] sm:$0xff] }
 0x11a   : > { %1790 = vperm.xlu1 %7337, %v1032_v58   ;;  %1785 = vperm.xlu0 %7336, %v1031_v24   ;;  %v1036_v58 = vld [vmem:[%s10865_s4 + $0x408] sm:$0xff]  ;;  %v1035_v24 = vld [vmem:[%s10865_s4 + $0x400] sm:$0xff] }
 0x11c   : > { %7074 = vmatmul.mubr.msk.bf16.gmra.mrb[20].mxu0 %vm3083_vm2, %v7340_v28  ;;  %7107 = vmatmul.mubr.msk.bf16.gmra.mrb[4].mxu1 %vm3083_vm2, %v7341_v17  ;;  %v8201_v21 = vpop.permute.xlu1 %1480  ;;  %v8203_v25 = vpop.permute.xlu0 %1475 }
 0x11d   : > { %11034 = vst [vmem:[#allocation42_spill] sm:$0xff] %v8201_v21  ;;  %11035 = vst [vmem:[#allocation43_spill] sm:$0xff] %v8203_v25  ;;  %3520 = vmatprep.mubr.bf16.mxu0 %v11031_v20  ;;  %3850 = vmatprep.mubr.bf16.mxu1 %v11031_v20  ;;  %v7342_v21 = vld [vmem:[%s10864_s3 + $0x10] sm:$0xff]  }
 0x11e   : > { %1800 = vperm.xlu1 %7337, %v1034_v23   ;;  %1795 = vperm.xlu0 %7336, %v1033_v26   ;;  %v7343_v23 = vld [vmem:[%s10864_s3 + $0x118] sm:$0xff]  }
 0x11f   : > { %v1038_v26 = vld [vmem:[%s10865_s4 + $0x418] sm:$0xff] }
 0x120   : > { %v8213_v28 = vpop.permute.xlu1 %1490  ;;  %v8215_v17 = vpop.permute.xlu0 %1485 }
 0x121   : > { %11036 = vst [vmem:[#allocation44_spill] sm:$0xff] %v8213_v28  ;;  %11037 = vst [vmem:[#allocation45_spill] sm:$0xff] %v8215_v17  ;;  %v1037_v28 = vld [vmem:[%s10865_s4 + $0x410] sm:$0xff] }
 0x122   : > { %1810 = vperm.xlu1 %7337, %v1036_v58   ;;  %1805 = vperm.xlu0 %7336, %v1035_v24   ;;  %v1040_v58 = vld [vmem:[%s10865_s4 + $0x428] sm:$0xff] }
 0x124   : > { %7075 = vmatmul.mubr.msk.bf16.gmra.mrb[24].mxu0 %vm3083_vm2, %v7342_v21  ;;  %7108 = vmatmul.mubr.msk.bf16.gmra.mrb[8].mxu1 %vm3083_vm2, %v7343_v23  ;;  %v8231_v17 = vpop.permute.xlu1 %1500  ;;  %v8233_v25 = vpop.permute.xlu0 %1495  ;;  %v1039_v21 = vld [vmem:[%s10865_s4 + $0x420] sm:$0xff] }
 0x125   : > { %3530 = vmatprep.mubr.bf16.mxu0 %v11031_v20  ;;  %3860 = vmatprep.mubr.bf16.mxu1 %v11031_v20 }
 0x126   : > { %1820 = vperm.xlu1 %7337, %v1038_v26   ;;  %1815 = vperm.xlu0 %7336, %v1037_v28   ;;  %v7345_v28 = vld [vmem:[%s10864_s3 + $0x120] sm:$0xff]   ;;  %v1042_v26 = vld [vmem:[%s10865_s4 + $0x438] sm:$0xff] }
 0x128   : > { %v8243_v24 = vpop.permute.xlu1 %1510  ;;  %v8245_v23 = vpop.permute.xlu0 %1505 }
 0x12a   : > { %1830 = vperm.xlu1 %7337, %v1040_v58   ;;  %1825 = vperm.xlu0 %7336, %v1039_v21   ;;  %v1044_v58 = vld [vmem:[%s10865_s4 + $0x448] sm:$0xff] }
 0x12c   : > { %7076 = vmatmul.mubr.msk.bf16.gmra.mrb[28].mxu0 %vm3083_vm2, %v7344_v63  ;;  %7109 = vmatmul.mubr.msk.bf16.gmra.mrb[12].mxu1 %vm3083_vm2, %v7345_v28  ;;  %v8261_v34 = vpop.permute.xlu1 %1520  ;;  %v8263_v29 = vpop.permute.xlu0 %1515  ;;  %v1043_v63 = vld [vmem:[%s10865_s4 + $0x440] sm:$0xff] }
 0x12d   : > { %3540 = vmatprep.mubr.bf16.mxu0 %v11031_v20  ;;  %3870 = vmatprep.mubr.bf16.mxu1 %v11031_v20 }
 0x12e   : > { %1840 = vperm.xlu1 %7337, %v1042_v26   ;;  %1835 = vperm.xlu0 %7336, %v1041_v2   ;;  %v7347_v2 = vld [vmem:[%s10864_s3 + $0x128] sm:$0xff]   ;;  %v1046_v26 = vld [vmem:[%s10865_s4 + $0x458] sm:$0xff] }
 0x130   : > { %v8273_v21 = vpop.permute.xlu1 %1530  ;;  %v8275_v28 = vpop.permute.xlu0 %1525 }
 0x132   : > { %1850 = vperm.xlu1 %7337, %v1044_v58   ;;  %1845 = vperm.xlu0 %7336, %v1043_v63   ;;  %v1048_v58 = vld [vmem:[%s10865_s4 + $0x468] sm:$0xff] }
 0x134   : > { %7077 = vmatmul.mubr.msk.bf16.gmra.mrb[32].mxu0 %vm3083_vm2, %v7346_v11  ;;  %7110 = vmatmul.mubr.msk.bf16.gmra.mrb[16].mxu1 %vm3083_vm2, %v7347_v2  ;;  %v8291_v8 = vpop.permute.xlu1 %1540  ;;  %v8293_v42 = vpop.permute.xlu0 %1535  ;;  %v1047_v11 = vld [vmem:[%s10865_s4 + $0x460] sm:$0xff] }
 0x135   : > { %3550 = vmatprep.mubr.bf16.mxu0 %v11031_v20  ;;  %3880 = vmatprep.mubr.bf16.mxu1 %v11031_v20 }
 0x136   : > { %1860 = vperm.xlu1 %7337, %v1046_v26   ;;  %1855 = vperm.xlu0 %7336, %v1045_v12   ;;  %v7349_v12 = vld [vmem:[%s10864_s3 + $0x130] sm:$0xff]   ;;  %v1050_v26 = vld [vmem:[%s10865_s4 + $0x478] sm:$0xff] }
 0x138   : > { %v8303_v63 = vpop.permute.xlu1 %1550  ;;  %v8305_v2 = vpop.permute.xlu0 %1545 }
 0x13a   : > { %1870 = vperm.xlu1 %7337, %v1048_v58   ;;  %1865 = vperm.xlu0 %7336, %v1047_v11   ;;  %v1052_v58 = vld [vmem:[%s10865_s4 + $0x488] sm:$0xff] }
 0x13c   : > { %7078 = vmatmul.mubr.msk.bf16.gmra.mrb[36].mxu0 %vm3083_vm2, %v7348_v16  ;;  %7111 = vmatmul.mubr.msk.bf16.gmra.mrb[20].mxu1 %vm3083_vm2, %v7349_v12  ;;  %v8321_v47 = vpop.permute.xlu1 %1560  ;;  %v8323_v3 = vpop.permute.xlu0 %1555  ;;  %v1051_v16 = vld [vmem:[%s10865_s4 + $0x480] sm:$0xff] }
 0x13d   : > { %3560 = vmatprep.mubr.bf16.mxu0 %v11031_v20  ;;  %3890 = vmatprep.mubr.bf16.mxu1 %v11031_v20 }
 0x13e   : > { %1880 = vperm.xlu1 %7337, %v1050_v26   ;;  %1875 = vperm.xlu0 %7336, %v1049_v50   ;;  %v7351_v50 = vld [vmem:[%s10864_s3 + $0x138] sm:$0xff]  }
 0x13f   : > { %v1054_v26 = vld [vmem:[%s10865_s4 + $0x498] sm:$0xff] }
 0x140   : > { %v8333_v11 = vpop.permute.xlu1 %1570  ;;  %v8335_v12 = vpop.permute.xlu0 %1565 }
 0x142   : > { %1890 = vperm.xlu1 %7337, %v1052_v58   ;;  %1885 = vperm.xlu0 %7336, %v1051_v16   ;;  %v1056_v58 = vld [vmem:[%s10865_s4 + $0x4a8] sm:$0xff] }
 0x144   : > { %7079 = vmatmul.mubr.msk.bf16.gmra.mrb[40].mxu0 %vm3083_vm2, %v7350_v39  ;;  %7112 = vmatmul.mubr.msk.bf16.gmra.mrb[24].mxu1 %vm3083_vm2, %v7351_v50  ;;  %v8351_v55 = vpop.permute.xlu1 %1580  ;;  %v8353_v15 = vpop.permute.xlu0 %1575  ;;  %v1055_v39 = vld [vmem:[%s10865_s4 + $0x4a0] sm:$0xff] }
 0x145   : > { %3570 = vmatprep.mubr.bf16.mxu0 %v11031_v20  ;;  %3900 = vmatprep.mubr.bf16.mxu1 %v11031_v20 }
 0x146   : > { %1900 = vperm.xlu1 %7337, %v1054_v26   ;;  %1895 = vperm.xlu0 %7336, %v1053_v31   ;;  %v7353_v31 = vld [vmem:[%s10864_s3 + $0x140] sm:$0xff]   ;;  %v1058_v26 = vld [vmem:[%s10865_s4 + $0x4b8] sm:$0xff] }
 0x148   : > { %v8363_v16 = vpop.permute.xlu1 %1590  ;;  %v8365_v50 = vpop.permute.xlu0 %1585 }
 0x14a   : > { %1910 = vperm.xlu1 %7337, %v1056_v58   ;;  %1905 = vperm.xlu0 %7336, %v1055_v39   ;;  %v1060_v58 = vld [vmem:[%s10865_s4 + $0x4c8] sm:$0xff] }
 0x14c   : > { %7080 = vmatmul.mubr.msk.bf16.gmra.mrb[44].mxu0 %vm3083_vm2, %v7352_v18  ;;  %7113 = vmatmul.mubr.msk.bf16.gmra.mrb[28].mxu1 %vm3083_vm2, %v7353_v31  ;;  %v8381_v7 = vpop.permute.xlu1 %1600  ;;  %v8383_v59 = vpop.permute.xlu0 %1595  ;;  %v1059_v18 = vld [vmem:[%s10865_s4 + $0x4c0] sm:$0xff] }
 0x14d   : > { %3580 = vmatprep.mubr.bf16.mxu0 %v11031_v20  ;;  %3910 = vmatprep.mubr.bf16.mxu1 %v11031_v20 }
 0x14e   : > { %1920 = vperm.xlu1 %7337, %v1058_v26   ;;  %1915 = vperm.xlu0 %7336, %v1057_v4   ;;  %v7355_v4 = vld [vmem:[%s10864_s3 + $0x148] sm:$0xff]   ;;  %v1062_v26 = vld [vmem:[%s10865_s4 + $0x4d8] sm:$0xff] }
 0x150   : > { %v8393_v39 = vpop.permute.xlu1 %1610  ;;  %v8395_v31 = vpop.permute.xlu0 %1605 }
 0x151   : > { %11038 = vst [vmem:[#allocation46_spill] sm:$0xff] %v8393_v39 }
 0x152   : > { %1930 = vperm.xlu1 %7337, %v1060_v58   ;;  %1925 = vperm.xlu0 %7336, %v1059_v18   ;;  %v1064_v58 = vld [vmem:[%s10865_s4 + $0x4e8] sm:$0xff] }
 0x154   : > { %7081 = vmatmul.mubr.msk.bf16.gmra.mrb[48].mxu0 %vm3083_vm2, %v7354_v62  ;;  %7114 = vmatmul.mubr.msk.bf16.gmra.mrb[32].mxu1 %vm3083_vm2, %v7355_v4  ;;  %v8411_v54 = vpop.permute.xlu1 %1620  ;;  %v8413_v43 = vpop.permute.xlu0 %1615  ;;  %v1063_v62 = vld [vmem:[%s10865_s4 + $0x4e0] sm:$0xff] }
 0x155   : > { %11039 = vst [vmem:[#allocation47_spill] sm:$0xff] %v8411_v54  ;;  %11040 = vst [vmem:[#allocation48_spill] sm:$0xff] %v8413_v43  ;;  %3590 = vmatprep.mubr.bf16.mxu0 %v11031_v20  ;;  %3920 = vmatprep.mubr.bf16.mxu1 %v11031_v20 }
 0x156   : > { %1940 = vperm.xlu1 %7337, %v1062_v26   ;;  %1935 = vperm.xlu0 %7336, %v1061_v51   ;;  %v7357_v51 = vld [vmem:[%s10864_s3 + $0x150] sm:$0xff]   ;;  %v1066_v26 = vld [vmem:[%s10865_s4 + $0x4f8] sm:$0xff] }
 0x158   : > { %v8423_v18 = vpop.permute.xlu1 %1630  ;;  %v8425_v4 = vpop.permute.xlu0 %1625 }
 0x159   : > { %11041 = vst [vmem:[#allocation49_spill] sm:$0xff] %v8423_v18  ;;  %11042 = vst [vmem:[#allocation50_spill] sm:$0xff] %v8425_v4 }
 0x15a   : > { %1950 = vperm.xlu1 %7337, %v1064_v58   ;;  %1945 = vperm.xlu0 %7336, %v1063_v62   ;;  %v1068_v58 = vld [vmem:[%s10865_s4 + $0x508] sm:$0xff] }
 0x15c   : > { %7082 = vmatmul.mubr.msk.bf16.gmra.mrb[52].mxu0 %vm3083_vm2, %v7356_v46  ;;  %7115 = vmatmul.mubr.msk.bf16.gmra.mrb[36].mxu1 %vm3083_vm2, %v7357_v51  ;;  %v8441_v38 = vpop.permute.xlu1 %1640  ;;  %v8443_v18 = vpop.permute.xlu0 %1635  ;;  %v1067_v46 = vld [vmem:[%s10865_s4 + $0x500] sm:$0xff] }
 0x15d   : > { %11043 = vst [vmem:[#allocation51_spill] sm:$0xff] %v8441_v38  ;;  %11044 = vst [vmem:[#allocation52_spill] sm:$0xff] %v8443_v18  ;;  %3600 = vmatprep.mubr.bf16.mxu0 %v11031_v20  ;;  %3930 = vmatprep.mubr.bf16.mxu1 %v11031_v20  ;;  %v7358_v38 = vld [vmem:[%s10864_s3 + $0x50] sm:$0xff]  }
 0x15e   : > { %1960 = vperm.xlu1 %7337, %v1066_v26   ;;  %1955 = vperm.xlu0 %7336, %v1065_v35   ;;  %v7359_v35 = vld [vmem:[%s10864_s3 + $0x158] sm:$0xff]  }
 0x15f   : > { %v1070_v26 = vld [vmem:[%s10865_s4 + $0x518] sm:$0xff] }
 0x160   : > { %v8453_v62 = vpop.permute.xlu1 %1650  ;;  %v8455_v51 = vpop.permute.xlu0 %1645 }
 0x161   : > { %11045 = vst [vmem:[#allocation53_spill] sm:$0xff] %v8453_v62  ;;  %11046 = vst [vmem:[#allocation54_spill] sm:$0xff] %v8455_v51  ;;  %v1069_v62 = vld [vmem:[%s10865_s4 + $0x510] sm:$0xff] }
 0x162   : > { %1970 = vperm.xlu1 %7337, %v1068_v58   ;;  %1965 = vperm.xlu0 %7336, %v1067_v46   ;;  %v1072_v58 = vld [vmem:[%s10865_s4 + $0x528] sm:$0xff] }
 0x164   : > { %7083 = vmatmul.mubr.msk.bf16.gmra.mrb[56].mxu0 %vm3083_vm2, %v7358_v38  ;;  %7116 = vmatmul.mubr.msk.bf16.gmra.mrb[40].mxu1 %vm3083_vm2, %v7359_v35  ;;  %v8471_v51 = vpop.permute.xlu1 %1660  ;;  %v8473_v18 = vpop.permute.xlu0 %1655  ;;  %v1071_v38 = vld [vmem:[%s10865_s4 + $0x520] sm:$0xff] }
 0x165   : > { %11047 = vst [vmem:[#allocation55_spill] sm:$0xff] %v8471_v51  ;;  %11048 = vst [vmem:[#allocation56_spill] sm:$0xff] %v8473_v18  ;;  %3610 = vmatprep.mubr.bf16.mxu0 %v11031_v20  ;;  %3940 = vmatprep.mubr.bf16.mxu1 %v11031_v20  ;;  %v7360_v51 = vld [vmem:[%s10864_s3 + $0x58] sm:$0xff]  }
 0x166   : > { %1980 = vperm.xlu1 %7337, %v1070_v26   ;;  %1975 = vperm.xlu0 %7336, %v1069_v62   ;;  %v7361_v62 = vld [vmem:[%s10864_s3 + $0x160] sm:$0xff]   ;;  %v1074_v26 = vld [vmem:[%s10865_s4 + $0x538] sm:$0xff] }
 0x168   : > { %v8483_v46 = vpop.permute.xlu1 %1670  ;;  %v8485_v35 = vpop.permute.xlu0 %1665 }
 0x169   : > { %11049 = vst [vmem:[#allocation57_spill] sm:$0xff] %v8483_v46  ;;  %11050 = vst [vmem:[#allocation58_spill] sm:$0xff] %v8485_v35  ;;  %v1073_v46 = vld [vmem:[%s10865_s4 + $0x530] sm:$0xff] }
 0x16a   : > { %1990 = vperm.xlu1 %7337, %v1072_v58   ;;  %1985 = vperm.xlu0 %7336, %v1071_v38   ;;  %v1076_v58 = vld [vmem:[%s10865_s4 + $0x548] sm:$0xff] }
 0x16c   : > { %7084 = vmatmul.mubr.msk.bf16.gmra.mrb[60].mxu0 %vm3083_vm2, %v7360_v51  ;;  %7117 = vmatmul.mubr.msk.bf16.gmra.mrb[44].mxu1 %vm3083_vm2, %v7361_v62  ;;  %v8501_v35 = vpop.permute.xlu1 %1680  ;;  %v8503_v18 = vpop.permute.xlu0 %1675  ;;  %v1075_v51 = vld [vmem:[%s10865_s4 + $0x540] sm:$0xff] }
 0x16d   : > { %11051 = vst [vmem:[#allocation59_spill] sm:$0xff] %v8501_v35  ;;  %11052 = vst [vmem:[#allocation60_spill] sm:$0xff] %v8503_v18  ;;  %3620 = vmatprep.mubr.bf16.mxu0 %v11031_v20  ;;  %3950 = vmatprep.mubr.bf16.mxu1 %v11031_v20  ;;  %v7362_v35 = vld [vmem:[%s10864_s3 + $0x60] sm:$0xff]  }
 0x16e   : > { %2000 = vperm.xlu1 %7337, %v1074_v26   ;;  %1995 = vperm.xlu0 %7336, %v1073_v46   ;;  %v7363_v46 = vld [vmem:[%s10864_s3 + $0x168] sm:$0xff]   ;;  %v1078_v26 = vld [vmem:[%s10865_s4 + $0x558] sm:$0xff] }
 0x170   : > { %v8513_v38 = vpop.permute.xlu1 %1690  ;;  %v8515_v62 = vpop.permute.xlu0 %1685 }
 0x171   : > { %11053 = vst [vmem:[#allocation61_spill] sm:$0xff] %v8513_v38  ;;  %11054 = vst [vmem:[#allocation62_spill] sm:$0xff] %v8515_v62  ;;  %v1077_v38 = vld [vmem:[%s10865_s4 + $0x550] sm:$0xff] }
 0x172   : > { %2010 = vperm.xlu1 %7337, %v1076_v58   ;;  %2005 = vperm.xlu0 %7336, %v1075_v51   ;;  %v1080_v58 = vld [vmem:[%s10865_s4 + $0x568] sm:$0xff] }
 0x173   : > { %v7364_v51 = vld [vmem:[%s10864_s3 + $0x68] sm:$0xff]  }
 0x174   : > { %7085 = vmatmul.mubr.msk.bf16.gmra.mrb[64].mxu0 %vm3083_vm2, %v7362_v35  ;;  %7118 = vmatmul.mubr.msk.bf16.gmra.mrb[48].mxu1 %vm3083_vm2, %v7363_v46  ;;  %v8531_v62 = vpop.permute.xlu1 %1700  ;;  %v8533_v18 = vpop.permute.xlu0 %1695  ;;  %v1079_v35 = vld [vmem:[%s10865_s4 + $0x560] sm:$0xff]  ;;  %v7365_v46 = vld [vmem:[%s10864_s3 + $0x170] sm:$0xff]  }
 0x175   : > { %11055 = vst [vmem:[#allocation63_spill] sm:$0xff] %v8531_v62  ;;  %11056 = vst [vmem:[#allocation64_spill] sm:$0xff] %v8533_v18  ;;  %3630 = vmatprep.mubr.bf16.mxu0 %v11031_v20  ;;  %3960 = vmatprep.mubr.bf16.mxu1 %v11031_v20  ;;  %v1081_v18 = vld [vmem:[%s10865_s4 + $0x570] sm:$0xff] }
 0x176   : > { %2020 = vperm.xlu1 %7337, %v1078_v26   ;;  %2015 = vperm.xlu0 %7336, %v1077_v38   ;;  %v1082_v38 = vld [vmem:[%s10865_s4 + $0x578] sm:$0xff] }
 0x179   : > { %v8549_v62 = vpop.permute.xlu1 %1710  ;;  %v8551_v26 = vpop.permute.xlu0 %1705 }
 0x17a   : > { %11057 = vst [vmem:[#allocation65_spill] sm:$0xff] %v8549_v62  ;;  %11058 = vst [vmem:[#allocation66_spill] sm:$0xff] %v8551_v26  ;;  %2030 = vperm.xlu1 %7337, %v1080_v58   ;;  %2025 = vperm.xlu0 %7336, %v1079_v35   ;;  %v1084_v58 = vld [vmem:[%s10865_s4 + $0x588] sm:$0xff]  ;;  %v1083_v35 = vld [vmem:[%s10865_s4 + $0x580] sm:$0xff] }
 0x17b   : > { %v7393_v26 = vld [vmem:[%s10864_s3 + $0x1e0] sm:$0xff]  }
 0x17c   : > { %7086 = vmatmul.mubr.msk.bf16.gmra.mrb[68].mxu0 %vm3083_vm2, %v7364_v51  ;;  %7119 = vmatmul.mubr.msk.bf16.gmra.mrb[52].mxu1 %vm3083_vm2, %v7365_v46  ;;  %v7366_v51 = vld [vmem:[%s10864_s3 + $0x70] sm:$0xff]   ;;  %v7367_v46 = vld [vmem:[%s10864_s3 + $0x178] sm:$0xff]  }
 0x17d   : > { %v8561_v27 = vpop.permute.xlu1 %1720  ;;  %v8563_v4 = vpop.permute.xlu0 %1715  ;;  %3640 = vmatprep.mubr.bf16.mxu0 %v11031_v20  ;;  %3970 = vmatprep.mubr.bf16.mxu1 %v11031_v20 }
 0x17e   : > { %11059 = vst [vmem:[#allocation67_spill] sm:$0xff] %v8561_v27  ;;  %11060 = vst [vmem:[#allocation68_spill] sm:$0xff] %v8563_v4  ;;  %2040 = vperm.xlu1 %7337, %v1082_v38   ;;  %2035 = vperm.xlu0 %7336, %v1081_v18   ;;  %v1086_v18 = vld [vmem:[%s10865_s4 + $0x598] sm:$0xff]  ;;  %v1085_v4 = vld [vmem:[%s10865_s4 + $0x590] sm:$0xff] }
 0x181   : > { %v8579_v27 = vpop.permute.xlu1 %1730  ;;  %v8581_v38 = vpop.permute.xlu0 %1725 }
 0x182   : > { %11061 = vst [vmem:[#allocation69_spill] sm:$0xff] %v8579_v27  ;;  %11062 = vst [vmem:[#allocation70_spill] sm:$0xff] %v8581_v38  ;;  %2050 = vperm.xlu1 %7337, %v1084_v58   ;;  %2045 = vperm.xlu0 %7336, %v1083_v35   ;;  %v1088_v35 = vld [vmem:[%s10865_s4 + $0x5a8] sm:$0xff]  ;;  %v7392_v38 = vld [vmem:[%s10864_s3 + $0xd8] sm:$0xff]  }
 0x184   : > { %7087 = vmatmul.mubr.msk.bf16.gmra.mrb[72].mxu0 %vm3083_vm2, %v7366_v51  ;;  %7120 = vmatmul.mubr.msk.bf16.gmra.mrb[56].mxu1 %vm3083_vm2, %v7367_v46  ;;  %v1087_v51 = vld [vmem:[%s10865_s4 + $0x5a0] sm:$0xff]  ;;  %v7368_v46 = vld [vmem:[%s10864_s3 + $0x78] sm:$0xff]  }
 0x185   : > { %v8591_v62 = vpop.permute.xlu0 %1735  ;;  %3650 = vmatprep.mubr.bf16.mxu0 %v11031_v20  ;;  %3980 = vmatprep.mubr.bf16.mxu1 %v11031_v20  ;;  %v8595_v58 = vpop.permute.xlu1 %1740 }
 0x186   : > { %11063 = vst [vmem:[#allocation71_spill] sm:$0xff] %v8591_v62  ;;  %11064 = vst [vmem:[#allocation72_spill] sm:$0xff] %v8595_v58  ;;  %2060 = vperm.xlu1 %7337, %v1086_v18   ;;  %2055 = vperm.xlu0 %7336, %v1085_v4   ;;  %v7369_v62 = vld [vmem:[%s10864_s3 + $0x180] sm:$0xff]   ;;  %v1090_v4 = vld [vmem:[%s10865_s4 + $0x5b8] sm:$0xff] }
 0x187   : > { %v1089_v18 = vld [vmem:[%s10865_s4 + $0x5b0] sm:$0xff] }
 0x189   : > { %v8609_v27 = vpop.permute.xlu0 %1745  ;;  %v8617_v58 = vpop.permute.xlu1 %1750 }
 0x18a   : > { %11065 = vst [vmem:[#allocation73_spill] sm:$0xff] %v8609_v27  ;;  %2070 = vperm.xlu1 %7337, %v1088_v35   ;;  %2065 = vperm.xlu0 %7336, %v1087_v51   ;;  %11066 = vst [vmem:[#allocation74_spill] sm:$0xff] %v8617_v58  ;;  %v1092_v51 = vld [vmem:[%s10865_s4 + $0x5c8] sm:$0xff]  ;;  %v1091_v58 = vld [vmem:[%s10865_s4 + $0x5c0] sm:$0xff] }
 0x18c   : > { %7088 = vmatmul.mubr.msk.bf16.gmra.mrb[76].mxu0 %vm3083_vm2, %v7368_v46  ;;  %7121 = vmatmul.mubr.msk.bf16.gmra.mrb[60].mxu1 %vm3083_vm2, %v7369_v62  ;;  %v7370_v62 = vld [vmem:[%s10864_s3 + $0x80] sm:$0xff]   ;;  %v7371_v46 = vld [vmem:[%s10864_s3 + $0x188] sm:$0xff]  }
 0x18d   : > { %3660 = vmatprep.mubr.bf16.mxu0 %v11031_v20  ;;  %3990 = vmatprep.mubr.bf16.mxu1 %v11031_v20  ;;  %v8623_v35 = vpop.permute.xlu0 %1755 }
 0x18e   : > { %2080 = vperm.xlu1 %7337, %v1090_v4   ;;  %2075 = vperm.xlu0 %7336, %v1089_v18   ;;  %11067 = vst [vmem:[#allocation75_spill] sm:$0xff] %v8623_v35  ;;  %v8637_v4 = vpop.permute.xlu1 %1760  ;;  %v1094_v18 = vld [vmem:[%s10865_s4 + $0x5d8] sm:$0xff]  ;;  %v1093_v35 = vld [vmem:[%s10865_s4 + $0x5d0] sm:$0xff] }
 0x18f   : > { %11068 = vst [vmem:[#allocation76_spill] sm:$0xff] %v8637_v4 }
 0x191   : > { %v8647_v27 = vpop.permute.xlu0 %1765 }
 0x192   : > { %2090 = vperm.xlu1 %7337, %v1092_v51   ;;  %2085 = vperm.xlu0 %7336, %v1091_v58   ;;  %11069 = vst [vmem:[#allocation77_spill] sm:$0xff] %v8647_v27  ;;  %v1096_v58 = vld [vmem:[%s10865_s4 + $0x5e8] sm:$0xff]  ;;  %v1095_v51 = vld [vmem:[%s10865_s4 + $0x5e0] sm:$0xff]  ;;  %v8657_v4 = vpop.permute.xlu1 %1770 }
 0x193   : > { %11070 = vst [vmem:[#allocation78_spill] sm:$0xff] %v8657_v4  ;;  %v1097_v4 = vld [vmem:[%s10865_s4 + $0x5f0] sm:$0xff] }
 0x194   : > { %7089 = vmatmul.mubr.msk.bf16.gmra.mrb[80].mxu0 %vm3083_vm2, %v7370_v62  ;;  %7122 = vmatmul.mubr.msk.bf16.gmra.mrb[64].mxu1 %vm3083_vm2, %v7371_v46  ;;  %v7372_v62 = vld [vmem:[%s10864_s3 + $0x88] sm:$0xff]   ;;  %v7373_v46 = vld [vmem:[%s10864_s3 + $0x190] sm:$0xff]  }
 0x195   : > { %3670 = vmatprep.mubr.bf16.mxu0 %v11031_v20  ;;  %4000 = vmatprep.mubr.bf16.mxu1 %v11031_v20 }
 0x196   : > { %2100 = vperm.xlu1 %7337, %v1094_v18   ;;  %2095 = vperm.xlu0 %7336, %v1093_v35   ;;  %v8665_v35 = vpop.permute.xlu0 %1775  ;;  %v1098_v18 = vld [vmem:[%s10865_s4 + $0x5f8] sm:$0xff] }
 0x197   : > { %11071 = vst [vmem:[#allocation79_spill] sm:$0xff] %v8665_v35  ;;  %v1099_v35 = vld [vmem:[%s10865_s4 + $0x600] sm:$0xff] }
 0x19a   : > { %2110 = vperm.xlu1 %7337, %v1096_v58   ;;  %2105 = vperm.xlu0 %7336, %v1095_v51   ;;  %v8677_v58 = vpop.permute.xlu1 %1780  ;;  %v1100_v51 = vld [vmem:[%s10865_s4 + $0x608] sm:$0xff]  ;;  %v8691_v27 = vpop.permute.xlu0 %1785 }
 0x19b   : > { %11072 = vst [vmem:[#allocation80_spill] sm:$0xff] %v8677_v58  ;;  %11073 = vst [vmem:[#allocation81_spill] sm:$0xff] %v8691_v27 }
 0x19c   : > { %7090 = vmatmul.mubr.msk.bf16.gmra.mrb[84].mxu0 %vm3083_vm2, %v7372_v62  ;;  %7123 = vmatmul.mubr.msk.bf16.gmra.mrb[68].mxu1 %vm3083_vm2, %v7373_v46  ;;  %v7374_v62 = vld [vmem:[%s10864_s3 + $0x90] sm:$0xff]   ;;  %v7375_v46 = vld [vmem:[%s10864_s3 + $0x198] sm:$0xff]  }
 0x19d   : > { %3680 = vmatprep.mubr.bf16.mxu0 %v11031_v20  ;;  %4010 = vmatprep.mubr.bf16.mxu1 %v11031_v20 }
 0x19e   : > { %2120 = vperm.xlu1 %7337, %v1098_v18   ;;  %2115 = vperm.xlu0 %7336, %v1097_v4   ;;  %v1102_v4 = vld [vmem:[%s10865_s4 + $0x618] sm:$0xff]  ;;  %v1101_v18 = vld [vmem:[%s10865_s4 + $0x610] sm:$0xff]  ;;  %v8699_v58 = vpop.permute.xlu1 %1790 }
 0x19f   : > { %11074 = vst [vmem:[#allocation82_spill] sm:$0xff] %v8699_v58  ;;  %v1103_v58 = vld [vmem:[%s10865_s4 + $0x620] sm:$0xff] }
 0x1a2   : > { %2130 = vperm.xlu1 %7337, %v1100_v51   ;;  %2125 = vperm.xlu0 %7336, %v1099_v35   ;;  %v8705_v35 = vpop.permute.xlu0 %1795  ;;  %v1104_v51 = vld [vmem:[%s10865_s4 + $0x628] sm:$0xff] }
 0x1a3   : > { %11075 = vst [vmem:[#allocation83_spill] sm:$0xff] %v8705_v35  ;;  %v1105_v35 = vld [vmem:[%s10865_s4 + $0x630] sm:$0xff] }
 0x1a4   : > { %7091 = vmatmul.mubr.msk.bf16.gmra.mrb[88].mxu0 %vm3083_vm2, %v7374_v62  ;;  %7124 = vmatmul.mubr.msk.bf16.gmra.mrb[72].mxu1 %vm3083_vm2, %v7375_v46  ;;  %v7376_v62 = vld [vmem:[%s10864_s3 + $0x98] sm:$0xff]   ;;  %v7377_v46 = vld [vmem:[%s10864_s3 + $0x1a0] sm:$0xff]  }
 0x1a5   : > { %3690 = vmatprep.mubr.bf16.mxu0 %v11031_v20  ;;  %4020 = vmatprep.mubr.bf16.mxu1 %v11031_v20 }
 0x1a6   : > { %2140 = vperm.xlu1 %7337, %v1102_v4   ;;  %2135 = vperm.xlu0 %7336, %v1101_v18   ;;  %v8719_v4 = vpop.permute.xlu1 %1800  ;;  %v1106_v18 = vld [vmem:[%s10865_s4 + $0x638] sm:$0xff]  ;;  %v8729_v27 = vpop.permute.xlu0 %1805 }
 0x1a7   : > { %11076 = vst [vmem:[#allocation84_spill] sm:$0xff] %v8719_v4  ;;  %11077 = vst [vmem:[#allocation85_spill] sm:$0xff] %v8729_v27 }
 0x1aa   : > { %2150 = vperm.xlu1 %7337, %v1104_v51   ;;  %2145 = vperm.xlu0 %7336, %v1103_v58   ;;  %v1108_v58 = vld [vmem:[%s10865_s4 + $0x648] sm:$0xff]  ;;  %v1107_v51 = vld [vmem:[%s10865_s4 + $0x640] sm:$0xff]  ;;  %v8739_v4 = vpop.permute.xlu1 %1810 }
 0x1ab   : > { %11078 = vst [vmem:[#allocation86_spill] sm:$0xff] %v8739_v4  ;;  %v1109_v4 = vld [vmem:[%s10865_s4 + $0x650] sm:$0xff] }
 0x1ac   : > { %7092 = vmatmul.mubr.msk.bf16.gmra.mrb[92].mxu0 %vm3083_vm2, %v7376_v62  ;;  %7125 = vmatmul.mubr.msk.bf16.gmra.mrb[76].mxu1 %vm3083_vm2, %v7377_v46  ;;  %v7378_v62 = vld [vmem:[%s10864_s3 + $0xa0] sm:$0xff]   ;;  %v7379_v46 = vld [vmem:[%s10864_s3 + $0x1a8] sm:$0xff]  }
 0x1ad   : > { %3700 = vmatprep.mubr.bf16.mxu0 %v11031_v20  ;;  %4030 = vmatprep.mubr.bf16.mxu1 %v11031_v20 }
 0x1ae   : > { %2160 = vperm.xlu1 %7337, %v1106_v18   ;;  %2155 = vperm.xlu0 %7336, %v1105_v35   ;;  %v8747_v35 = vpop.permute.xlu0 %1815  ;;  %v1110_v18 = vld [vmem:[%s10865_s4 + $0x658] sm:$0xff] }
 0x1af   : > { %11079 = vst [vmem:[#allocation87_spill] sm:$0xff] %v8747_v35  ;;  %v1111_v35 = vld [vmem:[%s10865_s4 + $0x660] sm:$0xff] }
 0x1b2   : > { %2170 = vperm.xlu1 %7337, %v1108_v58   ;;  %2165 = vperm.xlu0 %7336, %v1107_v51   ;;  %v8759_v58 = vpop.permute.xlu1 %1820  ;;  %v1112_v51 = vld [vmem:[%s10865_s4 + $0x668] sm:$0xff]  ;;  %v8773_v27 = vpop.permute.xlu0 %1825 }
 0x1b3   : > { %11080 = vst [vmem:[#allocation88_spill] sm:$0xff] %v8759_v58  ;;  %11081 = vst [vmem:[#allocation89_spill] sm:$0xff] %v8773_v27 }
 0x1b4   : > { %7093 = vmatmul.mubr.msk.bf16.gmra.mrb[96].mxu0 %vm3083_vm2, %v7378_v62  ;;  %7126 = vmatmul.mubr.msk.bf16.gmra.mrb[80].mxu1 %vm3083_vm2, %v7379_v46  ;;  %v7380_v62 = vld [vmem:[%s10864_s3 + $0xa8] sm:$0xff]   ;;  %v7381_v46 = vld [vmem:[%s10864_s3 + $0x1b0] sm:$0xff]  }
 0x1b5   : > { %3710 = vmatprep.mubr.bf16.mxu0 %v11031_v20  ;;  %4040 = vmatprep.mubr.bf16.mxu1 %v11031_v20 }
 0x1b6   : > { %2180 = vperm.xlu1 %7337, %v1110_v18   ;;  %2175 = vperm.xlu0 %7336, %v1109_v4   ;;  %v1114_v4 = vld [vmem:[%s10865_s4 + $0x678] sm:$0xff]  ;;  %v1113_v18 = vld [vmem:[%s10865_s4 + $0x670] sm:$0xff]  ;;  %v8781_v58 = vpop.permute.xlu1 %1830 }
 0x1b7   : > { %11082 = vst [vmem:[#allocation90_spill] sm:$0xff] %v8781_v58  ;;  %v1115_v58 = vld [vmem:[%s10865_s4 + $0x680] sm:$0xff] }
 0x1ba   : > { %2190 = vperm.xlu1 %7337, %v1112_v51   ;;  %2185 = vperm.xlu0 %7336, %v1111_v35   ;;  %v8787_v35 = vpop.permute.xlu0 %1835  ;;  %v1116_v51 = vld [vmem:[%s10865_s4 + $0x688] sm:$0xff] }
 0x1bb   : > { %11083 = vst [vmem:[#allocation91_spill] sm:$0xff] %v8787_v35  ;;  %v1117_v35 = vld [vmem:[%s10865_s4 + $0x690] sm:$0xff] }
 0x1bc   : > { %7094 = vmatmul.mubr.msk.bf16.gmra.mrb[100].mxu0 %vm3083_vm2, %v7380_v62  ;;  %7127 = vmatmul.mubr.msk.bf16.gmra.mrb[84].mxu1 %vm3083_vm2, %v7381_v46  ;;  %v7382_v62 = vld [vmem:[%s10864_s3 + $0xb0] sm:$0xff]   ;;  %v7383_v46 = vld [vmem:[%s10864_s3 + $0x1b8] sm:$0xff]  }
 0x1bd   : > { %3720 = vmatprep.mubr.bf16.mxu0 %v11031_v20  ;;  %4050 = vmatprep.mubr.bf16.mxu1 %v11031_v20 }
 0x1be   : > { %2200 = vperm.xlu1 %7337, %v1114_v4   ;;  %2195 = vperm.xlu0 %7336, %v1113_v18   ;;  %v8801_v4 = vpop.permute.xlu1 %1840  ;;  %v1118_v18 = vld [vmem:[%s10865_s4 + $0x698] sm:$0xff]  ;;  %v8811_v27 = vpop.permute.xlu0 %1845 }
 0x1bf   : > { %11084 = vst [vmem:[#allocation92_spill] sm:$0xff] %v8801_v4  ;;  %11085 = vst [vmem:[#allocation93_spill] sm:$0xff] %v8811_v27 }
 0x1c2   : > { %2210 = vperm.xlu1 %7337, %v1116_v51   ;;  %2205 = vperm.xlu0 %7336, %v1115_v58   ;;  %v1120_v58 = vld [vmem:[%s10865_s4 + $0x6a8] sm:$0xff]  ;;  %v1119_v51 = vld [vmem:[%s10865_s4 + $0x6a0] sm:$0xff]  ;;  %v8821_v4 = vpop.permute.xlu1 %1850 }
 0x1c3   : > { %11086 = vst [vmem:[#allocation94_spill] sm:$0xff] %v8821_v4  ;;  %v1121_v4 = vld [vmem:[%s10865_s4 + $0x6b0] sm:$0xff] }
 0x1c4   : > { %7095 = vmatmul.mubr.msk.bf16.gmra.mrb[104].mxu0 %vm3083_vm2, %v7382_v62  ;;  %7128 = vmatmul.mubr.msk.bf16.gmra.mrb[88].mxu1 %vm3083_vm2, %v7383_v46  ;;  %v7384_v62 = vld [vmem:[%s10864_s3 + $0xb8] sm:$0xff]   ;;  %v7385_v46 = vld [vmem:[%s10864_s3 + $0x1c0] sm:$0xff]  }
 0x1c5   : > { %3730 = vmatprep.mubr.bf16.mxu0 %v11031_v20  ;;  %4060 = vmatprep.mubr.bf16.mxu1 %v11031_v20 }
 0x1c6   : > { %2220 = vperm.xlu1 %7337, %v1118_v18   ;;  %2215 = vperm.xlu0 %7336, %v1117_v35   ;;  %v8829_v35 = vpop.permute.xlu0 %1855  ;;  %v1122_v18 = vld [vmem:[%s10865_s4 + $0x6b8] sm:$0xff] }
 0x1c7   : > { %11087 = vst [vmem:[#allocation95_spill] sm:$0xff] %v8829_v35  ;;  %v1123_v35 = vld [vmem:[%s10865_s4 + $0x6c0] sm:$0xff] }
 0x1ca   : > { %2230 = vperm.xlu1 %7337, %v1120_v58   ;;  %2225 = vperm.xlu0 %7336, %v1119_v51   ;;  %v8841_v58 = vpop.permute.xlu1 %1860  ;;  %v1124_v51 = vld [vmem:[%s10865_s4 + $0x6c8] sm:$0xff]  ;;  %v8855_v27 = vpop.permute.xlu0 %1865 }
 0x1cb   : > { %11088 = vst [vmem:[#allocation96_spill] sm:$0xff] %v8841_v58  ;;  %11089 = vst [vmem:[#allocation97_spill] sm:$0xff] %v8855_v27 }
 0x1cc   : > { %7096 = vmatmul.mubr.msk.bf16.gmra.mrb[108].mxu0 %vm3083_vm2, %v7384_v62  ;;  %7129 = vmatmul.mubr.msk.bf16.gmra.mrb[92].mxu1 %vm3083_vm2, %v7385_v46  ;;  %v7386_v62 = vld [vmem:[%s10864_s3 + $0xc0] sm:$0xff]   ;;  %v7387_v46 = vld [vmem:[%s10864_s3 + $0x1c8] sm:$0xff]  }
 0x1cd   : > { %3740 = vmatprep.mubr.bf16.mxu0 %v11031_v20  ;;  %4070 = vmatprep.mubr.bf16.mxu1 %v11031_v20 }
 0x1ce   : > { %2240 = vperm.xlu1 %7337, %v1122_v18   ;;  %2235 = vperm.xlu0 %7336, %v1121_v4   ;;  %v1126_v4 = vld [vmem:[%s10865_s4 + $0x6d8] sm:$0xff]  ;;  %v1125_v18 = vld [vmem:[%s10865_s4 + $0x6d0] sm:$0xff]  ;;  %v8863_v58 = vpop.permute.xlu1 %1870 }
 0x1cf   : > { %11090 = vst [vmem:[#allocation98_spill] sm:$0xff] %v8863_v58  ;;  %v1127_v58 = vld [vmem:[%s10865_s4 + $0x6e0] sm:$0xff] }
 0x1d2   : > { %2250 = vperm.xlu1 %7337, %v1124_v51   ;;  %2245 = vperm.xlu0 %7336, %v1123_v35   ;;  %v8869_v35 = vpop.permute.xlu0 %1875  ;;  %v1128_v51 = vld [vmem:[%s10865_s4 + $0x6e8] sm:$0xff] }
 0x1d3   : > { %11091 = vst [vmem:[#allocation99_spill] sm:$0xff] %v8869_v35  ;;  %v1129_v35 = vld [vmem:[%s10865_s4 + $0x6f0] sm:$0xff] }
 0x1d4   : > { %7097 = vmatmul.mubr.msk.bf16.gmra.mrb[112].mxu0 %vm3083_vm2, %v7386_v62  ;;  %7130 = vmatmul.mubr.msk.bf16.gmra.mrb[96].mxu1 %vm3083_vm2, %v7387_v46  ;;  %v7388_v62 = vld [vmem:[%s10864_s3 + $0xc8] sm:$0xff]   ;;  %v7389_v46 = vld [vmem:[%s10864_s3 + $0x1d0] sm:$0xff]  }
 0x1d5   : > { %3750 = vmatprep.mubr.bf16.mxu0 %v11031_v20  ;;  %4080 = vmatprep.mubr.bf16.mxu1 %v11031_v20 }
 0x1d6   : > { %2260 = vperm.xlu1 %7337, %v1126_v4   ;;  %2255 = vperm.xlu0 %7336, %v1125_v18   ;;  %v8883_v4 = vpop.permute.xlu1 %1880  ;;  %v1130_v18 = vld [vmem:[%s10865_s4 + $0x6f8] sm:$0xff]  ;;  %v8893_v27 = vpop.permute.xlu0 %1885 }
 0x1d7   : > { %11092 = vst [vmem:[#allocation100_spill] sm:$0xff] %v8883_v4  ;;  %11093 = vst [vmem:[#allocation101_spill] sm:$0xff] %v8893_v27  ;;  %v7391_v27 = vld [vmem:[%s10864_s3 + $0x1d8] sm:$0xff]  }
 0x1da   : > { %2270 = vperm.xlu1 %7337, %v1128_v51   ;;  %2265 = vperm.xlu0 %7336, %v1127_v58   ;;  %v1132_v58 = vld [vmem:[%s10865_s4 + $0x708] sm:$0xff]  ;;  %v1131_v51 = vld [vmem:[%s10865_s4 + $0x700] sm:$0xff] }
 0x1dc   : > { %7098 = vmatmul.mubr.msk.bf16.gmra.mrb[116].mxu0 %vm3083_vm2, %v7388_v62  ;;  %7131 = vmatmul.mubr.msk.bf16.gmra.mrb[100].mxu1 %vm3083_vm2, %v7389_v46  ;;  %v8903_v62 = vpop.permute.xlu1 %1890  ;;  %v7390_v46 = vld [vmem:[%s10864_s3 + $0xd0] sm:$0xff]  }
 0x1dd   : > { %3760 = vmatprep.mubr.bf16.mxu0 %v11031_v20  ;;  %4090 = vmatprep.mubr.bf16.mxu1 %v11031_v20  ;;  %11094 = vst [vmem:[#allocation102_spill] sm:$0xff] %v8903_v62  ;;  %v1133_v62 = vld [vmem:[%s10865_s4 + $0x710] sm:$0xff] }
 0x1de   : > { %2280 = vperm.xlu1 %7337, %v1130_v18   ;;  %2275 = vperm.xlu0 %7336, %v1129_v35   ;;  %v8911_v35 = vpop.permute.xlu0 %1895  ;;  %v1134_v18 = vld [vmem:[%s10865_s4 + $0x718] sm:$0xff] }
 0x1df   : > { %11095 = vst [vmem:[#allocation103_spill] sm:$0xff] %v8911_v35  ;;  %v1135_v35 = vld [vmem:[%s10865_s4 + $0x720] sm:$0xff] }
 0x1e2   : > { %2290 = vperm.xlu1 %7337, %v1132_v58   ;;  %2285 = vperm.xlu0 %7336, %v1131_v51   ;;  %v8924_v58 = vpop.permute.xlu1 %1900  ;;  %v8945_v30 = vpop.permute.xlu0 %1905 }
 0x1e3   : > { %11096 = vst [vmem:[#allocation104_spill] sm:$0xff] %v8924_v58  ;;  %11097 = vst [vmem:[#allocation105_spill] sm:$0xff] %v8945_v30 }
 0x1e4   : > { %7099 = vmatmul.mubr.msk.bf16.gmra.mrb[120].mxu0 %vm3083_vm2, %v7390_v46  ;;  %7132 = vmatmul.mubr.msk.bf16.gmra.mrb[104].mxu1 %vm3083_vm2, %v7391_v27  ;;  %v1136_v27 = vld [vmem:[%s10865_s4 + $0x728] sm:$0xff] }
 0x1e5   : > { %3770 = vmatprep.mubr.bf16.mxu0 %v11031_v20  ;;  %4100 = vmatprep.mubr.bf16.mxu1 %v11031_v20 }
 0x1e6   : > { %2300 = vperm.xlu1 %7337, %v1134_v18   ;;  %2295 = vperm.xlu0 %7336, %v1133_v62   ;;  %v8969_v13 = vpop.permute.xlu1 %1910 }
 0x1e7   : > { %v3502_v51 = vpop.f32.mrb[16].mxu0  ;;  %v3832_v46 = vpop.f32.mrb[0].mxu1  ;;  %11098 = vst [vmem:[#allocation106_spill] sm:$0xff] %v8969_v13 }
 0x1e8   : > { %v3503_v62 = vadd.f32 %v3502_v51, %v7859_v33  ;;  %v3833_v18 = vadd.f32 %v3832_v46, %v8233_v25  ;;  %v3504_v58 = vpop.f32.mrb[17].mxu0  ;;  %v3834_v4 = vpop.f32.mrb[1].mxu1 }
 0x1e9   : > { %v3505_v54 = vadd.f32 %v3504_v58, %v7859_v33  ;;  %v3835_v19 = vadd.f32 %v3834_v4, %v8233_v25  ;;  %v3506_v51 = vpop.f32.mrb[18].mxu0  ;;  %v3836_v46 = vpop.f32.mrb[2].mxu1  ;;  %v1138_v33 = vld [vmem:[%s10865_s4 + $0x738] sm:$0xff]  ;;  %v1137_v25 = vld [vmem:[%s10865_s4 + $0x730] sm:$0xff] }
 0x1ea   : > { %4781 = vst [vmem:[%s8929_s26] sm:$0xff] %v3503_v62  ;;  %4913 = vst [vmem:[%s8929_s26 + $0x420] sm:$0xff] %v3833_v18  ;;  %2310 = vperm.xlu1 %7337, %v1136_v27   ;;  %2305 = vperm.xlu0 %7336, %v1135_v35   ;;  %v3507_v43 = vadd.f32 %v3506_v51, %v7857_v32  ;;  %v3837_v22 = vadd.f32 %v3836_v46, %v8231_v17  ;;  %v3508_v39 = vpop.f32.mrb[19].mxu0  ;;  %v3838_v30 = vpop.f32.mrb[3].mxu1  ;;  %v5325_v58 = vmax.f32 %v3503_v62, 0.0 }
 0x1eb   : > { %4782 = vst [vmem:[%s8929_s26 + $0x8] sm:$0xff] %v3505_v54  ;;  %4914 = vst [vmem:[%s8929_s26 + $0x428] sm:$0xff] %v3835_v19  ;;  %v3509_v4 = vadd.f32 %v3508_v39, %v7857_v32  ;;  %v3839_v35 = vadd.f32 %v3838_v30, %v8231_v17  ;;  %v5457_v27 = vmax.f32 %v3833_v18, 0.0  ;;  %v5326_v32 = vmax.f32 %v3505_v54, 0.0  ;;  %v8984_v54 = vld [vmem:[%s10866_s5 + $0x40] sm:$0xff] }
 0x1ec   : > { %7100 = vmatmul.mubr.msk.bf16.gmra.mrb[124].mxu0 %vm3083_vm2, %v7392_v38  ;;  %7133 = vmatmul.mubr.msk.bf16.gmra.mrb[108].mxu1 %vm3083_vm2, %v7393_v26  ;;  %4783 = vst [vmem:[%s8929_s26 + $0x10] sm:$0xff] %v3507_v43  ;;  %v5327_v51 = vmax.f32 %v3507_v43, 0.0  ;;  %4915 = vst [vmem:[%s8929_s26 + $0x430] sm:$0xff] %v3837_v22  ;;  %v5459_v46 = vmax.f32 %v3837_v22, 0.0  ;;  %v5458_v17 = vmax.f32 %v3835_v19, 0.0  ;;  %v1140_v22 = vld [vmem:[%s10865_s4 + $0x748] sm:$0xff] }
 0x1ed   : > { %3780 = vmatprep.mubr.bf16.mxu0 %v11031_v20  ;;  %4110 = vmatprep.mubr.bf16.mxu1 %v11031_v20  ;;  %4784 = vst [vmem:[%s8929_s26 + $0x18] sm:$0xff] %v3509_v4  ;;  %v5328_v39 = vmax.f32 %v3509_v4, 0.0  ;;  %4916 = vst [vmem:[%s8929_s26 + $0x438] sm:$0xff] %v3839_v35  ;;  %v5460_v30 = vmax.f32 %v3839_v35, 0.0  ;;  %v8979_v43 = vld [vmem:[%s10866_s5] sm:$0xff] }
 0x1ee   : > { %2320 = vperm.xlu1 %7337, %v1138_v33   ;;  %2315 = vperm.xlu0 %7336, %v1137_v25   ;;  %v5837_v26 = vpack.c.bf16 %v5327_v51, %v5325_v58  ;;  %v8986_v19 = vpack.c.bf16 %v5459_v46, %v5457_v27  ;;  %v1139_v58 = vld [vmem:[%s10865_s4 + $0x740] sm:$0xff]  ;;  %v7395_v27 = vld [vmem:[%s10864_s3 + $0x1e8] sm:$0xff]   ;;  %v8999_v46 = vpop.permute.xlu0 %1915 }
 0x1ef   : > { %v3512_v38 = vpop.f32.mrb[20].mxu0  ;;  %v3842_v62 = vpop.f32.mrb[4].mxu1  ;;  %v5838_v35 = vpack.c.bf16 %v5328_v39, %v5326_v32  ;;  %v7394_v51 = vld [vmem:[%s10864_s3 + $0xe0] sm:$0xff]   ;;  %11100 = vst [vmem:[#allocation108_spill] sm:$0xff] %v8999_v46  ;;  %v9005_v39 = vpack.c.bf16 %v5460_v30, %v5458_v17  ;;  %v1142_v30 = vld [vmem:[%s10865_s4 + $0x758] sm:$0xff] }
 0x1f0   : > { %11099 = vst [vmem:[#allocation107_spill] sm:$0xff] %v8986_v19  ;;  %v3513_v18 = vadd.f32 %v3512_v38, %v7869_v37  ;;  %v3843_v33 = vadd.f32 %v3842_v62, %v8245_v23  ;;  %v3514_v25 = vpop.f32.mrb[21].mxu0  ;;  %v3844_v4 = vpop.f32.mrb[5].mxu1 }
 0x1f1   : > { %v3515_v38 = vadd.f32 %v3514_v25, %v7869_v37  ;;  %v3845_v62 = vadd.f32 %v3844_v4, %v8245_v23  ;;  %v3516_v13 = vpop.f32.mrb[22].mxu0  ;;  %v3846_v19 = vpop.f32.mrb[6].mxu1  ;;  %6277 = vmatprep.subr.bf16.mxu0 %v5838_v35 }
 0x1f2   : > { %4785 = vst [vmem:[%s8929_s26 + $0x20] sm:$0xff] %v3513_v18  ;;  %4917 = vst [vmem:[%s8929_s26 + $0x440] sm:$0xff] %v3843_v33  ;;  %2330 = vperm.xlu1 %7337, %v1140_v22   ;;  %v3517_v46 = vadd.f32 %v3516_v13, %v7867_v36  ;;  %v3847_v37 = vadd.f32 %v3846_v19, %v8243_v24  ;;  %2325 = vperm.xlu0 %7336, %v1139_v58   ;;  %v3518_v23 = vpop.f32.mrb[23].mxu0  ;;  %v3848_v25 = vpop.f32.mrb[7].mxu1  ;;  %v1141_v13 = vld [vmem:[%s10865_s4 + $0x750] sm:$0xff]  ;;  %v5329_v19 = vmax.f32 %v3513_v18, 0.0 }
 0x1f3   : > { %4786 = vst [vmem:[%s8929_s26 + $0x28] sm:$0xff] %v3515_v38  ;;  %4918 = vst [vmem:[%s8929_s26 + $0x448] sm:$0xff] %v3845_v62  ;;  %6278 = vmatpush1.bf16.msra.mxu0 %v5837_v26  ;;  %v3519_v17 = vadd.f32 %v3518_v23, %v7867_v36  ;;  %v3849_v22 = vadd.f32 %v3848_v25, %v8243_v24  ;;  %v5461_v26 = vmax.f32 %v3843_v33, 0.0  ;;  %v9027_v36 = vpop.permute.xlu1 %1920  ;;  %v5330_v24 = vmax.f32 %v3515_v38, 0.0 }
 0x1f4   : > { %7101 = vmatmul.mubr.msk.bf16.gmra.mrb[128].mxu0 %vm3083_vm2, %v7394_v51  ;;  %7134 = vmatmul.mubr.msk.bf16.gmra.mrb[112].mxu1 %vm3083_vm2, %v7395_v27  ;;  %4787 = vst [vmem:[%s8929_s26 + $0x30] sm:$0xff] %v3517_v46  ;;  %v5331_v4 = vmax.f32 %v3517_v46, 0.0  ;;  %4919 = vst [vmem:[%s8929_s26 + $0x450] sm:$0xff] %v3847_v37  ;;  %v5463_v35 = vmax.f32 %v3847_v37, 0.0  ;;  %v5462_v58 = vmax.f32 %v3845_v62, 0.0  ;;  %v1144_v46 = vld [vmem:[%s10865_s4 + $0x768] sm:$0xff] }
 0x1f5   : > { %3790 = vmatprep.mubr.bf16.mxu0 %v11031_v20  ;;  %4120 = vmatprep.mubr.bf16.mxu1 %v11031_v20  ;;  %4788 = vst [vmem:[%s8929_s26 + $0x38] sm:$0xff] %v3519_v17  ;;  %v5332_v51 = vmax.f32 %v3519_v17, 0.0  ;;  %4920 = vst [vmem:[%s8929_s26 + $0x458] sm:$0xff] %v3849_v22  ;;  %v5464_v27 = vmax.f32 %v3849_v22, 0.0  ;;  %v1143_v22 = vld [vmem:[%s10865_s4 + $0x760] sm:$0xff] }
 0x1f6   : > { %2340 = vperm.xlu1 %7337, %v1142_v30   ;;  %v5839_v23 = vpack.c.bf16 %v5331_v4, %v5329_v19  ;;  %2335 = vperm.xlu0 %7336, %v1141_v13   ;;  %v9034_v37 = vpack.c.bf16 %v5463_v35, %v5461_v26  ;;  %v7396_v13 = vld [vmem:[%s10864_s3 + $0xe8] sm:$0xff]   ;;  %v7397_v19 = vld [vmem:[%s10864_s3 + $0x1f0] sm:$0xff]   ;;  %v9049_v4 = vpop.permute.xlu0 %1925 }
 0x1f7   : > { %v3522_v18 = vpop.f32.mrb[24].mxu0  ;;  %v3852_v33 = vpop.f32.mrb[8].mxu1  ;;  %v5840_v30 = vpack.c.bf16 %v5332_v51, %v5330_v24  ;;  %v9047_v26 = vpack.c.bf16 %v5464_v27, %v5462_v58  ;;  %11101 = vst [vmem:[#allocation109_spill] sm:$0xff] %v9049_v4 }
 0x1f8   : > { %v3523_v38 = vadd.f32 %v3522_v18, %v7879_v41  ;;  %v3853_v62 = vadd.f32 %v3852_v33, %v8263_v29  ;;  %v3524_v25 = vpop.f32.mrb[25].mxu0  ;;  %v3854_v17 = vpop.f32.mrb[9].mxu1 }
 0x1f9   : > { %v3525_v35 = vadd.f32 %v3524_v25, %v7879_v41  ;;  %v3855_v24 = vadd.f32 %v3854_v17, %v8263_v29  ;;  %v3526_v51 = vpop.f32.mrb[26].mxu0  ;;  %v3856_v18 = vpop.f32.mrb[10].mxu1  ;;  %6279 = vmatprep.subr.bf16.mxu0 %v5840_v30  ;;  %v1146_v41 = vld [vmem:[%s10865_s4 + $0x778] sm:$0xff]  ;;  %v1145_v25 = vld [vmem:[%s10865_s4 + $0x770] sm:$0xff] }
 0x1fa   : > { %4789 = vst [vmem:[%s8929_s26 + $0x40] sm:$0xff] %v3523_v38  ;;  %4921 = vst [vmem:[%s8929_s26 + $0x460] sm:$0xff] %v3853_v62  ;;  %2350 = vperm.xlu1 %7337, %v1144_v46   ;;  %v3527_v33 = vadd.f32 %v3526_v51, %v7877_v40  ;;  %v3857_v58 = vadd.f32 %v3856_v18, %v8261_v34  ;;  %2345 = vperm.xlu0 %7336, %v1143_v22   ;;  %v3528_v27 = vpop.f32.mrb[27].mxu0  ;;  %v3858_v32 = vpop.f32.mrb[11].mxu1  ;;  %v5333_v17 = vmax.f32 %v3523_v38, 0.0  ;;  %v1148_v18 = vld [vmem:[%s10865_s4 + $0x788] sm:$0xff] }
 0x1fb   : > { %4790 = vst [vmem:[%s8929_s26 + $0x48] sm:$0xff] %v3525_v35  ;;  %4922 = vst [vmem:[%s8929_s26 + $0x468] sm:$0xff] %v3855_v24  ;;  %6280 = vmatpush1.bf16.msra.mxu0 %v5839_v23  ;;  %v3529_v29 = vadd.f32 %v3528_v27, %v7877_v40  ;;  %v3859_v46 = vadd.f32 %v3858_v32, %v8261_v34  ;;  %v5465_v23 = vmax.f32 %v3853_v62, 0.0  ;;  %v9073_v40 = vpop.permute.xlu1 %1930  ;;  %v5334_v34 = vmax.f32 %v3525_v35, 0.0 }
 0x1fc   : > { %7102 = vmatmul.mubr.msk.bf16.gmra.mrb[132].mxu0 %vm3083_vm2, %v7396_v13  ;;  %7135 = vmatmul.mubr.msk.bf16.gmra.mrb[116].mxu1 %vm3083_vm2, %v7397_v19  ;;  %4791 = vst [vmem:[%s8929_s26 + $0x50] sm:$0xff] %v3527_v33  ;;  %v5335_v30 = vmax.f32 %v3527_v33, 0.0  ;;  %4923 = vst [vmem:[%s8929_s26 + $0x470] sm:$0xff] %v3857_v58  ;;  %v5467_v22 = vmax.f32 %v3857_v58, 0.0  ;;  %v5466_v32 = vmax.f32 %v3855_v24, 0.0 }
 0x1fd   : > { %3800 = vmatprep.mubr.bf16.mxu0 %v11031_v20  ;;  %4130 = vmatprep.mubr.bf16.mxu1 %v11031_v20  ;;  %11102 = vst [vmem:[#allocation110_spill] sm:$0xff] %v9073_v40  ;;  %4792 = vst [vmem:[%s8929_s26 + $0x58] sm:$0xff] %v3529_v29  ;;  %v5336_v13 = vmax.f32 %v3529_v29, 0.0  ;;  %v5468_v19 = vmax.f32 %v3859_v46, 0.0  ;;  %v1147_v29 = vld [vmem:[%s10865_s4 + $0x780] sm:$0xff] }
 0x1fe   : > { %4924 = vst [vmem:[%s8929_s26 + $0x478] sm:$0xff] %v3859_v46  ;;  %2360 = vperm.xlu1 %7337, %v1146_v41   ;;  %v5841_v51 = vpack.c.bf16 %v5335_v30, %v5333_v17  ;;  %2355 = vperm.xlu0 %7336, %v1145_v25   ;;  %v9080_v33 = vpack.c.bf16 %v5467_v22, %v5465_v23  ;;  %v7398_v46 = vld [vmem:[%s10864_s3 + $0xf0] sm:$0xff]   ;;  %v7399_v25 = vld [vmem:[%s10864_s3 + $0x1f8] sm:$0xff]   ;;  %v9095_v23 = vpop.permute.xlu0 %1935 }
 0x1ff   : > { %v3532_v38 = vpop.f32.mrb[28].mxu0  ;;  %v3862_v62 = vpop.f32.mrb[12].mxu1  ;;  %v5842_v41 = vpack.c.bf16 %v5336_v13, %v5334_v34  ;;  %v9093_v17 = vpack.c.bf16 %v5468_v19, %v5466_v32  ;;  %11103 = vst [vmem:[#allocation111_spill] sm:$0xff] %v9095_v23 }
 0x200   : > { %v3533_v35 = vadd.f32 %v3532_v38, %v7889_v45  ;;  %v3863_v24 = vadd.f32 %v3862_v62, %v8275_v28  ;;  %v3534_v58 = vpop.f32.mrb[29].mxu0  ;;  %v3864_v27 = vpop.f32.mrb[13].mxu1 }
 0x201   : > { %v3535_v30 = vadd.f32 %v3534_v58, %v7889_v45  ;;  %v3865_v22 = vadd.f32 %v3864_v27, %v8275_v28  ;;  %v3536_v34 = vpop.f32.mrb[30].mxu0  ;;  %v3866_v13 = vpop.f32.mrb[14].mxu1  ;;  %6281 = vmatprep.subr.bf16.mxu0 %v5842_v41  ;;  %v1150_v45 = vld [vmem:[%s10865_s4 + $0x798] sm:$0xff]  ;;  %v1149_v58 = vld [vmem:[%s10865_s4 + $0x790] sm:$0xff] }
 0x202   : > { %4793 = vst [vmem:[%s8929_s26 + $0x60] sm:$0xff] %v3533_v35  ;;  %4925 = vst [vmem:[%s8929_s26 + $0x480] sm:$0xff] %v3863_v24  ;;  %2370 = vperm.xlu1 %7337, %v1148_v18   ;;  %v3537_v38 = vadd.f32 %v3536_v34, %v7887_v44  ;;  %v3867_v32 = vadd.f32 %v3866_v13, %v8273_v21  ;;  %2365 = vperm.xlu0 %7336, %v1147_v29   ;;  %v3538_v19 = vpop.f32.mrb[31].mxu0  ;;  %v3868_v62 = vpop.f32.mrb[15].mxu1  ;;  %v5337_v27 = vmax.f32 %v3533_v35, 0.0 }
 0x203   : > { %4794 = vst [vmem:[%s8929_s26 + $0x68] sm:$0xff] %v3535_v30  ;;  %4926 = vst [vmem:[%s8929_s26 + $0x488] sm:$0xff] %v3865_v22  ;;  %6282 = vmatpush1.bf16.msra.mxu0 %v5841_v51  ;;  %v3539_v28 = vadd.f32 %v3538_v19, %v7887_v44  ;;  %v3869_v18 = vadd.f32 %v3868_v62, %v8273_v21  ;;  %v5469_v51 = vmax.f32 %v3863_v24, 0.0  ;;  %v9119_v44 = vpop.permute.xlu1 %1940  ;;  %v5338_v21 = vmax.f32 %v3535_v30, 0.0 }
 0x204   : > { %7103 = vmatmul.mubr.msk.bf16.gmra.mrb[136].mxu0 %vm3083_vm2, %v7398_v46  ;;  %7136 = vmatmul.mubr.msk.bf16.gmra.mrb[120].mxu1 %vm3083_vm2, %v7399_v25  ;;  %4795 = vst [vmem:[%s8929_s26 + $0x70] sm:$0xff] %v3537_v38  ;;  %v5339_v41 = vmax.f32 %v3537_v38, 0.0  ;;  %4927 = vst [vmem:[%s8929_s26 + $0x490] sm:$0xff] %v3867_v32  ;;  %v5471_v29 = vmax.f32 %v3867_v32, 0.0  ;;  %v5470_v46 = vmax.f32 %v3865_v22, 0.0  ;;  %v1152_v38 = vld [vmem:[%s10865_s4 + $0x7a8] sm:$0xff] }
 0x205   : > { %3810 = vmatprep.mubr.bf16.mxu0 %v11031_v20  ;;  %4140 = vmatprep.mubr.bf16.mxu1 %v11031_v20  ;;  %11104 = vst [vmem:[#allocation112_spill] sm:$0xff] %v9119_v44  ;;  %4796 = vst [vmem:[%s8929_s26 + $0x78] sm:$0xff] %v3539_v28  ;;  %v5340_v25 = vmax.f32 %v3539_v28, 0.0  ;;  %v5472_v34 = vmax.f32 %v3869_v18, 0.0  ;;  %v1151_v28 = vld [vmem:[%s10865_s4 + $0x7a0] sm:$0xff] }
 0x206   : > { %4928 = vst [vmem:[%s8929_s26 + $0x498] sm:$0xff] %v3869_v18  ;;  %2380 = vperm.xlu1 %7337, %v1150_v45   ;;  %v5843_v13 = vpack.c.bf16 %v5339_v41, %v5337_v27  ;;  %2375 = vperm.xlu0 %7336, %v1149_v58   ;;  %v9126_v32 = vpack.c.bf16 %v5471_v29, %v5469_v51  ;;  %v7400_v18 = vld [vmem:[%s10864_s3 + $0xf8] sm:$0xff]   ;;  %v7401_v58 = vld [vmem:[%s10864_s3 + $0x200] sm:$0xff]   ;;  %v9141_v51 = vpop.permute.xlu0 %1945 }
 0x207   : > { %v3542_v35 = vpop.f32.mrb[32].mxu0  ;;  %v3872_v24 = vpop.f32.mrb[16].mxu1  ;;  %v5844_v45 = vpack.c.bf16 %v5340_v25, %v5338_v21  ;;  %v9139_v27 = vpack.c.bf16 %v5472_v34, %v5470_v46  ;;  %11105 = vst [vmem:[#allocation113_spill] sm:$0xff] %v9141_v51 }
 0x208   : > { %v3543_v30 = vadd.f32 %v3542_v35, %v7899_v49  ;;  %v3873_v22 = vadd.f32 %v3872_v24, %v8293_v42  ;;  %v3544_v19 = vpop.f32.mrb[33].mxu0  ;;  %v3874_v62 = vpop.f32.mrb[17].mxu1 }
 0x209   : > { %v3545_v41 = vadd.f32 %v3544_v19, %v7899_v49  ;;  %v3875_v29 = vadd.f32 %v3874_v62, %v8293_v42  ;;  %v3546_v21 = vpop.f32.mrb[34].mxu0  ;;  %v3876_v25 = vpop.f32.mrb[18].mxu1  ;;  %6283 = vmatprep.subr.bf16.mxu0 %v5844_v45  ;;  %v1154_v49 = vld [vmem:[%s10865_s4 + $0x7b8] sm:$0xff]  ;;  %v1153_v19 = vld [vmem:[%s10865_s4 + $0x7b0] sm:$0xff] }
 0x20a   : > { %4797 = vst [vmem:[%s8929_s26 + $0x80] sm:$0xff] %v3543_v30  ;;  %4929 = vst [vmem:[%s8929_s26 + $0x4a0] sm:$0xff] %v3873_v22  ;;  %2390 = vperm.xlu1 %7337, %v1152_v38   ;;  %v3547_v35 = vadd.f32 %v3546_v21, %v7897_v48  ;;  %v3877_v46 = vadd.f32 %v3876_v25, %v8291_v8  ;;  %2385 = vperm.xlu0 %7336, %v1151_v28   ;;  %v3548_v34 = vpop.f32.mrb[35].mxu0  ;;  %v3878_v24 = vpop.f32.mrb[19].mxu1  ;;  %v5341_v62 = vmax.f32 %v3543_v30, 0.0 }
 0x20b   : > { %4798 = vst [vmem:[%s8929_s26 + $0x88] sm:$0xff] %v3545_v41  ;;  %4930 = vst [vmem:[%s8929_s26 + $0x4a8] sm:$0xff] %v3875_v29  ;;  %6284 = vmatpush1.bf16.msra.mxu0 %v5843_v13  ;;  %v3549_v42 = vadd.f32 %v3548_v34, %v7897_v48  ;;  %v3879_v38 = vadd.f32 %v3878_v24, %v8291_v8  ;;  %v5473_v13 = vmax.f32 %v3873_v22, 0.0  ;;  %v9165_v48 = vpop.permute.xlu1 %1950  ;;  %v5342_v8 = vmax.f32 %v3545_v41, 0.0 }
 0x20c   : > { %7104 = vmatmul.mubr.msk.bf16.gmra.mrb[140].mxu0 %vm3083_vm2, %v7400_v18  ;;  %7137 = vmatmul.mubr.msk.bf16.gmra.mrb[124].mxu1 %vm3083_vm2, %v7401_v58  ;;  %4799 = vst [vmem:[%s8929_s26 + $0x90] sm:$0xff] %v3547_v35  ;;  %v5343_v45 = vmax.f32 %v3547_v35, 0.0  ;;  %4931 = vst [vmem:[%s8929_s26 + $0x4b0] sm:$0xff] %v3877_v46  ;;  %v5475_v28 = vmax.f32 %v3877_v46, 0.0  ;;  %v5474_v18 = vmax.f32 %v3875_v29, 0.0  ;;  %v1156_v35 = vld [vmem:[%s10865_s4 + $0x7c8] sm:$0xff] }
 0x20d   : > { %3820 = vmatprep.mubr.bf16.mxu0 %v11031_v20  ;;  %4150 = vmatprep.mubr.bf16.mxu1 %v11031_v20  ;;  %11106 = vst [vmem:[#allocation114_spill] sm:$0xff] %v9165_v48  ;;  %4800 = vst [vmem:[%s8929_s26 + $0x98] sm:$0xff] %v3549_v42  ;;  %v5344_v58 = vmax.f32 %v3549_v42, 0.0  ;;  %v5476_v21 = vmax.f32 %v3879_v38, 0.0  ;;  %v1155_v42 = vld [vmem:[%s10865_s4 + $0x7c0] sm:$0xff] }
 0x20e   : > { %4932 = vst [vmem:[%s8929_s26 + $0x4b8] sm:$0xff] %v3879_v38  ;;  %2400 = vperm.xlu1 %7337, %v1154_v49   ;;  %v5845_v25 = vpack.c.bf16 %v5343_v45, %v5341_v62  ;;  %2395 = vperm.xlu0 %7336, %v1153_v19   ;;  %v9172_v46 = vpack.c.bf16 %v5475_v28, %v5473_v13  ;;  %v7402_v38 = vld [vmem:[%s10864_s3 + $0x100] sm:$0xff]   ;;  %v7403_v19 = vld [vmem:[%s10864_s3 + $0x208] sm:$0xff]   ;;  %v9187_v13 = vpop.permute.xlu0 %1955 }
 0x20f   : > { %v3552_v30 = vpop.f32.mrb[36].mxu0  ;;  %v3882_v22 = vpop.f32.mrb[20].mxu1  ;;  %v5846_v49 = vpack.c.bf16 %v5344_v58, %v5342_v8  ;;  %v9185_v62 = vpack.c.bf16 %v5476_v21, %v5474_v18  ;;  %11107 = vst [vmem:[#allocation115_spill] sm:$0xff] %v9187_v13  ;;  %v7202_v8 = vcombine.high %v8979_v43, %v8984_v54 }
 0x210   : > { %v3553_v41 = vadd.f32 %v3552_v30, %v7909_v53  ;;  %v3883_v29 = vadd.f32 %v3882_v22, %v8305_v2  ;;  %v3554_v34 = vpop.f32.mrb[37].mxu0  ;;  %v3884_v24 = vpop.f32.mrb[21].mxu1  ;;  %v1158_v22 = vld [vmem:[%s10865_s4 + $0x7d8] sm:$0xff] }
 0x211   : > { %v3555_v45 = vadd.f32 %v3554_v34, %v7909_v53  ;;  %v3885_v28 = vadd.f32 %v3884_v24, %v8305_v2  ;;  %v3556_v58 = vpop.f32.mrb[38].mxu0  ;;  %v3886_v30 = vpop.f32.mrb[22].mxu1  ;;  %6285 = vmatprep.subr.bf16.mxu0 %v5846_v49  ;;  %v1157_v24 = vld [vmem:[%s10865_s4 + $0x7d0] sm:$0xff] }
 0x212   : > { %4801 = vst [vmem:[%s8929_s26 + $0xa0] sm:$0xff] %v3553_v41  ;;  %4933 = vst [vmem:[%s8929_s26 + $0x4c0] sm:$0xff] %v3883_v29  ;;  %2410 = vperm.xlu1 %7337, %v1156_v35   ;;  %v3557_v18 = vadd.f32 %v3556_v58, %v7907_v52  ;;  %v3887_v21 = vadd.f32 %v3886_v30, %v8303_v63  ;;  %2405 = vperm.xlu0 %7336, %v1155_v42   ;;  %v3558_v53 = vpop.f32.mrb[39].mxu0  ;;  %v3888_v2 = vpop.f32.mrb[23].mxu1  ;;  %v5345_v49 = vmax.f32 %v3553_v41, 0.0 }
 0x213   : > { %4802 = vst [vmem:[%s8929_s26 + $0xa8] sm:$0xff] %v3555_v45  ;;  %4934 = vst [vmem:[%s8929_s26 + $0x4c8] sm:$0xff] %v3885_v28  ;;  %6286 = vmatpush1.bf16.msra.mxu0 %v5845_v25  ;;  %v3559_v34 = vadd.f32 %v3558_v53, %v7907_v52  ;;  %v3889_v35 = vadd.f32 %v3888_v2, %v8303_v63  ;;  %v5477_v25 = vmax.f32 %v3883_v29, 0.0  ;;  %v9212_v52 = vpop.permute.xlu1 %1960  ;;  %v5346_v63 = vmax.f32 %v3555_v45, 0.0 }
 0x214   : > { %7105 = vmatmul.mubr.msk.bf16.gmra.mrb[144].mxu0 %vm3083_vm2, %v7402_v38  ;;  %7138 = vmatmul.mubr.msk.bf16.gmra.mrb[128].mxu1 %vm3083_vm2, %v7403_v19  ;;  %4803 = vst [vmem:[%s8929_s26 + $0xb0] sm:$0xff] %v3557_v18  ;;  %v5347_v42 = vmax.f32 %v3557_v18, 0.0  ;;  %4935 = vst [vmem:[%s8929_s26 + $0x4d0] sm:$0xff] %v3887_v21  ;;  %v5479_v58 = vmax.f32 %v3887_v21, 0.0  ;;  %v5478_v38 = vmax.f32 %v3885_v28, 0.0  ;;  %v1160_v18 = vld [vmem:[%s10865_s4 + $0x7e8] sm:$0xff] }
 0x215   : > { %4160 = vmatprep.mubr.bf16.mxu1 %v11031_v20  ;;  %6309 = vmatprep.mubr.bf16.mxu0 %v7202_v8  ;;  %11108 = vst [vmem:[#allocation116_spill] sm:$0xff] %v9212_v52  ;;  %4804 = vst [vmem:[%s8929_s26 + $0xb8] sm:$0xff] %v3559_v34  ;;  %v5348_v30 = vmax.f32 %v3559_v34, 0.0  ;;  %v5480_v19 = vmax.f32 %v3889_v35, 0.0  ;;  %v1159_v34 = vld [vmem:[%s10865_s4 + $0x7e0] sm:$0xff] }
 0x216   : > { %4936 = vst [vmem:[%s8929_s26 + $0x4d8] sm:$0xff] %v3889_v35  ;;  %2420 = vperm.xlu1 %7337, %v1158_v22   ;;  %v5847_v53 = vpack.c.bf16 %v5347_v42, %v5345_v49  ;;  %2415 = vperm.xlu0 %7336, %v1157_v24   ;;  %v9219_v8 = vpack.c.bf16 %v5479_v58, %v5477_v25  ;;  %v7404_v35 = vld [vmem:[%s10864_s3 + $0x210] sm:$0xff]   ;;  %v9231_v49 = vpop.permute.xlu0 %1965 }
 0x217   : > { %v3562_v41 = vpop.f32.mrb[40].mxu0  ;;  %v3892_v29 = vpop.f32.mrb[24].mxu1  ;;  %v5848_v22 = vpack.c.bf16 %v5348_v30, %v5346_v63  ;;  %v9229_v24 = vpack.c.bf16 %v5480_v19, %v5478_v38  ;;  %11109 = vst [vmem:[#allocation117_spill] sm:$0xff] %v9231_v49 }
 0x218   : > { %v3563_v45 = vadd.f32 %v3562_v41, %v7919_v57  ;;  %v3893_v28 = vadd.f32 %v3892_v29, %v8323_v3  ;;  %v3564_v21 = vpop.f32.mrb[41].mxu0  ;;  %v3894_v2 = vpop.f32.mrb[25].mxu1 }
 0x219   : > { %v3565_v25 = vadd.f32 %v3564_v21, %v7919_v57  ;;  %v3895_v42 = vadd.f32 %v3894_v2, %v8323_v3  ;;  %v3566_v58 = vpop.f32.mrb[42].mxu0  ;;  %v3896_v63 = vpop.f32.mrb[26].mxu1  ;;  %6287 = vmatprep.subr.bf16.mxu0 %v5848_v22  ;;  %v1162_v57 = vld [vmem:[%s10865_s4 + $0x7f8] sm:$0xff] }
 0x21a   : > { %4805 = vst [vmem:[%s8929_s26 + $0xc0] sm:$0xff] %v3563_v45  ;;  %4937 = vst [vmem:[%s8929_s26 + $0x4e0] sm:$0xff] %v3893_v28  ;;  %2430 = vperm.xlu1 %7337, %v1160_v18   ;;  %v3567_v30 = vadd.f32 %v3566_v58, %v7917_v56  ;;  %v3897_v38 = vadd.f32 %v3896_v63, %v8321_v47  ;;  %2425 = vperm.xlu0 %7336, %v1159_v34   ;;  %v3568_v19 = vpop.f32.mrb[43].mxu0  ;;  %v3898_v41 = vpop.f32.mrb[27].mxu1  ;;  %v1161_v18 = vld [vmem:[%s10865_s4 + $0x7f0] sm:$0xff]  ;;  %v5349_v21 = vmax.f32 %v3563_v45, 0.0 }
 0x21b   : > { %4806 = vst [vmem:[%s8929_s26 + $0xc8] sm:$0xff] %v3565_v25  ;;  %4938 = vst [vmem:[%s8929_s26 + $0x4e8] sm:$0xff] %v3895_v42  ;;  %6288 = vmatpush1.bf16.msra.mxu0 %v5847_v53  ;;  %v3569_v3 = vadd.f32 %v3568_v19, %v7917_v56  ;;  %v3899_v29 = vadd.f32 %v3898_v41, %v8321_v47  ;;  %v5481_v2 = vmax.f32 %v3893_v28, 0.0  ;;  %v9253_v34 = vpop.permute.xlu1 %1970  ;;  %v5350_v56 = vmax.f32 %v3565_v25, 0.0 }
 0x21c   : > { %7139 = vmatmul.mubr.msk.bf16.gmra.mrb[132].mxu1 %vm3083_vm2, %v7404_v35  ;;  %4807 = vst [vmem:[%s8929_s26 + $0xd0] sm:$0xff] %v3567_v30  ;;  %v5351_v53 = vmax.f32 %v3567_v30, 0.0  ;;  %4939 = vst [vmem:[%s8929_s26 + $0x4f0] sm:$0xff] %v3897_v38  ;;  %v5483_v22 = vmax.f32 %v3897_v38, 0.0  ;;  %v5482_v58 = vmax.f32 %v3895_v42, 0.0  ;;  %v6094_v30 = vld [vmem:[%s10867_s6 + $0x8] sm:$0xff] }
 0x21d   : > { %4170 = vmatprep.mubr.bf16.mxu1 %v11031_v20  ;;  %11110 = vst [vmem:[#allocation118_spill] sm:$0xff] %v9253_v34  ;;  %4808 = vst [vmem:[%s8929_s26 + $0xd8] sm:$0xff] %v3569_v3  ;;  %v5352_v47 = vmax.f32 %v3569_v3, 0.0  ;;  %v5484_v35 = vmax.f32 %v3899_v29, 0.0  ;;  %v6093_v3 = vld [vmem:[%s10867_s6] sm:$0xff] }
 0x21e   : > { %4940 = vst [vmem:[%s8929_s26 + $0x4f8] sm:$0xff] %v3899_v29  ;;  %2440 = vperm.xlu1 %7337, %v1162_v57   ;;  %v5849_v63 = vpack.c.bf16 %v5351_v53, %v5349_v21  ;;  %2435 = vperm.xlu0 %7336, %v1161_v18   ;;  %v9260_v38 = vpack.c.bf16 %v5483_v22, %v5481_v2  ;;  %v7405_v29 = vld [vmem:[%s10864_s3 + $0x218] sm:$0xff]   ;;  %v9272_v21 = vpop.permute.xlu0 %1975 }
 0x21f   : > { %v3572_v45 = vpop.f32.mrb[44].mxu0  ;;  %v3902_v28 = vpop.f32.mrb[28].mxu1  ;;  %v5850_v57 = vpack.c.bf16 %v5352_v47, %v5350_v56  ;;  %v9270_v18 = vpack.c.bf16 %v5484_v35, %v5482_v58  ;;  %11111 = vst [vmem:[#allocation119_spill] sm:$0xff] %v9272_v21 }
 0x220   : > { %v3573_v25 = vadd.f32 %v3572_v45, %v7929_v61  ;;  %v3903_v42 = vadd.f32 %v3902_v28, %v8335_v12  ;;  %v3574_v19 = vpop.f32.mrb[45].mxu0  ;;  %v3904_v41 = vpop.f32.mrb[29].mxu1 }
 0x221   : > { %v3575_v2 = vadd.f32 %v3574_v19, %v7929_v61  ;;  %v3905_v53 = vadd.f32 %v3904_v41, %v8335_v12  ;;  %v3576_v22 = vpop.f32.mrb[46].mxu0  ;;  %v3906_v56 = vpop.f32.mrb[30].mxu1  ;;  %6289 = vmatprep.subr.bf16.mxu0 %v5850_v57  ;;  %v6096_v61 = vld [vmem:[%s10867_s6 + $0x18] sm:$0xff] }
 0x222   : > { %4809 = vst [vmem:[%s8929_s26 + $0xe0] sm:$0xff] %v3573_v25  ;;  %4941 = vst [vmem:[%s8929_s26 + $0x500] sm:$0xff] %v3903_v42  ;;  %6104 = vperm.xlu1 %7337, %v6094_v30   ;;  %v3577_v47 = vadd.f32 %v3576_v22, %v7927_v60  ;;  %v3907_v58 = vadd.f32 %v3906_v56, %v8333_v11  ;;  %6099 = vperm.xlu0 %7336, %v6093_v3   ;;  %v3578_v35 = vpop.f32.mrb[47].mxu0  ;;  %v3908_v45 = vpop.f32.mrb[31].mxu1  ;;  %v6095_v30 = vld [vmem:[%s10867_s6 + $0x10] sm:$0xff]  ;;  %v5353_v19 = vmax.f32 %v3573_v25, 0.0 }
 0x223   : > { %4810 = vst [vmem:[%s8929_s26 + $0xe8] sm:$0xff] %v3575_v2  ;;  %4942 = vst [vmem:[%s8929_s26 + $0x508] sm:$0xff] %v3905_v53  ;;  %6290 = vmatpush1.bf16.msra.mxu0 %v5849_v63  ;;  %v3579_v12 = vadd.f32 %v3578_v35, %v7927_v60  ;;  %v3909_v28 = vadd.f32 %v3908_v45, %v8333_v11  ;;  %v5485_v41 = vmax.f32 %v3903_v42, 0.0  ;;  %v9294_v3 = vpop.permute.xlu1 %1980  ;;  %v5354_v60 = vmax.f32 %v3575_v2, 0.0 }
 0x224   : > { %7140 = vmatmul.mubr.msk.bf16.gmra.mrb[136].mxu1 %vm3083_vm2, %v7405_v29  ;;  %4811 = vst [vmem:[%s8929_s26 + $0xf0] sm:$0xff] %v3577_v47  ;;  %v5355_v63 = vmax.f32 %v3577_v47, 0.0  ;;  %4943 = vst [vmem:[%s8929_s26 + $0x510] sm:$0xff] %v3907_v58  ;;  %v5487_v57 = vmax.f32 %v3907_v58, 0.0  ;;  %v5486_v22 = vmax.f32 %v3905_v53, 0.0  ;;  %v6710_v47 = vld [vmem:[%s10868_s7 + $0x8] sm:$0xff] }
 0x225   : > { %4180 = vmatprep.mubr.bf16.mxu1 %v11031_v20  ;;  %11112 = vst [vmem:[#allocation120_spill] sm:$0xff] %v9294_v3  ;;  %4812 = vst [vmem:[%s8929_s26 + $0xf8] sm:$0xff] %v3579_v12  ;;  %v5356_v11 = vmax.f32 %v3579_v12, 0.0  ;;  %v5488_v29 = vmax.f32 %v3909_v28, 0.0  ;;  %v6709_v12 = vld [vmem:[%s10868_s7] sm:$0xff] }
 0x226   : > { %4944 = vst [vmem:[%s8929_s26 + $0x518] sm:$0xff] %v3909_v28  ;;  %6114 = vperm.xlu1 %7337, %v6096_v61   ;;  %v5851_v56 = vpack.c.bf16 %v5355_v63, %v5353_v19  ;;  %6109 = vperm.xlu0 %7336, %v6095_v30   ;;  %v9301_v58 = vpack.c.bf16 %v5487_v57, %v5485_v41  ;;  %v7406_v28 = vld [vmem:[%s10864_s3 + $0x220] sm:$0xff]   ;;  %v9313_v19 = vpop.permute.xlu0 %1985 }
 0x227   : > { %v3582_v25 = vpop.f32.mrb[48].mxu0  ;;  %v3912_v42 = vpop.f32.mrb[32].mxu1  ;;  %v5852_v61 = vpack.c.bf16 %v5356_v11, %v5354_v60  ;;  %v9311_v30 = vpack.c.bf16 %v5488_v29, %v5486_v22  ;;  %11113 = vst [vmem:[#allocation121_spill] sm:$0xff] %v9313_v19 }
 0x228   : > { %v3583_v2 = vadd.f32 %v3582_v25, %v7939_v1  ;;  %v3913_v53 = vadd.f32 %v3912_v42, %v8353_v15  ;;  %v3584_v35 = vpop.f32.mrb[49].mxu0  ;;  %v3914_v45 = vpop.f32.mrb[33].mxu1 }
 0x229   : > { %v3585_v41 = vadd.f32 %v3584_v35, %v7939_v1  ;;  %v3915_v63 = vadd.f32 %v3914_v45, %v8353_v15  ;;  %v3586_v57 = vpop.f32.mrb[50].mxu0  ;;  %v3916_v60 = vpop.f32.mrb[34].mxu1  ;;  %6291 = vmatprep.subr.bf16.mxu0 %v5852_v61  ;;  %v6712_v1 = vld [vmem:[%s10868_s7 + $0x18] sm:$0xff] }
 0x22a   : > { %4813 = vst [vmem:[%s8929_s26 + $0x100] sm:$0xff] %v3583_v2  ;;  %4945 = vst [vmem:[%s8929_s26 + $0x520] sm:$0xff] %v3913_v53  ;;  %6720 = vperm.xlu1 %7337, %v6710_v47   ;;  %v3587_v11 = vadd.f32 %v3586_v57, %v7937_v0  ;;  %v3917_v22 = vadd.f32 %v3916_v60, %v8351_v55  ;;  %6715 = vperm.xlu0 %7336, %v6709_v12   ;;  %v3588_v29 = vpop.f32.mrb[51].mxu0  ;;  %v3918_v25 = vpop.f32.mrb[35].mxu1  ;;  %v6711_v47 = vld [vmem:[%s10868_s7 + $0x10] sm:$0xff]  ;;  %v5357_v35 = vmax.f32 %v3583_v2, 0.0 }
 0x22b   : > { %4814 = vst [vmem:[%s8929_s26 + $0x108] sm:$0xff] %v3585_v41  ;;  %4946 = vst [vmem:[%s8929_s26 + $0x528] sm:$0xff] %v3915_v63  ;;  %6292 = vmatpush1.bf16.msra.mxu0 %v5851_v56  ;;  %v3589_v15 = vadd.f32 %v3588_v29, %v7937_v0  ;;  %v3919_v42 = vadd.f32 %v3918_v25, %v8351_v55  ;;  %v5489_v45 = vmax.f32 %v3913_v53, 0.0  ;;  %v9335_v12 = vpop.permute.xlu1 %1990  ;;  %v5358_v0 = vmax.f32 %v3585_v41, 0.0 }
 0x22c   : > { %7141 = vmatmul.mubr.msk.bf16.gmra.mrb[140].mxu1 %vm3083_vm2, %v7406_v28  ;;  %4815 = vst [vmem:[%s8929_s26 + $0x110] sm:$0xff] %v3587_v11  ;;  %v5359_v56 = vmax.f32 %v3587_v11, 0.0  ;;  %4947 = vst [vmem:[%s8929_s26 + $0x530] sm:$0xff] %v3917_v22  ;;  %v5491_v61 = vmax.f32 %v3917_v22, 0.0  ;;  %v5490_v57 = vmax.f32 %v3915_v63, 0.0 }
 0x22d   : > { %4190 = vmatprep.mubr.bf16.mxu1 %v11031_v20  ;;  %11114 = vst [vmem:[#allocation122_spill] sm:$0xff] %v9335_v12  ;;  %4816 = vst [vmem:[%s8929_s26 + $0x118] sm:$0xff] %v3589_v15  ;;  %v5360_v55 = vmax.f32 %v3589_v15, 0.0  ;;  %v5492_v28 = vmax.f32 %v3919_v42, 0.0  ;;  %v6759_v15 = vld [vmem:[#allocation2] sm:$0x1] }
 0x22e   : > { %4948 = vst [vmem:[%s8929_s26 + $0x538] sm:$0xff] %v3919_v42  ;;  %6730 = vperm.xlu1 %7337, %v6712_v1   ;;  %v5853_v60 = vpack.c.bf16 %v5359_v56, %v5357_v35  ;;  %6725 = vperm.xlu0 %7336, %v6711_v47   ;;  %v9339_v11 = vpack.c.bf16 %v5491_v61, %v5489_v45  ;;  %v7407_v1 = vld [vmem:[%s10864_s3 + $0x228] sm:$0xff]   ;;  %v9348_v47 = vpop.permute.xlu0 %1995 }
 0x22f   : > { %v3592_v2 = vpop.f32.mrb[52].mxu0  ;;  %v3922_v53 = vpop.f32.mrb[36].mxu1  ;;  %v5854_v25 = vpack.c.bf16 %v5360_v55, %v5358_v0  ;;  %v9346_v42 = vpack.c.bf16 %v5492_v28, %v5490_v57  ;;  %11115 = vst [vmem:[#allocation123_spill] sm:$0xff] %v9348_v47 }
 0x230   : > { %v3593_v22 = vadd.f32 %v3592_v2, %v7949_v6  ;;  %v3923_v29 = vadd.f32 %v3922_v53, %v8365_v50  ;;  %v3594_v41 = vpop.f32.mrb[53].mxu0  ;;  %v3924_v63 = vpop.f32.mrb[37].mxu1 }
 0x231   : > { %v3595_v35 = vadd.f32 %v3594_v41, %v7949_v6  ;;  %v3925_v45 = vadd.f32 %v3924_v63, %v8365_v50  ;;  %v3596_v56 = vpop.f32.mrb[54].mxu0  ;;  %v3926_v61 = vpop.f32.mrb[38].mxu1  ;;  %6293 = vmatprep.subr.bf16.mxu0 %v5854_v25 }
 0x232   : > { %4817 = vst [vmem:[%s8929_s26 + $0x120] sm:$0xff] %v3593_v22  ;;  %4949 = vst [vmem:[%s8929_s26 + $0x540] sm:$0xff] %v3923_v29  ;;  %v3597_v0 = vadd.f32 %v3596_v56, %v7947_v5  ;;  %v3927_v57 = vadd.f32 %v3926_v61, %v8363_v16  ;;  %6762 = vperm.xlu0 %7336, %v6759_v15   ;;  %v3598_v55 = vpop.f32.mrb[55].mxu0  ;;  %v3928_v28 = vpop.f32.mrb[39].mxu1  ;;  %6294 = vmatpush1.bf16.msra.mxu0 %v5853_v60  ;;  %v5361_v2 = vmax.f32 %v3593_v22, 0.0 }
 0x233   : > { %4818 = vst [vmem:[%s8929_s26 + $0x128] sm:$0xff] %v3595_v35  ;;  %4950 = vst [vmem:[%s8929_s26 + $0x548] sm:$0xff] %v3925_v45  ;;  %v3599_v6 = vadd.f32 %v3598_v55, %v7947_v5  ;;  %v3929_v50 = vadd.f32 %v3928_v28, %v8363_v16  ;;  %v5493_v53 = vmax.f32 %v3923_v29, 0.0  ;;  %v5362_v25 = vmax.f32 %v3595_v35, 0.0 }
 0x234   : > { %7142 = vmatmul.mubr.msk.bf16.gmra.mrb[144].mxu1 %vm3083_vm2, %v7407_v1  ;;  %4819 = vst [vmem:[%s8929_s26 + $0x130] sm:$0xff] %v3597_v0  ;;  %v5363_v41 = vmax.f32 %v3597_v0, 0.0  ;;  %4951 = vst [vmem:[%s8929_s26 + $0x550] sm:$0xff] %v3927_v57  ;;  %v5495_v63 = vmax.f32 %v3927_v57, 0.0  ;;  %v5494_v15 = vmax.f32 %v3925_v45, 0.0  ;;  %v7408_v57 = vld [vmem:[%s10864_s3 + $0x230] sm:$0xff]  }
 0x235   : > { %4200 = vmatprep.mubr.bf16.mxu1 %v11031_v20  ;;  %4820 = vst [vmem:[%s8929_s26 + $0x138] sm:$0xff] %v3599_v6  ;;  %v5364_v56 = vmax.f32 %v3599_v6, 0.0  ;;  %4952 = vst [vmem:[%s8929_s26 + $0x558] sm:$0xff] %v3929_v50  ;;  %v5496_v5 = vmax.f32 %v3929_v50, 0.0 }
 0x236   : > { %v5855_v60 = vpack.c.bf16 %v5363_v41, %v5361_v2  ;;  %v9366_v22 = vpack.c.bf16 %v5495_v63, %v5493_v53 }
 0x237   : > { %v3602_v16 = vpop.f32.mrb[56].mxu0  ;;  %v3932_v61 = vpop.f32.mrb[40].mxu1  ;;  %v5856_v45 = vpack.c.bf16 %v5364_v56, %v5362_v25  ;;  %v9373_v55 = vpack.c.bf16 %v5496_v5, %v5494_v15 }
 0x238   : > { %v3603_v29 = vadd.f32 %v3602_v16, %v7959_v10  ;;  %v3933_v1 = vadd.f32 %v3932_v61, %v8383_v59  ;;  %v3604_v0 = vpop.f32.mrb[57].mxu0  ;;  %v3934_v35 = vpop.f32.mrb[41].mxu1 }
 0x239   : > { %v3605_v28 = vadd.f32 %v3604_v0, %v7959_v10  ;;  %v3935_v6 = vadd.f32 %v3934_v35, %v8383_v59  ;;  %v3606_v50 = vpop.f32.mrb[58].mxu0  ;;  %v3936_v2 = vpop.f32.mrb[42].mxu1  ;;  %6295 = vmatprep.subr.bf16.mxu0 %v5856_v45 }
 0x23a   : > { %4821 = vst [vmem:[%s8929_s26 + $0x140] sm:$0xff] %v3603_v29  ;;  %4953 = vst [vmem:[%s8929_s26 + $0x560] sm:$0xff] %v3933_v1  ;;  %v3607_v53 = vadd.f32 %v3606_v50, %v7957_v9  ;;  %v3937_v41 = vadd.f32 %v3936_v2, %v8381_v7  ;;  %v3608_v63 = vpop.f32.mrb[59].mxu0  ;;  %v3938_v25 = vpop.f32.mrb[43].mxu1  ;;  %6296 = vmatpush1.bf16.msra.mxu0 %v5855_v60  ;;  %v5365_v15 = vmax.f32 %v3603_v29, 0.0  ;;  %v5497_v56 = vmax.f32 %v3933_v1, 0.0 }
 0x23b   : > { %4822 = vst [vmem:[%s8929_s26 + $0x148] sm:$0xff] %v3605_v28  ;;  %4954 = vst [vmem:[%s8929_s26 + $0x568] sm:$0xff] %v3935_v6  ;;  %v3609_v10 = vadd.f32 %v3608_v63, %v7957_v9  ;;  %v3939_v59 = vadd.f32 %v3938_v25, %v8381_v7  ;;  %v5366_v61 = vmax.f32 %v3605_v28, 0.0  ;;  %v5498_v0 = vmax.f32 %v3935_v6, 0.0  ;;  %v7409_v2 = vld [vmem:[%s10864_s3 + $0x238] sm:$0xff]  }
 0x23c   : > { %7143 = vmatmul.mubr.msk.bf16.gmra.mrb[148].mxu1 %vm3083_vm2, %v7408_v57  ;;  %4823 = vst [vmem:[%s8929_s26 + $0x150] sm:$0xff] %v3607_v53  ;;  %v5367_v5 = vmax.f32 %v3607_v53, 0.0  ;;  %4955 = vst [vmem:[%s8929_s26 + $0x570] sm:$0xff] %v3937_v41  ;;  %v5499_v16 = vmax.f32 %v3937_v41, 0.0 }
 0x23d   : > { %4210 = vmatprep.mubr.bf16.mxu1 %v11031_v20  ;;  %4824 = vst [vmem:[%s8929_s26 + $0x158] sm:$0xff] %v3609_v10  ;;  %v5368_v35 = vmax.f32 %v3609_v10, 0.0  ;;  %4956 = vst [vmem:[%s8929_s26 + $0x578] sm:$0xff] %v3939_v59  ;;  %v5500_v9 = vmax.f32 %v3939_v59, 0.0  ;;  %v11116_v59 = vld [vmem:[#allocation3_spill] sm:$0xff] }
 0x23e   : > { %v5857_v60 = vpack.c.bf16 %v5367_v5, %v5365_v15  ;;  %v9391_v29 = vpack.c.bf16 %v5499_v16, %v5497_v56  ;;  %v11117_v56 = vld [vmem:[#allocation46_spill] sm:$0xff] }
 0x23f   : > { %v3612_v7 = vpop.f32.mrb[60].mxu0  ;;  %v3942_v45 = vpop.f32.mrb[44].mxu1  ;;  %v5858_v6 = vpack.c.bf16 %v5368_v35, %v5366_v61  ;;  %v9398_v53 = vpack.c.bf16 %v5500_v9, %v5498_v0 }
 0x240   : > { %v3613_v1 = vadd.f32 %v3612_v7, %v7969_v14  ;;  %v3943_v57 = vadd.f32 %v3942_v45, %v8395_v31  ;;  %v3614_v50 = vpop.f32.mrb[61].mxu0  ;;  %v3944_v28 = vpop.f32.mrb[45].mxu1 }
 0x241   : > { %v3615_v41 = vadd.f32 %v3614_v50, %v7969_v14  ;;  %v3945_v63 = vadd.f32 %v3944_v28, %v8395_v31  ;;  %v3616_v25 = vpop.f32.mrb[62].mxu0  ;;  %v3946_v10 = vpop.f32.mrb[46].mxu1  ;;  %6297 = vmatprep.subr.bf16.mxu0 %v5858_v6 }
 0x242   : > { %4825 = vst [vmem:[%s8929_s26 + $0x160] sm:$0xff] %v3613_v1  ;;  %4957 = vst [vmem:[%s8929_s26 + $0x580] sm:$0xff] %v3943_v57  ;;  %v3617_v15 = vadd.f32 %v3616_v25, %v11116_v59  ;;  %v3947_v5 = vadd.f32 %v3946_v10, %v11117_v56  ;;  %v3618_v16 = vpop.f32.mrb[63].mxu0  ;;  %v3948_v61 = vpop.f32.mrb[47].mxu1  ;;  %6298 = vmatpush1.bf16.msra.mxu0 %v5857_v60  ;;  %v5369_v0 = vmax.f32 %v3613_v1, 0.0  ;;  %v5501_v35 = vmax.f32 %v3943_v57, 0.0 }
 0x243   : > { %4826 = vst [vmem:[%s8929_s26 + $0x168] sm:$0xff] %v3615_v41  ;;  %4958 = vst [vmem:[%s8929_s26 + $0x588] sm:$0xff] %v3945_v63  ;;  %v3619_v14 = vadd.f32 %v3618_v16, %v11116_v59  ;;  %v3949_v31 = vadd.f32 %v3948_v61, %v11117_v56  ;;  %v5370_v45 = vmax.f32 %v3615_v41, 0.0  ;;  %v5502_v50 = vmax.f32 %v3945_v63, 0.0  ;;  %v11118_v57 = vld [vmem:[#allocation5_spill] sm:$0xff]  ;;  %v11119_v59 = vld [vmem:[#allocation48_spill] sm:$0xff] }
 0x244   : > { %7144 = vmatmul.mubr.msk.bf16.gmra.mrb[152].mxu1 %vm3083_vm2, %v7409_v2  ;;  %4827 = vst [vmem:[%s8929_s26 + $0x170] sm:$0xff] %v3617_v15  ;;  %v5371_v9 = vmax.f32 %v3617_v15, 0.0  ;;  %4959 = vst [vmem:[%s8929_s26 + $0x590] sm:$0xff] %v3947_v5  ;;  %v5503_v7 = vmax.f32 %v3947_v5, 0.0  ;;  %v7410_v5 = vld [vmem:[%s10864_s3 + $0x240] sm:$0xff]  }
 0x245   : > { %4220 = vmatprep.mubr.bf16.mxu1 %v11031_v20  ;;  %4828 = vst [vmem:[%s8929_s26 + $0x178] sm:$0xff] %v3619_v14  ;;  %v5372_v28 = vmax.f32 %v3619_v14, 0.0  ;;  %4960 = vst [vmem:[%s8929_s26 + $0x598] sm:$0xff] %v3949_v31  ;;  %v5504_v60 = vmax.f32 %v3949_v31, 0.0 }
 0x246   : > { %v5859_v6 = vpack.c.bf16 %v5371_v9, %v5369_v0  ;;  %v9416_v1 = vpack.c.bf16 %v5503_v7, %v5501_v35  ;;  %v11120_v35 = vld [vmem:[#allocation4_spill] sm:$0xff]  ;;  %v11121_v7 = vld [vmem:[#allocation47_spill] sm:$0xff] }
 0x247   : > { %v3622_v25 = vpop.f32.mrb[64].mxu0  ;;  %v3952_v10 = vpop.f32.mrb[48].mxu1  ;;  %v5860_v63 = vpack.c.bf16 %v5372_v28, %v5370_v45  ;;  %v9423_v16 = vpack.c.bf16 %v5504_v60, %v5502_v50 }
 0x248   : > { %v3623_v2 = vadd.f32 %v3622_v25, %v11118_v57  ;;  %v3953_v15 = vadd.f32 %v3952_v10, %v11119_v59  ;;  %v3624_v56 = vpop.f32.mrb[65].mxu0  ;;  %v3954_v41 = vpop.f32.mrb[49].mxu1 }
 0x249   : > { %v3625_v61 = vadd.f32 %v3624_v56, %v11118_v57  ;;  %v3955_v14 = vadd.f32 %v3954_v41, %v11119_v59  ;;  %v3626_v31 = vpop.f32.mrb[66].mxu0  ;;  %v3956_v0 = vpop.f32.mrb[50].mxu1  ;;  %6299 = vmatprep.subr.bf16.mxu0 %v5860_v63 }
 0x24a   : > { %4829 = vst [vmem:[%s8929_s26 + $0x180] sm:$0xff] %v3623_v2  ;;  %4961 = vst [vmem:[%s8929_s26 + $0x5a0] sm:$0xff] %v3953_v15  ;;  %v3627_v9 = vadd.f32 %v3626_v31, %v11120_v35  ;;  %v3957_v45 = vadd.f32 %v3956_v0, %v11121_v7  ;;  %v3628_v50 = vpop.f32.mrb[67].mxu0  ;;  %v3958_v28 = vpop.f32.mrb[51].mxu1  ;;  %6300 = vmatpush1.bf16.msra.mxu0 %v5859_v6  ;;  %v5373_v10 = vmax.f32 %v3623_v2, 0.0  ;;  %v5505_v57 = vmax.f32 %v3953_v15, 0.0 }
 0x24b   : > { %4830 = vst [vmem:[%s8929_s26 + $0x188] sm:$0xff] %v3625_v61  ;;  %4962 = vst [vmem:[%s8929_s26 + $0x5a8] sm:$0xff] %v3955_v14  ;;  %v3629_v60 = vadd.f32 %v3628_v50, %v11120_v35  ;;  %v3959_v25 = vadd.f32 %v3958_v28, %v11121_v7  ;;  %v5374_v41 = vmax.f32 %v3625_v61, 0.0  ;;  %v5506_v63 = vmax.f32 %v3955_v14, 0.0  ;;  %v11122_v15 = vld [vmem:[#allocation7_spill] sm:$0xff] }
 0x24c   : > { %7145 = vmatmul.mubr.msk.bf16.gmra.mrb[156].mxu1 %vm3083_vm2, %v7410_v5  ;;  %4831 = vst [vmem:[%s8929_s26 + $0x190] sm:$0xff] %v3627_v9  ;;  %v5375_v59 = vmax.f32 %v3627_v9, 0.0  ;;  %4963 = vst [vmem:[%s8929_s26 + $0x5b0] sm:$0xff] %v3957_v45  ;;  %v5507_v56 = vmax.f32 %v3957_v45, 0.0  ;;  %v11123_v9 = vld [vmem:[#allocation50_spill] sm:$0xff]  ;;  %v7411_v28 = vld [vmem:[%s10864_s3 + $0x248] sm:$0xff]  }
 0x24d   : > { %4230 = vmatprep.mubr.bf16.mxu1 %v11031_v20  ;;  %4832 = vst [vmem:[%s8929_s26 + $0x198] sm:$0xff] %v3629_v60  ;;  %v5376_v31 = vmax.f32 %v3629_v60, 0.0  ;;  %4964 = vst [vmem:[%s8929_s26 + $0x5b8] sm:$0xff] %v3959_v25  ;;  %v5508_v6 = vmax.f32 %v3959_v25, 0.0 }
 0x24e   : > { %v5861_v0 = vpack.c.bf16 %v5375_v59, %v5373_v10  ;;  %v9441_v2 = vpack.c.bf16 %v5507_v56, %v5505_v57  ;;  %v11124_v56 = vld [vmem:[#allocation6_spill] sm:$0xff] }
 0x24f   : > { %v3632_v35 = vpop.f32.mrb[68].mxu0  ;;  %v3962_v7 = vpop.f32.mrb[52].mxu1  ;;  %v5862_v14 = vpack.c.bf16 %v5376_v31, %v5374_v41  ;;  %v9448_v60 = vpack.c.bf16 %v5508_v6, %v5506_v63  ;;  %v11125_v31 = vld [vmem:[#allocation49_spill] sm:$0xff] }
 0x250   : > { %v3633_v5 = vadd.f32 %v3632_v35, %v11122_v15  ;;  %v3963_v45 = vadd.f32 %v3962_v7, %v11123_v9  ;;  %v3634_v50 = vpop.f32.mrb[69].mxu0  ;;  %v3964_v61 = vpop.f32.mrb[53].mxu1 }
 0x251   : > { %v3635_v25 = vadd.f32 %v3634_v50, %v11122_v15  ;;  %v3965_v10 = vadd.f32 %v3964_v61, %v11123_v9  ;;  %v3636_v57 = vpop.f32.mrb[70].mxu0  ;;  %v3966_v59 = vpop.f32.mrb[54].mxu1  ;;  %6301 = vmatprep.subr.bf16.mxu0 %v5862_v14 }
 0x252   : > { %4833 = vst [vmem:[%s8929_s26 + $0x1a0] sm:$0xff] %v3633_v5  ;;  %4965 = vst [vmem:[%s8929_s26 + $0x5c0] sm:$0xff] %v3963_v45  ;;  %v3637_v41 = vadd.f32 %v3636_v57, %v11124_v56  ;;  %v3967_v35 = vadd.f32 %v3966_v59, %v11125_v31  ;;  %v3638_v63 = vpop.f32.mrb[71].mxu0  ;;  %v3968_v6 = vpop.f32.mrb[55].mxu1  ;;  %6302 = vmatpush1.bf16.msra.mxu0 %v5861_v0  ;;  %v5377_v9 = vmax.f32 %v3633_v5, 0.0  ;;  %v5509_v50 = vmax.f32 %v3963_v45, 0.0 }
 0x253   : > { %4834 = vst [vmem:[%s8929_s26 + $0x1a8] sm:$0xff] %v3635_v25  ;;  %4966 = vst [vmem:[%s8929_s26 + $0x5c8] sm:$0xff] %v3965_v10  ;;  %v3639_v7 = vadd.f32 %v3638_v63, %v11124_v56  ;;  %v3969_v15 = vadd.f32 %v3968_v6, %v11125_v31  ;;  %v5378_v57 = vmax.f32 %v3635_v25, 0.0  ;;  %v5510_v59 = vmax.f32 %v3965_v10, 0.0  ;;  %v11126_v45 = vld [vmem:[#allocation9_spill] sm:$0xff] }
 0x254   : > { %7146 = vmatmul.mubr.msk.bf16.gmra.mrb[160].mxu1 %vm3083_vm2, %v7411_v28  ;;  %4835 = vst [vmem:[%s8929_s26 + $0x1b0] sm:$0xff] %v3637_v41  ;;  %v5379_v61 = vmax.f32 %v3637_v41, 0.0  ;;  %4967 = vst [vmem:[%s8929_s26 + $0x5d0] sm:$0xff] %v3967_v35  ;;  %v5511_v14 = vmax.f32 %v3967_v35, 0.0  ;;  %v11127_v41 = vld [vmem:[#allocation52_spill] sm:$0xff] }
 0x255   : > { %4240 = vmatprep.mubr.bf16.mxu1 %v11031_v20  ;;  %4836 = vst [vmem:[%s8929_s26 + $0x1b8] sm:$0xff] %v3639_v7  ;;  %v5380_v47 = vmax.f32 %v3639_v7, 0.0  ;;  %4968 = vst [vmem:[%s8929_s26 + $0x5d8] sm:$0xff] %v3969_v15  ;;  %v5512_v0 = vmax.f32 %v3969_v15, 0.0  ;;  %v7412_v7 = vld [vmem:[%s10864_s3 + $0x250] sm:$0xff]  }
 0x256   : > { %v5863_v56 = vpack.c.bf16 %v5379_v61, %v5377_v9  ;;  %v9466_v5 = vpack.c.bf16 %v5511_v14, %v5509_v50 }
 0x257   : > { %v3642_v31 = vpop.f32.mrb[72].mxu0  ;;  %v3972_v63 = vpop.f32.mrb[56].mxu1  ;;  %v5864_v10 = vpack.c.bf16 %v5380_v47, %v5378_v57  ;;  %v9473_v12 = vpack.c.bf16 %v5512_v0, %v5510_v59  ;;  %v11128_v47 = vld [vmem:[#allocation8_spill] sm:$0xff]  ;;  %v11129_v57 = vld [vmem:[#allocation51_spill] sm:$0xff] }
 0x258   : > { %v3643_v28 = vadd.f32 %v3642_v31, %v11126_v45  ;;  %v3973_v35 = vadd.f32 %v3972_v63, %v11127_v41  ;;  %v3644_v6 = vpop.f32.mrb[73].mxu0  ;;  %v3974_v25 = vpop.f32.mrb[57].mxu1 }
 0x259   : > { %v3645_v15 = vadd.f32 %v3644_v6, %v11126_v45  ;;  %v3975_v9 = vadd.f32 %v3974_v25, %v11127_v41  ;;  %v3646_v50 = vpop.f32.mrb[74].mxu0  ;;  %v3976_v61 = vpop.f32.mrb[58].mxu1  ;;  %6303 = vmatprep.subr.bf16.mxu0 %v5864_v10 }
 0x25a   : > { %4837 = vst [vmem:[%s8929_s26 + $0x1c0] sm:$0xff] %v3643_v28  ;;  %4969 = vst [vmem:[%s8929_s26 + $0x5e0] sm:$0xff] %v3973_v35  ;;  %v3647_v14 = vadd.f32 %v3646_v50, %v11128_v47  ;;  %v3977_v31 = vadd.f32 %v3976_v61, %v11129_v57  ;;  %v3648_v59 = vpop.f32.mrb[75].mxu0  ;;  %v3978_v0 = vpop.f32.mrb[59].mxu1  ;;  %6304 = vmatpush1.bf16.msra.mxu0 %v5863_v56  ;;  %v5381_v41 = vmax.f32 %v3643_v28, 0.0  ;;  %v5513_v6 = vmax.f32 %v3973_v35, 0.0 }
 0x25b   : > { %4838 = vst [vmem:[%s8929_s26 + $0x1c8] sm:$0xff] %v3645_v15  ;;  %4970 = vst [vmem:[%s8929_s26 + $0x5e8] sm:$0xff] %v3975_v9  ;;  %v3649_v63 = vadd.f32 %v3648_v59, %v11128_v47  ;;  %v3979_v45 = vadd.f32 %v3978_v0, %v11129_v57  ;;  %v5382_v50 = vmax.f32 %v3645_v15, 0.0  ;;  %v5514_v61 = vmax.f32 %v3975_v9, 0.0  ;;  %v11130_v35 = vld [vmem:[#allocation11_spill] sm:$0xff] }
 0x25c   : > { %7147 = vmatmul.mubr.msk.bf16.gmra.mrb[164].mxu1 %vm3083_vm2, %v7412_v7  ;;  %4839 = vst [vmem:[%s8929_s26 + $0x1d0] sm:$0xff] %v3647_v14  ;;  %v5383_v25 = vmax.f32 %v3647_v14, 0.0  ;;  %4971 = vst [vmem:[%s8929_s26 + $0x5f0] sm:$0xff] %v3977_v31  ;;  %v5515_v10 = vmax.f32 %v3977_v31, 0.0  ;;  %v11131_v14 = vld [vmem:[#allocation54_spill] sm:$0xff] }
 0x25d   : > { %4250 = vmatprep.mubr.bf16.mxu1 %v11031_v20  ;;  %4840 = vst [vmem:[%s8929_s26 + $0x1d8] sm:$0xff] %v3649_v63  ;;  %v5384_v19 = vmax.f32 %v3649_v63, 0.0  ;;  %4972 = vst [vmem:[%s8929_s26 + $0x5f8] sm:$0xff] %v3979_v45  ;;  %v5516_v56 = vmax.f32 %v3979_v45, 0.0  ;;  %v7413_v63 = vld [vmem:[%s10864_s3 + $0x258] sm:$0xff]  }
 0x25e   : > { %v5865_v47 = vpack.c.bf16 %v5383_v25, %v5381_v41  ;;  %v9491_v28 = vpack.c.bf16 %v5515_v10, %v5513_v6 }
 0x25f   : > { %v3652_v57 = vpop.f32.mrb[76].mxu0  ;;  %v3982_v59 = vpop.f32.mrb[60].mxu1  ;;  %v5866_v9 = vpack.c.bf16 %v5384_v19, %v5382_v50  ;;  %v9498_v3 = vpack.c.bf16 %v5516_v56, %v5514_v61  ;;  %v11132_v19 = vld [vmem:[#allocation10_spill] sm:$0xff]  ;;  %v11133_v50 = vld [vmem:[#allocation53_spill] sm:$0xff] }
 0x260   : > { %v3653_v7 = vadd.f32 %v3652_v57, %v11130_v35  ;;  %v3983_v31 = vadd.f32 %v3982_v59, %v11131_v14  ;;  %v3654_v0 = vpop.f32.mrb[77].mxu0  ;;  %v3984_v15 = vpop.f32.mrb[61].mxu1 }
 0x261   : > { %v3655_v45 = vadd.f32 %v3654_v0, %v11130_v35  ;;  %v3985_v41 = vadd.f32 %v3984_v15, %v11131_v14  ;;  %v3656_v6 = vpop.f32.mrb[78].mxu0  ;;  %v3986_v25 = vpop.f32.mrb[62].mxu1  ;;  %6305 = vmatprep.subr.bf16.mxu0 %v5866_v9 }
 0x262   : > { %4841 = vst [vmem:[%s8929_s26 + $0x1e0] sm:$0xff] %v3653_v7  ;;  %4973 = vst [vmem:[%s8929_s26 + $0x600] sm:$0xff] %v3983_v31  ;;  %v3657_v10 = vadd.f32 %v3656_v6, %v11132_v19  ;;  %v3987_v57 = vadd.f32 %v3986_v25, %v11133_v50  ;;  %v3658_v61 = vpop.f32.mrb[79].mxu0  ;;  %v3988_v56 = vpop.f32.mrb[63].mxu1  ;;  %6306 = vmatpush1.bf16.msra.mxu0 %v5865_v47  ;;  %v5385_v14 = vmax.f32 %v3653_v7, 0.0  ;;  %v5517_v0 = vmax.f32 %v3983_v31, 0.0 }
 0x263   : > { %4842 = vst [vmem:[%s8929_s26 + $0x1e8] sm:$0xff] %v3655_v45  ;;  %4974 = vst [vmem:[%s8929_s26 + $0x608] sm:$0xff] %v3985_v41  ;;  %v3659_v59 = vadd.f32 %v3658_v61, %v11132_v19  ;;  %v3989_v35 = vadd.f32 %v3988_v56, %v11133_v50  ;;  %v5386_v6 = vmax.f32 %v3655_v45, 0.0  ;;  %v5518_v47 = vmax.f32 %v3985_v41, 0.0  ;;  %v11134_v7 = vld [vmem:[#allocation13_spill] sm:$0xff]  ;;  %v7414_v41 = vld [vmem:[%s10864_s3 + $0x260] sm:$0xff]  }
 0x264   : > { %7148 = vmatmul.mubr.msk.bf16.gmra.mrb[168].mxu1 %vm3083_vm2, %v7413_v63  ;;  %4843 = vst [vmem:[%s8929_s26 + $0x1f0] sm:$0xff] %v3657_v10  ;;  %v5387_v15 = vmax.f32 %v3657_v10, 0.0  ;;  %4975 = vst [vmem:[%s8929_s26 + $0x610] sm:$0xff] %v3987_v57  ;;  %v5519_v9 = vmax.f32 %v3987_v57, 0.0  ;;  %v11135_v10 = vld [vmem:[#allocation56_spill] sm:$0xff] }
 0x265   : > { %4260 = vmatprep.mubr.bf16.mxu1 %v11031_v20  ;;  %4844 = vst [vmem:[%s8929_s26 + $0x1f8] sm:$0xff] %v3659_v59  ;;  %v5388_v25 = vmax.f32 %v3659_v59, 0.0  ;;  %4976 = vst [vmem:[%s8929_s26 + $0x618] sm:$0xff] %v3989_v35  ;;  %v5520_v21 = vmax.f32 %v3989_v35, 0.0  ;;  %v9526_v59 = vld [vmem:[%s10866_s5 + $0x80] sm:$0xff] }
 0x266   : > { %v5867_v19 = vpack.c.bf16 %v5387_v15, %v5385_v14  ;;  %v9516_v63 = vpack.c.bf16 %v5519_v9, %v5517_v0  ;;  %v9531_v35 = vld [vmem:[%s10866_s5 + $0xc0] sm:$0xff] }
 0x267   : > { %v3662_v50 = vpop.f32.mrb[80].mxu0  ;;  %v3992_v61 = vpop.f32.mrb[64].mxu1  ;;  %v5868_v34 = vpack.c.bf16 %v5388_v25, %v5386_v6  ;;  %v9535_v15 = vpack.c.bf16 %v5520_v21, %v5518_v47  ;;  %v11136_v25 = vld [vmem:[#allocation12_spill] sm:$0xff]  ;;  %v7218_v21 = vcombine.high %v9526_v59, %v9531_v35 }
 0x268   : > { %v3663_v31 = vadd.f32 %v3662_v50, %v11134_v7  ;;  %v3993_v57 = vadd.f32 %v3992_v61, %v11135_v10  ;;  %v3664_v56 = vpop.f32.mrb[81].mxu0  ;;  %v3994_v45 = vpop.f32.mrb[65].mxu1  ;;  %v11137_v61 = vld [vmem:[#allocation55_spill] sm:$0xff] }
 0x269   : > { %v3665_v14 = vadd.f32 %v3664_v56, %v11134_v7  ;;  %v3995_v0 = vadd.f32 %v3994_v45, %v11135_v10  ;;  %v3666_v9 = vpop.f32.mrb[82].mxu0  ;;  %v3996_v6 = vpop.f32.mrb[66].mxu1  ;;  %6307 = vmatprep.subr.bf16.mxu0 %v5868_v34 }
 0x26a   : > { %4845 = vst [vmem:[%s8929_s26 + $0x200] sm:$0xff] %v3663_v31  ;;  %4977 = vst [vmem:[%s8929_s26 + $0x620] sm:$0xff] %v3993_v57  ;;  %v3667_v50 = vadd.f32 %v3666_v9, %v11136_v25  ;;  %v3997_v49 = vadd.f32 %v3996_v6, %v11137_v61  ;;  %v3668_v52 = vpop.f32.mrb[83].mxu0  ;;  %v3998_v7 = vpop.f32.mrb[67].mxu1  ;;  %6308 = vmatpush1.bf16.msra.mxu0 %v5867_v19  ;;  %v5389_v34 = vmax.f32 %v3663_v31, 0.0  ;;  %v5521_v56 = vmax.f32 %v3993_v57, 0.0 }
 0x26b   : > { %4846 = vst [vmem:[%s8929_s26 + $0x208] sm:$0xff] %v3665_v14  ;;  %4978 = vst [vmem:[%s8929_s26 + $0x628] sm:$0xff] %v3995_v0  ;;  %v3669_v47 = vadd.f32 %v3668_v52, %v11136_v25  ;;  %v3999_v10 = vadd.f32 %v3998_v7, %v11137_v61  ;;  %v5390_v6 = vmax.f32 %v3665_v14, 0.0  ;;  %v11138_v52 = vcombine.low %v8979_v43, %v8984_v54  ;;  %v9564_v57 = vld [vmem:[%s10866_s5 + $0x48] sm:$0xff] }
 0x26c   : > { %7149 = vmatmul.mubr.msk.bf16.gmra.mrb[172].mxu1 %vm3083_vm2, %v7414_v41  ;;  %4847 = vst [vmem:[%s8929_s26 + $0x210] sm:$0xff] %v3667_v50  ;;  %v5391_v45 = vmax.f32 %v3667_v50, 0.0  ;;  %4979 = vst [vmem:[%s8929_s26 + $0x630] sm:$0xff] %v3997_v49  ;;  %v5523_v9 = vmax.f32 %v3997_v49, 0.0  ;;  %v5522_v25 = vmax.f32 %v3995_v0, 0.0  ;;  %v9559_v49 = vld [vmem:[%s10866_s5 + $0x8] sm:$0xff] }
 0x26d   : > { %4270 = vmatprep.mubr.bf16.mxu1 %v11031_v20  ;;  %4848 = vst [vmem:[%s8929_s26 + $0x218] sm:$0xff] %v3669_v47  ;;  %v5392_v19 = vmax.f32 %v3669_v47, 0.0  ;;  %4980 = vst [vmem:[%s8929_s26 + $0x638] sm:$0xff] %v3999_v10  ;;  %v5524_v13 = vmax.f32 %v3999_v10, 0.0  ;;  %6310 = vmatmul.mubr.bf16.vlgmr.msra.gmra.mrb[148].mxu0 %v11138_v52  ;;  %v11139_v43 = vld [vmem:[#allocation15_spill] sm:$0xff]  ;;  %v11140_v0 = vld [vmem:[#allocation58_spill] sm:$0xff] }
 0x26e   : > { %v5869_v61 = vpack.c.bf16 %v5391_v45, %v5389_v34  ;;  %6319 = vmatprep.mubr.bf16.mxu0 %v7218_v21  ;;  %v9566_v14 = vpack.c.bf16 %v5523_v9, %v5521_v56  ;;  %v7415_v10 = vld [vmem:[%s10864_s3 + $0x268] sm:$0xff]  }
 0x26f   : > { %v3672_v41 = vpop.f32.mrb[84].mxu0  ;;  %v4002_v31 = vpop.f32.mrb[68].mxu1  ;;  %v5870_v47 = vpack.c.bf16 %v5392_v19, %v5390_v6  ;;  %v9577_v9 = vpack.c.bf16 %v5524_v13, %v5522_v25  ;;  %v7217_v19 = vcombine.low %v9526_v59, %v9531_v35  ;;  %v7204_v13 = vcombine.high %v9559_v49, %v9564_v57 }
 0x270   : > { %v3673_v54 = vadd.f32 %v3672_v41, %v11139_v43  ;;  %v4003_v50 = vadd.f32 %v4002_v31, %v11140_v0  ;;  %v3674_v7 = vpop.f32.mrb[85].mxu0  ;;  %v4004_v21 = vpop.f32.mrb[69].mxu1  ;;  %v11141_v41 = vld [vmem:[#allocation14_spill] sm:$0xff] }
 0x271   : > { %v3675_v34 = vadd.f32 %v3674_v7, %v11139_v43  ;;  %v4005_v45 = vadd.f32 %v4004_v21, %v11140_v0  ;;  %v3676_v52 = vpop.f32.mrb[86].mxu0  ;;  %v4006_v6 = vpop.f32.mrb[70].mxu1  ;;  %6330 = vmatprep.subr.bf16.mxu0 %v5870_v47  ;;  %v11142_v43 = vld [vmem:[#allocation57_spill] sm:$0xff] }
 0x272   : > { %4849 = vst [vmem:[%s8929_s26 + $0x220] sm:$0xff] %v3673_v54  ;;  %4981 = vst [vmem:[%s8929_s26 + $0x640] sm:$0xff] %v4003_v50  ;;  %v3677_v31 = vadd.f32 %v3676_v52, %v11141_v41  ;;  %v4007_v0 = vadd.f32 %v4006_v6, %v11142_v43  ;;  %v3678_v7 = vpop.f32.mrb[87].mxu0  ;;  %v4008_v21 = vpop.f32.mrb[71].mxu1  ;;  %6331 = vmatpush1.bf16.msra.mxu0 %v5869_v61  ;;  %v5393_v25 = vmax.f32 %v3673_v54, 0.0  ;;  %v5525_v35 = vmax.f32 %v4003_v50, 0.0 }
 0x273   : > { %4850 = vst [vmem:[%s8929_s26 + $0x228] sm:$0xff] %v3675_v34  ;;  %4982 = vst [vmem:[%s8929_s26 + $0x648] sm:$0xff] %v4005_v45  ;;  %v3679_v47 = vadd.f32 %v3678_v7, %v11141_v41  ;;  %v4009_v59 = vadd.f32 %v4008_v21, %v11142_v43  ;;  %v5394_v56 = vmax.f32 %v3675_v34, 0.0  ;;  %v5526_v61 = vmax.f32 %v4005_v45, 0.0  ;;  %v11143_v50 = vld [vmem:[#allocation17_spill] sm:$0xff]  ;;  %v11144_v34 = vld [vmem:[#allocation60_spill] sm:$0xff] }
 0x274   : > { %4851 = vst [vmem:[%s8929_s26 + $0x230] sm:$0xff] %v3677_v31  ;;  %v5395_v52 = vmax.f32 %v3677_v31, 0.0  ;;  %7150 = vmatmul.mubr.msk.bf16.gmra.mrb[176].mxu1 %vm3083_vm2, %v7415_v10  ;;  %4983 = vst [vmem:[%s8929_s26 + $0x650] sm:$0xff] %v4007_v0  ;;  %v5527_v6 = vmax.f32 %v4007_v0, 0.0 }
 0x275   : > { %4280 = vmatprep.mubr.bf16.mxu1 %v11031_v20  ;;  %4852 = vst [vmem:[%s8929_s26 + $0x238] sm:$0xff] %v3679_v47  ;;  %v5396_v51 = vmax.f32 %v3679_v47, 0.0  ;;  %4984 = vst [vmem:[%s8929_s26 + $0x658] sm:$0xff] %v4009_v59  ;;  %v5528_v54 = vmax.f32 %v4009_v59, 0.0  ;;  %6320 = vmatmul.mubr.bf16.gmra.mrb[152].mxu0 %v7217_v19  ;;  %v11145_v59 = vld [vmem:[#allocation16_spill] sm:$0xff] }
 0x276   : > { %v5871_v48 = vpack.c.bf16 %v5395_v52, %v5393_v25  ;;  %6362 = vmatprep.mubr.bf16.mxu0 %v7204_v13  ;;  %v9597_v43 = vpack.c.bf16 %v5527_v6, %v5525_v35  ;;  %v7416_v25 = vld [vmem:[%s10864_s3 + $0x270] sm:$0xff]  }
 0x277   : > { %v3682_v41 = vpop.f32.mrb[88].mxu0  ;;  %v4012_v31 = vpop.f32.mrb[72].mxu1  ;;  %v5872_v21 = vpack.c.bf16 %v5396_v51, %v5394_v56  ;;  %v9604_v19 = vpack.c.bf16 %v5528_v54, %v5526_v61  ;;  %v11146_v51 = vld [vmem:[#allocation59_spill] sm:$0xff] }
 0x278   : > { %v3683_v10 = vadd.f32 %v3682_v41, %v11143_v50  ;;  %v4013_v0 = vadd.f32 %v4012_v31, %v11144_v34  ;;  %v3684_v45 = vpop.f32.mrb[89].mxu0  ;;  %v4014_v7 = vpop.f32.mrb[73].mxu1 }
 0x279   : > { %v3685_v13 = vadd.f32 %v3684_v45, %v11143_v50  ;;  %v4015_v52 = vadd.f32 %v4014_v7, %v11144_v34  ;;  %v3686_v47 = vpop.f32.mrb[90].mxu0  ;;  %v4016_v6 = vpop.f32.mrb[74].mxu1  ;;  %6332 = vmatprep.subr.bf16.mxu0 %v5872_v21 }
 0x27a   : > { %4853 = vst [vmem:[%s8929_s26 + $0x240] sm:$0xff] %v3683_v10  ;;  %4985 = vst [vmem:[%s8929_s26 + $0x660] sm:$0xff] %v4013_v0  ;;  %v3687_v35 = vadd.f32 %v3686_v47, %v11145_v59  ;;  %v4017_v56 = vadd.f32 %v4016_v6, %v11146_v51  ;;  %v3688_v41 = vpop.f32.mrb[91].mxu0  ;;  %v4018_v61 = vpop.f32.mrb[75].mxu1  ;;  %6333 = vmatpush1.bf16.msra.mxu0 %v5871_v48  ;;  %v5397_v54 = vmax.f32 %v3683_v10, 0.0  ;;  %v5529_v45 = vmax.f32 %v4013_v0, 0.0 }
 0x27b   : > { %4854 = vst [vmem:[%s8929_s26 + $0x248] sm:$0xff] %v3685_v13  ;;  %4986 = vst [vmem:[%s8929_s26 + $0x668] sm:$0xff] %v4015_v52  ;;  %v3689_v50 = vadd.f32 %v3688_v41, %v11145_v59  ;;  %v4019_v34 = vadd.f32 %v4018_v61, %v11146_v51  ;;  %v5398_v7 = vmax.f32 %v3685_v13, 0.0  ;;  %v5530_v47 = vmax.f32 %v4015_v52, 0.0  ;;  %v11148_v51 = vld [vmem:[#allocation19_spill] sm:$0xff] }
 0x27c   : > { %4855 = vst [vmem:[%s8929_s26 + $0x250] sm:$0xff] %v3687_v35  ;;  %v5399_v31 = vmax.f32 %v3687_v35, 0.0  ;;  %7151 = vmatmul.mubr.msk.bf16.gmra.mrb[180].mxu1 %vm3083_vm2, %v7416_v25  ;;  %4987 = vst [vmem:[%s8929_s26 + $0x670] sm:$0xff] %v4017_v56  ;;  %v5531_v21 = vmax.f32 %v4017_v56, 0.0  ;;  %v11149_v25 = vld [vmem:[#allocation62_spill] sm:$0xff] }
 0x27d   : > { %4290 = vmatprep.mubr.bf16.mxu1 %v11031_v20  ;;  %4856 = vst [vmem:[%s8929_s26 + $0x258] sm:$0xff] %v3689_v50  ;;  %v5400_v48 = vmax.f32 %v3689_v50, 0.0  ;;  %4988 = vst [vmem:[%s8929_s26 + $0x678] sm:$0xff] %v4019_v34  ;;  %v5532_v10 = vmax.f32 %v4019_v34, 0.0 }
 0x27e   : > { %v5873_v6 = vpack.c.bf16 %v5399_v31, %v5397_v54  ;;  %v9622_v41 = vpack.c.bf16 %v5531_v21, %v5529_v45  ;;  %v7417_v54 = vld [vmem:[%s10864_s3 + $0x278] sm:$0xff]  }
 0x27f   : > { %v3692_v35 = vpop.f32.mrb[92].mxu0  ;;  %v4022_v59 = vpop.f32.mrb[76].mxu1  ;;  %v5874_v52 = vpack.c.bf16 %v5400_v48, %v5398_v7  ;;  %v9629_v31 = vpack.c.bf16 %v5532_v10, %v5530_v47  ;;  %v11151_v21 = vld [vmem:[#allocation18_spill] sm:$0xff]  ;;  %v11152_v7 = vld [vmem:[#allocation61_spill] sm:$0xff] }
 0x280   : > { %11147 = vst [vmem:[#allocation3_spill] sm:$0xff] %v9622_v41  ;;  %v3693_v0 = vadd.f32 %v3692_v35, %v11148_v51  ;;  %v4023_v13 = vadd.f32 %v4022_v59, %v11149_v25  ;;  %v3694_v56 = vpop.f32.mrb[93].mxu0  ;;  %v4024_v61 = vpop.f32.mrb[77].mxu1 }
 0x281   : > { %11150 = vst [vmem:[#allocation46_spill] sm:$0xff] %v9629_v31  ;;  %v3695_v50 = vadd.f32 %v3694_v56, %v11148_v51  ;;  %v4025_v34 = vadd.f32 %v4024_v61, %v11149_v25  ;;  %v3696_v45 = vpop.f32.mrb[94].mxu0  ;;  %v4026_v59 = vpop.f32.mrb[78].mxu1  ;;  %6334 = vmatprep.subr.bf16.mxu0 %v5874_v52  ;;  %v11231_v31 = vcombine.low %v9559_v49, %v9564_v57  ;;  %v9997_v49 = vld [vmem:[%s10866_s5 + $0x50] sm:$0xff] }
 0x282   : > { %4857 = vst [vmem:[%s8929_s26 + $0x260] sm:$0xff] %v3693_v0  ;;  %4989 = vst [vmem:[%s8929_s26 + $0x680] sm:$0xff] %v4023_v13  ;;  %v3697_v35 = vadd.f32 %v3696_v45, %v11151_v21  ;;  %v4027_v48 = vadd.f32 %v4026_v59, %v11152_v7  ;;  %v3698_v44 = vpop.f32.mrb[95].mxu0  ;;  %v4028_v47 = vpop.f32.mrb[79].mxu1  ;;  %6335 = vmatpush1.bf16.msra.mxu0 %v5873_v6  ;;  %v5401_v10 = vmax.f32 %v3693_v0, 0.0  ;;  %v5533_v61 = vmax.f32 %v4023_v13, 0.0 }
 0x283   : > { %4858 = vst [vmem:[%s8929_s26 + $0x268] sm:$0xff] %v3695_v50  ;;  %4990 = vst [vmem:[%s8929_s26 + $0x688] sm:$0xff] %v4025_v34  ;;  %v3699_v25 = vadd.f32 %v3698_v44, %v11151_v21  ;;  %v4029_v56 = vadd.f32 %v4028_v47, %v11152_v7  ;;  %v5402_v52 = vmax.f32 %v3695_v50, 0.0  ;;  %v5534_v59 = vmax.f32 %v4025_v34, 0.0  ;;  %v11154_v7 = vld [vmem:[#allocation21_spill] sm:$0xff] }
 0x284   : > { %4859 = vst [vmem:[%s8929_s26 + $0x270] sm:$0xff] %v3697_v35  ;;  %v5403_v51 = vmax.f32 %v3697_v35, 0.0  ;;  %7152 = vmatmul.mubr.msk.bf16.gmra.mrb[184].mxu1 %vm3083_vm2, %v7417_v54  ;;  %4991 = vst [vmem:[%s8929_s26 + $0x690] sm:$0xff] %v4027_v48  ;;  %v5535_v45 = vmax.f32 %v4027_v48, 0.0  ;;  %v11155_v54 = vld [vmem:[#allocation64_spill] sm:$0xff] }
 0x285   : > { %4300 = vmatprep.mubr.bf16.mxu1 %v11031_v20  ;;  %4860 = vst [vmem:[%s8929_s26 + $0x278] sm:$0xff] %v3699_v25  ;;  %v5404_v6 = vmax.f32 %v3699_v25, 0.0  ;;  %4992 = vst [vmem:[%s8929_s26 + $0x698] sm:$0xff] %v4029_v56  ;;  %v5536_v0 = vmax.f32 %v4029_v56, 0.0 }
 0x286   : > { %v5875_v23 = vpack.c.bf16 %v5403_v51, %v5401_v10  ;;  %v9647_v21 = vpack.c.bf16 %v5535_v45, %v5533_v61  ;;  %v7418_v10 = vld [vmem:[%s10864_s3 + $0x280] sm:$0xff]   ;;  %v11157_v45 = vld [vmem:[#allocation20_spill] sm:$0xff] }
 0x287   : > { %v3702_v35 = vpop.f32.mrb[96].mxu0  ;;  %v4032_v44 = vpop.f32.mrb[80].mxu1  ;;  %v5876_v34 = vpack.c.bf16 %v5404_v6, %v5402_v52  ;;  %v9654_v51 = vpack.c.bf16 %v5536_v0, %v5534_v59  ;;  %v11158_v52 = vld [vmem:[#allocation63_spill] sm:$0xff] }
 0x288   : > { %11153 = vst [vmem:[#allocation5_spill] sm:$0xff] %v9647_v21  ;;  %v3703_v13 = vadd.f32 %v3702_v35, %v11154_v7  ;;  %v4033_v50 = vadd.f32 %v4032_v44, %v11155_v54  ;;  %v3704_v48 = vpop.f32.mrb[97].mxu0  ;;  %v4034_v47 = vpop.f32.mrb[81].mxu1 }
 0x289   : > { %11156 = vst [vmem:[#allocation48_spill] sm:$0xff] %v9654_v51  ;;  %v3705_v25 = vadd.f32 %v3704_v48, %v11154_v7  ;;  %v4035_v56 = vadd.f32 %v4034_v47, %v11155_v54  ;;  %v3706_v61 = vpop.f32.mrb[98].mxu0  ;;  %v4036_v44 = vpop.f32.mrb[82].mxu1  ;;  %6336 = vmatprep.subr.bf16.mxu0 %v5876_v34 }
 0x28a   : > { %4861 = vst [vmem:[%s8929_s26 + $0x280] sm:$0xff] %v3703_v13  ;;  %4993 = vst [vmem:[%s8929_s26 + $0x6a0] sm:$0xff] %v4033_v50  ;;  %v3707_v35 = vadd.f32 %v3706_v61, %v11157_v45  ;;  %v4037_v6 = vadd.f32 %v4036_v44, %v11158_v52  ;;  %v3708_v21 = vpop.f32.mrb[99].mxu0  ;;  %v4038_v59 = vpop.f32.mrb[83].mxu1  ;;  %6337 = vmatpush1.bf16.msra.mxu0 %v5875_v23  ;;  %v5405_v0 = vmax.f32 %v3703_v13, 0.0  ;;  %v5537_v47 = vmax.f32 %v4033_v50, 0.0 }
 0x28b   : > { %4862 = vst [vmem:[%s8929_s26 + $0x288] sm:$0xff] %v3705_v25  ;;  %4994 = vst [vmem:[%s8929_s26 + $0x6a8] sm:$0xff] %v4035_v56  ;;  %v3709_v54 = vadd.f32 %v3708_v21, %v11157_v45  ;;  %v4039_v48 = vadd.f32 %v4038_v59, %v11158_v52  ;;  %v5406_v34 = vmax.f32 %v3705_v25, 0.0  ;;  %v5538_v44 = vmax.f32 %v4035_v56, 0.0  ;;  %v11160_v52 = vld [vmem:[#allocation23_spill] sm:$0xff] }
 0x28c   : > { %4863 = vst [vmem:[%s8929_s26 + $0x290] sm:$0xff] %v3707_v35  ;;  %v5407_v7 = vmax.f32 %v3707_v35, 0.0  ;;  %7153 = vmatmul.mubr.msk.bf16.gmra.mrb[188].mxu1 %vm3083_vm2, %v7418_v10  ;;  %4995 = vst [vmem:[%s8929_s26 + $0x6b0] sm:$0xff] %v4037_v6  ;;  %v5539_v61 = vmax.f32 %v4037_v6, 0.0  ;;  %v11161_v10 = vld [vmem:[#allocation66_spill] sm:$0xff] }
 0x28d   : > { %4310 = vmatprep.mubr.bf16.mxu1 %v11031_v20  ;;  %4864 = vst [vmem:[%s8929_s26 + $0x298] sm:$0xff] %v3709_v54  ;;  %v5408_v23 = vmax.f32 %v3709_v54, 0.0  ;;  %4996 = vst [vmem:[%s8929_s26 + $0x6b8] sm:$0xff] %v4039_v48  ;;  %v5540_v13 = vmax.f32 %v4039_v48, 0.0 }
 0x28e   : > { %v5877_v40 = vpack.c.bf16 %v5407_v7, %v5405_v0  ;;  %v9672_v45 = vpack.c.bf16 %v5539_v61, %v5537_v47  ;;  %v7419_v0 = vld [vmem:[%s10864_s3 + $0x288] sm:$0xff]   ;;  %v11163_v61 = vld [vmem:[#allocation22_spill] sm:$0xff] }
 0x28f   : > { %v3712_v35 = vpop.f32.mrb[100].mxu0  ;;  %v4042_v21 = vpop.f32.mrb[84].mxu1  ;;  %v5878_v56 = vpack.c.bf16 %v5408_v23, %v5406_v34  ;;  %v9679_v7 = vpack.c.bf16 %v5540_v13, %v5538_v44  ;;  %v11164_v34 = vld [vmem:[#allocation65_spill] sm:$0xff] }
 0x290   : > { %11159 = vst [vmem:[#allocation4_spill] sm:$0xff] %v9672_v45  ;;  %v3713_v50 = vadd.f32 %v3712_v35, %v11160_v52  ;;  %v4043_v25 = vadd.f32 %v4042_v21, %v11161_v10  ;;  %v3714_v6 = vpop.f32.mrb[101].mxu0  ;;  %v4044_v59 = vpop.f32.mrb[85].mxu1 }
 0x291   : > { %11162 = vst [vmem:[#allocation47_spill] sm:$0xff] %v9679_v7  ;;  %v3715_v54 = vadd.f32 %v3714_v6, %v11160_v52  ;;  %v4045_v48 = vadd.f32 %v4044_v59, %v11161_v10  ;;  %v3716_v47 = vpop.f32.mrb[102].mxu0  ;;  %v4046_v21 = vpop.f32.mrb[86].mxu1  ;;  %6338 = vmatprep.subr.bf16.mxu0 %v5878_v56 }
 0x292   : > { %4865 = vst [vmem:[%s8929_s26 + $0x2a0] sm:$0xff] %v3713_v50  ;;  %4997 = vst [vmem:[%s8929_s26 + $0x6c0] sm:$0xff] %v4043_v25  ;;  %v3717_v35 = vadd.f32 %v3716_v47, %v11163_v61  ;;  %v4047_v23 = vadd.f32 %v4046_v21, %v11164_v34  ;;  %v3718_v45 = vpop.f32.mrb[103].mxu0  ;;  %v4048_v44 = vpop.f32.mrb[87].mxu1  ;;  %6339 = vmatpush1.bf16.msra.mxu0 %v5877_v40  ;;  %v5409_v13 = vmax.f32 %v3713_v50, 0.0  ;;  %v5541_v59 = vmax.f32 %v4043_v25, 0.0 }
 0x293   : > { %4866 = vst [vmem:[%s8929_s26 + $0x2a8] sm:$0xff] %v3715_v54  ;;  %4998 = vst [vmem:[%s8929_s26 + $0x6c8] sm:$0xff] %v4045_v48  ;;  %v3719_v10 = vadd.f32 %v3718_v45, %v11163_v61  ;;  %v4049_v6 = vadd.f32 %v4048_v44, %v11164_v34  ;;  %v5410_v56 = vmax.f32 %v3715_v54, 0.0  ;;  %v5542_v21 = vmax.f32 %v4045_v48, 0.0  ;;  %v11166_v34 = vld [vmem:[#allocation25_spill] sm:$0xff] }
 0x294   : > { %4867 = vst [vmem:[%s8929_s26 + $0x2b0] sm:$0xff] %v3717_v35  ;;  %v5411_v52 = vmax.f32 %v3717_v35, 0.0  ;;  %7154 = vmatmul.mubr.msk.bf16.gmra.mrb[192].mxu1 %vm3083_vm2, %v7419_v0  ;;  %4999 = vst [vmem:[%s8929_s26 + $0x6d0] sm:$0xff] %v4047_v23  ;;  %v5543_v47 = vmax.f32 %v4047_v23, 0.0  ;;  %v11167_v0 = vld [vmem:[#allocation68_spill] sm:$0xff] }
 0x295   : > { %4320 = vmatprep.mubr.bf16.mxu1 %v11031_v20  ;;  %4868 = vst [vmem:[%s8929_s26 + $0x2b8] sm:$0xff] %v3719_v10  ;;  %v5412_v40 = vmax.f32 %v3719_v10, 0.0  ;;  %5000 = vst [vmem:[%s8929_s26 + $0x6d8] sm:$0xff] %v4049_v6  ;;  %v5544_v50 = vmax.f32 %v4049_v6, 0.0 }
 0x296   : > { %v5879_v7 = vpack.c.bf16 %v5411_v52, %v5409_v13  ;;  %v9697_v61 = vpack.c.bf16 %v5543_v47, %v5541_v59  ;;  %v7420_v13 = vld [vmem:[%s10864_s3 + $0x290] sm:$0xff]  }
 0x297   : > { %v3722_v35 = vpop.f32.mrb[104].mxu0  ;;  %v4052_v45 = vpop.f32.mrb[88].mxu1  ;;  %v5880_v48 = vpack.c.bf16 %v5412_v40, %v5410_v56  ;;  %v9704_v52 = vpack.c.bf16 %v5544_v50, %v5542_v21  ;;  %v11169_v47 = vld [vmem:[#allocation24_spill] sm:$0xff]  ;;  %v11170_v56 = vld [vmem:[#allocation67_spill] sm:$0xff] }
 0x298   : > { %11165 = vst [vmem:[#allocation7_spill] sm:$0xff] %v9697_v61  ;;  %v3723_v25 = vadd.f32 %v3722_v35, %v11166_v34  ;;  %v4053_v54 = vadd.f32 %v4052_v45, %v11167_v0  ;;  %v3724_v23 = vpop.f32.mrb[105].mxu0  ;;  %v4054_v44 = vpop.f32.mrb[89].mxu1 }
 0x299   : > { %11168 = vst [vmem:[#allocation50_spill] sm:$0xff] %v9704_v52  ;;  %v3725_v10 = vadd.f32 %v3724_v23, %v11166_v34  ;;  %v4055_v6 = vadd.f32 %v4054_v44, %v11167_v0  ;;  %v3726_v59 = vpop.f32.mrb[106].mxu0  ;;  %v4056_v45 = vpop.f32.mrb[90].mxu1  ;;  %6340 = vmatprep.subr.bf16.mxu0 %v5880_v48 }
 0x29a   : > { %4869 = vst [vmem:[%s8929_s26 + $0x2c0] sm:$0xff] %v3723_v25  ;;  %5001 = vst [vmem:[%s8929_s26 + $0x6e0] sm:$0xff] %v4053_v54  ;;  %v3727_v35 = vadd.f32 %v3726_v59, %v11169_v47  ;;  %v4057_v40 = vadd.f32 %v4056_v45, %v11170_v56  ;;  %v3728_v61 = vpop.f32.mrb[107].mxu0  ;;  %v4058_v21 = vpop.f32.mrb[91].mxu1  ;;  %6341 = vmatpush1.bf16.msra.mxu0 %v5879_v7  ;;  %v5413_v50 = vmax.f32 %v3723_v25, 0.0  ;;  %v5545_v44 = vmax.f32 %v4053_v54, 0.0 }
 0x29b   : > { %4870 = vst [vmem:[%s8929_s26 + $0x2c8] sm:$0xff] %v3725_v10  ;;  %5002 = vst [vmem:[%s8929_s26 + $0x6e8] sm:$0xff] %v4055_v6  ;;  %v3729_v0 = vadd.f32 %v3728_v61, %v11169_v47  ;;  %v4059_v23 = vadd.f32 %v4058_v21, %v11170_v56  ;;  %v5414_v48 = vmax.f32 %v3725_v10, 0.0  ;;  %v5546_v45 = vmax.f32 %v4055_v6, 0.0  ;;  %v11172_v56 = vld [vmem:[#allocation27_spill] sm:$0xff] }
 0x29c   : > { %4871 = vst [vmem:[%s8929_s26 + $0x2d0] sm:$0xff] %v3727_v35  ;;  %v5415_v34 = vmax.f32 %v3727_v35, 0.0  ;;  %7155 = vmatmul.mubr.msk.bf16.gmra.mrb[196].mxu1 %vm3083_vm2, %v7420_v13  ;;  %5003 = vst [vmem:[%s8929_s26 + $0x6f0] sm:$0xff] %v4057_v40  ;;  %v5547_v59 = vmax.f32 %v4057_v40, 0.0  ;;  %v11173_v13 = vld [vmem:[#allocation70_spill] sm:$0xff] }
 0x29d   : > { %4330 = vmatprep.mubr.bf16.mxu1 %v11031_v20  ;;  %4872 = vst [vmem:[%s8929_s26 + $0x2d8] sm:$0xff] %v3729_v0  ;;  %v5416_v7 = vmax.f32 %v3729_v0, 0.0  ;;  %5004 = vst [vmem:[%s8929_s26 + $0x6f8] sm:$0xff] %v4059_v23  ;;  %v5548_v25 = vmax.f32 %v4059_v23, 0.0 }
 0x29e   : > { %v5881_v52 = vpack.c.bf16 %v5415_v34, %v5413_v50  ;;  %v9722_v47 = vpack.c.bf16 %v5547_v59, %v5545_v44  ;;  %v7421_v50 = vld [vmem:[%s10864_s3 + $0x298] sm:$0xff]  }
 0x29f   : > { %v3732_v35 = vpop.f32.mrb[108].mxu0  ;;  %v4062_v61 = vpop.f32.mrb[92].mxu1  ;;  %v5882_v6 = vpack.c.bf16 %v5416_v7, %v5414_v48  ;;  %v9729_v34 = vpack.c.bf16 %v5548_v25, %v5546_v45  ;;  %v11175_v59 = vld [vmem:[#allocation26_spill] sm:$0xff]  ;;  %v11176_v48 = vld [vmem:[#allocation69_spill] sm:$0xff] }
 0x2a0   : > { %11171 = vst [vmem:[#allocation6_spill] sm:$0xff] %v9722_v47  ;;  %v3733_v54 = vadd.f32 %v3732_v35, %v11172_v56  ;;  %v4063_v10 = vadd.f32 %v4062_v61, %v11173_v13  ;;  %v3734_v40 = vpop.f32.mrb[109].mxu0  ;;  %v4064_v21 = vpop.f32.mrb[93].mxu1 }
 0x2a1   : > { %11174 = vst [vmem:[#allocation49_spill] sm:$0xff] %v9729_v34  ;;  %v3735_v0 = vadd.f32 %v3734_v40, %v11172_v56  ;;  %v4065_v23 = vadd.f32 %v4064_v21, %v11173_v13  ;;  %v3736_v44 = vpop.f32.mrb[110].mxu0  ;;  %v4066_v61 = vpop.f32.mrb[94].mxu1  ;;  %6342 = vmatprep.subr.bf16.mxu0 %v5882_v6 }
 0x2a2   : > { %4873 = vst [vmem:[%s8929_s26 + $0x2e0] sm:$0xff] %v3733_v54  ;;  %5005 = vst [vmem:[%s8929_s26 + $0x700] sm:$0xff] %v4063_v10  ;;  %v3737_v35 = vadd.f32 %v3736_v44, %v11175_v59  ;;  %v4067_v7 = vadd.f32 %v4066_v61, %v11176_v48  ;;  %v3738_v47 = vpop.f32.mrb[111].mxu0  ;;  %v4068_v45 = vpop.f32.mrb[95].mxu1  ;;  %6343 = vmatpush1.bf16.msra.mxu0 %v5881_v52  ;;  %v5417_v25 = vmax.f32 %v3733_v54, 0.0  ;;  %v5549_v21 = vmax.f32 %v4063_v10, 0.0 }
 0x2a3   : > { %4874 = vst [vmem:[%s8929_s26 + $0x2e8] sm:$0xff] %v3735_v0  ;;  %5006 = vst [vmem:[%s8929_s26 + $0x708] sm:$0xff] %v4065_v23  ;;  %v3739_v13 = vadd.f32 %v3738_v47, %v11175_v59  ;;  %v4069_v40 = vadd.f32 %v4068_v45, %v11176_v48  ;;  %v5418_v6 = vmax.f32 %v3735_v0, 0.0  ;;  %v5550_v61 = vmax.f32 %v4065_v23, 0.0  ;;  %v11178_v48 = vld [vmem:[#allocation29_spill] sm:$0xff] }
 0x2a4   : > { %4875 = vst [vmem:[%s8929_s26 + $0x2f0] sm:$0xff] %v3737_v35  ;;  %v5419_v56 = vmax.f32 %v3737_v35, 0.0  ;;  %7156 = vmatmul.mubr.msk.bf16.gmra.mrb[200].mxu1 %vm3083_vm2, %v7421_v50  ;;  %5007 = vst [vmem:[%s8929_s26 + $0x710] sm:$0xff] %v4067_v7  ;;  %v5551_v44 = vmax.f32 %v4067_v7, 0.0  ;;  %v11179_v50 = vld [vmem:[#allocation71_spill] sm:$0xff] }
 0x2a5   : > { %4340 = vmatprep.mubr.bf16.mxu1 %v11031_v20  ;;  %4876 = vst [vmem:[%s8929_s26 + $0x2f8] sm:$0xff] %v3739_v13  ;;  %v5420_v52 = vmax.f32 %v3739_v13, 0.0  ;;  %5008 = vst [vmem:[%s8929_s26 + $0x718] sm:$0xff] %v4069_v40  ;;  %v5552_v54 = vmax.f32 %v4069_v40, 0.0 }
 0x2a6   : > { %v5883_v34 = vpack.c.bf16 %v5419_v56, %v5417_v25  ;;  %v9747_v59 = vpack.c.bf16 %v5551_v44, %v5549_v21  ;;  %v7422_v25 = vld [vmem:[%s10864_s3 + $0x2a0] sm:$0xff]   ;;  %v11181_v44 = vld [vmem:[#allocation28_spill] sm:$0xff] }
 0x2a7   : > { %v3742_v35 = vpop.f32.mrb[112].mxu0  ;;  %v4072_v47 = vpop.f32.mrb[96].mxu1  ;;  %v5884_v23 = vpack.c.bf16 %v5420_v52, %v5418_v6  ;;  %v9754_v56 = vpack.c.bf16 %v5552_v54, %v5550_v61  ;;  %v11182_v6 = vld [vmem:[#allocation72_spill] sm:$0xff] }
 0x2a8   : > { %11177 = vst [vmem:[#allocation9_spill] sm:$0xff] %v9747_v59  ;;  %v3743_v10 = vadd.f32 %v3742_v35, %v11178_v48  ;;  %v4073_v0 = vadd.f32 %v4072_v47, %v11179_v50  ;;  %v3744_v7 = vpop.f32.mrb[113].mxu0  ;;  %v4074_v45 = vpop.f32.mrb[97].mxu1 }
 0x2a9   : > { %11180 = vst [vmem:[#allocation52_spill] sm:$0xff] %v9754_v56  ;;  %v3745_v13 = vadd.f32 %v3744_v7, %v11178_v48  ;;  %v4075_v40 = vadd.f32 %v4074_v45, %v11179_v50  ;;  %v3746_v21 = vpop.f32.mrb[114].mxu0  ;;  %v4076_v47 = vpop.f32.mrb[98].mxu1  ;;  %6344 = vmatprep.subr.bf16.mxu0 %v5884_v23 }
 0x2aa   : > { %4877 = vst [vmem:[%s8929_s26 + $0x300] sm:$0xff] %v3743_v10  ;;  %5009 = vst [vmem:[%s8929_s26 + $0x720] sm:$0xff] %v4073_v0  ;;  %v3747_v35 = vadd.f32 %v3746_v21, %v11181_v44  ;;  %v4077_v52 = vadd.f32 %v4076_v47, %v11182_v6  ;;  %v3748_v59 = vpop.f32.mrb[115].mxu0  ;;  %v4078_v61 = vpop.f32.mrb[99].mxu1  ;;  %6345 = vmatpush1.bf16.msra.mxu0 %v5883_v34  ;;  %v5421_v54 = vmax.f32 %v3743_v10, 0.0  ;;  %v5553_v45 = vmax.f32 %v4073_v0, 0.0 }
 0x2ab   : > { %4878 = vst [vmem:[%s8929_s26 + $0x308] sm:$0xff] %v3745_v13  ;;  %5010 = vst [vmem:[%s8929_s26 + $0x728] sm:$0xff] %v4075_v40  ;;  %v3749_v50 = vadd.f32 %v3748_v59, %v11181_v44  ;;  %v4079_v7 = vadd.f32 %v4078_v61, %v11182_v6  ;;  %v5422_v23 = vmax.f32 %v3745_v13, 0.0  ;;  %v5554_v47 = vmax.f32 %v4075_v40, 0.0  ;;  %v11184_v6 = vld [vmem:[#allocation31_spill] sm:$0xff]  ;;  %v11185_v0 = vld [vmem:[#allocation73_spill] sm:$0xff] }
 0x2ac   : > { %4879 = vst [vmem:[%s8929_s26 + $0x310] sm:$0xff] %v3747_v35  ;;  %v5423_v48 = vmax.f32 %v3747_v35, 0.0  ;;  %7157 = vmatmul.mubr.msk.bf16.gmra.mrb[204].mxu1 %vm3083_vm2, %v7422_v25  ;;  %5011 = vst [vmem:[%s8929_s26 + $0x730] sm:$0xff] %v4077_v52  ;;  %v5555_v21 = vmax.f32 %v4077_v52, 0.0 }
 0x2ad   : > { %4350 = vmatprep.mubr.bf16.mxu1 %v11031_v20  ;;  %4880 = vst [vmem:[%s8929_s26 + $0x318] sm:$0xff] %v3749_v50  ;;  %v5424_v34 = vmax.f32 %v3749_v50, 0.0  ;;  %5012 = vst [vmem:[%s8929_s26 + $0x738] sm:$0xff] %v4079_v7  ;;  %v5556_v10 = vmax.f32 %v4079_v7, 0.0 }
 0x2ae   : > { %v5885_v56 = vpack.c.bf16 %v5423_v48, %v5421_v54  ;;  %v9772_v44 = vpack.c.bf16 %v5555_v21, %v5553_v45  ;;  %v7423_v54 = vld [vmem:[%s10864_s3 + $0x2a8] sm:$0xff]  }
 0x2af   : > { %v3752_v35 = vpop.f32.mrb[116].mxu0  ;;  %v4082_v59 = vpop.f32.mrb[100].mxu1  ;;  %v5886_v40 = vpack.c.bf16 %v5424_v34, %v5422_v23  ;;  %v9779_v48 = vpack.c.bf16 %v5556_v10, %v5554_v47 }
 0x2b0   : > { %11183 = vst [vmem:[#allocation8_spill] sm:$0xff] %v9772_v44  ;;  %v3753_v25 = vadd.f32 %v3752_v35, %v11184_v6  ;;  %v4083_v13 = vadd.f32 %v4082_v59, %v11185_v0  ;;  %v3754_v61 = vpop.f32.mrb[117].mxu0  ;;  %v4084_v52 = vpop.f32.mrb[101].mxu1  ;;  %v11187_v35 = vld [vmem:[#allocation30_spill] sm:$0xff] }
 0x2b1   : > { %11186 = vst [vmem:[#allocation51_spill] sm:$0xff] %v9779_v48  ;;  %v3755_v50 = vadd.f32 %v3754_v61, %v11184_v6  ;;  %v4085_v7 = vadd.f32 %v4084_v52, %v11185_v0  ;;  %v3756_v45 = vpop.f32.mrb[118].mxu0  ;;  %v4086_v21 = vpop.f32.mrb[102].mxu1  ;;  %v11188_v44 = vld [vmem:[#allocation74_spill] sm:$0xff]  ;;  %6346 = vmatprep.subr.bf16.mxu0 %v5886_v40 }
 0x2b2   : > { %4881 = vst [vmem:[%s8929_s26 + $0x320] sm:$0xff] %v3753_v25  ;;  %5013 = vst [vmem:[%s8929_s26 + $0x740] sm:$0xff] %v4083_v13  ;;  %v3757_v59 = vadd.f32 %v3756_v45, %v11187_v35  ;;  %v4087_v23 = vadd.f32 %v4086_v21, %v11188_v44  ;;  %v3758_v34 = vpop.f32.mrb[119].mxu0  ;;  %v5425_v4 = vmax.f32 %v3753_v25, 0.0  ;;  %v4088_v10 = vpop.f32.mrb[103].mxu1  ;;  %6347 = vmatpush1.bf16.msra.mxu0 %v5885_v56  ;;  %v5557_v6 = vmax.f32 %v4083_v13, 0.0 }
 0x2b3   : > { %4882 = vst [vmem:[%s8929_s26 + $0x328] sm:$0xff] %v3755_v50  ;;  %5014 = vst [vmem:[%s8929_s26 + $0x748] sm:$0xff] %v4085_v7  ;;  %v3759_v47 = vadd.f32 %v3758_v34, %v11187_v35  ;;  %v4089_v52 = vadd.f32 %v4088_v10, %v11188_v44  ;;  %v5426_v40 = vmax.f32 %v3755_v50, 0.0  ;;  %v5558_v25 = vmax.f32 %v4085_v7, 0.0  ;;  %v11190_v34 = vld [vmem:[#allocation33_spill] sm:$0xff]  ;;  %v11191_v10 = vld [vmem:[#allocation75_spill] sm:$0xff] }
 0x2b4   : > { %4883 = vst [vmem:[%s8929_s26 + $0x330] sm:$0xff] %v3757_v59  ;;  %v5427_v0 = vmax.f32 %v3757_v59, 0.0  ;;  %5015 = vst [vmem:[%s8929_s26 + $0x750] sm:$0xff] %v4087_v23  ;;  %v5559_v61 = vmax.f32 %v4087_v23, 0.0  ;;  %7158 = vmatmul.mubr.msk.bf16.gmra.mrb[208].mxu1 %vm3083_vm2, %v7423_v54 }
 0x2b5   : > { %4884 = vst [vmem:[%s8929_s26 + $0x338] sm:$0xff] %v3759_v47  ;;  %v5428_v45 = vmax.f32 %v3759_v47, 0.0  ;;  %4360 = vmatprep.mubr.bf16.mxu1 %v11031_v20  ;;  %5016 = vst [vmem:[%s8929_s26 + $0x758] sm:$0xff] %v4089_v52  ;;  %v5560_v35 = vmax.f32 %v4089_v52, 0.0 }
 0x2b6   : > { %v5887_v21 = vpack.c.bf16 %v5427_v0, %v5425_v4  ;;  %v9797_v56 = vpack.c.bf16 %v5559_v61, %v5557_v6  ;;  %v7424_v4 = vld [vmem:[%s10864_s3 + $0x2b0] sm:$0xff]  }
 0x2b7   : > { %v3762_v13 = vpop.f32.mrb[120].mxu0  ;;  %v4092_v59 = vpop.f32.mrb[104].mxu1  ;;  %v5888_v23 = vpack.c.bf16 %v5428_v45, %v5426_v40  ;;  %v9804_v7 = vpack.c.bf16 %v5560_v35, %v5558_v25  ;;  %v11193_v40 = vld [vmem:[#allocation32_spill] sm:$0xff] }
 0x2b8   : > { %11189 = vst [vmem:[#allocation11_spill] sm:$0xff] %v9797_v56  ;;  %v3763_v44 = vadd.f32 %v3762_v13, %v11190_v34  ;;  %v4093_v54 = vadd.f32 %v4092_v59, %v11191_v10  ;;  %v3764_v50 = vpop.f32.mrb[121].mxu0  ;;  %v4094_v47 = vpop.f32.mrb[105].mxu1  ;;  %v11194_v13 = vld [vmem:[#allocation76_spill] sm:$0xff] }
 0x2b9   : > { %11192 = vst [vmem:[#allocation54_spill] sm:$0xff] %v9804_v7  ;;  %v3765_v6 = vadd.f32 %v3764_v50, %v11190_v34  ;;  %v4095_v0 = vadd.f32 %v4094_v47, %v11191_v10  ;;  %v3766_v61 = vpop.f32.mrb[122].mxu0  ;;  %v4096_v52 = vpop.f32.mrb[106].mxu1  ;;  %6348 = vmatprep.subr.bf16.mxu0 %v5888_v23 }
 0x2ba   : > { %4885 = vst [vmem:[%s8929_s26 + $0x340] sm:$0xff] %v3763_v44  ;;  %5017 = vst [vmem:[%s8929_s26 + $0x760] sm:$0xff] %v4093_v54  ;;  %v3767_v45 = vadd.f32 %v3766_v61, %v11193_v40  ;;  %v4097_v59 = vadd.f32 %v4096_v52, %v11194_v13  ;;  %v3768_v56 = vpop.f32.mrb[123].mxu0  ;;  %v4098_v48 = vpop.f32.mrb[107].mxu1  ;;  %6349 = vmatpush1.bf16.msra.mxu0 %v5887_v21  ;;  %v5429_v34 = vmax.f32 %v3763_v44, 0.0  ;;  %v5561_v23 = vmax.f32 %v4093_v54, 0.0 }
 0x2bb   : > { %4886 = vst [vmem:[%s8929_s26 + $0x348] sm:$0xff] %v3765_v6  ;;  %5018 = vst [vmem:[%s8929_s26 + $0x768] sm:$0xff] %v4095_v0  ;;  %v3769_v25 = vadd.f32 %v3768_v56, %v11193_v40  ;;  %v4099_v35 = vadd.f32 %v4098_v48, %v11194_v13  ;;  %v5430_v47 = vmax.f32 %v3765_v6, 0.0  ;;  %v5562_v61 = vmax.f32 %v4095_v0, 0.0  ;;  %v11198_v6 = vld [vmem:[#allocation77_spill] sm:$0xff] }
 0x2bc   : > { %4887 = vst [vmem:[%s8929_s26 + $0x350] sm:$0xff] %v3767_v45  ;;  %v5431_v10 = vmax.f32 %v3767_v45, 0.0  ;;  %5019 = vst [vmem:[%s8929_s26 + $0x770] sm:$0xff] %v4097_v59  ;;  %v5563_v50 = vmax.f32 %v4097_v59, 0.0  ;;  %7159 = vmatmul.mubr.msk.bf16.gmra.mrb[212].mxu1 %vm3083_vm2, %v7424_v4  ;;  %v11197_v45 = vld [vmem:[#allocation35_spill] sm:$0xff] }
 0x2bd   : > { %4888 = vst [vmem:[%s8929_s26 + $0x358] sm:$0xff] %v3769_v25  ;;  %v5432_v52 = vmax.f32 %v3769_v25, 0.0  ;;  %5020 = vst [vmem:[%s8929_s26 + $0x778] sm:$0xff] %v4099_v35  ;;  %v5564_v21 = vmax.f32 %v4099_v35, 0.0  ;;  %4370 = vmatprep.mubr.bf16.mxu1 %v11031_v20  ;;  %v7425_v25 = vld [vmem:[%s10864_s3 + $0x2b8] sm:$0xff]  }
 0x2be   : > { %v5889_v7 = vpack.c.bf16 %v5431_v10, %v5429_v34  ;;  %v9822_v56 = vpack.c.bf16 %v5563_v50, %v5561_v23  ;;  %v11199_v50 = vld [vmem:[#allocation34_spill] sm:$0xff] }
 0x2bf   : > { %v3772_v48 = vpop.f32.mrb[124].mxu0  ;;  %v4102_v44 = vpop.f32.mrb[108].mxu1  ;;  %v5890_v54 = vpack.c.bf16 %v5432_v52, %v5430_v47  ;;  %v9824_v40 = vpack.c.bf16 %v5564_v21, %v5562_v61  ;;  %v11200_v61 = vld [vmem:[#allocation78_spill] sm:$0xff] }
 0x2c0   : > { %11195 = vst [vmem:[#allocation10_spill] sm:$0xff] %v9822_v56  ;;  %v3773_v4 = vadd.f32 %v3772_v48, %v11197_v45  ;;  %v4103_v0 = vadd.f32 %v4102_v44, %v11198_v6  ;;  %v3774_v13 = vpop.f32.mrb[125].mxu0  ;;  %v4104_v59 = vpop.f32.mrb[109].mxu1 }
 0x2c1   : > { %11196 = vst [vmem:[#allocation53_spill] sm:$0xff] %v9824_v40  ;;  %v3775_v35 = vadd.f32 %v3774_v13, %v11197_v45  ;;  %v4105_v34 = vadd.f32 %v4104_v59, %v11198_v6  ;;  %v3776_v23 = vpop.f32.mrb[126].mxu0  ;;  %v4106_v10 = vpop.f32.mrb[110].mxu1  ;;  %6350 = vmatprep.subr.bf16.mxu0 %v5890_v54 }
 0x2c2   : > { %4889 = vst [vmem:[%s8929_s26 + $0x360] sm:$0xff] %v3773_v4  ;;  %5021 = vst [vmem:[%s8929_s26 + $0x780] sm:$0xff] %v4103_v0  ;;  %v3777_v47 = vadd.f32 %v3776_v23, %v11199_v50  ;;  %v4107_v52 = vadd.f32 %v4106_v10, %v11200_v61  ;;  %v3778_v21 = vpop.f32.mrb[127].mxu0  ;;  %v4108_v48 = vpop.f32.mrb[111].mxu1  ;;  %6351 = vmatpush1.bf16.msra.mxu0 %v5889_v7  ;;  %v5433_v6 = vmax.f32 %v3773_v4, 0.0  ;;  %v5565_v54 = vmax.f32 %v4103_v0, 0.0 }
 0x2c3   : > { %4890 = vst [vmem:[%s8929_s26 + $0x368] sm:$0xff] %v3775_v35  ;;  %5022 = vst [vmem:[%s8929_s26 + $0x788] sm:$0xff] %v4105_v34  ;;  %v3779_v44 = vadd.f32 %v3778_v21, %v11199_v50  ;;  %v4109_v45 = vadd.f32 %v4108_v48, %v11200_v61  ;;  %v5434_v23 = vmax.f32 %v3775_v35, 0.0  ;;  %v5566_v10 = vmax.f32 %v4105_v34, 0.0  ;;  %v11204_v35 = vld [vmem:[#allocation79_spill] sm:$0xff] }
 0x2c4   : > { %4891 = vst [vmem:[%s8929_s26 + $0x370] sm:$0xff] %v3777_v47  ;;  %v5435_v13 = vmax.f32 %v3777_v47, 0.0  ;;  %5023 = vst [vmem:[%s8929_s26 + $0x790] sm:$0xff] %v4107_v52  ;;  %v5567_v59 = vmax.f32 %v4107_v52, 0.0  ;;  %7160 = vmatmul.mubr.msk.bf16.gmra.mrb[216].mxu1 %vm3083_vm2, %v7425_v25  ;;  %v11203_v52 = vld [vmem:[#allocation37_spill] sm:$0xff] }
 0x2c5   : > { %4892 = vst [vmem:[%s8929_s26 + $0x378] sm:$0xff] %v3779_v44  ;;  %v5436_v56 = vmax.f32 %v3779_v44, 0.0  ;;  %5024 = vst [vmem:[%s8929_s26 + $0x798] sm:$0xff] %v4109_v45  ;;  %v5568_v7 = vmax.f32 %v4109_v45, 0.0  ;;  %4380 = vmatprep.mubr.bf16.mxu1 %v11031_v20  ;;  %v7426_v44 = vld [vmem:[%s10864_s3 + $0x2c0] sm:$0xff]  }
 0x2c6   : > { %v5891_v40 = vpack.c.bf16 %v5435_v13, %v5433_v6  ;;  %v9847_v50 = vpack.c.bf16 %v5567_v59, %v5565_v54  ;;  %v11205_v13 = vld [vmem:[#allocation36_spill] sm:$0xff] }
 0x2c7   : > { %v3782_v4 = vpop.f32.mrb[128].mxu0  ;;  %v4112_v0 = vpop.f32.mrb[112].mxu1  ;;  %v5892_v47 = vpack.c.bf16 %v5436_v56, %v5434_v23  ;;  %v9849_v61 = vpack.c.bf16 %v5568_v7, %v5566_v10  ;;  %v11206_v23 = vld [vmem:[#allocation80_spill] sm:$0xff] }
 0x2c8   : > { %11201 = vst [vmem:[#allocation13_spill] sm:$0xff] %v9847_v50  ;;  %v3783_v25 = vadd.f32 %v3782_v4, %v11203_v52  ;;  %v4113_v34 = vadd.f32 %v4112_v0, %v11204_v35  ;;  %v3784_v21 = vpop.f32.mrb[129].mxu0  ;;  %v4114_v48 = vpop.f32.mrb[113].mxu1 }
 0x2c9   : > { %11202 = vst [vmem:[#allocation56_spill] sm:$0xff] %v9849_v61  ;;  %v3785_v45 = vadd.f32 %v3784_v21, %v11203_v52  ;;  %v4115_v6 = vadd.f32 %v4114_v48, %v11204_v35  ;;  %v3786_v54 = vpop.f32.mrb[130].mxu0  ;;  %v4116_v56 = vpop.f32.mrb[114].mxu1  ;;  %6352 = vmatprep.subr.bf16.mxu0 %v5892_v47 }
 0x2ca   : > { %4893 = vst [vmem:[%s8929_s26 + $0x380] sm:$0xff] %v3783_v25  ;;  %5025 = vst [vmem:[%s8929_s26 + $0x7a0] sm:$0xff] %v4113_v34  ;;  %v3787_v59 = vadd.f32 %v3786_v54, %v11205_v13  ;;  %v4117_v10 = vadd.f32 %v4116_v56, %v11206_v23  ;;  %v3788_v7 = vpop.f32.mrb[131].mxu0  ;;  %v4118_v4 = vpop.f32.mrb[115].mxu1  ;;  %6353 = vmatpush1.bf16.msra.mxu0 %v5891_v40  ;;  %v5437_v35 = vmax.f32 %v3783_v25, 0.0  ;;  %v5569_v47 = vmax.f32 %v4113_v34, 0.0 }
 0x2cb   : > { %4894 = vst [vmem:[%s8929_s26 + $0x388] sm:$0xff] %v3785_v45  ;;  %5026 = vst [vmem:[%s8929_s26 + $0x7a8] sm:$0xff] %v4115_v6  ;;  %v3789_v0 = vadd.f32 %v3788_v7, %v11205_v13  ;;  %v4119_v52 = vadd.f32 %v4118_v4, %v11206_v23  ;;  %v5438_v54 = vmax.f32 %v3785_v45, 0.0  ;;  %v5570_v56 = vmax.f32 %v4115_v6, 0.0  ;;  %v11210_v45 = vld [vmem:[#allocation81_spill] sm:$0xff] }
 0x2cc   : > { %4895 = vst [vmem:[%s8929_s26 + $0x390] sm:$0xff] %v3787_v59  ;;  %v5439_v21 = vmax.f32 %v3787_v59, 0.0  ;;  %5027 = vst [vmem:[%s8929_s26 + $0x7b0] sm:$0xff] %v4117_v10  ;;  %v5571_v48 = vmax.f32 %v4117_v10, 0.0  ;;  %7161 = vmatmul.mubr.msk.bf16.gmra.mrb[220].mxu1 %vm3083_vm2, %v7426_v44  ;;  %v11209_v10 = vld [vmem:[#allocation39_spill] sm:$0xff] }
 0x2cd   : > { %4896 = vst [vmem:[%s8929_s26 + $0x398] sm:$0xff] %v3789_v0  ;;  %v5440_v50 = vmax.f32 %v3789_v0, 0.0  ;;  %5028 = vst [vmem:[%s8929_s26 + $0x7b8] sm:$0xff] %v4119_v52  ;;  %v5572_v40 = vmax.f32 %v4119_v52, 0.0  ;;  %4390 = vmatprep.mubr.bf16.mxu1 %v11031_v20  ;;  %v7427_v0 = vld [vmem:[%s10864_s3 + $0x2c8] sm:$0xff]  }
 0x2ce   : > { %v5893_v61 = vpack.c.bf16 %v5439_v21, %v5437_v35  ;;  %v9872_v13 = vpack.c.bf16 %v5571_v48, %v5569_v47  ;;  %v11211_v21 = vld [vmem:[#allocation38_spill] sm:$0xff] }
 0x2cf   : > { %v3792_v25 = vpop.f32.mrb[132].mxu0  ;;  %v4122_v34 = vpop.f32.mrb[116].mxu1  ;;  %v5894_v59 = vpack.c.bf16 %v5440_v50, %v5438_v54  ;;  %v9874_v23 = vpack.c.bf16 %v5572_v40, %v5570_v56  ;;  %v11212_v54 = vld [vmem:[#allocation82_spill] sm:$0xff] }
 0x2d0   : > { %11207 = vst [vmem:[#allocation12_spill] sm:$0xff] %v9872_v13  ;;  %v3793_v44 = vadd.f32 %v3792_v25, %v11209_v10  ;;  %v4123_v6 = vadd.f32 %v4122_v34, %v11210_v45  ;;  %v3794_v7 = vpop.f32.mrb[133].mxu0  ;;  %v4124_v4 = vpop.f32.mrb[117].mxu1 }
 0x2d1   : > { %11208 = vst [vmem:[#allocation55_spill] sm:$0xff] %v9874_v23  ;;  %v3795_v52 = vadd.f32 %v3794_v7, %v11209_v10  ;;  %v4125_v35 = vadd.f32 %v4124_v4, %v11210_v45  ;;  %v3796_v47 = vpop.f32.mrb[134].mxu0  ;;  %v4126_v50 = vpop.f32.mrb[118].mxu1  ;;  %6354 = vmatprep.subr.bf16.mxu0 %v5894_v59 }
 0x2d2   : > { %4897 = vst [vmem:[%s8929_s26 + $0x3a0] sm:$0xff] %v3793_v44  ;;  %5029 = vst [vmem:[%s8929_s26 + $0x7c0] sm:$0xff] %v4123_v6  ;;  %v3797_v48 = vadd.f32 %v3796_v47, %v11211_v21  ;;  %v4127_v56 = vadd.f32 %v4126_v50, %v11212_v54  ;;  %v3798_v40 = vpop.f32.mrb[135].mxu0  ;;  %v4128_v25 = vpop.f32.mrb[119].mxu1  ;;  %6355 = vmatpush1.bf16.msra.mxu0 %v5893_v61  ;;  %v5441_v45 = vmax.f32 %v3793_v44, 0.0  ;;  %v5573_v59 = vmax.f32 %v4123_v6, 0.0 }
 0x2d3   : > { %4898 = vst [vmem:[%s8929_s26 + $0x3a8] sm:$0xff] %v3795_v52  ;;  %5030 = vst [vmem:[%s8929_s26 + $0x7c8] sm:$0xff] %v4125_v35  ;;  %v3799_v34 = vadd.f32 %v3798_v40, %v11211_v21  ;;  %v4129_v10 = vadd.f32 %v4128_v25, %v11212_v54  ;;  %v5442_v47 = vmax.f32 %v3795_v52, 0.0  ;;  %v5574_v50 = vmax.f32 %v4125_v35, 0.0  ;;  %v11216_v52 = vld [vmem:[#allocation83_spill] sm:$0xff] }
 0x2d4   : > { %4899 = vst [vmem:[%s8929_s26 + $0x3b0] sm:$0xff] %v3797_v48  ;;  %v5443_v7 = vmax.f32 %v3797_v48, 0.0  ;;  %5031 = vst [vmem:[%s8929_s26 + $0x7d0] sm:$0xff] %v4127_v56  ;;  %v5575_v4 = vmax.f32 %v4127_v56, 0.0  ;;  %7162 = vmatmul.mubr.msk.bf16.gmra.mrb[224].mxu1 %vm3083_vm2, %v7427_v0  ;;  %v11215_v56 = vld [vmem:[#allocation41_spill] sm:$0xff] }
 0x2d5   : > { %4900 = vst [vmem:[%s8929_s26 + $0x3b8] sm:$0xff] %v3799_v34  ;;  %v5444_v13 = vmax.f32 %v3799_v34, 0.0  ;;  %5032 = vst [vmem:[%s8929_s26 + $0x7d8] sm:$0xff] %v4129_v10  ;;  %v5576_v61 = vmax.f32 %v4129_v10, 0.0  ;;  %4400 = vmatprep.mubr.bf16.mxu1 %v11031_v20  ;;  %v7428_v34 = vld [vmem:[%s10864_s3 + $0x2d0] sm:$0xff]  }
 0x2d6   : > { %v5895_v23 = vpack.c.bf16 %v5443_v7, %v5441_v45  ;;  %v9897_v21 = vpack.c.bf16 %v5575_v4, %v5573_v59  ;;  %v11217_v7 = vld [vmem:[#allocation40_spill] sm:$0xff] }
 0x2d7   : > { %v3802_v44 = vpop.f32.mrb[136].mxu0  ;;  %v4132_v6 = vpop.f32.mrb[120].mxu1  ;;  %v5896_v48 = vpack.c.bf16 %v5444_v13, %v5442_v47  ;;  %v9899_v54 = vpack.c.bf16 %v5576_v61, %v5574_v50  ;;  %v11218_v47 = vld [vmem:[#allocation84_spill] sm:$0xff] }
 0x2d8   : > { %11213 = vst [vmem:[#allocation15_spill] sm:$0xff] %v9897_v21  ;;  %v3803_v0 = vadd.f32 %v3802_v44, %v11215_v56  ;;  %v4133_v35 = vadd.f32 %v4132_v6, %v11216_v52  ;;  %v3804_v40 = vpop.f32.mrb[137].mxu0  ;;  %v4134_v25 = vpop.f32.mrb[121].mxu1 }
 0x2d9   : > { %11214 = vst [vmem:[#allocation58_spill] sm:$0xff] %v9899_v54  ;;  %v3805_v10 = vadd.f32 %v3804_v40, %v11215_v56  ;;  %v4135_v45 = vadd.f32 %v4134_v25, %v11216_v52  ;;  %v3806_v59 = vpop.f32.mrb[138].mxu0  ;;  %v4136_v13 = vpop.f32.mrb[122].mxu1  ;;  %6356 = vmatprep.subr.bf16.mxu0 %v5896_v48 }
 0x2da   : > { %4901 = vst [vmem:[%s8929_s26 + $0x3c0] sm:$0xff] %v3803_v0  ;;  %5033 = vst [vmem:[%s8929_s26 + $0x7e0] sm:$0xff] %v4133_v35  ;;  %v3807_v4 = vadd.f32 %v3806_v59, %v11217_v7  ;;  %v4137_v50 = vadd.f32 %v4136_v13, %v11218_v47  ;;  %v3808_v61 = vpop.f32.mrb[139].mxu0  ;;  %v4138_v44 = vpop.f32.mrb[123].mxu1  ;;  %6357 = vmatpush1.bf16.msra.mxu0 %v5895_v23  ;;  %v5445_v52 = vmax.f32 %v3803_v0, 0.0  ;;  %v5577_v48 = vmax.f32 %v4133_v35, 0.0 }
 0x2db   : > { %4902 = vst [vmem:[%s8929_s26 + $0x3c8] sm:$0xff] %v3805_v10  ;;  %5034 = vst [vmem:[%s8929_s26 + $0x7e8] sm:$0xff] %v4135_v45  ;;  %v3809_v6 = vadd.f32 %v3808_v61, %v11217_v7  ;;  %v4139_v56 = vadd.f32 %v4138_v44, %v11218_v47  ;;  %v5446_v59 = vmax.f32 %v3805_v10, 0.0  ;;  %v5578_v13 = vmax.f32 %v4135_v45, 0.0  ;;  %v11222_v10 = vld [vmem:[#allocation85_spill] sm:$0xff] }
 0x2dc   : > { %4903 = vst [vmem:[%s8929_s26 + $0x3d0] sm:$0xff] %v3807_v4  ;;  %v5447_v40 = vmax.f32 %v3807_v4, 0.0  ;;  %5035 = vst [vmem:[%s8929_s26 + $0x7f0] sm:$0xff] %v4137_v50  ;;  %v5579_v25 = vmax.f32 %v4137_v50, 0.0  ;;  %7163 = vmatmul.mubr.msk.bf16.gmra.mrb[228].mxu1 %vm3083_vm2, %v7428_v34  ;;  %v11221_v50 = vld [vmem:[#allocation43_spill] sm:$0xff] }
 0x2dd   : > { %4904 = vst [vmem:[%s8929_s26 + $0x3d8] sm:$0xff] %v3809_v6  ;;  %v5448_v21 = vmax.f32 %v3809_v6, 0.0  ;;  %5036 = vst [vmem:[%s8929_s26 + $0x7f8] sm:$0xff] %v4139_v56  ;;  %v5580_v23 = vmax.f32 %v4139_v56, 0.0  ;;  %4410 = vmatprep.mubr.bf16.mxu1 %v11031_v20  ;;  %v7429_v6 = vld [vmem:[%s10864_s3 + $0x2d8] sm:$0xff]  }
 0x2de   : > { %v5897_v54 = vpack.c.bf16 %v5447_v40, %v5445_v52  ;;  %v9922_v7 = vpack.c.bf16 %v5579_v25, %v5577_v48  ;;  %v11223_v40 = vld [vmem:[#allocation42_spill] sm:$0xff] }
 0x2df   : > { %v3812_v0 = vpop.f32.mrb[140].mxu0  ;;  %v4142_v35 = vpop.f32.mrb[124].mxu1  ;;  %v5898_v4 = vpack.c.bf16 %v5448_v21, %v5446_v59  ;;  %v9924_v47 = vpack.c.bf16 %v5580_v23, %v5578_v13  ;;  %v11224_v59 = vld [vmem:[#allocation86_spill] sm:$0xff] }
 0x2e0   : > { %11219 = vst [vmem:[#allocation14_spill] sm:$0xff] %v9922_v7  ;;  %v3813_v34 = vadd.f32 %v3812_v0, %v11221_v50  ;;  %v4143_v45 = vadd.f32 %v4142_v35, %v11222_v10  ;;  %v3814_v61 = vpop.f32.mrb[141].mxu0  ;;  %v4144_v44 = vpop.f32.mrb[125].mxu1 }
 0x2e1   : > { %11220 = vst [vmem:[#allocation57_spill] sm:$0xff] %v9924_v47  ;;  %v3815_v56 = vadd.f32 %v3814_v61, %v11221_v50  ;;  %v4145_v52 = vadd.f32 %v4144_v44, %v11222_v10  ;;  %v3816_v48 = vpop.f32.mrb[142].mxu0  ;;  %v4146_v21 = vpop.f32.mrb[126].mxu1  ;;  %6358 = vmatprep.subr.bf16.mxu0 %v5898_v4 }
 0x2e2   : > { %4905 = vst [vmem:[%s8929_s26 + $0x3e0] sm:$0xff] %v3813_v34  ;;  %5037 = vst [vmem:[%s8929_s26 + $0x800] sm:$0xff] %v4143_v45  ;;  %v3817_v25 = vadd.f32 %v3816_v48, %v11223_v40  ;;  %v4147_v13 = vadd.f32 %v4146_v21, %v11224_v59  ;;  %v3818_v23 = vpop.f32.mrb[143].mxu0  ;;  %v4148_v0 = vpop.f32.mrb[127].mxu1  ;;  %6359 = vmatpush1.bf16.msra.mxu0 %v5897_v54  ;;  %v5449_v10 = vmax.f32 %v3813_v34, 0.0  ;;  %v5581_v4 = vmax.f32 %v4143_v45, 0.0 }
 0x2e3   : > { %4906 = vst [vmem:[%s8929_s26 + $0x3e8] sm:$0xff] %v3815_v56  ;;  %5038 = vst [vmem:[%s8929_s26 + $0x808] sm:$0xff] %v4145_v52  ;;  %v3819_v35 = vadd.f32 %v3818_v23, %v11223_v40  ;;  %v4149_v50 = vadd.f32 %v4148_v0, %v11224_v59  ;;  %v5450_v48 = vmax.f32 %v3815_v56, 0.0  ;;  %v5582_v21 = vmax.f32 %v4145_v52, 0.0  ;;  %v9957_v56 = vld [vmem:[%s10866_s5 + $0xc8] sm:$0xff] }
 0x2e4   : > { %4907 = vst [vmem:[%s8929_s26 + $0x3f0] sm:$0xff] %v3817_v25  ;;  %v5451_v61 = vmax.f32 %v3817_v25, 0.0  ;;  %5039 = vst [vmem:[%s8929_s26 + $0x810] sm:$0xff] %v4147_v13  ;;  %v5583_v44 = vmax.f32 %v4147_v13, 0.0  ;;  %7164 = vmatmul.mubr.msk.bf16.gmra.mrb[232].mxu1 %vm3083_vm2, %v7429_v6  ;;  %v9952_v6 = vld [vmem:[%s10866_s5 + $0x88] sm:$0xff]  ;;  %v11227_v25 = vld [vmem:[#allocation45_spill] sm:$0xff] }
 0x2e5   : > { %4908 = vst [vmem:[%s8929_s26 + $0x3f8] sm:$0xff] %v3819_v35  ;;  %v5452_v7 = vmax.f32 %v3819_v35, 0.0  ;;  %5040 = vst [vmem:[%s8929_s26 + $0x818] sm:$0xff] %v4149_v50  ;;  %v5584_v54 = vmax.f32 %v4149_v50, 0.0  ;;  %4420 = vmatprep.mubr.bf16.mxu1 %v11031_v20  ;;  %v11228_v23 = vld [vmem:[#allocation87_spill] sm:$0xff] }
 0x2e6   : > { %v5899_v47 = vpack.c.bf16 %v5451_v61, %v5449_v10  ;;  %v9947_v40 = vpack.c.bf16 %v5583_v44, %v5581_v4 }
 0x2e7   : > { %v3822_v59 = vpop.f32.mrb[144].mxu0  ;;  %v4152_v34 = vpop.f32.mrb[128].mxu1  ;;  %v5900_v45 = vpack.c.bf16 %v5452_v7, %v5450_v48  ;;  %v9959_v52 = vpack.c.bf16 %v5584_v54, %v5582_v21  ;;  %v7430_v7 = vld [vmem:[%s10864_s3 + $0x2e0] sm:$0xff]   ;;  %v11229_v48 = vld [vmem:[#allocation44_spill] sm:$0xff] }
 0x2e8   : > { %11225 = vst [vmem:[#allocation17_spill] sm:$0xff] %v9947_v40  ;;  %v3823_v13 = vadd.f32 %v3822_v59, %v11227_v25  ;;  %v4153_v0 = vadd.f32 %v4152_v34, %v11228_v23  ;;  %v3824_v35 = vpop.f32.mrb[145].mxu0  ;;  %v4154_v50 = vpop.f32.mrb[129].mxu1  ;;  %v11230_v54 = vld [vmem:[#allocation88_spill] sm:$0xff] }
 0x2e9   : > { %11226 = vst [vmem:[#allocation60_spill] sm:$0xff] %v9959_v52  ;;  %v3825_v10 = vadd.f32 %v3824_v35, %v11227_v25  ;;  %v4155_v4 = vadd.f32 %v4154_v50, %v11228_v23  ;;  %v3826_v61 = vpop.f32.mrb[146].mxu0  ;;  %v4156_v44 = vpop.f32.mrb[130].mxu1  ;;  %6360 = vmatprep.subr.bf16.mxu0 %v5900_v45  ;;  %v7220_v25 = vcombine.high %v9952_v6, %v9957_v56 }
 0x2ea   : > { %4909 = vst [vmem:[%s8929_s26 + $0x400] sm:$0xff] %v3823_v13  ;;  %5041 = vst [vmem:[%s8929_s26 + $0x820] sm:$0xff] %v4153_v0  ;;  %v3827_v21 = vadd.f32 %v3826_v61, %v11229_v48  ;;  %v4157_v59 = vadd.f32 %v4156_v44, %v11230_v54  ;;  %v3828_v34 = vpop.f32.mrb[147].mxu0  ;;  %v4158_v40 = vpop.f32.mrb[131].mxu1  ;;  %6361 = vmatpush1.bf16.msra.mxu0 %v5899_v47  ;;  %v5453_v35 = vmax.f32 %v3823_v13, 0.0  ;;  %v5585_v50 = vmax.f32 %v4153_v0, 0.0 }
 0x2eb   : > { %4910 = vst [vmem:[%s8929_s26 + $0x408] sm:$0xff] %v3825_v10  ;;  %5042 = vst [vmem:[%s8929_s26 + $0x828] sm:$0xff] %v4155_v4  ;;  %v3829_v23 = vadd.f32 %v3828_v34, %v11229_v48  ;;  %v4159_v45 = vadd.f32 %v4158_v40, %v11230_v54  ;;  %v5454_v52 = vmax.f32 %v3825_v10, 0.0  ;;  %v5586_v47 = vmax.f32 %v4155_v4, 0.0 }
 0x2ec   : > { %4911 = vst [vmem:[%s8929_s26 + $0x410] sm:$0xff] %v3827_v21  ;;  %v5455_v61 = vmax.f32 %v3827_v21, 0.0  ;;  %5043 = vst [vmem:[%s8929_s26 + $0x830] sm:$0xff] %v4157_v59  ;;  %v5587_v44 = vmax.f32 %v4157_v59, 0.0  ;;  %7165 = vmatmul.mubr.msk.bf16.gmra.mrb[236].mxu1 %vm3083_vm2, %v7430_v7  ;;  %v9992_v7 = vld [vmem:[%s10866_s5 + $0x10] sm:$0xff]  ;;  %v7219_v54 = vcombine.low %v9952_v6, %v9957_v56  ;;  %v11233_v59 = vld [vmem:[#allocation90_spill] sm:$0xff] }
 0x2ed   : > { %4912 = vst [vmem:[%s8929_s26 + $0x418] sm:$0xff] %v3829_v23  ;;  %v5456_v51 = vmax.f32 %v3829_v23, 0.0  ;;  %5044 = vst [vmem:[%s8929_s26 + $0x838] sm:$0xff] %v4159_v45  ;;  %v5588_v41 = vmax.f32 %v4159_v45, 0.0  ;;  %6363 = vmatmul.mubr.bf16.vlgmr.msra.gmra.mrb[148].mxu0 %v11231_v31  ;;  %4430 = vmatprep.mubr.bf16.mxu1 %v11031_v20  ;;  %v11232_v31 = vld [vmem:[#allocation89_spill] sm:$0xff] }
 0x2ee   : > { %v5901_v40 = vpack.c.bf16 %v5455_v61, %v5453_v35  ;;  %v9987_v13 = vpack.c.bf16 %v5587_v44, %v5585_v50  ;;  %6372 = vmatprep.mubr.bf16.mxu0 %v7220_v25  ;;  %v7206_v25 = vcombine.high %v9992_v7, %v9997_v49  ;;  %v11234_v61 = vld [vmem:[#allocation107_spill] sm:$0xff] }
 0x2ef   : > { %v4162_v0 = vpop.f32.mrb[132].mxu1  ;;  %v5902_v48 = vpack.c.bf16 %v5456_v51, %v5454_v52  ;;  %v9999_v57 = vpack.c.bf16 %v5588_v41, %v5586_v47  ;;  %v7431_v51 = vld [vmem:[%s10864_s3 + $0x2e8] sm:$0xff]  }
 0x2f0   : > { %v4163_v10 = vadd.f32 %v4162_v0, %v11232_v31  ;;  %v4164_v4 = vpop.f32.mrb[133].mxu1  ;;  %v11235_v47 = vld [vmem:[#allocation91_spill] sm:$0xff] }
 0x2f1   : > { %v4165_v52 = vadd.f32 %v4164_v4, %v11232_v31  ;;  %v4166_v21 = vpop.f32.mrb[134].mxu1  ;;  %6383 = vmatprep.subr.bf16.mxu0 %v5902_v48  ;;  %v7432_v48 = vld [vmem:[%s10864_s3 + $0x2f0] sm:$0xff]  }
 0x2f2   : > { %5045 = vst [vmem:[%s8929_s26 + $0x840] sm:$0xff] %v4163_v10  ;;  %v4167_v41 = vadd.f32 %v4166_v21, %v11233_v59  ;;  %v4168_v34 = vpop.f32.mrb[135].mxu1  ;;  %6384 = vmatpush1.bf16.msra.mxu0 %v5901_v40  ;;  %v5589_v45 = vmax.f32 %v4163_v10, 0.0  ;;  %v11236_v4 = vld [vmem:[#allocation92_spill] sm:$0xff] }
 0x2f3   : > { %5046 = vst [vmem:[%s8929_s26 + $0x848] sm:$0xff] %v4165_v52  ;;  %v4169_v23 = vadd.f32 %v4168_v34, %v11233_v59  ;;  %6385 = vmatprep.subr.bf16.mxu0 %v9005_v39  ;;  %v5590_v50 = vmax.f32 %v4165_v52, 0.0 }
 0x2f4   : > { %5047 = vst [vmem:[%s8929_s26 + $0x850] sm:$0xff] %v4167_v41  ;;  %v5591_v35 = vmax.f32 %v4167_v41, 0.0  ;;  %7166 = vmatmul.mubr.msk.bf16.gmra.mrb[240].mxu1 %vm3083_vm2, %v7431_v51 }
 0x2f5   : > { %5048 = vst [vmem:[%s8929_s26 + $0x858] sm:$0xff] %v4169_v23  ;;  %v5592_v6 = vmax.f32 %v4169_v23, 0.0  ;;  %4440 = vmatprep.mubr.bf16.mxu1 %v11031_v20  ;;  %6373 = vmatmul.mubr.bf16.gmra.mrb[152].mxu0 %v7219_v54 }
 0x2f6   : > { %v10019_v56 = vpack.c.bf16 %v5591_v35, %v5589_v45  ;;  %6386 = vmatpush1.bf16.msra.mxu0 %v11234_v61  ;;  %6415 = vmatprep.mubr.bf16.mxu0 %v7206_v25  ;;  %v11237_v25 = vld [vmem:[#allocation93_spill] sm:$0xff]  ;;  %v11238_v61 = vld [vmem:[#allocation94_spill] sm:$0xff] }
 0x2f7   : > { %v4172_v44 = vpop.f32.mrb[136].mxu1  ;;  %6387 = vmatprep.subr.bf16.mxu0 %v9047_v26  ;;  %v10023_v39 = vpack.c.bf16 %v5592_v6, %v5590_v50  ;;  %v7433_v35 = vld [vmem:[%s10864_s3 + $0x2f8] sm:$0xff]  }
 0x2f8   : > { %v4173_v40 = vadd.f32 %v4172_v44, %v11235_v47  ;;  %v4174_v0 = vpop.f32.mrb[137].mxu1 }
 0x2f9   : > { %v4175_v31 = vadd.f32 %v4174_v0, %v11235_v47  ;;  %v4176_v10 = vpop.f32.mrb[138].mxu1 }
 0x2fa   : > { %5049 = vst [vmem:[%s8929_s26 + $0x860] sm:$0xff] %v4173_v40  ;;  %v4177_v51 = vadd.f32 %v4176_v10, %v11236_v4  ;;  %v4178_v52 = vpop.f32.mrb[139].mxu1  ;;  %6388 = vmatpush1.bf16.msra.mxu0 %v9034_v37  ;;  %v5593_v21 = vmax.f32 %v4173_v40, 0.0  ;;  %v11239_v10 = vld [vmem:[#allocation95_spill] sm:$0xff] }
 0x2fb   : > { %5050 = vst [vmem:[%s8929_s26 + $0x868] sm:$0xff] %v4175_v31  ;;  %v4179_v26 = vadd.f32 %v4178_v52, %v11236_v4  ;;  %6389 = vmatprep.subr.bf16.mxu0 %v9093_v17  ;;  %v5594_v59 = vmax.f32 %v4175_v31, 0.0  ;;  %v7434_v52 = vld [vmem:[%s10864_s3 + $0x300] sm:$0xff]  }
 0x2fc   : > { %5051 = vst [vmem:[%s8929_s26 + $0x870] sm:$0xff] %v4177_v51  ;;  %v5595_v54 = vmax.f32 %v4177_v51, 0.0  ;;  %7167 = vmatmul.mubr.msk.bf16.gmra.mrb[244].mxu1 %vm3083_vm2, %v7432_v48 }
 0x2fd   : > { %5052 = vst [vmem:[%s8929_s26 + $0x878] sm:$0xff] %v4179_v26  ;;  %v5596_v41 = vmax.f32 %v4179_v26, 0.0  ;;  %4450 = vmatprep.mubr.bf16.mxu1 %v11031_v20 }
 0x2fe   : > { %v10040_v34 = vpack.c.bf16 %v5595_v54, %v5593_v21  ;;  %6390 = vmatpush1.bf16.msra.mxu0 %v9080_v33  ;;  %v11240_v54 = vld [vmem:[#allocation96_spill] sm:$0xff] }
 0x2ff   : > { %v4182_v37 = vpop.f32.mrb[140].mxu1  ;;  %6391 = vmatprep.subr.bf16.mxu0 %v9139_v27  ;;  %v10044_v17 = vpack.c.bf16 %v5596_v41, %v5594_v59 }
 0x300   : > { %v4183_v23 = vadd.f32 %v4182_v37, %v11237_v25  ;;  %v4184_v45 = vpop.f32.mrb[141].mxu1 }
 0x301   : > { %v4185_v50 = vadd.f32 %v4184_v45, %v11237_v25  ;;  %v4186_v6 = vpop.f32.mrb[142].mxu1 }
 0x302   : > { %5053 = vst [vmem:[%s8929_s26 + $0x880] sm:$0xff] %v4183_v23  ;;  %v4187_v33 = vadd.f32 %v4186_v6, %v11238_v61  ;;  %v4188_v44 = vpop.f32.mrb[143].mxu1  ;;  %6392 = vmatpush1.bf16.msra.mxu0 %v9126_v32  ;;  %v5597_v47 = vmax.f32 %v4183_v23, 0.0 }
 0x303   : > { %5054 = vst [vmem:[%s8929_s26 + $0x888] sm:$0xff] %v4185_v50  ;;  %v4189_v27 = vadd.f32 %v4188_v44, %v11238_v61  ;;  %6393 = vmatprep.subr.bf16.mxu0 %v9185_v62  ;;  %v5598_v0 = vmax.f32 %v4185_v50, 0.0  ;;  %v7435_v61 = vld [vmem:[%s10864_s3 + $0x308] sm:$0xff]  }
 0x304   : > { %5055 = vst [vmem:[%s8929_s26 + $0x890] sm:$0xff] %v4187_v33  ;;  %v5599_v40 = vmax.f32 %v4187_v33, 0.0  ;;  %7168 = vmatmul.mubr.msk.bf16.gmra.mrb[248].mxu1 %vm3083_vm2, %v7433_v35  ;;  %v11241_v35 = vld [vmem:[#allocation97_spill] sm:$0xff] }
 0x305   : > { %5056 = vst [vmem:[%s8929_s26 + $0x898] sm:$0xff] %v4189_v27  ;;  %v5600_v48 = vmax.f32 %v4189_v27, 0.0  ;;  %4460 = vmatprep.mubr.bf16.mxu1 %v11031_v20  ;;  %v11242_v27 = vld [vmem:[#allocation98_spill] sm:$0xff] }
 0x306   : > { %v10061_v31 = vpack.c.bf16 %v5599_v40, %v5597_v47  ;;  %6394 = vmatpush1.bf16.msra.mxu0 %v9172_v46 }
 0x307   : > { %v4192_v32 = vpop.f32.mrb[144].mxu1  ;;  %6395 = vmatprep.subr.bf16.mxu0 %v9229_v24  ;;  %v10065_v62 = vpack.c.bf16 %v5600_v48, %v5598_v0 }
 0x308   : > { %v4193_v4 = vadd.f32 %v4192_v32, %v11239_v10  ;;  %v4194_v51 = vpop.f32.mrb[145].mxu1 }
 0x309   : > { %v4195_v26 = vadd.f32 %v4194_v51, %v11239_v10  ;;  %v4196_v21 = vpop.f32.mrb[146].mxu1 }
 0x30a   : > { %5057 = vst [vmem:[%s8929_s26 + $0x8a0] sm:$0xff] %v4193_v4  ;;  %v4197_v46 = vadd.f32 %v4196_v21, %v11240_v54  ;;  %v4198_v59 = vpop.f32.mrb[147].mxu1  ;;  %6396 = vmatpush1.bf16.msra.mxu0 %v9219_v8  ;;  %v5601_v41 = vmax.f32 %v4193_v4, 0.0  ;;  %v11243_v4 = vld [vmem:[#allocation99_spill] sm:$0xff] }
 0x30b   : > { %5058 = vst [vmem:[%s8929_s26 + $0x8a8] sm:$0xff] %v4195_v26  ;;  %v4199_v24 = vadd.f32 %v4198_v59, %v11240_v54  ;;  %6397 = vmatprep.subr.bf16.mxu0 %v9270_v18  ;;  %v5602_v25 = vmax.f32 %v4195_v26, 0.0  ;;  %v7436_v26 = vld [vmem:[%s10864_s3 + $0x310] sm:$0xff]  }
 0x30c   : > { %5059 = vst [vmem:[%s8929_s26 + $0x8b0] sm:$0xff] %v4197_v46  ;;  %v5603_v37 = vmax.f32 %v4197_v46, 0.0  ;;  %7169 = vmatmul.mubr.msk.bf16.gmra.mrb[252].mxu1 %vm3083_vm2, %v7434_v52  ;;  %v11244_v46 = vld [vmem:[#allocation100_spill] sm:$0xff] }
 0x30d   : > { %5060 = vst [vmem:[%s8929_s26 + $0x8b8] sm:$0xff] %v4199_v24  ;;  %v5604_v23 = vmax.f32 %v4199_v24, 0.0  ;;  %4470 = vmatprep.mubr.bf16.mxu1 %v11031_v20 }
 0x30e   : > { %v10082_v45 = vpack.c.bf16 %v5603_v37, %v5601_v41  ;;  %6398 = vmatpush1.bf16.msra.mxu0 %v9260_v38 }
 0x30f   : > { %v4202_v8 = vpop.f32.mrb[148].mxu1  ;;  %6399 = vmatprep.subr.bf16.mxu0 %v9311_v30  ;;  %v10086_v18 = vpack.c.bf16 %v5604_v23, %v5602_v25 }
 0x310   : > { %v4203_v50 = vadd.f32 %v4202_v8, %v11241_v35  ;;  %v4204_v6 = vpop.f32.mrb[149].mxu1  ;;  %v11245_v8 = vld [vmem:[#allocation101_spill] sm:$0xff] }
 0x311   : > { %v4205_v33 = vadd.f32 %v4204_v6, %v11241_v35  ;;  %v4206_v44 = vpop.f32.mrb[150].mxu1  ;;  %v7437_v6 = vld [vmem:[%s10864_s3 + $0x318] sm:$0xff]  }
 0x312   : > { %5061 = vst [vmem:[%s8929_s26 + $0x8c0] sm:$0xff] %v4203_v50  ;;  %v4207_v38 = vadd.f32 %v4206_v44, %v11242_v27  ;;  %v4208_v47 = vpop.f32.mrb[151].mxu1  ;;  %6400 = vmatpush1.bf16.msra.mxu0 %v9301_v58  ;;  %v5605_v40 = vmax.f32 %v4203_v50, 0.0  ;;  %v11246_v44 = vld [vmem:[#allocation102_spill] sm:$0xff] }
 0x313   : > { %5062 = vst [vmem:[%s8929_s26 + $0x8c8] sm:$0xff] %v4205_v33  ;;  %v4209_v30 = vadd.f32 %v4208_v47, %v11242_v27  ;;  %6401 = vmatprep.subr.bf16.mxu0 %v9346_v42  ;;  %v5606_v48 = vmax.f32 %v4205_v33, 0.0 }
 0x314   : > { %5063 = vst [vmem:[%s8929_s26 + $0x8d0] sm:$0xff] %v4207_v38  ;;  %v5607_v0 = vmax.f32 %v4207_v38, 0.0  ;;  %7170 = vmatmul.mubr.msk.bf16.gmra.mrb[0].mxu1 %vm3083_vm2, %v7435_v61 }
 0x315   : > { %5064 = vst [vmem:[%s8929_s26 + $0x8d8] sm:$0xff] %v4209_v30  ;;  %v5608_v32 = vmax.f32 %v4209_v30, 0.0  ;;  %4480 = vmatprep.mubr.bf16.mxu1 %v11031_v20 }
 0x316   : > { %v10103_v10 = vpack.c.bf16 %v5607_v0, %v5605_v40  ;;  %6402 = vmatpush1.bf16.msra.mxu0 %v9339_v11 }
 0x317   : > { %v4212_v58 = vpop.f32.mrb[152].mxu1  ;;  %6403 = vmatprep.subr.bf16.mxu0 %v9373_v55  ;;  %v10107_v42 = vpack.c.bf16 %v5608_v32, %v5606_v48  ;;  %v11247_v48 = vld [vmem:[#allocation103_spill] sm:$0xff] }
 0x318   : > { %v4213_v51 = vadd.f32 %v4212_v58, %v11243_v4  ;;  %v4214_v52 = vpop.f32.mrb[153].mxu1 }
 0x319   : > { %v4215_v21 = vadd.f32 %v4214_v52, %v11243_v4  ;;  %v4216_v54 = vpop.f32.mrb[154].mxu1  ;;  %v7438_v4 = vld [vmem:[%s10864_s3 + $0x320] sm:$0xff]  }
 0x31a   : > { %5065 = vst [vmem:[%s8929_s26 + $0x8e0] sm:$0xff] %v4213_v51  ;;  %v4217_v11 = vadd.f32 %v4216_v54, %v11244_v46  ;;  %v4218_v59 = vpop.f32.mrb[155].mxu1  ;;  %6404 = vmatpush1.bf16.msra.mxu0 %v9366_v22  ;;  %v5609_v24 = vmax.f32 %v4213_v51, 0.0  ;;  %v5311_v54 = vld [vmem:[%s10866_s5 + $0x90] sm:$0xff] }
 0x31b   : > { %5066 = vst [vmem:[%s8929_s26 + $0x8e8] sm:$0xff] %v4215_v21  ;;  %v4219_v55 = vadd.f32 %v4218_v59, %v11244_v46  ;;  %6405 = vmatprep.subr.bf16.mxu0 %v9398_v53  ;;  %v5610_v37 = vmax.f32 %v4215_v21, 0.0  ;;  %v5319_v46 = vld [vmem:[%s10866_s5 + $0xd0] sm:$0xff] }
 0x31c   : > { %5067 = vst [vmem:[%s8929_s26 + $0x8f0] sm:$0xff] %v4217_v11  ;;  %v5611_v41 = vmax.f32 %v4217_v11, 0.0  ;;  %7171 = vmatmul.mubr.msk.bf16.gmra.mrb[4].mxu1 %vm3083_vm2, %v7436_v26  ;;  %v11248_v26 = vld [vmem:[#allocation104_spill] sm:$0xff] }
 0x31d   : > { %5068 = vst [vmem:[%s8929_s26 + $0x8f8] sm:$0xff] %v4219_v55  ;;  %v5612_v25 = vmax.f32 %v4219_v55, 0.0  ;;  %4490 = vmatprep.mubr.bf16.mxu1 %v11031_v20 }
 0x31e   : > { %v10124_v23 = vpack.c.bf16 %v5611_v41, %v5609_v24  ;;  %6406 = vmatpush1.bf16.msra.mxu0 %v9391_v29  ;;  %v7222_v41 = vcombine.high %v5311_v54, %v5319_v46 }
 0x31f   : > { %v4222_v22 = vpop.f32.mrb[156].mxu1  ;;  %6407 = vmatprep.subr.bf16.mxu0 %v9423_v16  ;;  %v10128_v53 = vpack.c.bf16 %v5612_v25, %v5610_v37 }
 0x320   : > { %v4223_v35 = vadd.f32 %v4222_v22, %v11245_v8  ;;  %v4224_v50 = vpop.f32.mrb[157].mxu1  ;;  %v11249_v22 = vld [vmem:[#allocation105_spill] sm:$0xff] }
 0x321   : > { %v4225_v61 = vadd.f32 %v4224_v50, %v11245_v8  ;;  %v4226_v33 = vpop.f32.mrb[158].mxu1 }
 0x322   : > { %5069 = vst [vmem:[%s8929_s26 + $0x900] sm:$0xff] %v4223_v35  ;;  %v4227_v29 = vadd.f32 %v4226_v33, %v11246_v44  ;;  %v4228_v27 = vpop.f32.mrb[159].mxu1  ;;  %6408 = vmatpush1.bf16.msra.mxu0 %v9416_v1  ;;  %v5613_v38 = vmax.f32 %v4223_v35, 0.0  ;;  %v10194_v33 = vld [vmem:[%s10866_s5 + $0x18] sm:$0xff] }
 0x323   : > { %5070 = vst [vmem:[%s8929_s26 + $0x908] sm:$0xff] %v4225_v61  ;;  %v4229_v16 = vadd.f32 %v4228_v27, %v11246_v44  ;;  %6409 = vmatprep.subr.bf16.mxu0 %v9448_v60  ;;  %v5614_v30 = vmax.f32 %v4225_v61, 0.0  ;;  %v10199_v44 = vld [vmem:[%s10866_s5 + $0x58] sm:$0xff] }
 0x324   : > { %5071 = vst [vmem:[%s8929_s26 + $0x910] sm:$0xff] %v4227_v29  ;;  %v5615_v47 = vmax.f32 %v4227_v29, 0.0  ;;  %7172 = vmatmul.mubr.msk.bf16.gmra.mrb[8].mxu1 %vm3083_vm2, %v7437_v6 }
 0x325   : > { %5072 = vst [vmem:[%s8929_s26 + $0x918] sm:$0xff] %v4229_v16  ;;  %v5616_v40 = vmax.f32 %v4229_v16, 0.0  ;;  %4500 = vmatprep.mubr.bf16.mxu1 %v11031_v20 }
 0x326   : > { %v10145_v0 = vpack.c.bf16 %v5615_v47, %v5613_v38  ;;  %6410 = vmatpush1.bf16.msra.mxu0 %v9441_v2  ;;  %v7208_v47 = vcombine.high %v10194_v33, %v10199_v44 }
 0x327   : > { %v4232_v1 = vpop.f32.mrb[160].mxu1  ;;  %6411 = vmatprep.subr.bf16.mxu0 %v9473_v12  ;;  %v10149_v60 = vpack.c.bf16 %v5616_v40, %v5614_v30 }
 0x328   : > { %v4233_v32 = vadd.f32 %v4232_v1, %v11247_v48  ;;  %v4234_v58 = vpop.f32.mrb[161].mxu1  ;;  %v11251_v1 = vld [vmem:[#allocation108_spill] sm:$0xff] }
 0x329   : > { %v4235_v51 = vadd.f32 %v4234_v58, %v11247_v48  ;;  %v4236_v52 = vpop.f32.mrb[162].mxu1  ;;  %v7440_v58 = vld [vmem:[%s10864_s3 + $0x330] sm:$0xff]  }
 0x32a   : > { %5073 = vst [vmem:[%s8929_s26 + $0x920] sm:$0xff] %v4233_v32  ;;  %v4237_v2 = vadd.f32 %v4236_v52, %v11248_v26  ;;  %v4238_v21 = vpop.f32.mrb[163].mxu1  ;;  %6412 = vmatpush1.bf16.msra.mxu0 %v9466_v5  ;;  %v5617_v11 = vmax.f32 %v4233_v32, 0.0 }
 0x32b   : > { %5074 = vst [vmem:[%s8929_s26 + $0x928] sm:$0xff] %v4235_v51  ;;  %v4239_v12 = vadd.f32 %v4238_v21, %v11248_v26  ;;  %6413 = vmatprep.subr.bf16.mxu0 %v9498_v3  ;;  %v5618_v55 = vmax.f32 %v4235_v51, 0.0  ;;  %v7205_v3 = vcombine.low %v9992_v7, %v9997_v49  ;;  %v7439_v7 = vld [vmem:[%s10864_s3 + $0x328] sm:$0xff]   ;;  %v11252_v26 = vld [vmem:[#allocation46_spill] sm:$0xff] }
 0x32c   : > { %5075 = vst [vmem:[%s8929_s26 + $0x930] sm:$0xff] %v4237_v2  ;;  %v5619_v59 = vmax.f32 %v4237_v2, 0.0  ;;  %7173 = vmatmul.mubr.msk.bf16.gmra.mrb[12].mxu1 %vm3083_vm2, %v7438_v4 }
 0x32d   : > { %5076 = vst [vmem:[%s8929_s26 + $0x938] sm:$0xff] %v4239_v12  ;;  %v5620_v5 = vmax.f32 %v4239_v12, 0.0  ;;  %4510 = vmatprep.mubr.bf16.mxu1 %v11031_v20 }
 0x32e   : > { %v10174_v24 = vpack.c.bf16 %v5619_v59, %v5617_v11  ;;  %6414 = vmatpush1.bf16.msra.mxu0 %v9491_v28  ;;  %v11250_v28 = vld [vmem:[#allocation106_spill] sm:$0xff] }
 0x32f   : > { %v4242_v37 = vpop.f32.mrb[164].mxu1  ;;  %6436 = vmatprep.subr.bf16.mxu0 %v9535_v15  ;;  %v10178_v25 = vpack.c.bf16 %v5620_v5, %v5618_v55  ;;  %v11255_v55 = vld [vmem:[#allocation109_spill] sm:$0xff] }
 0x330   : > { %v4243_v8 = vadd.f32 %v4242_v37, %v11249_v22  ;;  %v4244_v35 = vpop.f32.mrb[165].mxu1 }
 0x331   : > { %v4245_v49 = vadd.f32 %v4244_v35, %v11249_v22  ;;  %v4246_v50 = vpop.f32.mrb[166].mxu1  ;;  %6416 = vmatmul.mubr.bf16.vlgmr.msra.gmra.mrb[148].mxu0 %v7205_v3 }
 0x332   : > { %5077 = vst [vmem:[%s8929_s26 + $0x940] sm:$0xff] %v4243_v8  ;;  %v4247_v6 = vadd.f32 %v4246_v50, %v11250_v28  ;;  %v4248_v61 = vpop.f32.mrb[167].mxu1  ;;  %6437 = vmatpush1.bf16.msra.mxu0 %v9516_v63  ;;  %6425 = vmatprep.mubr.bf16.mxu0 %v7222_v41  ;;  %v5621_v29 = vmax.f32 %v4243_v8, 0.0  ;;  %v7441_v41 = vld [vmem:[%s10864_s3 + $0x338] sm:$0xff]  }
 0x333   : > { %5078 = vst [vmem:[%s8929_s26 + $0x948] sm:$0xff] %v4245_v49  ;;  %v4249_v15 = vadd.f32 %v4248_v61, %v11250_v28  ;;  %6438 = vmatprep.subr.bf16.mxu0 %v9577_v9  ;;  %v5622_v63 = vmax.f32 %v4245_v49, 0.0  ;;  %v7221_v9 = vcombine.low %v5311_v54, %v5319_v46  ;;  %v11256_v8 = vld [vmem:[#allocation110_spill] sm:$0xff]  ;;  %v11257_v49 = vld [vmem:[#allocation5_spill] sm:$0xff]  ;;  %v11258_v28 = vld [vmem:[#allocation47_spill] sm:$0xff] }
 0x334   : > { %5079 = vst [vmem:[%s8929_s26 + $0x950] sm:$0xff] %v4247_v6  ;;  %v5623_v27 = vmax.f32 %v4247_v6, 0.0  ;;  %7174 = vmatmul.mubr.msk.bf16.gmra.mrb[16].mxu1 %vm3083_vm2, %v7439_v7 }
 0x335   : > { %5080 = vst [vmem:[%s8929_s26 + $0x958] sm:$0xff] %v4249_v15  ;;  %v5624_v16 = vmax.f32 %v4249_v15, 0.0  ;;  %4520 = vmatprep.mubr.bf16.mxu1 %v11031_v20 }
 0x336   : > { %v10205_v38 = vpack.c.bf16 %v5623_v27, %v5621_v29  ;;  %6439 = vmatpush1.bf16.msra.mxu0 %v9566_v14 }
 0x337   : > { %v4252_v30 = vpop.f32.mrb[168].mxu1  ;;  %6440 = vmatprep.subr.bf16.mxu0 %v9604_v19  ;;  %v10211_v40 = vpack.c.bf16 %v5624_v16, %v5622_v63  ;;  %v11259_v63 = vld [vmem:[#allocation4_spill] sm:$0xff] }
 0x338   : > { %v4253_v48 = vadd.f32 %v4252_v30, %v11251_v1  ;;  %v4254_v32 = vpop.f32.mrb[169].mxu1  ;;  %v11261_v30 = vld [vmem:[#allocation111_spill] sm:$0xff] }
 0x339   : > { %v4255_v4 = vadd.f32 %v4254_v32, %v11251_v1  ;;  %v4256_v14 = vpop.f32.mrb[170].mxu1  ;;  %6426 = vmatmul.mubr.bf16.gmra.mrb[152].mxu0 %v7221_v9  ;;  %v11260_v9 = vld [vmem:[#allocation50_spill] sm:$0xff] }
 0x33a   : > { %5081 = vst [vmem:[%s8929_s26 + $0x960] sm:$0xff] %v4253_v48  ;;  %v4257_v51 = vadd.f32 %v4256_v14, %v9027_v36  ;;  %v4258_v52 = vpop.f32.mrb[171].mxu1  ;;  %6441 = vmatpush1.bf16.msra.mxu0 %v9597_v43  ;;  %6468 = vmatprep.mubr.bf16.mxu0 %v7208_v47  ;;  %v5625_v2 = vmax.f32 %v4253_v48, 0.0  ;;  %v11253_v43 = vld [vmem:[#allocation3_spill] sm:$0xff]  ;;  %v11262_v14 = vld [vmem:[#allocation112_spill] sm:$0xff] }
 0x33b   : > { %5082 = vst [vmem:[%s8929_s26 + $0x968] sm:$0xff] %v4255_v4  ;;  %v4259_v19 = vadd.f32 %v4258_v52, %v9027_v36  ;;  %6442 = vmatprep.subr.bf16.mxu0 %v11252_v26  ;;  %v5626_v12 = vmax.f32 %v4255_v4, 0.0  ;;  %v11254_v36 = vld [vmem:[#allocation48_spill] sm:$0xff]  ;;  %v7442_v32 = vld [vmem:[%s10864_s3 + $0x340] sm:$0xff]  }
 0x33c   : > { %5083 = vst [vmem:[%s8929_s26 + $0x970] sm:$0xff] %v4257_v51  ;;  %v5627_v21 = vmax.f32 %v4257_v51, 0.0  ;;  %7175 = vmatmul.mubr.msk.bf16.gmra.mrb[20].mxu1 %vm3083_vm2, %v7440_v58 }
 0x33d   : > { %5084 = vst [vmem:[%s8929_s26 + $0x978] sm:$0xff] %v4259_v19  ;;  %v5628_v54 = vmax.f32 %v4259_v19, 0.0  ;;  %4530 = vmatprep.mubr.bf16.mxu1 %v11031_v20  ;;  %v11263_v19 = vld [vmem:[#allocation7_spill] sm:$0xff] }
 0x33e   : > { %v10228_v46 = vpack.c.bf16 %v5627_v21, %v5625_v2  ;;  %6443 = vmatpush1.bf16.msra.mxu0 %v11253_v43  ;;  %v11264_v2 = vld [vmem:[#allocation49_spill] sm:$0xff] }
 0x33f   : > { %v4262_v11 = vpop.f32.mrb[172].mxu1  ;;  %6444 = vmatprep.subr.bf16.mxu0 %v11254_v36  ;;  %v10232_v59 = vpack.c.bf16 %v5628_v54, %v5626_v12  ;;  %v11265_v36 = vld [vmem:[#allocation6_spill] sm:$0xff] }
 0x340   : > { %v4263_v5 = vadd.f32 %v4262_v11, %v11255_v55  ;;  %v4264_v3 = vpop.f32.mrb[173].mxu1 }
 0x341   : > { %v4265_v37 = vadd.f32 %v4264_v3, %v11255_v55  ;;  %v4266_v22 = vpop.f32.mrb[174].mxu1 }
 0x342   : > { %5085 = vst [vmem:[%s8929_s26 + $0x980] sm:$0xff] %v4263_v5  ;;  %v4267_v35 = vadd.f32 %v4266_v22, %v11256_v8  ;;  %v4268_v7 = vpop.f32.mrb[175].mxu1  ;;  %6445 = vmatpush1.bf16.msra.mxu0 %v11257_v49  ;;  %v5629_v6 = vmax.f32 %v4263_v5, 0.0  ;;  %v11266_v5 = vld [vmem:[#allocation52_spill] sm:$0xff]  ;;  %v11268_v49 = vld [vmem:[#allocation114_spill] sm:$0xff] }
 0x343   : > { %5086 = vst [vmem:[%s8929_s26 + $0x988] sm:$0xff] %v4265_v37  ;;  %v4269_v50 = vadd.f32 %v4268_v7, %v11256_v8  ;;  %6446 = vmatprep.subr.bf16.mxu0 %v11258_v28  ;;  %v5630_v15 = vmax.f32 %v4265_v37, 0.0  ;;  %v7443_v8 = vld [vmem:[%s10864_s3 + $0x348] sm:$0xff]  }
 0x344   : > { %5087 = vst [vmem:[%s8929_s26 + $0x990] sm:$0xff] %v4267_v35  ;;  %v5631_v61 = vmax.f32 %v4267_v35, 0.0  ;;  %7176 = vmatmul.mubr.msk.bf16.gmra.mrb[24].mxu1 %vm3083_vm2, %v7441_v41  ;;  %v11267_v41 = vld [vmem:[#allocation113_spill] sm:$0xff] }
 0x345   : > { %5088 = vst [vmem:[%s8929_s26 + $0x998] sm:$0xff] %v4269_v50  ;;  %v5632_v29 = vmax.f32 %v4269_v50, 0.0  ;;  %4540 = vmatprep.mubr.bf16.mxu1 %v11031_v20 }
 0x346   : > { %v10249_v27 = vpack.c.bf16 %v5631_v61, %v5629_v6  ;;  %6447 = vmatpush1.bf16.msra.mxu0 %v11259_v63  ;;  %v11269_v6 = vld [vmem:[#allocation9_spill] sm:$0xff] }
 0x347   : > { %v4272_v16 = vpop.f32.mrb[176].mxu1  ;;  %6448 = vmatprep.subr.bf16.mxu0 %v11260_v9  ;;  %v10253_v47 = vpack.c.bf16 %v5632_v29, %v5630_v15  ;;  %v11270_v15 = vld [vmem:[#allocation51_spill] sm:$0xff] }
 0x348   : > { %v4273_v1 = vadd.f32 %v4272_v16, %v11261_v30  ;;  %v4274_v48 = vpop.f32.mrb[177].mxu1 }
 0x349   : > { %v4275_v58 = vadd.f32 %v4274_v48, %v11261_v30  ;;  %v4276_v4 = vpop.f32.mrb[178].mxu1 }
 0x34a   : > { %5089 = vst [vmem:[%s8929_s26 + $0x9a0] sm:$0xff] %v4273_v1  ;;  %v4277_v51 = vadd.f32 %v4276_v4, %v11262_v14  ;;  %v4278_v52 = vpop.f32.mrb[179].mxu1  ;;  %6449 = vmatpush1.bf16.msra.mxu0 %v11263_v19  ;;  %v5633_v21 = vmax.f32 %v4273_v1, 0.0  ;;  %v11271_v1 = vld [vmem:[#allocation8_spill] sm:$0xff]  ;;  %v11273_v4 = vld [vmem:[#allocation115_spill] sm:$0xff] }
 0x34b   : > { %5090 = vst [vmem:[%s8929_s26 + $0x9a8] sm:$0xff] %v4275_v58  ;;  %v4279_v26 = vadd.f32 %v4278_v52, %v11262_v14  ;;  %6450 = vmatprep.subr.bf16.mxu0 %v11264_v2  ;;  %v5634_v54 = vmax.f32 %v4275_v58, 0.0  ;;  %v7444_v52 = vld [vmem:[%s10864_s3 + $0x350] sm:$0xff]  }
 0x34c   : > { %5091 = vst [vmem:[%s8929_s26 + $0x9b0] sm:$0xff] %v4277_v51  ;;  %v5635_v12 = vmax.f32 %v4277_v51, 0.0  ;;  %7177 = vmatmul.mubr.msk.bf16.gmra.mrb[28].mxu1 %vm3083_vm2, %v7442_v32  ;;  %v11272_v32 = vld [vmem:[#allocation54_spill] sm:$0xff]  ;;  %v11274_v2 = vld [vmem:[#allocation116_spill] sm:$0xff] }
 0x34d   : > { %5092 = vst [vmem:[%s8929_s26 + $0x9b8] sm:$0xff] %v4279_v26  ;;  %v5636_v43 = vmax.f32 %v4279_v26, 0.0  ;;  %4550 = vmatprep.mubr.bf16.mxu1 %v11031_v20 }
 0x34e   : > { %v10270_v11 = vpack.c.bf16 %v5635_v12, %v5633_v21  ;;  %6451 = vmatpush1.bf16.msra.mxu0 %v11265_v36  ;;  %v11276_v36 = vld [vmem:[#allocation53_spill] sm:$0xff] }
 0x34f   : > { %v4282_v55 = vpop.f32.mrb[180].mxu1  ;;  %6452 = vmatprep.subr.bf16.mxu0 %v11266_v5  ;;  %v10274_v3 = vpack.c.bf16 %v5636_v43, %v5634_v54  ;;  %v11275_v54 = vld [vmem:[#allocation11_spill] sm:$0xff] }
 0x350   : > { %v4283_v37 = vadd.f32 %v4282_v55, %v11267_v41  ;;  %v4284_v22 = vpop.f32.mrb[181].mxu1 }
 0x351   : > { %v4285_v35 = vadd.f32 %v4284_v22, %v11267_v41  ;;  %v4286_v7 = vpop.f32.mrb[182].mxu1 }
 0x352   : > { %5093 = vst [vmem:[%s8929_s26 + $0x9c0] sm:$0xff] %v4283_v37  ;;  %v4287_v50 = vadd.f32 %v4286_v7, %v11268_v49  ;;  %v4288_v28 = vpop.f32.mrb[183].mxu1  ;;  %6453 = vmatpush1.bf16.msra.mxu0 %v11269_v6  ;;  %v5637_v29 = vmax.f32 %v4283_v37, 0.0  ;;  %v11278_v7 = vld [vmem:[#allocation56_spill] sm:$0xff] }
 0x353   : > { %5094 = vst [vmem:[%s8929_s26 + $0x9c8] sm:$0xff] %v4285_v35  ;;  %v4289_v61 = vadd.f32 %v4288_v28, %v11268_v49  ;;  %6454 = vmatprep.subr.bf16.mxu0 %v11270_v15  ;;  %v5638_v16 = vmax.f32 %v4285_v35, 0.0 }
 0x354   : > { %5095 = vst [vmem:[%s8929_s26 + $0x9d0] sm:$0xff] %v4287_v50  ;;  %v5639_v63 = vmax.f32 %v4287_v50, 0.0  ;;  %7178 = vmatmul.mubr.msk.bf16.gmra.mrb[32].mxu1 %vm3083_vm2, %v7443_v8  ;;  %v11277_v8 = vld [vmem:[#allocation10_spill] sm:$0xff]  ;;  %v11279_v50 = vld [vmem:[#allocation117_spill] sm:$0xff] }
 0x355   : > { %5096 = vst [vmem:[%s8929_s26 + $0x9d8] sm:$0xff] %v4289_v61  ;;  %v5640_v9 = vmax.f32 %v4289_v61, 0.0  ;;  %4560 = vmatprep.mubr.bf16.mxu1 %v11031_v20  ;;  %v7445_v61 = vld [vmem:[%s10864_s3 + $0x358] sm:$0xff]  }
 0x356   : > { %v10291_v30 = vpack.c.bf16 %v5639_v63, %v5637_v29  ;;  %6455 = vmatpush1.bf16.msra.mxu0 %v11271_v1  ;;  %v11280_v63 = vld [vmem:[#allocation118_spill] sm:$0xff]  ;;  %v11281_v1 = vld [vmem:[#allocation13_spill] sm:$0xff] }
 0x357   : > { %v4292_v48 = vpop.f32.mrb[184].mxu1  ;;  %6456 = vmatprep.subr.bf16.mxu0 %v11272_v32  ;;  %v10295_v58 = vpack.c.bf16 %v5640_v9, %v5638_v16  ;;  %v11282_v32 = vld [vmem:[#allocation55_spill] sm:$0xff] }
 0x358   : > { %v4293_v14 = vadd.f32 %v4292_v48, %v11273_v4  ;;  %v4294_v51 = vpop.f32.mrb[185].mxu1 }
 0x359   : > { %v4295_v19 = vadd.f32 %v4294_v51, %v11273_v4  ;;  %v4296_v26 = vpop.f32.mrb[186].mxu1 }
 0x35a   : > { %5097 = vst [vmem:[%s8929_s26 + $0x9e0] sm:$0xff] %v4293_v14  ;;  %v4297_v21 = vadd.f32 %v4296_v26, %v11274_v2  ;;  %v4298_v12 = vpop.f32.mrb[187].mxu1  ;;  %6457 = vmatpush1.bf16.msra.mxu0 %v11275_v54  ;;  %v5641_v55 = vmax.f32 %v4293_v14, 0.0  ;;  %v11283_v26 = vld [vmem:[#allocation12_spill] sm:$0xff]  ;;  %v11285_v54 = vld [vmem:[#allocation119_spill] sm:$0xff] }
 0x35b   : > { %5098 = vst [vmem:[%s8929_s26 + $0x9e8] sm:$0xff] %v4295_v19  ;;  %v4299_v43 = vadd.f32 %v4298_v12, %v11274_v2  ;;  %6458 = vmatprep.subr.bf16.mxu0 %v11276_v36  ;;  %v5642_v41 = vmax.f32 %v4295_v19, 0.0 }
 0x35c   : > { %5099 = vst [vmem:[%s8929_s26 + $0x9f0] sm:$0xff] %v4297_v21  ;;  %v5643_v5 = vmax.f32 %v4297_v21, 0.0  ;;  %7179 = vmatmul.mubr.msk.bf16.gmra.mrb[36].mxu1 %vm3083_vm2, %v7444_v52  ;;  %v11284_v21 = vld [vmem:[#allocation58_spill] sm:$0xff] }
 0x35d   : > { %5100 = vst [vmem:[%s8929_s26 + $0x9f8] sm:$0xff] %v4299_v43  ;;  %v5644_v37 = vmax.f32 %v4299_v43, 0.0  ;;  %4570 = vmatprep.mubr.bf16.mxu1 %v11031_v20 }
 0x35e   : > { %v10312_v22 = vpack.c.bf16 %v5643_v5, %v5641_v55  ;;  %6459 = vmatpush1.bf16.msra.mxu0 %v11277_v8  ;;  %v7446_v55 = vld [vmem:[%s10864_s3 + $0x360] sm:$0xff]  }
 0x35f   : > { %v4302_v35 = vpop.f32.mrb[188].mxu1  ;;  %6460 = vmatprep.subr.bf16.mxu0 %v11278_v7  ;;  %v10316_v49 = vpack.c.bf16 %v5644_v37, %v5642_v41  ;;  %v11286_v37 = vld [vmem:[#allocation120_spill] sm:$0xff]  ;;  %v11287_v7 = vld [vmem:[#allocation15_spill] sm:$0xff] }
 0x360   : > { %v4303_v28 = vadd.f32 %v4302_v35, %v11279_v50  ;;  %v4304_v6 = vpop.f32.mrb[189].mxu1 }
 0x361   : > { %v4305_v15 = vadd.f32 %v4304_v6, %v11279_v50  ;;  %v4306_v29 = vpop.f32.mrb[190].mxu1  ;;  %v5312_v6 = vld [vmem:[%s10866_s5 + $0x98] sm:$0xff] }
 0x362   : > { %5101 = vst [vmem:[%s8929_s26 + $0xa00] sm:$0xff] %v4303_v28  ;;  %v4307_v16 = vadd.f32 %v4306_v29, %v11280_v63  ;;  %v4308_v9 = vpop.f32.mrb[191].mxu1  ;;  %6461 = vmatpush1.bf16.msra.mxu0 %v11281_v1  ;;  %v5645_v4 = vmax.f32 %v4303_v28, 0.0  ;;  %v11288_v28 = vld [vmem:[#allocation57_spill] sm:$0xff] }
 0x363   : > { %5102 = vst [vmem:[%s8929_s26 + $0xa08] sm:$0xff] %v4305_v15  ;;  %v4309_v48 = vadd.f32 %v4308_v9, %v11280_v63  ;;  %6462 = vmatprep.subr.bf16.mxu0 %v11282_v32  ;;  %v5646_v51 = vmax.f32 %v4305_v15, 0.0  ;;  %v7207_v9 = vcombine.low %v10194_v33, %v10199_v44  ;;  %v7447_v33 = vld [vmem:[%s10864_s3 + $0x368] sm:$0xff]  }
 0x364   : > { %5103 = vst [vmem:[%s8929_s26 + $0xa10] sm:$0xff] %v4307_v16  ;;  %v5647_v14 = vmax.f32 %v4307_v16, 0.0  ;;  %7180 = vmatmul.mubr.msk.bf16.gmra.mrb[40].mxu1 %vm3083_vm2, %v7445_v61  ;;  %v5320_v61 = vld [vmem:[%s10866_s5 + $0xd8] sm:$0xff] }
 0x365   : > { %5104 = vst [vmem:[%s8929_s26 + $0xa18] sm:$0xff] %v4309_v48  ;;  %v5648_v52 = vmax.f32 %v4309_v48, 0.0  ;;  %4580 = vmatprep.mubr.bf16.mxu1 %v11031_v20  ;;  %v11289_v48 = vld [vmem:[#allocation14_spill] sm:$0xff]  ;;  %v7224_v32 = vcombine.high %v5312_v6, %v5320_v61 }
 0x366   : > { %v10333_v19 = vpack.c.bf16 %v5647_v14, %v5645_v4  ;;  %6463 = vmatpush1.bf16.msra.mxu0 %v11283_v26  ;;  %v11290_v14 = vld [vmem:[#allocation60_spill] sm:$0xff] }
 0x367   : > { %v4312_v2 = vpop.f32.mrb[192].mxu1  ;;  %6464 = vmatprep.subr.bf16.mxu0 %v11284_v21  ;;  %v10337_v12 = vpack.c.bf16 %v5648_v52, %v5646_v51  ;;  %v11291_v52 = vld [vmem:[#allocation121_spill] sm:$0xff] }
 0x368   : > { %v4313_v43 = vadd.f32 %v4312_v2, %v11285_v54  ;;  %v4314_v36 = vpop.f32.mrb[193].mxu1 }
 0x369   : > { %v4315_v5 = vadd.f32 %v4314_v36, %v11285_v54  ;;  %v4316_v41 = vpop.f32.mrb[194].mxu1  ;;  %v11292_v54 = vld [vmem:[#allocation122_spill] sm:$0xff] }
 0x36a   : > { %5105 = vst [vmem:[%s8929_s26 + $0xa20] sm:$0xff] %v4313_v43  ;;  %v4317_v8 = vadd.f32 %v4316_v41, %v11286_v37  ;;  %v4318_v35 = vpop.f32.mrb[195].mxu1  ;;  %6465 = vmatpush1.bf16.msra.mxu0 %v11287_v7  ;;  %v5649_v15 = vmax.f32 %v4313_v43, 0.0  ;;  %v10382_v41 = vld [vmem:[%s10866_s5 + $0x20] sm:$0xff] }
 0x36b   : > { %5106 = vst [vmem:[%s8929_s26 + $0xa28] sm:$0xff] %v4315_v5  ;;  %v4319_v50 = vadd.f32 %v4318_v35, %v11286_v37  ;;  %6466 = vmatprep.subr.bf16.mxu0 %v11288_v28  ;;  %v5650_v63 = vmax.f32 %v4315_v5, 0.0  ;;  %v10387_v37 = vld [vmem:[%s10866_s5 + $0x60] sm:$0xff] }
 0x36c   : > { %5107 = vst [vmem:[%s8929_s26 + $0xa30] sm:$0xff] %v4317_v8  ;;  %v5651_v29 = vmax.f32 %v4317_v8, 0.0  ;;  %7181 = vmatmul.mubr.msk.bf16.gmra.mrb[44].mxu1 %vm3083_vm2, %v7446_v55  ;;  %v11293_v55 = vld [vmem:[#allocation17_spill] sm:$0xff] }
 0x36d   : > { %5108 = vst [vmem:[%s8929_s26 + $0xa38] sm:$0xff] %v4319_v50  ;;  %v5652_v16 = vmax.f32 %v4319_v50, 0.0  ;;  %4590 = vmatprep.mubr.bf16.mxu1 %v11031_v20 }
 0x36e   : > { %v10362_v1 = vpack.c.bf16 %v5651_v29, %v5649_v15  ;;  %6467 = vmatpush1.bf16.msra.mxu0 %v11289_v48  ;;  %v7210_v15 = vcombine.high %v10382_v41, %v10387_v37 }
 0x36f   : > { %v4322_v4 = vpop.f32.mrb[196].mxu1  ;;  %6489 = vmatprep.subr.bf16.mxu0 %v11290_v14  ;;  %v10366_v51 = vpack.c.bf16 %v5652_v16, %v5650_v63  ;;  %v11294_v16 = vld [vmem:[#allocation123_spill] sm:$0xff] }
 0x370   : > { %v4323_v26 = vadd.f32 %v4322_v4, %v11291_v52  ;;  %v4324_v2 = vpop.f32.mrb[197].mxu1 }
 0x371   : > { %v4325_v44 = vadd.f32 %v4324_v2, %v11291_v52  ;;  %v4326_v21 = vpop.f32.mrb[198].mxu1  ;;  %6469 = vmatmul.mubr.bf16.vlgmr.msra.gmra.mrb[148].mxu0 %v7207_v9 }
 0x372   : > { %5109 = vst [vmem:[%s8929_s26 + $0xa40] sm:$0xff] %v4323_v26  ;;  %v4327_v43 = vadd.f32 %v4326_v21, %v11292_v54  ;;  %v4328_v36 = vpop.f32.mrb[199].mxu1  ;;  %6490 = vmatpush1.bf16.msra.mxu0 %v11293_v55  ;;  %6478 = vmatprep.mubr.bf16.mxu0 %v7224_v32  ;;  %v5653_v8 = vmax.f32 %v4323_v26, 0.0 }
 0x373   : > { %5110 = vst [vmem:[%s8929_s26 + $0xa48] sm:$0xff] %v4325_v44  ;;  %v4329_v5 = vadd.f32 %v4328_v36, %v11292_v54  ;;  %6491 = vmatprep.subr.bf16.mxu0 %v9999_v57  ;;  %v5654_v7 = vmax.f32 %v4325_v44, 0.0  ;;  %v7223_v57 = vcombine.low %v5312_v6, %v5320_v61  ;;  %v7448_v6 = vld [vmem:[%s10864_s3 + $0x370] sm:$0xff]   ;;  %v2001_v61 = vpop.permute.xlu1 %2000  ;;  %v7449_v36 = vld [vmem:[%s10864_s3 + $0x378] sm:$0xff]  }
 0x374   : > { %5111 = vst [vmem:[%s8929_s26 + $0xa50] sm:$0xff] %v4327_v43  ;;  %v5655_v35 = vmax.f32 %v4327_v43, 0.0  ;;  %7182 = vmatmul.mubr.msk.bf16.gmra.mrb[48].mxu1 %vm3083_vm2, %v7447_v33 }
 0x375   : > { %5112 = vst [vmem:[%s8929_s26 + $0xa58] sm:$0xff] %v4329_v5  ;;  %v5656_v50 = vmax.f32 %v4329_v5, 0.0  ;;  %4600 = vmatprep.mubr.bf16.mxu1 %v11031_v20 }
 0x376   : > { %v10393_v28 = vpack.c.bf16 %v5655_v35, %v5653_v8  ;;  %6492 = vmatpush1.bf16.msra.mxu0 %v9987_v13 }
 0x377   : > { %v4332_v29 = vpop.f32.mrb[200].mxu1  ;;  %6493 = vmatprep.subr.bf16.mxu0 %v10023_v39  ;;  %v10399_v63 = vpack.c.bf16 %v5656_v50, %v5654_v7  ;;  %v2011_v55 = vpop.permute.xlu1 %2010 }
 0x378   : > { %v4333_v9 = vadd.f32 %v4332_v29, %v11294_v16  ;;  %v4334_v48 = vpop.f32.mrb[201].mxu1 }
 0x379   : > { %v4335_v13 = vadd.f32 %v4334_v48, %v11294_v16  ;;  %v4336_v32 = vpop.f32.mrb[202].mxu1  ;;  %6479 = vmatmul.mubr.bf16.gmra.mrb[152].mxu0 %v7223_v57 }
 0x37a   : > { %5113 = vst [vmem:[%s8929_s26 + $0xa60] sm:$0xff] %v4333_v9  ;;  %v4337_v4 = vadd.f32 %v4336_v32, %v2001_v61  ;;  %v4338_v14 = vpop.f32.mrb[203].mxu1  ;;  %6494 = vmatpush1.bf16.msra.mxu0 %v10019_v56  ;;  %6521 = vmatprep.mubr.bf16.mxu0 %v7210_v15  ;;  %v5657_v52 = vmax.f32 %v4333_v9, 0.0  ;;  %v2006_v56 = vpop.permute.xlu0 %2005 }
 0x37b   : > { %5114 = vst [vmem:[%s8929_s26 + $0xa68] sm:$0xff] %v4335_v13  ;;  %v4339_v39 = vadd.f32 %v4338_v14, %v2001_v61  ;;  %6495 = vmatprep.subr.bf16.mxu0 %v10044_v17  ;;  %v5658_v2 = vmax.f32 %v4335_v13, 0.0  ;;  %v2021_v61 = vpop.permute.xlu1 %2020 }
 0x37c   : > { %5115 = vst [vmem:[%s8929_s26 + $0xa70] sm:$0xff] %v4337_v4  ;;  %v5659_v26 = vmax.f32 %v4337_v4, 0.0  ;;  %7183 = vmatmul.mubr.msk.bf16.gmra.mrb[52].mxu1 %vm3083_vm2, %v7448_v6  ;;  %v7450_v6 = vld [vmem:[%s10864_s3 + $0x380] sm:$0xff]  }
 0x37d   : > { %5116 = vst [vmem:[%s8929_s26 + $0xa78] sm:$0xff] %v4339_v39  ;;  %v5660_v33 = vmax.f32 %v4339_v39, 0.0  ;;  %4610 = vmatprep.mubr.bf16.mxu1 %v11031_v20 }
 0x37e   : > { %v10414_v44 = vpack.c.bf16 %v5659_v26, %v5657_v52  ;;  %6496 = vmatpush1.bf16.msra.mxu0 %v10040_v34 }
 0x37f   : > { %v4342_v21 = vpop.f32.mrb[204].mxu1  ;;  %6497 = vmatprep.subr.bf16.mxu0 %v10065_v62  ;;  %v10418_v17 = vpack.c.bf16 %v5660_v33, %v5658_v2 }
 0x380   : > { %v4343_v54 = vadd.f32 %v4342_v21, %v2006_v56  ;;  %v4344_v43 = vpop.f32.mrb[205].mxu1 }
 0x381   : > { %v4345_v5 = vadd.f32 %v4344_v43, %v2006_v56  ;;  %v4346_v8 = vpop.f32.mrb[206].mxu1  ;;  %v2031_v43 = vpop.permute.xlu1 %2030 }
 0x382   : > { %5117 = vst [vmem:[%s8929_s26 + $0xa80] sm:$0xff] %v4343_v54  ;;  %v4347_v35 = vadd.f32 %v4346_v8, %v2011_v55  ;;  %v4348_v34 = vpop.f32.mrb[207].mxu1  ;;  %6498 = vmatpush1.bf16.msra.mxu0 %v10061_v31  ;;  %v5661_v7 = vmax.f32 %v4343_v54, 0.0  ;;  %v2016_v31 = vpop.permute.xlu0 %2015  ;;  %v7451_v54 = vld [vmem:[%s10864_s3 + $0x388] sm:$0xff]  }
 0x383   : > { %5118 = vst [vmem:[%s8929_s26 + $0xa88] sm:$0xff] %v4345_v5  ;;  %v4349_v62 = vadd.f32 %v4348_v34, %v2011_v55  ;;  %6499 = vmatprep.subr.bf16.mxu0 %v10086_v18  ;;  %v5662_v57 = vmax.f32 %v4345_v5, 0.0 }
 0x384   : > { %5119 = vst [vmem:[%s8929_s26 + $0xa90] sm:$0xff] %v4347_v35  ;;  %v5663_v50 = vmax.f32 %v4347_v35, 0.0  ;;  %7184 = vmatmul.mubr.msk.bf16.gmra.mrb[56].mxu1 %vm3083_vm2, %v7449_v36 }
 0x385   : > { %5120 = vst [vmem:[%s8929_s26 + $0xa98] sm:$0xff] %v4349_v62  ;;  %v5664_v15 = vmax.f32 %v4349_v62, 0.0  ;;  %4620 = vmatprep.mubr.bf16.mxu1 %v11031_v20 }
 0x386   : > { %v10431_v29 = vpack.c.bf16 %v5663_v50, %v5661_v7  ;;  %6500 = vmatpush1.bf16.msra.mxu0 %v10082_v45 }
 0x387   : > { %v4352_v16 = vpop.f32.mrb[208].mxu1  ;;  %6501 = vmatprep.subr.bf16.mxu0 %v10107_v42  ;;  %v10435_v18 = vpack.c.bf16 %v5664_v15, %v5662_v57 }
 0x388   : > { %v4353_v9 = vadd.f32 %v4352_v16, %v2016_v31  ;;  %v4354_v48 = vpop.f32.mrb[209].mxu1  ;;  %v2041_v16 = vpop.permute.xlu1 %2040 }
 0x389   : > { %v4355_v13 = vadd.f32 %v4354_v48, %v2016_v31  ;;  %v4356_v32 = vpop.f32.mrb[210].mxu1  ;;  %v7452_v31 = vld [vmem:[%s10864_s3 + $0x390] sm:$0xff]  }
 0x38a   : > { %5121 = vst [vmem:[%s8929_s26 + $0xaa0] sm:$0xff] %v4353_v9  ;;  %v4357_v4 = vadd.f32 %v4356_v32, %v2021_v61  ;;  %v4358_v45 = vpop.f32.mrb[211].mxu1  ;;  %6502 = vmatpush1.bf16.msra.mxu0 %v10103_v10  ;;  %v5665_v14 = vmax.f32 %v4353_v9, 0.0  ;;  %v2026_v10 = vpop.permute.xlu0 %2025 }
 0x38b   : > { %5122 = vst [vmem:[%s8929_s26 + $0xaa8] sm:$0xff] %v4355_v13  ;;  %v4359_v42 = vadd.f32 %v4358_v45, %v2021_v61  ;;  %6503 = vmatprep.subr.bf16.mxu0 %v10128_v53  ;;  %v5666_v52 = vmax.f32 %v4355_v13, 0.0 }
 0x38c   : > { %5123 = vst [vmem:[%s8929_s26 + $0xab0] sm:$0xff] %v4357_v4  ;;  %v5667_v39 = vmax.f32 %v4357_v4, 0.0  ;;  %7185 = vmatmul.mubr.msk.bf16.gmra.mrb[60].mxu1 %vm3083_vm2, %v7450_v6 }
 0x38d   : > { %5124 = vst [vmem:[%s8929_s26 + $0xab8] sm:$0xff] %v4359_v42  ;;  %v5668_v26 = vmax.f32 %v4359_v42, 0.0  ;;  %4630 = vmatprep.mubr.bf16.mxu1 %v11031_v20 }
 0x38e   : > { %v10448_v2 = vpack.c.bf16 %v5667_v39, %v5665_v14  ;;  %6504 = vmatpush1.bf16.msra.mxu0 %v10124_v23 }
 0x38f   : > { %v4362_v33 = vpop.f32.mrb[212].mxu1  ;;  %6505 = vmatprep.subr.bf16.mxu0 %v10149_v60  ;;  %v10452_v53 = vpack.c.bf16 %v5668_v26, %v5666_v52  ;;  %v7453_v52 = vld [vmem:[%s10864_s3 + $0x398] sm:$0xff]   ;;  %v2051_v26 = vpop.permute.xlu1 %2050 }
 0x390   : > { %v4363_v56 = vadd.f32 %v4362_v33, %v2026_v10  ;;  %v4364_v21 = vpop.f32.mrb[213].mxu1 }
 0x391   : > { %v4365_v36 = vadd.f32 %v4364_v21, %v2026_v10  ;;  %v4366_v55 = vpop.f32.mrb[214].mxu1 }
 0x392   : > { %5125 = vst [vmem:[%s8929_s26 + $0xac0] sm:$0xff] %v4363_v56  ;;  %v4367_v5 = vadd.f32 %v4366_v55, %v2031_v43  ;;  %v4368_v23 = vpop.f32.mrb[215].mxu1  ;;  %6506 = vmatpush1.bf16.msra.mxu0 %v10145_v0  ;;  %v5669_v8 = vmax.f32 %v4363_v56, 0.0  ;;  %v2036_v0 = vpop.permute.xlu0 %2035 }
 0x393   : > { %5126 = vst [vmem:[%s8929_s26 + $0xac8] sm:$0xff] %v4365_v36  ;;  %v4369_v60 = vadd.f32 %v4368_v23, %v2031_v43  ;;  %6507 = vmatprep.subr.bf16.mxu0 %v10178_v25  ;;  %v5670_v34 = vmax.f32 %v4365_v36, 0.0 }
 0x394   : > { %5127 = vst [vmem:[%s8929_s26 + $0xad0] sm:$0xff] %v4367_v5  ;;  %v5671_v35 = vmax.f32 %v4367_v5, 0.0  ;;  %7186 = vmatmul.mubr.msk.bf16.gmra.mrb[64].mxu1 %vm3083_vm2, %v7451_v54 }
 0x395   : > { %5128 = vst [vmem:[%s8929_s26 + $0xad8] sm:$0xff] %v4369_v60  ;;  %v5672_v62 = vmax.f32 %v4369_v60, 0.0  ;;  %4640 = vmatprep.mubr.bf16.mxu1 %v11031_v20 }
 0x396   : > { %v10465_v7 = vpack.c.bf16 %v5671_v35, %v5669_v8  ;;  %6508 = vmatpush1.bf16.msra.mxu0 %v10174_v24  ;;  %v7454_v8 = vld [vmem:[%s10864_s3 + $0x3a0] sm:$0xff]   ;;  %v2061_v35 = vpop.permute.xlu1 %2060 }
 0x397   : > { %v4372_v50 = vpop.f32.mrb[216].mxu1  ;;  %6509 = vmatprep.subr.bf16.mxu0 %v10211_v40  ;;  %v10469_v25 = vpack.c.bf16 %v5672_v62, %v5670_v34 }
 0x398   : > { %v4373_v57 = vadd.f32 %v4372_v50, %v2036_v0  ;;  %v4374_v15 = vpop.f32.mrb[217].mxu1  ;;  %v5313_v50 = vld [vmem:[%s10866_s5 + $0xa0] sm:$0xff] }
 0x399   : > { %v4375_v9 = vadd.f32 %v4374_v15, %v2036_v0  ;;  %v4376_v48 = vpop.f32.mrb[218].mxu1 }
 0x39a   : > { %5129 = vst [vmem:[%s8929_s26 + $0xae0] sm:$0xff] %v4373_v57  ;;  %v4377_v6 = vadd.f32 %v4376_v48, %v2041_v16  ;;  %v4378_v24 = vpop.f32.mrb[219].mxu1  ;;  %6510 = vmatpush1.bf16.msra.mxu0 %v10205_v38  ;;  %v5673_v61 = vmax.f32 %v4373_v57, 0.0  ;;  %v2046_v38 = vpop.permute.xlu0 %2045  ;;  %v5321_v57 = vld [vmem:[%s10866_s5 + $0xe0] sm:$0xff] }
 0x39b   : > { %5130 = vst [vmem:[%s8929_s26 + $0xae8] sm:$0xff] %v4375_v9  ;;  %v4379_v40 = vadd.f32 %v4378_v24, %v2041_v16  ;;  %6511 = vmatprep.subr.bf16.mxu0 %v10232_v59  ;;  %v5674_v32 = vmax.f32 %v4375_v9, 0.0  ;;  %v7209_v9 = vcombine.low %v10382_v41, %v10387_v37  ;;  %v7226_v48 = vcombine.high %v5313_v50, %v5321_v57  ;;  %v7455_v41 = vld [vmem:[%s10864_s3 + $0x3a8] sm:$0xff]   ;;  %v2071_v37 = vpop.permute.xlu1 %2070 }
 0x39c   : > { %5131 = vst [vmem:[%s8929_s26 + $0xaf0] sm:$0xff] %v4377_v6  ;;  %v5675_v13 = vmax.f32 %v4377_v6, 0.0  ;;  %7187 = vmatmul.mubr.msk.bf16.gmra.mrb[68].mxu1 %vm3083_vm2, %v7452_v31 }
 0x39d   : > { %5132 = vst [vmem:[%s8929_s26 + $0xaf8] sm:$0xff] %v4379_v40  ;;  %v5676_v4 = vmax.f32 %v4379_v40, 0.0  ;;  %4650 = vmatprep.mubr.bf16.mxu1 %v11031_v20 }
 0x39e   : > { %v10482_v45 = vpack.c.bf16 %v5675_v13, %v5673_v61  ;;  %6512 = vmatpush1.bf16.msra.mxu0 %v10228_v46 }
 0x39f   : > { %v4382_v42 = vpop.f32.mrb[220].mxu1  ;;  %6513 = vmatprep.subr.bf16.mxu0 %v10253_v47  ;;  %v10486_v59 = vpack.c.bf16 %v5676_v4, %v5674_v32 }
 0x3a0   : > { %v4383_v14 = vadd.f32 %v4382_v42, %v2046_v38  ;;  %v4384_v39 = vpop.f32.mrb[221].mxu1  ;;  %v10540_v42 = vld [vmem:[%s10866_s5 + $0x28] sm:$0xff] }
 0x3a1   : > { %v4385_v10 = vadd.f32 %v4384_v39, %v2046_v38  ;;  %v4386_v33 = vpop.f32.mrb[222].mxu1 }
 0x3a2   : > { %5133 = vst [vmem:[%s8929_s26 + $0xb00] sm:$0xff] %v4383_v14  ;;  %v4387_v56 = vadd.f32 %v4386_v33, %v2051_v26  ;;  %v4388_v46 = vpop.f32.mrb[223].mxu1  ;;  %6514 = vmatpush1.bf16.msra.mxu0 %v10249_v27  ;;  %v5677_v21 = vmax.f32 %v4383_v14, 0.0  ;;  %v2056_v27 = vpop.permute.xlu0 %2055  ;;  %v10545_v14 = vld [vmem:[%s10866_s5 + $0x68] sm:$0xff] }
 0x3a3   : > { %5134 = vst [vmem:[%s8929_s26 + $0xb08] sm:$0xff] %v4385_v10  ;;  %v4389_v47 = vadd.f32 %v4388_v46, %v2051_v26  ;;  %6515 = vmatprep.subr.bf16.mxu0 %v10274_v3  ;;  %v5678_v43 = vmax.f32 %v4385_v10, 0.0  ;;  %v7212_v33 = vcombine.high %v10540_v42, %v10545_v14 }
 0x3a4   : > { %5135 = vst [vmem:[%s8929_s26 + $0xb10] sm:$0xff] %v4387_v56  ;;  %v5679_v54 = vmax.f32 %v4387_v56, 0.0  ;;  %7188 = vmatmul.mubr.msk.bf16.gmra.mrb[72].mxu1 %vm3083_vm2, %v7453_v52 }
 0x3a5   : > { %5136 = vst [vmem:[%s8929_s26 + $0xb18] sm:$0xff] %v4389_v47  ;;  %v5680_v36 = vmax.f32 %v4389_v47, 0.0  ;;  %4660 = vmatprep.mubr.bf16.mxu1 %v11031_v20 }
 0x3a6   : > { %v10499_v55 = vpack.c.bf16 %v5679_v54, %v5677_v21  ;;  %6516 = vmatpush1.bf16.msra.mxu0 %v10270_v11  ;;  %v2066_v6 = vpop.permute.xlu0 %2065 }
 0x3a7   : > { %v4392_v5 = vpop.f32.mrb[224].mxu1  ;;  %6517 = vmatprep.subr.bf16.mxu0 %v10295_v58  ;;  %v10503_v3 = vpack.c.bf16 %v5680_v36, %v5678_v43  ;;  %v7456_v43 = vld [vmem:[%s10864_s3 + $0x3b0] sm:$0xff]   ;;  %v2081_v36 = vpop.permute.xlu1 %2080 }
 0x3a8   : > { %v4393_v23 = vadd.f32 %v4392_v5, %v2056_v27  ;;  %v4394_v60 = vpop.f32.mrb[225].mxu1 }
 0x3a9   : > { %v4395_v34 = vadd.f32 %v4394_v60, %v2056_v27  ;;  %v4396_v62 = vpop.f32.mrb[226].mxu1 }
 0x3aa   : > { %5137 = vst [vmem:[%s8929_s26 + $0xb20] sm:$0xff] %v4393_v23  ;;  %v4397_v0 = vadd.f32 %v4396_v62, %v2061_v35  ;;  %v4398_v11 = vpop.f32.mrb[227].mxu1  ;;  %6518 = vmatpush1.bf16.msra.mxu0 %v10291_v30  ;;  %v5681_v15 = vmax.f32 %v4393_v23, 0.0  ;;  %v2076_v56 = vpop.permute.xlu0 %2075 }
 0x3ab   : > { %5138 = vst [vmem:[%s8929_s26 + $0xb28] sm:$0xff] %v4395_v34  ;;  %v4399_v58 = vadd.f32 %v4398_v11, %v2061_v35  ;;  %6519 = vmatprep.subr.bf16.mxu0 %v10316_v49  ;;  %v5682_v16 = vmax.f32 %v4395_v34, 0.0 }
 0x3ac   : > { %5139 = vst [vmem:[%s8929_s26 + $0xb30] sm:$0xff] %v4397_v0  ;;  %v5683_v31 = vmax.f32 %v4397_v0, 0.0  ;;  %7189 = vmatmul.mubr.msk.bf16.gmra.mrb[76].mxu1 %vm3083_vm2, %v7454_v8 }
 0x3ad   : > { %5140 = vst [vmem:[%s8929_s26 + $0xb38] sm:$0xff] %v4399_v58  ;;  %v5684_v30 = vmax.f32 %v4399_v58, 0.0  ;;  %4670 = vmatprep.mubr.bf16.mxu1 %v11031_v20 }
 0x3ae   : > { %v10524_v49 = vpack.c.bf16 %v5683_v31, %v5681_v15  ;;  %6520 = vmatpush1.bf16.msra.mxu0 %v10312_v22 }
 0x3af   : > { %v4402_v24 = vpop.f32.mrb[228].mxu1  ;;  %6542 = vmatprep.subr.bf16.mxu0 %v10337_v12  ;;  %v10528_v40 = vpack.c.bf16 %v5684_v30, %v5682_v16 }
 0x3b0   : > { %v4403_v61 = vadd.f32 %v4402_v24, %v2066_v6  ;;  %v4404_v13 = vpop.f32.mrb[229].mxu1 }
 0x3b1   : > { %v4405_v32 = vadd.f32 %v4404_v13, %v2066_v6  ;;  %v4406_v4 = vpop.f32.mrb[230].mxu1  ;;  %6522 = vmatmul.mubr.bf16.vlgmr.msra.gmra.mrb[148].mxu0 %v7209_v9 }
 0x3b2   : > { %5141 = vst [vmem:[%s8929_s26 + $0xb40] sm:$0xff] %v4403_v61  ;;  %v4407_v22 = vadd.f32 %v4406_v4, %v2071_v37  ;;  %v4408_v38 = vpop.f32.mrb[231].mxu1  ;;  %6543 = vmatpush1.bf16.msra.mxu0 %v10333_v19  ;;  %6531 = vmatprep.mubr.bf16.mxu0 %v7226_v48  ;;  %v5685_v39 = vmax.f32 %v4403_v61, 0.0 }
 0x3b3   : > { %5142 = vst [vmem:[%s8929_s26 + $0xb48] sm:$0xff] %v4405_v32  ;;  %v4409_v12 = vadd.f32 %v4408_v38, %v2071_v37  ;;  %6544 = vmatprep.subr.bf16.mxu0 %v10366_v51  ;;  %v5686_v19 = vmax.f32 %v4405_v32, 0.0  ;;  %v7225_v51 = vcombine.low %v5313_v50, %v5321_v57  ;;  %v7457_v50 = vld [vmem:[%s10864_s3 + $0x3b8] sm:$0xff]   ;;  %v2091_v57 = vpop.permute.xlu1 %2090  ;;  %v7458_v37 = vld [vmem:[%s10864_s3 + $0x3c0] sm:$0xff]  }
 0x3b4   : > { %5143 = vst [vmem:[%s8929_s26 + $0xb50] sm:$0xff] %v4407_v22  ;;  %v5687_v52 = vmax.f32 %v4407_v22, 0.0  ;;  %7190 = vmatmul.mubr.msk.bf16.gmra.mrb[80].mxu1 %vm3083_vm2, %v7455_v41 }
 0x3b5   : > { %5144 = vst [vmem:[%s8929_s26 + $0xb58] sm:$0xff] %v4409_v12  ;;  %v5688_v26 = vmax.f32 %v4409_v12, 0.0  ;;  %4680 = vmatprep.mubr.bf16.mxu1 %v11031_v20 }
 0x3b6   : > { %v10551_v10 = vpack.c.bf16 %v5687_v52, %v5685_v39  ;;  %6545 = vmatpush1.bf16.msra.mxu0 %v10362_v1 }
 0x3b7   : > { %v4412_v46 = vpop.f32.mrb[232].mxu1  ;;  %6546 = vmatprep.subr.bf16.mxu0 %v10399_v63  ;;  %v10557_v47 = vpack.c.bf16 %v5688_v26, %v5686_v19  ;;  %v2101_v32 = vpop.permute.xlu1 %2100 }
 0x3b8   : > { %v4413_v21 = vadd.f32 %v4412_v46, %v2076_v56  ;;  %v4414_v54 = vpop.f32.mrb[233].mxu1  ;;  %v7459_v46 = vld [vmem:[%s10864_s3 + $0x3c8] sm:$0xff]  }
 0x3b9   : > { %v4415_v27 = vadd.f32 %v4414_v54, %v2076_v56  ;;  %v4416_v1 = vpop.f32.mrb[234].mxu1  ;;  %6532 = vmatmul.mubr.bf16.gmra.mrb[152].mxu0 %v7225_v51 }
 0x3ba   : > { %5145 = vst [vmem:[%s8929_s26 + $0xb60] sm:$0xff] %v4413_v21  ;;  %v4417_v5 = vadd.f32 %v4416_v1, %v2081_v36  ;;  %v4418_v23 = vpop.f32.mrb[235].mxu1  ;;  %6547 = vmatpush1.bf16.msra.mxu0 %v10393_v28  ;;  %6574 = vmatprep.mubr.bf16.mxu0 %v7212_v33  ;;  %v5689_v60 = vmax.f32 %v4413_v21, 0.0  ;;  %v2086_v28 = vpop.permute.xlu0 %2085 }
 0x3bb   : > { %5146 = vst [vmem:[%s8929_s26 + $0xb68] sm:$0xff] %v4415_v27  ;;  %v4419_v63 = vadd.f32 %v4418_v23, %v2081_v36  ;;  %6548 = vmatprep.subr.bf16.mxu0 %v10418_v17  ;;  %v5690_v35 = vmax.f32 %v4415_v27, 0.0  ;;  %v2111_v21 = vpop.permute.xlu1 %2110 }
 0x3bc   : > { %5147 = vst [vmem:[%s8929_s26 + $0xb70] sm:$0xff] %v4417_v5  ;;  %v5691_v8 = vmax.f32 %v4417_v5, 0.0  ;;  %7191 = vmatmul.mubr.msk.bf16.gmra.mrb[84].mxu1 %vm3083_vm2, %v7456_v43 }
 0x3bd   : > { %5148 = vst [vmem:[%s8929_s26 + $0xb78] sm:$0xff] %v4419_v63  ;;  %v5692_v34 = vmax.f32 %v4419_v63, 0.0  ;;  %4690 = vmatprep.mubr.bf16.mxu1 %v11031_v20 }
 0x3be   : > { %v10570_v62 = vpack.c.bf16 %v5691_v8, %v5689_v60  ;;  %6549 = vmatpush1.bf16.msra.mxu0 %v10414_v44 }
 0x3bf   : > { %v4422_v0 = vpop.f32.mrb[236].mxu1  ;;  %6550 = vmatprep.subr.bf16.mxu0 %v10435_v18  ;;  %v10574_v17 = vpack.c.bf16 %v5692_v34, %v5690_v35  ;;  %v7460_v34 = vld [vmem:[%s10864_s3 + $0x3d0] sm:$0xff]  }
 0x3c0   : > { %v4423_v11 = vadd.f32 %v4422_v0, %v2086_v28  ;;  %v4424_v58 = vpop.f32.mrb[237].mxu1 }
 0x3c1   : > { %v4425_v15 = vadd.f32 %v4424_v58, %v2086_v28  ;;  %v4426_v31 = vpop.f32.mrb[238].mxu1  ;;  %v2121_v28 = vpop.permute.xlu1 %2120 }
 0x3c2   : > { %5149 = vst [vmem:[%s8929_s26 + $0xb80] sm:$0xff] %v4423_v11  ;;  %v4427_v16 = vadd.f32 %v4426_v31, %v2091_v57  ;;  %v4428_v44 = vpop.f32.mrb[239].mxu1  ;;  %6551 = vmatpush1.bf16.msra.mxu0 %v10431_v29  ;;  %v5693_v30 = vmax.f32 %v4423_v11, 0.0  ;;  %v2096_v29 = vpop.permute.xlu0 %2095 }
 0x3c3   : > { %5150 = vst [vmem:[%s8929_s26 + $0xb88] sm:$0xff] %v4425_v15  ;;  %v4429_v18 = vadd.f32 %v4428_v44, %v2091_v57  ;;  %6552 = vmatprep.subr.bf16.mxu0 %v10452_v53  ;;  %v5694_v48 = vmax.f32 %v4425_v15, 0.0 }
 0x3c4   : > { %5151 = vst [vmem:[%s8929_s26 + $0xb90] sm:$0xff] %v4427_v16  ;;  %v5695_v9 = vmax.f32 %v4427_v16, 0.0  ;;  %7192 = vmatmul.mubr.msk.bf16.gmra.mrb[88].mxu1 %vm3083_vm2, %v7457_v50 }
 0x3c5   : > { %5152 = vst [vmem:[%s8929_s26 + $0xb98] sm:$0xff] %v4429_v18  ;;  %v5696_v6 = vmax.f32 %v4429_v18, 0.0  ;;  %4700 = vmatprep.mubr.bf16.mxu1 %v11031_v20 }
 0x3c6   : > { %v10587_v24 = vpack.c.bf16 %v5695_v9, %v5693_v30  ;;  %6553 = vmatpush1.bf16.msra.mxu0 %v10448_v2  ;;  %v7461_v9 = vld [vmem:[%s10864_s3 + $0x3d8] sm:$0xff]  }
 0x3c7   : > { %v4432_v61 = vpop.f32.mrb[240].mxu1  ;;  %6554 = vmatprep.subr.bf16.mxu0 %v10469_v25  ;;  %v10591_v53 = vpack.c.bf16 %v5696_v6, %v5694_v48  ;;  %v2131_v48 = vpop.permute.xlu1 %2130 }
 0x3c8   : > { %v4433_v13 = vadd.f32 %v4432_v61, %v2096_v29  ;;  %v4434_v41 = vpop.f32.mrb[241].mxu1 }
 0x3c9   : > { %v4435_v4 = vadd.f32 %v4434_v41, %v2096_v29  ;;  %v4436_v22 = vpop.f32.mrb[242].mxu1 }
 0x3ca   : > { %5153 = vst [vmem:[%s8929_s26 + $0xba0] sm:$0xff] %v4433_v13  ;;  %v4437_v38 = vadd.f32 %v4436_v22, %v2101_v32  ;;  %v4438_v2 = vpop.f32.mrb[243].mxu1  ;;  %6555 = vmatpush1.bf16.msra.mxu0 %v10465_v7  ;;  %v5697_v12 = vmax.f32 %v4433_v13, 0.0  ;;  %v2106_v7 = vpop.permute.xlu0 %2105 }
 0x3cb   : > { %5154 = vst [vmem:[%s8929_s26 + $0xba8] sm:$0xff] %v4435_v4  ;;  %v4439_v25 = vadd.f32 %v4438_v2, %v2101_v32  ;;  %6556 = vmatprep.subr.bf16.mxu0 %v10486_v59  ;;  %v5698_v52 = vmax.f32 %v4435_v4, 0.0 }
 0x3cc   : > { %5155 = vst [vmem:[%s8929_s26 + $0xbb0] sm:$0xff] %v4437_v38  ;;  %v5699_v39 = vmax.f32 %v4437_v38, 0.0  ;;  %7193 = vmatmul.mubr.msk.bf16.gmra.mrb[92].mxu1 %vm3083_vm2, %v7458_v37 }
 0x3cd   : > { %5156 = vst [vmem:[%s8929_s26 + $0xbb8] sm:$0xff] %v4439_v25  ;;  %v5700_v19 = vmax.f32 %v4439_v25, 0.0  ;;  %4710 = vmatprep.mubr.bf16.mxu1 %v11031_v20 }
 0x3ce   : > { %v10604_v26 = vpack.c.bf16 %v5699_v39, %v5697_v12  ;;  %6557 = vmatpush1.bf16.msra.mxu0 %v10482_v45  ;;  %v7462_v12 = vld [vmem:[%s10864_s3 + $0x3e0] sm:$0xff]   ;;  %v10656_v39 = vld [vmem:[%s10866_s5 + $0x30] sm:$0xff] }
 0x3cf   : > { %v4442_v51 = vpop.f32.mrb[244].mxu1  ;;  %6558 = vmatprep.subr.bf16.mxu0 %v10503_v3  ;;  %v10608_v59 = vpack.c.bf16 %v5700_v19, %v5698_v52  ;;  %v10661_v52 = vld [vmem:[%s10866_s5 + $0x70] sm:$0xff]  ;;  %v2141_v19 = vpop.permute.xlu1 %2140 }
 0x3d0   : > { %v4443_v33 = vadd.f32 %v4442_v51, %v2106_v7  ;;  %v4444_v56 = vpop.f32.mrb[245].mxu1 }
 0x3d1   : > { %v4445_v54 = vadd.f32 %v4444_v56, %v2106_v7  ;;  %v4446_v43 = vpop.f32.mrb[246].mxu1 }
 0x3d2   : > { %5157 = vst [vmem:[%s8929_s26 + $0xbc0] sm:$0xff] %v4443_v33  ;;  %v4447_v36 = vadd.f32 %v4446_v43, %v2111_v21  ;;  %v4448_v45 = vpop.f32.mrb[247].mxu1  ;;  %6559 = vmatpush1.bf16.msra.mxu0 %v10499_v55  ;;  %v5701_v27 = vmax.f32 %v4443_v33, 0.0  ;;  %v2116_v55 = vpop.permute.xlu0 %2115  ;;  %v7213_v33 = vcombine.low %v10656_v39, %v10661_v52 }
 0x3d3   : > { %5158 = vst [vmem:[%s8929_s26 + $0xbc8] sm:$0xff] %v4445_v54  ;;  %v4449_v3 = vadd.f32 %v4448_v45, %v2111_v21  ;;  %6560 = vmatprep.subr.bf16.mxu0 %v10528_v40  ;;  %v5702_v5 = vmax.f32 %v4445_v54, 0.0  ;;  %v5322_v21 = vld [vmem:[%s10866_s5 + $0xe8] sm:$0xff] }
 0x3d4   : > { %5159 = vst [vmem:[%s8929_s26 + $0xbd0] sm:$0xff] %v4447_v36  ;;  %v5703_v1 = vmax.f32 %v4447_v36, 0.0  ;;  %7194 = vmatmul.mubr.msk.bf16.gmra.mrb[96].mxu1 %vm3083_vm2, %v7459_v46  ;;  %v5314_v46 = vld [vmem:[%s10866_s5 + $0xa8] sm:$0xff] }
 0x3d5   : > { %5160 = vst [vmem:[%s8929_s26 + $0xbd8] sm:$0xff] %v4449_v3  ;;  %v5704_v23 = vmax.f32 %v4449_v3, 0.0  ;;  %4720 = vmatprep.mubr.bf16.mxu1 %v11031_v20  ;;  %v7211_v3 = vcombine.low %v10540_v42, %v10545_v14 }
 0x3d6   : > { %v10621_v63 = vpack.c.bf16 %v5703_v1, %v5701_v27  ;;  %6561 = vmatpush1.bf16.msra.mxu0 %v10524_v49  ;;  %v7228_v1 = vcombine.high %v5314_v46, %v5322_v21 }
 0x3d7   : > { %v4452_v60 = vpop.f32.mrb[248].mxu1  ;;  %6562 = vmatprep.subr.bf16.mxu0 %v10557_v47  ;;  %v6026_v40 = vpack.c.bf16 %v5704_v23, %v5702_v5 }
 0x3d8   : > { %v4453_v8 = vadd.f32 %v4452_v60, %v2116_v55  ;;  %v4454_v35 = vpop.f32.mrb[249].mxu1 }
 0x3d9   : > { %v4455_v0 = vadd.f32 %v4454_v35, %v2116_v55  ;;  %v4456_v11 = vpop.f32.mrb[250].mxu1 }
 0x3da   : > { %5161 = vst [vmem:[%s8929_s26 + $0xbe0] sm:$0xff] %v4453_v8  ;;  %v4457_v58 = vadd.f32 %v4456_v11, %v2121_v28  ;;  %v4458_v50 = vpop.f32.mrb[251].mxu1  ;;  %6563 = vmatpush1.bf16.msra.mxu0 %v10551_v10  ;;  %v5705_v47 = vmax.f32 %v4453_v8, 0.0  ;;  %v2126_v10 = vpop.permute.xlu0 %2125 }
 0x3db   : > { %5162 = vst [vmem:[%s8929_s26 + $0xbe8] sm:$0xff] %v4455_v0  ;;  %v4459_v49 = vadd.f32 %v4458_v50, %v2121_v28  ;;  %6564 = vmatprep.subr.bf16.mxu0 %v10574_v17  ;;  %v5706_v15 = vmax.f32 %v4455_v0, 0.0  ;;  %v2151_v8 = vpop.permute.xlu1 %2150 }
 0x3dc   : > { %5163 = vst [vmem:[%s8929_s26 + $0xbf0] sm:$0xff] %v4457_v58  ;;  %v5707_v57 = vmax.f32 %v4457_v58, 0.0  ;;  %7195 = vmatmul.mubr.msk.bf16.gmra.mrb[100].mxu1 %vm3083_vm2, %v7460_v34 }
 0x3dd   : > { %5164 = vst [vmem:[%s8929_s26 + $0xbf8] sm:$0xff] %v4459_v49  ;;  %v5708_v31 = vmax.f32 %v4459_v49, 0.0  ;;  %4730 = vmatprep.mubr.bf16.mxu1 %v11031_v20  ;;  %v7227_v49 = vcombine.low %v5314_v46, %v5322_v21 }
 0x3de   : > { %v6027_v16 = vpack.c.bf16 %v5707_v57, %v5705_v47  ;;  %6565 = vmatpush1.bf16.msra.mxu0 %v10570_v62  ;;  %v2136_v22 = vpop.permute.xlu0 %2135  ;;  %v7214_v57 = vcombine.high %v10656_v39, %v10661_v52 }
 0x3df   : > { %v4462_v44 = vpop.f32.mrb[252].mxu1  ;;  %6566 = vmatprep.subr.bf16.mxu0 %v10591_v53  ;;  %v6028_v17 = vpack.c.bf16 %v5708_v31, %v5706_v15 }
 0x3e0   : > { %v4463_v18 = vadd.f32 %v4462_v44, %v2126_v10  ;;  %v4464_v30 = vpop.f32.mrb[253].mxu1 }
 0x3e1   : > { %v4465_v6 = vadd.f32 %v4464_v30, %v2126_v10  ;;  %v4466_v29 = vpop.f32.mrb[254].mxu1 }
 0x3e2   : > { %5165 = vst [vmem:[%s8929_s26 + $0xc00] sm:$0xff] %v4463_v18  ;;  %v4467_v61 = vadd.f32 %v4466_v29, %v2131_v48  ;;  %v4468_v13 = vpop.f32.mrb[255].mxu1  ;;  %6567 = vmatpush1.bf16.msra.mxu0 %v10587_v24  ;;  %v5709_v53 = vmax.f32 %v4463_v18, 0.0  ;;  %v2146_v5 = vpop.permute.xlu0 %2145 }
 0x3e3   : > { %5166 = vst [vmem:[%s8929_s26 + $0xc08] sm:$0xff] %v4465_v6  ;;  %v4469_v62 = vadd.f32 %v4468_v13, %v2131_v48  ;;  %6568 = vmatprep.subr.bf16.mxu0 %v10608_v59  ;;  %v5710_v37 = vmax.f32 %v4465_v6, 0.0  ;;  %v2161_v18 = vpop.permute.xlu1 %2160 }
 0x3e4   : > { %5167 = vst [vmem:[%s8929_s26 + $0xc10] sm:$0xff] %v4467_v61  ;;  %v5711_v41 = vmax.f32 %v4467_v61, 0.0  ;;  %7196 = vmatmul.mubr.msk.bf16.gmra.mrb[104].mxu1 %vm3083_vm2, %v7461_v9 }
 0x3e5   : > { %5168 = vst [vmem:[%s8929_s26 + $0xc18] sm:$0xff] %v4469_v62  ;;  %v5712_v32 = vmax.f32 %v4469_v62, 0.0  ;;  %4740 = vmatprep.mubr.bf16.mxu1 %v11031_v20 }
 0x3e6   : > { %v6029_v4 = vpack.c.bf16 %v5711_v41, %v5709_v53  ;;  %6569 = vmatpush1.bf16.msra.mxu0 %v10604_v26  ;;  %v2156_v15 = vpop.permute.xlu0 %2155 }
 0x3e7   : > { %v4472_v24 = vpop.f32.mrb[0].mxu1  ;;  %6570 = vmatprep.subr.bf16.mxu0 %v6026_v40  ;;  %v6030_v38 = vpack.c.bf16 %v5712_v32, %v5710_v37  ;;  %v7463_v40 = vld [vmem:[%s10864_s3 + $0x3e8] sm:$0xff]  }
 0x3e8   : > { %v4473_v2 = vadd.f32 %v4472_v24, %v2136_v22  ;;  %v4474_v25 = vpop.f32.mrb[1].mxu1 }
 0x3e9   : > { %v4475_v26 = vadd.f32 %v4474_v25, %v2136_v22  ;;  %v4476_v7 = vpop.f32.mrb[2].mxu1 }
 0x3ea   : > { %5169 = vst [vmem:[%s8929_s26 + $0xc20] sm:$0xff] %v4473_v2  ;;  %v4477_v51 = vadd.f32 %v4476_v7, %v2141_v19  ;;  %v4478_v59 = vpop.f32.mrb[3].mxu1  ;;  %6571 = vmatpush1.bf16.msra.mxu0 %v10621_v63  ;;  %v5713_v54 = vmax.f32 %v4473_v2, 0.0  ;;  %v2166_v37 = vpop.permute.xlu0 %2165 }
 0x3eb   : > { %5170 = vst [vmem:[%s8929_s26 + $0xc28] sm:$0xff] %v4475_v26  ;;  %v4479_v56 = vadd.f32 %v4478_v59, %v2141_v19  ;;  %6572 = vmatprep.subr.bf16.mxu0 %v6028_v17  ;;  %v5714_v36 = vmax.f32 %v4475_v26, 0.0  ;;  %v7464_v17 = vld [vmem:[%s10864_s3 + $0x3f0] sm:$0xff]   ;;  %v2171_v2 = vpop.permute.xlu1 %2170 }
 0x3ec   : > { %5171 = vst [vmem:[%s8929_s26 + $0xc30] sm:$0xff] %v4477_v51  ;;  %v5715_v43 = vmax.f32 %v4477_v51, 0.0  ;;  %7197 = vmatmul.mubr.msk.bf16.gmra.mrb[108].mxu1 %vm3083_vm2, %v7462_v12 }
 0x3ed   : > { %5172 = vst [vmem:[%s8929_s26 + $0xc38] sm:$0xff] %v4479_v56  ;;  %v5716_v45 = vmax.f32 %v4479_v56, 0.0  ;;  %4750 = vmatprep.mubr.bf16.mxu1 %v11031_v20 }
 0x3ee   : > { %v6031_v27 = vpack.c.bf16 %v5715_v43, %v5713_v54  ;;  %6573 = vmatpush1.bf16.msra.mxu0 %v6027_v16  ;;  %v2176_v21 = vpop.permute.xlu0 %2175 }
 0x3ef   : > { %v4482_v23 = vpop.f32.mrb[4].mxu1  ;;  %6595 = vmatprep.subr.bf16.mxu0 %v6030_v38  ;;  %v6032_v63 = vpack.c.bf16 %v5716_v45, %v5714_v36  ;;  %v7465_v38 = vld [vmem:[%s10864_s3 + $0x3f8] sm:$0xff]  }
 0x3f0   : > { %v4483_v55 = vadd.f32 %v4482_v23, %v2146_v5  ;;  %v4484_v60 = vpop.f32.mrb[5].mxu1 }
 0x3f1   : > { %v4485_v42 = vadd.f32 %v4484_v60, %v2146_v5  ;;  %v4486_v14 = vpop.f32.mrb[6].mxu1  ;;  %6575 = vmatmul.mubr.bf16.vlgmr.msra.gmra.mrb[148].mxu0 %v7211_v3  ;;  %v2181_v3 = vpop.permute.xlu1 %2180 }
 0x3f2   : > { %5173 = vst [vmem:[%s8929_s26 + $0xc40] sm:$0xff] %v4483_v55  ;;  %v4487_v35 = vadd.f32 %v4486_v14, %v2151_v8  ;;  %v4488_v34 = vpop.f32.mrb[7].mxu1  ;;  %6596 = vmatpush1.bf16.msra.mxu0 %v6029_v4  ;;  %6584 = vmatprep.mubr.bf16.mxu0 %v7228_v1  ;;  %v5717_v0 = vmax.f32 %v4483_v55, 0.0  ;;  %v2186_v14 = vpop.permute.xlu0 %2185 }
 0x3f3   : > { %5174 = vst [vmem:[%s8929_s26 + $0xc48] sm:$0xff] %v4485_v42  ;;  %v4489_v28 = vadd.f32 %v4488_v34, %v2151_v8  ;;  %6597 = vmatprep.subr.bf16.mxu0 %v6032_v63  ;;  %v5718_v58 = vmax.f32 %v4485_v42, 0.0 }
 0x3f4   : > { %5175 = vst [vmem:[%s8929_s26 + $0xc50] sm:$0xff] %v4487_v35  ;;  %v5719_v11 = vmax.f32 %v4487_v35, 0.0  ;;  %7198 = vmatmul.mubr.msk.bf16.gmra.mrb[112].mxu1 %vm3083_vm2, %v7463_v40 }
 0x3f5   : > { %5176 = vst [vmem:[%s8929_s26 + $0xc58] sm:$0xff] %v4489_v28  ;;  %v5720_v50 = vmax.f32 %v4489_v28, 0.0  ;;  %4760 = vmatprep.mubr.bf16.mxu1 %v11031_v20 }
 0x3f6   : > { %v6033_v47 = vpack.c.bf16 %v5719_v11, %v5717_v0  ;;  %6598 = vmatpush1.bf16.msra.mxu0 %v6031_v27  ;;  %v2191_v11 = vpop.permute.xlu1 %2190 }
 0x3f7   : > { %v4492_v31 = vpop.f32.mrb[8].mxu1  ;;  %v6034_v16 = vpack.c.bf16 %v5720_v50, %v5718_v58 }
 0x3f8   : > { %v4493_v10 = vadd.f32 %v4492_v31, %v2156_v15  ;;  %v4494_v44 = vpop.f32.mrb[9].mxu1 }
 0x3f9   : > { %v4495_v30 = vadd.f32 %v4494_v44, %v2156_v15  ;;  %v4496_v9 = vpop.f32.mrb[10].mxu1  ;;  %6599 = vmatprep.subr.bf16.mxu0 %v6034_v16  ;;  %6585 = vmatmul.mubr.bf16.gmra.mrb[152].mxu0 %v7227_v49 }
 0x3fa   : > { %5177 = vst [vmem:[%s8929_s26 + $0xc60] sm:$0xff] %v4493_v10  ;;  %v4497_v48 = vadd.f32 %v4496_v9, %v2161_v18  ;;  %v4498_v6 = vpop.f32.mrb[11].mxu1  ;;  %6600 = vmatpush1.bf16.msra.mxu0 %v6033_v47  ;;  %6627 = vmatprep.mubr.bf16.mxu0 %v7214_v57  ;;  %v5721_v61 = vmax.f32 %v4493_v10, 0.0 }
 0x3fb   : > { %5178 = vst [vmem:[%s8929_s26 + $0xc68] sm:$0xff] %v4495_v30  ;;  %v4499_v29 = vadd.f32 %v4498_v6, %v2161_v18  ;;  %v5722_v62 = vmax.f32 %v4495_v30, 0.0  ;;  %v2201_v6 = vpop.permute.xlu1 %2200 }
 0x3fc   : > { %5179 = vst [vmem:[%s8929_s26 + $0xc70] sm:$0xff] %v4497_v48  ;;  %v5723_v13 = vmax.f32 %v4497_v48, 0.0  ;;  %7199 = vmatmul.mubr.msk.bf16.gmra.mrb[116].mxu1 %vm3083_vm2, %v7464_v17  ;;  %v2196_v17 = vpop.permute.xlu0 %2195 }
 0x3fd   : > { %5180 = vst [vmem:[%s8929_s26 + $0xc78] sm:$0xff] %v4499_v29  ;;  %v5724_v53 = vmax.f32 %v4499_v29, 0.0  ;;  %4770 = vmatprep.mubr.bf16.mxu1 %v11031_v20 }
 0x3fe   : > { %v6035_v41 = vpack.c.bf16 %v5723_v13, %v5721_v61 }
 0x3ff   : > { %v4502_v32 = vpop.f32.mrb[12].mxu1  ;;  %v6036_v4 = vpack.c.bf16 %v5724_v53, %v5722_v62 }
 0x400   : > { %v4503_v22 = vadd.f32 %v4502_v32, %v2166_v37  ;;  %v4504_v24 = vpop.f32.mrb[13].mxu1 }
 0x401   : > { %v4505_v25 = vadd.f32 %v4504_v24, %v2166_v37  ;;  %v4506_v12 = vpop.f32.mrb[14].mxu1  ;;  %6601 = vmatprep.subr.bf16.mxu0 %v6036_v4  ;;  %v2206_v24 = vpop.permute.xlu0 %2205 }
 0x402   : > { %5181 = vst [vmem:[%s8929_s26 + $0xc80] sm:$0xff] %v4503_v22  ;;  %v4507_v19 = vadd.f32 %v4506_v12, %v2171_v2  ;;  %v4508_v20 = vpop.f32.mrb[15].mxu1  ;;  %6602 = vmatpush1.bf16.msra.mxu0 %v6035_v41  ;;  %v5725_v7 = vmax.f32 %v4503_v22, 0.0 }
 0x403   : > { %5182 = vst [vmem:[%s8929_s26 + $0xc88] sm:$0xff] %v4505_v25  ;;  %v4509_v26 = vadd.f32 %v4508_v20, %v2171_v2  ;;  %v5726_v59 = vmax.f32 %v4505_v25, 0.0 }
 0x404   : > { %5183 = vst [vmem:[%s8929_s26 + $0xc90] sm:$0xff] %v4507_v19  ;;  %v5727_v51 = vmax.f32 %v4507_v19, 0.0  ;;  %7200 = vmatmul.mubr.msk.bf16.gmra.mrb[120].mxu1 %vm3083_vm2, %v7465_v38  ;;  %v2211_v19 = vpop.permute.xlu1 %2210 }
 0x405   : > { %5184 = vst [vmem:[%s8929_s26 + $0xc98] sm:$0xff] %v4509_v26  ;;  %v5728_v56 = vmax.f32 %v4509_v26, 0.0 }
 0x406   : > { %v6037_v46 = vpack.c.bf16 %v5727_v51, %v5725_v7 }
 0x407   : > { %v4512_v54 = vpop.f32.mrb[16].mxu1  ;;  %v6038_v43 = vpack.c.bf16 %v5728_v56, %v5726_v59 }
 0x408   : > { %v4513_v36 = vadd.f32 %v4512_v54, %v2176_v21  ;;  %v4514_v45 = vpop.f32.mrb[17].mxu1 }
 0x409   : > { %v4515_v27 = vadd.f32 %v4514_v45, %v2176_v21  ;;  %v4516_v1 = vpop.f32.mrb[18].mxu1  ;;  %6603 = vmatprep.subr.bf16.mxu0 %v6038_v43 }
 0x40a   : > { %5185 = vst [vmem:[%s8929_s26 + $0xca0] sm:$0xff] %v4513_v36  ;;  %v4517_v5 = vadd.f32 %v4516_v1, %v2181_v3  ;;  %v4518_v23 = vpop.f32.mrb[19].mxu1  ;;  %6604 = vmatpush1.bf16.msra.mxu0 %v6037_v46  ;;  %v5729_v55 = vmax.f32 %v4513_v36, 0.0  ;;  %v2216_v36 = vpop.permute.xlu0 %2215 }
 0x40b   : > { %5186 = vst [vmem:[%s8929_s26 + $0xca8] sm:$0xff] %v4515_v27  ;;  %v4519_v63 = vadd.f32 %v4518_v23, %v2181_v3  ;;  %v5730_v40 = vmax.f32 %v4515_v27, 0.0 }
 0x40c   : > { %5187 = vst [vmem:[%s8929_s26 + $0xcb0] sm:$0xff] %v4517_v5  ;;  %v5731_v60 = vmax.f32 %v4517_v5, 0.0  ;;  %v2221_v5 = vpop.permute.xlu1 %2220 }
 0x40d   : > { %5188 = vst [vmem:[%s8929_s26 + $0xcb8] sm:$0xff] %v4519_v63  ;;  %v5732_v8 = vmax.f32 %v4519_v63, 0.0 }
 0x40e   : > { %v6039_v42 = vpack.c.bf16 %v5731_v60, %v5729_v55 }
 0x40f   : > { %v4522_v35 = vpop.f32.mrb[20].mxu1  ;;  %v6040_v34 = vpack.c.bf16 %v5732_v8, %v5730_v40 }
 0x410   : > { %v4523_v28 = vadd.f32 %v4522_v35, %v2186_v14  ;;  %v4524_v0 = vpop.f32.mrb[21].mxu1 }
 0x411   : > { %v4525_v58 = vadd.f32 %v4524_v0, %v2186_v14  ;;  %v4526_v50 = vpop.f32.mrb[22].mxu1  ;;  %6605 = vmatprep.subr.bf16.mxu0 %v6040_v34 }
 0x412   : > { %5189 = vst [vmem:[%s8929_s26 + $0xcc0] sm:$0xff] %v4523_v28  ;;  %v4527_v49 = vadd.f32 %v4526_v50, %v2191_v11  ;;  %v4528_v47 = vpop.f32.mrb[23].mxu1  ;;  %6606 = vmatpush1.bf16.msra.mxu0 %v6039_v42  ;;  %v5733_v15 = vmax.f32 %v4523_v28, 0.0  ;;  %v2226_v28 = vpop.permute.xlu0 %2225 }
 0x413   : > { %5190 = vst [vmem:[%s8929_s26 + $0xcc8] sm:$0xff] %v4525_v58  ;;  %v4529_v57 = vadd.f32 %v4528_v47, %v2191_v11  ;;  %v5734_v16 = vmax.f32 %v4525_v58, 0.0 }
 0x414   : > { %5191 = vst [vmem:[%s8929_s26 + $0xcd0] sm:$0xff] %v4527_v49  ;;  %v5735_v31 = vmax.f32 %v4527_v49, 0.0  ;;  %v2231_v49 = vpop.permute.xlu1 %2230 }
 0x415   : > { %5192 = vst [vmem:[%s8929_s26 + $0xcd8] sm:$0xff] %v4529_v57  ;;  %v5736_v10 = vmax.f32 %v4529_v57, 0.0 }
 0x416   : > { %v6041_v44 = vpack.c.bf16 %v5735_v31, %v5733_v15 }
 0x417   : > { %v4532_v18 = vpop.f32.mrb[24].mxu1  ;;  %v6042_v30 = vpack.c.bf16 %v5736_v10, %v5734_v16 }
 0x418   : > { %v4533_v9 = vadd.f32 %v4532_v18, %v2196_v17  ;;  %v4534_v48 = vpop.f32.mrb[25].mxu1 }
 0x419   : > { %v4535_v29 = vadd.f32 %v4534_v48, %v2196_v17  ;;  %v4536_v61 = vpop.f32.mrb[26].mxu1  ;;  %6607 = vmatprep.subr.bf16.mxu0 %v6042_v30 }
 0x41a   : > { %5193 = vst [vmem:[%s8929_s26 + $0xce0] sm:$0xff] %v4533_v9  ;;  %v4537_v13 = vadd.f32 %v4536_v61, %v2201_v6  ;;  %v4538_v62 = vpop.f32.mrb[27].mxu1  ;;  %6608 = vmatpush1.bf16.msra.mxu0 %v6041_v44  ;;  %v5737_v41 = vmax.f32 %v4533_v9, 0.0  ;;  %v2236_v9 = vpop.permute.xlu0 %2235 }
 0x41b   : > { %5194 = vst [vmem:[%s8929_s26 + $0xce8] sm:$0xff] %v4535_v29  ;;  %v4539_v53 = vadd.f32 %v4538_v62, %v2201_v6  ;;  %v5738_v32 = vmax.f32 %v4535_v29, 0.0 }
 0x41c   : > { %5195 = vst [vmem:[%s8929_s26 + $0xcf0] sm:$0xff] %v4537_v13  ;;  %v5739_v37 = vmax.f32 %v4537_v13, 0.0  ;;  %v2241_v13 = vpop.permute.xlu1 %2240 }
 0x41d   : > { %5196 = vst [vmem:[%s8929_s26 + $0xcf8] sm:$0xff] %v4539_v53  ;;  %v5740_v4 = vmax.f32 %v4539_v53, 0.0 }
 0x41e   : > { %v6043_v22 = vpack.c.bf16 %v5739_v37, %v5737_v41 }
 0x41f   : > { %v4542_v38 = vpop.f32.mrb[28].mxu1  ;;  %v6044_v2 = vpack.c.bf16 %v5740_v4, %v5738_v32 }
 0x420   : > { %v4543_v25 = vadd.f32 %v4542_v38, %v2206_v24  ;;  %v4544_v12 = vpop.f32.mrb[29].mxu1 }
 0x421   : > { %v4545_v20 = vadd.f32 %v4544_v12, %v2206_v24  ;;  %v4546_v26 = vpop.f32.mrb[30].mxu1  ;;  %6609 = vmatprep.subr.bf16.mxu0 %v6044_v2 }
 0x422   : > { %5197 = vst [vmem:[%s8929_s26 + $0xd00] sm:$0xff] %v4543_v25  ;;  %v4547_v7 = vadd.f32 %v4546_v26, %v2211_v19  ;;  %v4548_v51 = vpop.f32.mrb[31].mxu1  ;;  %6610 = vmatpush1.bf16.msra.mxu0 %v6043_v22  ;;  %v5741_v56 = vmax.f32 %v4543_v25, 0.0  ;;  %v2246_v25 = vpop.permute.xlu0 %2245 }
 0x423   : > { %5198 = vst [vmem:[%s8929_s26 + $0xd08] sm:$0xff] %v4545_v20  ;;  %v4549_v59 = vadd.f32 %v4548_v51, %v2211_v19  ;;  %v5742_v21 = vmax.f32 %v4545_v20, 0.0 }
 0x424   : > { %5199 = vst [vmem:[%s8929_s26 + $0xd10] sm:$0xff] %v4547_v7  ;;  %v5743_v46 = vmax.f32 %v4547_v7, 0.0  ;;  %v2251_v7 = vpop.permute.xlu1 %2250 }
 0x425   : > { %5200 = vst [vmem:[%s8929_s26 + $0xd18] sm:$0xff] %v4549_v59  ;;  %v5744_v54 = vmax.f32 %v4549_v59, 0.0 }
 0x426   : > { %v6045_v43 = vpack.c.bf16 %v5743_v46, %v5741_v56 }
 0x427   : > { %v4552_v45 = vpop.f32.mrb[32].mxu1  ;;  %v6046_v3 = vpack.c.bf16 %v5744_v54, %v5742_v21 }
 0x428   : > { %v4553_v27 = vadd.f32 %v4552_v45, %v2216_v36  ;;  %v4554_v1 = vpop.f32.mrb[33].mxu1 }
 0x429   : > { %v4555_v23 = vadd.f32 %v4554_v1, %v2216_v36  ;;  %v4556_v63 = vpop.f32.mrb[34].mxu1  ;;  %6611 = vmatprep.subr.bf16.mxu0 %v6046_v3 }
 0x42a   : > { %5201 = vst [vmem:[%s8929_s26 + $0xd20] sm:$0xff] %v4553_v27  ;;  %v4557_v55 = vadd.f32 %v4556_v63, %v2221_v5  ;;  %v4558_v60 = vpop.f32.mrb[35].mxu1  ;;  %6612 = vmatpush1.bf16.msra.mxu0 %v6045_v43  ;;  %v5745_v8 = vmax.f32 %v4553_v27, 0.0  ;;  %v2256_v27 = vpop.permute.xlu0 %2255 }
 0x42b   : > { %5202 = vst [vmem:[%s8929_s26 + $0xd28] sm:$0xff] %v4555_v23  ;;  %v4559_v40 = vadd.f32 %v4558_v60, %v2221_v5  ;;  %v5746_v14 = vmax.f32 %v4555_v23, 0.0 }
 0x42c   : > { %5203 = vst [vmem:[%s8929_s26 + $0xd30] sm:$0xff] %v4557_v55  ;;  %v5747_v42 = vmax.f32 %v4557_v55, 0.0  ;;  %v2261_v55 = vpop.permute.xlu1 %2260 }
 0x42d   : > { %5204 = vst [vmem:[%s8929_s26 + $0xd38] sm:$0xff] %v4559_v40  ;;  %v5748_v35 = vmax.f32 %v4559_v40, 0.0 }
 0x42e   : > { %v6047_v34 = vpack.c.bf16 %v5747_v42, %v5745_v8 }
 0x42f   : > { %v4562_v0 = vpop.f32.mrb[36].mxu1  ;;  %v6048_v11 = vpack.c.bf16 %v5748_v35, %v5746_v14 }
 0x430   : > { %v4563_v58 = vadd.f32 %v4562_v0, %v2226_v28  ;;  %v4564_v50 = vpop.f32.mrb[37].mxu1 }
 0x431   : > { %v4565_v47 = vadd.f32 %v4564_v50, %v2226_v28  ;;  %v4566_v57 = vpop.f32.mrb[38].mxu1  ;;  %6613 = vmatprep.subr.bf16.mxu0 %v6048_v11 }
 0x432   : > { %5205 = vst [vmem:[%s8929_s26 + $0xd40] sm:$0xff] %v4563_v58  ;;  %v4567_v15 = vadd.f32 %v4566_v57, %v2231_v49  ;;  %v4568_v31 = vpop.f32.mrb[39].mxu1  ;;  %6614 = vmatpush1.bf16.msra.mxu0 %v6047_v34  ;;  %v5749_v10 = vmax.f32 %v4563_v58, 0.0  ;;  %v2266_v58 = vpop.permute.xlu0 %2265 }
 0x433   : > { %5206 = vst [vmem:[%s8929_s26 + $0xd48] sm:$0xff] %v4565_v47  ;;  %v4569_v16 = vadd.f32 %v4568_v31, %v2231_v49  ;;  %v5750_v17 = vmax.f32 %v4565_v47, 0.0 }
 0x434   : > { %5207 = vst [vmem:[%s8929_s26 + $0xd50] sm:$0xff] %v4567_v15  ;;  %v5751_v44 = vmax.f32 %v4567_v15, 0.0  ;;  %v2271_v15 = vpop.permute.xlu1 %2270 }
 0x435   : > { %5208 = vst [vmem:[%s8929_s26 + $0xd58] sm:$0xff] %v4569_v16  ;;  %v5752_v18 = vmax.f32 %v4569_v16, 0.0 }
 0x436   : > { %v6049_v30 = vpack.c.bf16 %v5751_v44, %v5749_v10 }
 0x437   : > { %v4572_v48 = vpop.f32.mrb[40].mxu1  ;;  %v6050_v6 = vpack.c.bf16 %v5752_v18, %v5750_v17 }
 0x438   : > { %v4573_v29 = vadd.f32 %v4572_v48, %v2236_v9  ;;  %v4574_v61 = vpop.f32.mrb[41].mxu1 }
 0x439   : > { %v4575_v62 = vadd.f32 %v4574_v61, %v2236_v9  ;;  %v4576_v53 = vpop.f32.mrb[42].mxu1  ;;  %6615 = vmatprep.subr.bf16.mxu0 %v6050_v6 }
 0x43a   : > { %5209 = vst [vmem:[%s8929_s26 + $0xd60] sm:$0xff] %v4573_v29  ;;  %v4577_v41 = vadd.f32 %v4576_v53, %v2241_v13  ;;  %v4578_v37 = vpop.f32.mrb[43].mxu1  ;;  %6616 = vmatpush1.bf16.msra.mxu0 %v6049_v30  ;;  %v5753_v4 = vmax.f32 %v4573_v29, 0.0  ;;  %v2276_v29 = vpop.permute.xlu0 %2275 }
 0x43b   : > { %5210 = vst [vmem:[%s8929_s26 + $0xd68] sm:$0xff] %v4575_v62  ;;  %v4579_v32 = vadd.f32 %v4578_v37, %v2241_v13  ;;  %v5754_v24 = vmax.f32 %v4575_v62, 0.0 }
 0x43c   : > { %5211 = vst [vmem:[%s8929_s26 + $0xd70] sm:$0xff] %v4577_v41  ;;  %v5755_v22 = vmax.f32 %v4577_v41, 0.0  ;;  %v2281_v41 = vpop.permute.xlu1 %2280 }
 0x43d   : > { %5212 = vst [vmem:[%s8929_s26 + $0xd78] sm:$0xff] %v4579_v32  ;;  %v5756_v38 = vmax.f32 %v4579_v32, 0.0 }
 0x43e   : > { %v6051_v2 = vpack.c.bf16 %v5755_v22, %v5753_v4 }
 0x43f   : > { %v4582_v12 = vpop.f32.mrb[44].mxu1  ;;  %v6052_v19 = vpack.c.bf16 %v5756_v38, %v5754_v24 }
 0x440   : > { %v4583_v20 = vadd.f32 %v4582_v12, %v2246_v25  ;;  %v4584_v26 = vpop.f32.mrb[45].mxu1 }
 0x441   : > { %v4585_v51 = vadd.f32 %v4584_v26, %v2246_v25  ;;  %v4586_v59 = vpop.f32.mrb[46].mxu1  ;;  %6617 = vmatprep.subr.bf16.mxu0 %v6052_v19 }
 0x442   : > { %5213 = vst [vmem:[%s8929_s26 + $0xd80] sm:$0xff] %v4583_v20  ;;  %v4587_v56 = vadd.f32 %v4586_v59, %v2251_v7  ;;  %v4588_v46 = vpop.f32.mrb[47].mxu1  ;;  %6618 = vmatpush1.bf16.msra.mxu0 %v6051_v2  ;;  %v5757_v54 = vmax.f32 %v4583_v20, 0.0  ;;  %v2286_v20 = vpop.permute.xlu0 %2285  ;;  %v5323_v59 = vld [vmem:[%s10866_s5 + $0xf0] sm:$0xff] }
 0x443   : > { %5214 = vst [vmem:[%s8929_s26 + $0xd88] sm:$0xff] %v4585_v51  ;;  %v4589_v21 = vadd.f32 %v4588_v46, %v2251_v7  ;;  %v5758_v36 = vmax.f32 %v4585_v51, 0.0  ;;  %v5315_v51 = vld [vmem:[%s10866_s5 + $0xb0] sm:$0xff] }
 0x444   : > { %5215 = vst [vmem:[%s8929_s26 + $0xd90] sm:$0xff] %v4587_v56  ;;  %v5759_v43 = vmax.f32 %v4587_v56, 0.0 }
 0x445   : > { %5216 = vst [vmem:[%s8929_s26 + $0xd98] sm:$0xff] %v4589_v21  ;;  %v5760_v45 = vmax.f32 %v4589_v21, 0.0  ;;  %v2291_v21 = vpop.permute.xlu1 %2290 }
 0x446   : > { %v6053_v3 = vpack.c.bf16 %v5759_v43, %v5757_v54 }
 0x447   : > { %v4592_v1 = vpop.f32.mrb[48].mxu1  ;;  %v6054_v5 = vpack.c.bf16 %v5760_v45, %v5758_v36 }
 0x448   : > { %v4593_v23 = vadd.f32 %v4592_v1, %v2256_v27  ;;  %v4594_v63 = vpop.f32.mrb[49].mxu1  ;;  %v10767_v1 = vld [vmem:[%s10866_s5 + $0x78] sm:$0xff] }
 0x449   : > { %v4595_v60 = vadd.f32 %v4594_v63, %v2256_v27  ;;  %v4596_v40 = vpop.f32.mrb[50].mxu1  ;;  %6619 = vmatprep.subr.bf16.mxu0 %v6054_v5  ;;  %v10762_v27 = vld [vmem:[%s10866_s5 + $0x38] sm:$0xff] }
 0x44a   : > { %5217 = vst [vmem:[%s8929_s26 + $0xda0] sm:$0xff] %v4593_v23  ;;  %v4597_v8 = vadd.f32 %v4596_v40, %v2261_v55  ;;  %v4598_v42 = vpop.f32.mrb[51].mxu1  ;;  %6620 = vmatpush1.bf16.msra.mxu0 %v6053_v3  ;;  %v5761_v35 = vmax.f32 %v4593_v23, 0.0  ;;  %v7230_v3 = vcombine.high %v5315_v51, %v5323_v59  ;;  %v7215_v23 = vcombine.low %v10762_v27, %v10767_v1 }
 0x44b   : > { %5218 = vst [vmem:[%s8929_s26 + $0xda8] sm:$0xff] %v4595_v60  ;;  %v4599_v14 = vadd.f32 %v4598_v42, %v2261_v55  ;;  %v5762_v28 = vmax.f32 %v4595_v60, 0.0  ;;  %v2296_v42 = vpop.permute.xlu0 %2295  ;;  %v7216_v39 = vcombine.high %v10762_v27, %v10767_v1 }
 0x44c   : > { %5219 = vst [vmem:[%s8929_s26 + $0xdb0] sm:$0xff] %v4597_v8  ;;  %v5763_v34 = vmax.f32 %v4597_v8, 0.0 }
 0x44d   : > { %5220 = vst [vmem:[%s8929_s26 + $0xdb8] sm:$0xff] %v4599_v14  ;;  %v5764_v0 = vmax.f32 %v4599_v14, 0.0 }
 0x44e   : > { %v6055_v11 = vpack.c.bf16 %v5763_v34, %v5761_v35 }
 0x44f   : > { %v4602_v50 = vpop.f32.mrb[52].mxu1  ;;  %v6056_v49 = vpack.c.bf16 %v5764_v0, %v5762_v28  ;;  %v2301_v0 = vpop.permute.xlu1 %2300 }
 0x450   : > { %v4603_v47 = vadd.f32 %v4602_v50, %v2266_v58  ;;  %v4604_v57 = vpop.f32.mrb[53].mxu1  ;;  %v7229_v50 = vcombine.low %v5315_v51, %v5323_v59 }
 0x451   : > { %v4605_v31 = vadd.f32 %v4604_v57, %v2266_v58  ;;  %v4606_v16 = vpop.f32.mrb[54].mxu1  ;;  %6621 = vmatprep.subr.bf16.mxu0 %v6056_v49 }
 0x452   : > { %5221 = vst [vmem:[%s8929_s26 + $0xdc0] sm:$0xff] %v4603_v47  ;;  %v4607_v10 = vadd.f32 %v4606_v16, %v2271_v15  ;;  %v4608_v44 = vpop.f32.mrb[55].mxu1  ;;  %6622 = vmatpush1.bf16.msra.mxu0 %v6055_v11  ;;  %v5765_v18 = vmax.f32 %v4603_v47, 0.0 }
 0x453   : > { %5222 = vst [vmem:[%s8929_s26 + $0xdc8] sm:$0xff] %v4605_v31  ;;  %v4609_v17 = vadd.f32 %v4608_v44, %v2271_v15  ;;  %v5766_v9 = vmax.f32 %v4605_v31, 0.0 }
 0x454   : > { %5223 = vst [vmem:[%s8929_s26 + $0xdd0] sm:$0xff] %v4607_v10  ;;  %v5767_v30 = vmax.f32 %v4607_v10, 0.0  ;;  %v2306_v10 = vpop.permute.xlu0 %2305 }
 0x455   : > { %5224 = vst [vmem:[%s8929_s26 + $0xdd8] sm:$0xff] %v4609_v17  ;;  %v5768_v48 = vmax.f32 %v4609_v17, 0.0 }
 0x456   : > { %v6057_v6 = vpack.c.bf16 %v5767_v30, %v5765_v18 }
 0x457   : > { %v4612_v61 = vpop.f32.mrb[56].mxu1  ;;  %v6058_v13 = vpack.c.bf16 %v5768_v48, %v5766_v9  ;;  %v2311_v9 = vpop.permute.xlu1 %2310 }
 0x458   : > { %v4613_v62 = vadd.f32 %v4612_v61, %v2276_v29  ;;  %v4614_v53 = vpop.f32.mrb[57].mxu1 }
 0x459   : > { %v4615_v37 = vadd.f32 %v4614_v53, %v2276_v29  ;;  %v4616_v32 = vpop.f32.mrb[58].mxu1  ;;  %6623 = vmatprep.subr.bf16.mxu0 %v6058_v13 }
 0x45a   : > { %5225 = vst [vmem:[%s8929_s26 + $0xde0] sm:$0xff] %v4613_v62  ;;  %v4617_v4 = vadd.f32 %v4616_v32, %v2281_v41  ;;  %v4618_v22 = vpop.f32.mrb[59].mxu1  ;;  %6624 = vmatpush1.bf16.msra.mxu0 %v6057_v6  ;;  %v5769_v38 = vmax.f32 %v4613_v62, 0.0 }
 0x45b   : > { %5226 = vst [vmem:[%s8929_s26 + $0xde8] sm:$0xff] %v4615_v37  ;;  %v4619_v24 = vadd.f32 %v4618_v22, %v2281_v41  ;;  %v5770_v25 = vmax.f32 %v4615_v37, 0.0 }
 0x45c   : > { %5227 = vst [vmem:[%s8929_s26 + $0xdf0] sm:$0xff] %v4617_v4  ;;  %v5771_v2 = vmax.f32 %v4617_v4, 0.0  ;;  %v2316_v4 = vpop.permute.xlu0 %2315 }
 0x45d   : > { %5228 = vst [vmem:[%s8929_s26 + $0xdf8] sm:$0xff] %v4619_v24  ;;  %v5772_v12 = vmax.f32 %v4619_v24, 0.0 }
 0x45e   : > { %v6059_v19 = vpack.c.bf16 %v5771_v2, %v5769_v38 }
 0x45f   : > { %v4622_v26 = vpop.f32.mrb[60].mxu1  ;;  %v6060_v7 = vpack.c.bf16 %v5772_v12, %v5770_v25  ;;  %v2321_v25 = vpop.permute.xlu1 %2320 }
 0x460   : > { %v4623_v56 = vadd.f32 %v4622_v26, %v2286_v20  ;;  %v4624_v46 = vpop.f32.mrb[61].mxu1 }
 0x461   : > { %v4625_v54 = vadd.f32 %v4624_v46, %v2286_v20  ;;  %v4626_v43 = vpop.f32.mrb[62].mxu1  ;;  %6625 = vmatprep.subr.bf16.mxu0 %v6060_v7 }
 0x462   : > { %5229 = vst [vmem:[%s8929_s26 + $0xe00] sm:$0xff] %v4623_v56  ;;  %v4627_v36 = vadd.f32 %v4626_v43, %v2291_v21  ;;  %v4628_v45 = vpop.f32.mrb[63].mxu1  ;;  %6626 = vmatpush1.bf16.msra.mxu0 %v6059_v19  ;;  %v5773_v63 = vmax.f32 %v4623_v56, 0.0 }
 0x463   : > { %5230 = vst [vmem:[%s8929_s26 + $0xe08] sm:$0xff] %v4625_v54  ;;  %v4629_v5 = vadd.f32 %v4628_v45, %v2291_v21  ;;  %v5774_v60 = vmax.f32 %v4625_v54, 0.0  ;;  %v2326_v54 = vpop.permute.xlu0 %2325 }
 0x464   : > { %5231 = vst [vmem:[%s8929_s26 + $0xe10] sm:$0xff] %v4627_v36  ;;  %v5775_v55 = vmax.f32 %v4627_v36, 0.0 }
 0x465   : > { %5232 = vst [vmem:[%s8929_s26 + $0xe18] sm:$0xff] %v4629_v5  ;;  %v5776_v40 = vmax.f32 %v4629_v5, 0.0  ;;  %6628 = vmatmul.mubr.bf16.vlgmr.msra.gmra.mrb[148].mxu0 %v7213_v33  ;;  %v2331_v5 = vpop.permute.xlu1 %2330 }
 0x466   : > { %v6061_v8 = vpack.c.bf16 %v5775_v55, %v5773_v63  ;;  %6637 = vmatprep.mubr.bf16.mxu0 %v7230_v3 }
 0x467   : > { %v4632_v14 = vpop.f32.mrb[64].mxu1  ;;  %v6062_v35 = vpack.c.bf16 %v5776_v40, %v5774_v60 }
 0x468   : > { %v4633_v34 = vadd.f32 %v4632_v14, %v2296_v42  ;;  %v4634_v28 = vpop.f32.mrb[65].mxu1 }
 0x469   : > { %v4635_v11 = vadd.f32 %v4634_v28, %v2296_v42  ;;  %v4636_v58 = vpop.f32.mrb[66].mxu1  ;;  %6648 = vmatprep.subr.bf16.mxu0 %v6062_v35 }
 0x46a   : > { %5233 = vst [vmem:[%s8929_s26 + $0xe20] sm:$0xff] %v4633_v34  ;;  %v4637_v49 = vadd.f32 %v4636_v58, %v2301_v0  ;;  %v4638_v47 = vpop.f32.mrb[67].mxu1  ;;  %6649 = vmatpush1.bf16.msra.mxu0 %v6061_v8  ;;  %v5777_v33 = vmax.f32 %v4633_v34, 0.0 }
 0x46b   : > { %5234 = vst [vmem:[%s8929_s26 + $0xe28] sm:$0xff] %v4635_v11  ;;  %v4639_v52 = vadd.f32 %v4638_v47, %v2301_v0  ;;  %v5778_v15 = vmax.f32 %v4635_v11, 0.0  ;;  %v2336_v0 = vpop.permute.xlu0 %2335  ;;  %v2341_v47 = vpop.permute.xlu1 %2340 }
 0x46c   : > { %5235 = vst [vmem:[%s8929_s26 + $0xe30] sm:$0xff] %v4637_v49  ;;  %v5779_v57 = vmax.f32 %v4637_v49, 0.0 }
 0x46d   : > { %5236 = vst [vmem:[%s8929_s26 + $0xe38] sm:$0xff] %v4639_v52  ;;  %v5780_v31 = vmax.f32 %v4639_v52, 0.0  ;;  %6638 = vmatmul.mubr.bf16.gmra.mrb[152].mxu0 %v7229_v50 }
 0x46e   : > { %v6063_v16 = vpack.c.bf16 %v5779_v57, %v5777_v33  ;;  %6680 = vmatprep.mubr.bf16.mxu0 %v7216_v39 }
 0x46f   : > { %v4642_v44 = vpop.f32.mrb[68].mxu1  ;;  %v6064_v17 = vpack.c.bf16 %v5780_v31, %v5778_v15 }
 0x470   : > { %v4643_v18 = vadd.f32 %v4642_v44, %v2306_v10  ;;  %v4644_v30 = vpop.f32.mrb[69].mxu1 }
 0x471   : > { %v4645_v48 = vadd.f32 %v4644_v30, %v2306_v10  ;;  %v4646_v6 = vpop.f32.mrb[70].mxu1  ;;  %6650 = vmatprep.subr.bf16.mxu0 %v6064_v17 }
 0x472   : > { %5237 = vst [vmem:[%s8929_s26 + $0xe40] sm:$0xff] %v4643_v18  ;;  %v4647_v29 = vadd.f32 %v4646_v6, %v2311_v9  ;;  %v4648_v61 = vpop.f32.mrb[71].mxu1  ;;  %6651 = vmatpush1.bf16.msra.mxu0 %v6063_v16  ;;  %v5781_v62 = vmax.f32 %v4643_v18, 0.0  ;;  %v2346_v18 = vpop.permute.xlu0 %2345 }
 0x473   : > { %5238 = vst [vmem:[%s8929_s26 + $0xe48] sm:$0xff] %v4645_v48  ;;  %v4649_v13 = vadd.f32 %v4648_v61, %v2311_v9  ;;  %v5782_v41 = vmax.f32 %v4645_v48, 0.0 }
 0x474   : > { %5239 = vst [vmem:[%s8929_s26 + $0xe50] sm:$0xff] %v4647_v29  ;;  %v5783_v53 = vmax.f32 %v4647_v29, 0.0  ;;  %v2351_v29 = vpop.permute.xlu1 %2350 }
 0x475   : > { %5240 = vst [vmem:[%s8929_s26 + $0xe58] sm:$0xff] %v4649_v13  ;;  %v5784_v37 = vmax.f32 %v4649_v13, 0.0 }
 0x476   : > { %v6065_v32 = vpack.c.bf16 %v5783_v53, %v5781_v62 }
 0x477   : > { %v4652_v22 = vpop.f32.mrb[72].mxu1  ;;  %v6066_v24 = vpack.c.bf16 %v5784_v37, %v5782_v41 }
 0x478   : > { %v4653_v38 = vadd.f32 %v4652_v22, %v2316_v4  ;;  %v4654_v2 = vpop.f32.mrb[73].mxu1 }
 0x479   : > { %v4655_v12 = vadd.f32 %v4654_v2, %v2316_v4  ;;  %v4656_v19 = vpop.f32.mrb[74].mxu1  ;;  %6652 = vmatprep.subr.bf16.mxu0 %v6066_v24 }
 0x47a   : > { %5241 = vst [vmem:[%s8929_s26 + $0xe60] sm:$0xff] %v4653_v38  ;;  %v4657_v20 = vadd.f32 %v4656_v19, %v2321_v25  ;;  %v4658_v26 = vpop.f32.mrb[75].mxu1  ;;  %6653 = vmatpush1.bf16.msra.mxu0 %v6065_v32  ;;  %v5785_v51 = vmax.f32 %v4653_v38, 0.0  ;;  %v2356_v38 = vpop.permute.xlu0 %2355 }
 0x47b   : > { %5242 = vst [vmem:[%s8929_s26 + $0xe68] sm:$0xff] %v4655_v12  ;;  %v4659_v7 = vadd.f32 %v4658_v26, %v2321_v25  ;;  %v5786_v56 = vmax.f32 %v4655_v12, 0.0 }
 0x47c   : > { %5243 = vst [vmem:[%s8929_s26 + $0xe70] sm:$0xff] %v4657_v20  ;;  %v5787_v59 = vmax.f32 %v4657_v20, 0.0  ;;  %v2361_v20 = vpop.permute.xlu1 %2360 }
 0x47d   : > { %5244 = vst [vmem:[%s8929_s26 + $0xe78] sm:$0xff] %v4659_v7  ;;  %v5788_v46 = vmax.f32 %v4659_v7, 0.0 }
 0x47e   : > { %v6067_v21 = vpack.c.bf16 %v5787_v59, %v5785_v51 }
 0x47f   : > { %v4662_v43 = vpop.f32.mrb[76].mxu1  ;;  %v6068_v36 = vpack.c.bf16 %v5788_v46, %v5786_v56 }
 0x480   : > { %v4663_v45 = vadd.f32 %v4662_v43, %v2326_v54  ;;  %v4664_v3 = vpop.f32.mrb[77].mxu1 }
 0x481   : > { %v4665_v63 = vadd.f32 %v4664_v3, %v2326_v54  ;;  %v4666_v55 = vpop.f32.mrb[78].mxu1  ;;  %6654 = vmatprep.subr.bf16.mxu0 %v6068_v36 }
 0x482   : > { %5245 = vst [vmem:[%s8929_s26 + $0xe80] sm:$0xff] %v4663_v45  ;;  %v4667_v60 = vadd.f32 %v4666_v55, %v2331_v5  ;;  %v4668_v40 = vpop.f32.mrb[79].mxu1  ;;  %6655 = vmatpush1.bf16.msra.mxu0 %v6067_v21  ;;  %v5789_v42 = vmax.f32 %v4663_v45, 0.0  ;;  %v2366_v45 = vpop.permute.xlu0 %2365 }
 0x483   : > { %5246 = vst [vmem:[%s8929_s26 + $0xe88] sm:$0xff] %v4665_v63  ;;  %v4669_v8 = vadd.f32 %v4668_v40, %v2331_v5  ;;  %v5790_v35 = vmax.f32 %v4665_v63, 0.0 }
 0x484   : > { %5247 = vst [vmem:[%s8929_s26 + $0xe90] sm:$0xff] %v4667_v60  ;;  %v5791_v14 = vmax.f32 %v4667_v60, 0.0  ;;  %v2371_v60 = vpop.permute.xlu1 %2370 }
 0x485   : > { %5248 = vst [vmem:[%s8929_s26 + $0xe98] sm:$0xff] %v4669_v8  ;;  %v5792_v34 = vmax.f32 %v4669_v8, 0.0 }
 0x486   : > { %v6069_v28 = vpack.c.bf16 %v5791_v14, %v5789_v42 }
 0x487   : > { %v4672_v11 = vpop.f32.mrb[80].mxu1  ;;  %v6070_v58 = vpack.c.bf16 %v5792_v34, %v5790_v35 }
 0x488   : > { %v4673_v50 = vadd.f32 %v4672_v11, %v2336_v0  ;;  %v4674_v49 = vpop.f32.mrb[81].mxu1 }
 0x489   : > { %v4675_v39 = vadd.f32 %v4674_v49, %v2336_v0  ;;  %v4676_v52 = vpop.f32.mrb[82].mxu1  ;;  %6656 = vmatprep.subr.bf16.mxu0 %v6070_v58 }
 0x48a   : > { %5249 = vst [vmem:[%s8929_s26 + $0xea0] sm:$0xff] %v4673_v50  ;;  %v4677_v33 = vadd.f32 %v4676_v52, %v2341_v47  ;;  %v4678_v57 = vpop.f32.mrb[83].mxu1  ;;  %6657 = vmatpush1.bf16.msra.mxu0 %v6069_v28  ;;  %v5793_v31 = vmax.f32 %v4673_v50, 0.0  ;;  %v2376_v50 = vpop.permute.xlu0 %2375 }
 0x48b   : > { %5250 = vst [vmem:[%s8929_s26 + $0xea8] sm:$0xff] %v4675_v39  ;;  %v4679_v15 = vadd.f32 %v4678_v57, %v2341_v47  ;;  %v5794_v10 = vmax.f32 %v4675_v39, 0.0 }
 0x48c   : > { %5251 = vst [vmem:[%s8929_s26 + $0xeb0] sm:$0xff] %v4677_v33  ;;  %v5795_v16 = vmax.f32 %v4677_v33, 0.0  ;;  %v2381_v33 = vpop.permute.xlu1 %2380 }
 0x48d   : > { %5252 = vst [vmem:[%s8929_s26 + $0xeb8] sm:$0xff] %v4679_v15  ;;  %v5796_v44 = vmax.f32 %v4679_v15, 0.0 }
 0x48e   : > { %v6071_v17 = vpack.c.bf16 %v5795_v16, %v5793_v31 }
 0x48f   : > { %v4682_v30 = vpop.f32.mrb[84].mxu1  ;;  %v6072_v9 = vpack.c.bf16 %v5796_v44, %v5794_v10 }
 0x490   : > { %v4683_v48 = vadd.f32 %v4682_v30, %v2346_v18  ;;  %v4684_v6 = vpop.f32.mrb[85].mxu1 }
 0x491   : > { %v4685_v61 = vadd.f32 %v4684_v6, %v2346_v18  ;;  %v4686_v13 = vpop.f32.mrb[86].mxu1  ;;  %6658 = vmatprep.subr.bf16.mxu0 %v6072_v9 }
 0x492   : > { %5253 = vst [vmem:[%s8929_s26 + $0xec0] sm:$0xff] %v4683_v48  ;;  %v4687_v62 = vadd.f32 %v4686_v13, %v2351_v29  ;;  %v4688_v53 = vpop.f32.mrb[87].mxu1  ;;  %6659 = vmatpush1.bf16.msra.mxu0 %v6071_v17  ;;  %v5797_v37 = vmax.f32 %v4683_v48, 0.0  ;;  %v2386_v48 = vpop.permute.xlu0 %2385 }
 0x493   : > { %5254 = vst [vmem:[%s8929_s26 + $0xec8] sm:$0xff] %v4685_v61  ;;  %v4689_v41 = vadd.f32 %v4688_v53, %v2351_v29  ;;  %v5798_v4 = vmax.f32 %v4685_v61, 0.0 }
 0x494   : > { %5255 = vst [vmem:[%s8929_s26 + $0xed0] sm:$0xff] %v4687_v62  ;;  %v5799_v32 = vmax.f32 %v4687_v62, 0.0  ;;  %v2391_v62 = vpop.permute.xlu1 %2390 }
 0x495   : > { %5256 = vst [vmem:[%s8929_s26 + $0xed8] sm:$0xff] %v4689_v41  ;;  %v5800_v22 = vmax.f32 %v4689_v41, 0.0 }
 0x496   : > { %v6073_v24 = vpack.c.bf16 %v5799_v32, %v5797_v37 }
 0x497   : > { %v4692_v2 = vpop.f32.mrb[88].mxu1  ;;  %v6074_v25 = vpack.c.bf16 %v5800_v22, %v5798_v4 }
 0x498   : > { %v4693_v12 = vadd.f32 %v4692_v2, %v2356_v38  ;;  %v4694_v19 = vpop.f32.mrb[89].mxu1 }
 0x499   : > { %v4695_v26 = vadd.f32 %v4694_v19, %v2356_v38  ;;  %v4696_v7 = vpop.f32.mrb[90].mxu1  ;;  %6660 = vmatprep.subr.bf16.mxu0 %v6074_v25 }
 0x49a   : > { %5257 = vst [vmem:[%s8929_s26 + $0xee0] sm:$0xff] %v4693_v12  ;;  %v4697_v51 = vadd.f32 %v4696_v7, %v2361_v20  ;;  %v4698_v59 = vpop.f32.mrb[91].mxu1  ;;  %6661 = vmatpush1.bf16.msra.mxu0 %v6073_v24  ;;  %v5801_v46 = vmax.f32 %v4693_v12, 0.0  ;;  %v2396_v12 = vpop.permute.xlu0 %2395 }
 0x49b   : > { %5258 = vst [vmem:[%s8929_s26 + $0xee8] sm:$0xff] %v4695_v26  ;;  %v4699_v56 = vadd.f32 %v4698_v59, %v2361_v20  ;;  %v5802_v54 = vmax.f32 %v4695_v26, 0.0 }
 0x49c   : > { %5259 = vst [vmem:[%s8929_s26 + $0xef0] sm:$0xff] %v4697_v51  ;;  %v5803_v21 = vmax.f32 %v4697_v51, 0.0  ;;  %v2401_v51 = vpop.permute.xlu1 %2400 }
 0x49d   : > { %5260 = vst [vmem:[%s8929_s26 + $0xef8] sm:$0xff] %v4699_v56  ;;  %v5804_v43 = vmax.f32 %v4699_v56, 0.0 }
 0x49e   : > { %v6075_v36 = vpack.c.bf16 %v5803_v21, %v5801_v46 }
 0x49f   : > { %v4702_v3 = vpop.f32.mrb[92].mxu1  ;;  %v6076_v5 = vpack.c.bf16 %v5804_v43, %v5802_v54 }
 0x4a0   : > { %v4703_v63 = vadd.f32 %v4702_v3, %v2366_v45  ;;  %v4704_v55 = vpop.f32.mrb[93].mxu1 }
 0x4a1   : > { %v4705_v40 = vadd.f32 %v4704_v55, %v2366_v45  ;;  %v4706_v8 = vpop.f32.mrb[94].mxu1  ;;  %6662 = vmatprep.subr.bf16.mxu0 %v6076_v5 }
 0x4a2   : > { %5261 = vst [vmem:[%s8929_s26 + $0xf00] sm:$0xff] %v4703_v63  ;;  %v4707_v42 = vadd.f32 %v4706_v8, %v2371_v60  ;;  %v4708_v14 = vpop.f32.mrb[95].mxu1  ;;  %6663 = vmatpush1.bf16.msra.mxu0 %v6075_v36  ;;  %v5805_v34 = vmax.f32 %v4703_v63, 0.0  ;;  %v2406_v63 = vpop.permute.xlu0 %2405 }
 0x4a3   : > { %5262 = vst [vmem:[%s8929_s26 + $0xf08] sm:$0xff] %v4705_v40  ;;  %v4709_v35 = vadd.f32 %v4708_v14, %v2371_v60  ;;  %v5806_v0 = vmax.f32 %v4705_v40, 0.0 }
 0x4a4   : > { %5263 = vst [vmem:[%s8929_s26 + $0xf10] sm:$0xff] %v4707_v42  ;;  %v5807_v28 = vmax.f32 %v4707_v42, 0.0  ;;  %v2411_v42 = vpop.permute.xlu1 %2410 }
 0x4a5   : > { %5264 = vst [vmem:[%s8929_s26 + $0xf18] sm:$0xff] %v4709_v35  ;;  %v5808_v11 = vmax.f32 %v4709_v35, 0.0 }
 0x4a6   : > { %v6077_v58 = vpack.c.bf16 %v5807_v28, %v5805_v34 }
 0x4a7   : > { %v4712_v49 = vpop.f32.mrb[96].mxu1  ;;  %v6078_v47 = vpack.c.bf16 %v5808_v11, %v5806_v0 }
 0x4a8   : > { %v4713_v39 = vadd.f32 %v4712_v49, %v2376_v50  ;;  %v4714_v52 = vpop.f32.mrb[97].mxu1 }
 0x4a9   : > { %v4715_v57 = vadd.f32 %v4714_v52, %v2376_v50  ;;  %v4716_v15 = vpop.f32.mrb[98].mxu1  ;;  %6664 = vmatprep.subr.bf16.mxu0 %v6078_v47 }
 0x4aa   : > { %5265 = vst [vmem:[%s8929_s26 + $0xf20] sm:$0xff] %v4713_v39  ;;  %v4717_v31 = vadd.f32 %v4716_v15, %v2381_v33  ;;  %v4718_v16 = vpop.f32.mrb[99].mxu1  ;;  %6665 = vmatpush1.bf16.msra.mxu0 %v6077_v58  ;;  %v5809_v44 = vmax.f32 %v4713_v39, 0.0  ;;  %v2416_v39 = vpop.permute.xlu0 %2415 }
 0x4ab   : > { %5266 = vst [vmem:[%s8929_s26 + $0xf28] sm:$0xff] %v4715_v57  ;;  %v4719_v10 = vadd.f32 %v4718_v16, %v2381_v33  ;;  %v5810_v18 = vmax.f32 %v4715_v57, 0.0 }
 0x4ac   : > { %5267 = vst [vmem:[%s8929_s26 + $0xf30] sm:$0xff] %v4717_v31  ;;  %v5811_v17 = vmax.f32 %v4717_v31, 0.0  ;;  %v2421_v31 = vpop.permute.xlu1 %2420 }
 0x4ad   : > { %5268 = vst [vmem:[%s8929_s26 + $0xf38] sm:$0xff] %v4719_v10  ;;  %v5812_v30 = vmax.f32 %v4719_v10, 0.0 }
 0x4ae   : > { %v6079_v9 = vpack.c.bf16 %v5811_v17, %v5809_v44 }
 0x4af   : > { %v4722_v6 = vpop.f32.mrb[100].mxu1  ;;  %v6080_v29 = vpack.c.bf16 %v5812_v30, %v5810_v18 }
 0x4b0   : > { %v4723_v61 = vadd.f32 %v4722_v6, %v2386_v48  ;;  %v4724_v13 = vpop.f32.mrb[101].mxu1 }
 0x4b1   : > { %v4725_v53 = vadd.f32 %v4724_v13, %v2386_v48  ;;  %v4726_v41 = vpop.f32.mrb[102].mxu1  ;;  %6666 = vmatprep.subr.bf16.mxu0 %v6080_v29 }
 0x4b2   : > { %5269 = vst [vmem:[%s8929_s26 + $0xf40] sm:$0xff] %v4723_v61  ;;  %v4727_v37 = vadd.f32 %v4726_v41, %v2391_v62  ;;  %v4728_v32 = vpop.f32.mrb[103].mxu1  ;;  %6667 = vmatpush1.bf16.msra.mxu0 %v6079_v9  ;;  %v5813_v22 = vmax.f32 %v4723_v61, 0.0  ;;  %v2426_v61 = vpop.permute.xlu0 %2425 }
 0x4b3   : > { %5270 = vst [vmem:[%s8929_s26 + $0xf48] sm:$0xff] %v4725_v53  ;;  %v4729_v4 = vadd.f32 %v4728_v32, %v2391_v62  ;;  %v5814_v38 = vmax.f32 %v4725_v53, 0.0 }
 0x4b4   : > { %5271 = vst [vmem:[%s8929_s26 + $0xf50] sm:$0xff] %v4727_v37  ;;  %v5815_v24 = vmax.f32 %v4727_v37, 0.0  ;;  %v2431_v37 = vpop.permute.xlu1 %2430 }
 0x4b5   : > { %5272 = vst [vmem:[%s8929_s26 + $0xf58] sm:$0xff] %v4729_v4  ;;  %v5816_v2 = vmax.f32 %v4729_v4, 0.0 }
 0x4b6   : > { %v6081_v25 = vpack.c.bf16 %v5815_v24, %v5813_v22 }
 0x4b7   : > { %v4732_v19 = vpop.f32.mrb[104].mxu1  ;;  %v6082_v20 = vpack.c.bf16 %v5816_v2, %v5814_v38 }
 0x4b8   : > { %v4733_v26 = vadd.f32 %v4732_v19, %v2396_v12  ;;  %v4734_v7 = vpop.f32.mrb[105].mxu1 }
 0x4b9   : > { %v4735_v59 = vadd.f32 %v4734_v7, %v2396_v12  ;;  %v4736_v56 = vpop.f32.mrb[106].mxu1  ;;  %6668 = vmatprep.subr.bf16.mxu0 %v6082_v20 }
 0x4ba   : > { %5273 = vst [vmem:[%s8929_s26 + $0xf60] sm:$0xff] %v4733_v26  ;;  %v4737_v46 = vadd.f32 %v4736_v56, %v2401_v51  ;;  %v4738_v21 = vpop.f32.mrb[107].mxu1  ;;  %6669 = vmatpush1.bf16.msra.mxu0 %v6081_v25  ;;  %v5817_v43 = vmax.f32 %v4733_v26, 0.0  ;;  %v2436_v26 = vpop.permute.xlu0 %2435 }
 0x4bb   : > { %5274 = vst [vmem:[%s8929_s26 + $0xf68] sm:$0xff] %v4735_v59  ;;  %v4739_v54 = vadd.f32 %v4738_v21, %v2401_v51  ;;  %v5818_v45 = vmax.f32 %v4735_v59, 0.0 }
 0x4bc   : > { %5275 = vst [vmem:[%s8929_s26 + $0xf70] sm:$0xff] %v4737_v46  ;;  %v5819_v36 = vmax.f32 %v4737_v46, 0.0  ;;  %v2441_v46 = vpop.permute.xlu1 %2440 }
 0x4bd   : > { %5276 = vst [vmem:[%s8929_s26 + $0xf78] sm:$0xff] %v4739_v54  ;;  %v5820_v3 = vmax.f32 %v4739_v54, 0.0 }
 0x4be   : > { %v6083_v5 = vpack.c.bf16 %v5819_v36, %v5817_v43 }
 0x4bf   : > { %v4742_v55 = vpop.f32.mrb[108].mxu1  ;;  %v6084_v60 = vpack.c.bf16 %v5820_v3, %v5818_v45 }
 0x4c0   : > { %v4743_v40 = vadd.f32 %v4742_v55, %v2406_v63  ;;  %v4744_v8 = vpop.f32.mrb[109].mxu1 }
 0x4c1   : > { %v4745_v14 = vadd.f32 %v4744_v8, %v2406_v63  ;;  %v4746_v35 = vpop.f32.mrb[110].mxu1  ;;  %6670 = vmatprep.subr.bf16.mxu0 %v6084_v60  ;;  %v5316_v8 = vld [vmem:[%s10866_s5 + $0xb8] sm:$0xff] }
 0x4c2   : > { %5277 = vst [vmem:[%s8929_s26 + $0xf80] sm:$0xff] %v4743_v40  ;;  %v4747_v34 = vadd.f32 %v4746_v35, %v2411_v42  ;;  %v4748_v28 = vpop.f32.mrb[111].mxu1  ;;  %6671 = vmatpush1.bf16.msra.mxu0 %v6083_v5  ;;  %v5821_v11 = vmax.f32 %v4743_v40, 0.0 }
 0x4c3   : > { %5278 = vst [vmem:[%s8929_s26 + $0xf88] sm:$0xff] %v4745_v14  ;;  %v4749_v0 = vadd.f32 %v4748_v28, %v2411_v42  ;;  %v5822_v50 = vmax.f32 %v4745_v14, 0.0  ;;  %v5324_v42 = vld [vmem:[%s10866_s5 + $0xf8] sm:$0xff]  ;;  %v6100_v28 = vpop.permute.xlu0 %6099 }
 0x4c4   : > { %5279 = vst [vmem:[%s8929_s26 + $0xf90] sm:$0xff] %v4747_v34  ;;  %v5823_v58 = vmax.f32 %v4747_v34, 0.0  ;;  %v7232_v14 = vcombine.high %v5316_v8, %v5324_v42  ;;  %v7231_v35 = vcombine.low %v5316_v8, %v5324_v42  ;;  %v6105_v34 = vpop.permute.xlu1 %6104 }
 0x4c5   : > { %5280 = vst [vmem:[%s8929_s26 + $0xf98] sm:$0xff] %v4749_v0  ;;  %v5824_v49 = vmax.f32 %v4749_v0, 0.0 }
 0x4c6   : > { %v6085_v47 = vpack.c.bf16 %v5823_v58, %v5821_v11 }
 0x4c7   : > { %v4752_v52 = vpop.f32.mrb[112].mxu1  ;;  %v6086_v33 = vpack.c.bf16 %v5824_v49, %v5822_v50  ;;  %v6110_v11 = vpop.permute.xlu0 %6109 }
 0x4c8   : > { %v4753_v57 = vadd.f32 %v4752_v52, %v2416_v39  ;;  %v4754_v15 = vpop.f32.mrb[113].mxu1  ;;  %v6115_v0 = vpop.permute.xlu1 %6114 }
 0x4c9   : > { %v4755_v16 = vadd.f32 %v4754_v15, %v2416_v39  ;;  %v4756_v10 = vpop.f32.mrb[114].mxu1  ;;  %6672 = vmatprep.subr.bf16.mxu0 %v6086_v33 }
 0x4ca   : > { %5281 = vst [vmem:[%s8929_s26 + $0xfa0] sm:$0xff] %v4753_v57  ;;  %v4757_v44 = vadd.f32 %v4756_v10, %v2421_v31  ;;  %v4758_v17 = vpop.f32.mrb[115].mxu1  ;;  %6673 = vmatpush1.bf16.msra.mxu0 %v6085_v47  ;;  %v5825_v30 = vmax.f32 %v4753_v57, 0.0 }
 0x4cb   : > { %5282 = vst [vmem:[%s8929_s26 + $0xfa8] sm:$0xff] %v4755_v16  ;;  %v4759_v18 = vadd.f32 %v4758_v17, %v2421_v31  ;;  %v5826_v48 = vmax.f32 %v4755_v16, 0.0  ;;  %v6716_v1 = vpop.permute.xlu0 %6715 }
 0x4cc   : > { %5283 = vst [vmem:[%s8929_s26 + $0xfb0] sm:$0xff] %v4757_v44  ;;  %v5827_v9 = vmax.f32 %v4757_v44, 0.0  ;;  %v6721_v27 = vpop.permute.xlu1 %6720 }
 0x4cd   : > { %5284 = vst [vmem:[%s8929_s26 + $0xfb8] sm:$0xff] %v4759_v18  ;;  %v5828_v6 = vmax.f32 %v4759_v18, 0.0 }
 0x4ce   : > { %v6087_v29 = vpack.c.bf16 %v5827_v9, %v5825_v30 }
 0x4cf   : > { %v4762_v13 = vpop.f32.mrb[116].mxu1  ;;  %v6088_v62 = vpack.c.bf16 %v5828_v6, %v5826_v48 }
 0x4d0   : > { %v4763_v53 = vadd.f32 %v4762_v13, %v2426_v61  ;;  %v4764_v41 = vpop.f32.mrb[117].mxu1 }
 0x4d1   : > { %v4765_v32 = vadd.f32 %v4764_v41, %v2426_v61  ;;  %v4766_v4 = vpop.f32.mrb[118].mxu1  ;;  %6674 = vmatprep.subr.bf16.mxu0 %v6088_v62 }
 0x4d2   : > { %5285 = vst [vmem:[%s8929_s26 + $0xfc0] sm:$0xff] %v4763_v53  ;;  %v4767_v22 = vadd.f32 %v4766_v4, %v2431_v37  ;;  %v4768_v24 = vpop.f32.mrb[119].mxu1  ;;  %6675 = vmatpush1.bf16.msra.mxu0 %v6087_v29  ;;  %v5829_v2 = vmax.f32 %v4763_v53, 0.0 }
 0x4d3   : > { %5286 = vst [vmem:[%s8929_s26 + $0xfc8] sm:$0xff] %v4765_v32  ;;  %v4769_v38 = vadd.f32 %v4768_v24, %v2431_v37  ;;  %v5830_v12 = vmax.f32 %v4765_v32, 0.0  ;;  %v6726_v37 = vpop.permute.xlu0 %6725 }
 0x4d4   : > { %5287 = vst [vmem:[%s8929_s26 + $0xfd0] sm:$0xff] %v4767_v22  ;;  %v5831_v25 = vmax.f32 %v4767_v22, 0.0 }
 0x4d5   : > { %5288 = vst [vmem:[%s8929_s26 + $0xfd8] sm:$0xff] %v4769_v38  ;;  %v5832_v19 = vmax.f32 %v4769_v38, 0.0  ;;  %v6731_v38 = vpop.permute.xlu1 %6730 }
 0x4d6   : > { %v6089_v20 = vpack.c.bf16 %v5831_v25, %v5829_v2 }
 0x4d7   : > { %v4772_v7 = vpop.f32.mrb[120].mxu1  ;;  %v6090_v51 = vpack.c.bf16 %v5832_v19, %v5830_v12 }
 0x4d8   : > { %v4773_v59 = vadd.f32 %v4772_v7, %v2436_v26  ;;  %v4774_v56 = vpop.f32.mrb[121].mxu1  ;;  %v6765_v7 = vlaneseq }
 0x4d9   : > { %v4775_v21 = vadd.f32 %v4774_v56, %v2436_v26  ;;  %v4776_v54 = vpop.f32.mrb[122].mxu1  ;;  %6676 = vmatprep.subr.bf16.mxu0 %v6090_v51 }
 0x4da   : > { %5289 = vst [vmem:[%s8929_s26 + $0xfe0] sm:$0xff] %v4773_v59  ;;  %v4777_v43 = vadd.f32 %v4776_v54, %v2441_v46  ;;  %v4778_v36 = vpop.f32.mrb[123].mxu1  ;;  %6677 = vmatpush1.bf16.msra.mxu0 %v6089_v20  ;;  %v5833_v3 = vmax.f32 %v4773_v59, 0.0  ;;  %vm6791_vm3 = vcmp.lt.s32.totalorder %v6765_v7, 256 }
 0x4db   : > { %5290 = vst [vmem:[%s8929_s26 + $0xfe8] sm:$0xff] %v4775_v21  ;;  %v4779_v45 = vadd.f32 %v4778_v36, %v2441_v46  ;;  %v5834_v63 = vmax.f32 %v4775_v21, 0.0  ;;  %v6766_v21 = vshrl.u32 %v6765_v7, 7 }
 0x4dc   : > { %5291 = vst [vmem:[%s8929_s26 + $0xff0] sm:$0xff] %v4777_v43  ;;  %v5835_v5 = vmax.f32 %v4777_v43, 0.0 }
 0x4dd   : > { %5292 = vst [vmem:[%s8929_s26 + $0xff8] sm:$0xff] %v4779_v45  ;;  %v5836_v55 = vmax.f32 %v4779_v45, 0.0  ;;  %v7492_v45 = vmov 1966171168   ;;  %s6932_s26 = sshll.u32 %s11300_s15, 1 }
 0x4de   : > { %v6091_v60 = vpack.c.bf16 %v5835_v5, %v5833_v3  ;;  %v6775_v3 = vunpack.c.l.s4 %v7492_v45  ;;  %s411_s24 = scalar_lea.vmem %s10870_s9, %s6932_s26 }
 0x4df   : > { %v6092_v40 = vpack.c.bf16 %v5836_v55, %v5834_v63  ;;  %v6767_v63 = vsub.s32 0, %v6766_v21 }
 0x4e0   : > { %v6776_v42 = vunpack.c.0.s8 %v6775_v3 }
 0x4e1   : > { %6678 = vmatprep.subr.bf16.mxu0 %v6092_v40 }
 0x4e2   : > { %6679 = vmatpush1.bf16.msra.mxu0 %v6091_v60  ;;  %v6763_v60 = vpop.permute.xlu0 %6762 }
 0x4e5   : > { %6681 = vmatmul.mubr.bf16.vlgmr.msra.gmra.mrb[148].mxu0 %v7215_v23 }
 0x4e6   : > { %6690 = vmatprep.mubr.bf16.mxu0 %v7232_v14 }
 0x4ed   : > { %6691 = vmatmul.mubr.bf16.gmra.mrb[152].mxu0 %v7231_v35  ;;  %v6768_v35 = vrot.slane %v6763_v60, %v6767_v63 }
 0x5b8   : > { %v6682_v58 = vpop.f32.mrb[148].mxu0 }
 0x5b9   : > { %v7245_v50 = vadd.f32 %v6682_v58, %v6100_v28  ;;  %v6684_v49 = vpop.f32.mrb[149].mxu0 }
 0x5ba   : > { %v7246_v47 = vadd.f32 %v6684_v49, %v6100_v28  ;;  %v6686_v39 = vpop.f32.mrb[150].mxu0 }
 0x5bb   : > { %v6701_v52 = vmax.f32 %v7245_v50, 0.0  ;;  %v7247_v33 = vadd.f32 %v6686_v39, %v6105_v34  ;;  %v6688_v57 = vpop.f32.mrb[151].mxu0 }
 0x5bc   : > { %v6702_v15 = vmax.f32 %v7246_v47, 0.0  ;;  %v7248_v31 = vadd.f32 %v6688_v57, %v6105_v34 }
 0x5bd   : > { %v6703_v16 = vmax.f32 %v7247_v33, 0.0  ;;  %v6733_v10 = vmul.f32 %v6716_v1, %v6701_v52 }
 0x5be   : > { %v6704_v23 = vmax.f32 %v7248_v31, 0.0  ;;  %v6734_v17 = vmul.f32 %v6716_v1, %v6702_v15 }
 0x5bf   : > { %v6735_v44 = vmul.f32 %v6721_v27, %v6703_v16 }
 0x5c0   : > { %v6736_v18 = vmul.f32 %v6721_v27, %v6704_v23  ;;  %v6692_v30 = vpop.f32.mrb[152].mxu0 }
 0x5c1   : > { %v6741_v9 = vadd.f32 %v6735_v44, %v6733_v10  ;;  %v7249_v48 = vadd.f32 %v6692_v30, %v6110_v11  ;;  %v6694_v6 = vpop.f32.mrb[153].mxu0 }
 0x5c2   : > { %v6750_v29 = vadd.f32 %v6736_v18, %v6734_v17  ;;  %v7250_v61 = vadd.f32 %v6694_v6, %v6110_v11  ;;  %v6696_v13 = vpop.f32.mrb[154].mxu0  ;;  %v6779_v11 = vsub.s32 %v6776_v42, %v6766_v21 }
 0x5c3   : > { %v6705_v62 = vmax.f32 %v7249_v48, 0.0  ;;  %v7251_v53 = vadd.f32 %v6696_v13, %v6115_v0  ;;  %v6698_v41 = vpop.f32.mrb[155].mxu0 }
 0x5c4   : > { %v6706_v32 = vmax.f32 %v7250_v61, 0.0  ;;  %v7252_v4 = vadd.f32 %v6698_v41, %v6115_v0 }
 0x5c5   : > { %v6737_v22 = vmul.f32 %v6726_v37, %v6705_v62  ;;  %v6707_v24 = vmax.f32 %v7251_v53, 0.0 }
 0x5c6   : > { %v6738_v2 = vmul.f32 %v6726_v37, %v6706_v32  ;;  %v6708_v25 = vmax.f32 %v7252_v4, 0.0 }
 0x5c7   : > { %v6742_v12 = vadd.f32 %v6741_v9, %v6737_v22  ;;  %v6739_v19 = vmul.f32 %v6731_v38, %v6707_v24 }
 0x5c8   : > { %v6751_v20 = vadd.f32 %v6750_v29, %v6738_v2  ;;  %v6740_v26 = vmul.f32 %v6731_v38, %v6708_v25 }
 0x5c9   : > { %v6743_v51 = vadd.f32 %v6742_v12, %v6739_v19 }
 0x5ca   : > { %v6752_v59 = vadd.f32 %v6751_v20, %v6740_v26 }
 0x5cb   : > { %v6744_v56 = vrot.slane %v6743_v51, 4 }
 0x5cc   : > { %v6753_v46 = vrot.slane %v6752_v59, 4 }
 0x5cd   : > { %v6745_v54 = vadd.f32 %v6744_v56, %v6743_v51 }
 0x5ce   : > { %v6754_v43 = vadd.f32 %v6753_v46, %v6752_v59 }
 0x5cf   : > { %v6746_v36 = vrot.slane %v6745_v54, 2 }
 0x5d0   : > { %v6755_v5 = vrot.slane %v6754_v43, 2 }
 0x5d1   : > { %v6747_v55 = vadd.f32 %v6746_v36, %v6745_v54 }
 0x5d2   : > { %v6756_v40 = vadd.f32 %v6755_v5, %v6754_v43 }
 0x5d3   : > { %v6748_v8 = vrot.slane %v6747_v55, 1 }
 0x5d4   : > { %v6757_v14 = vrot.slane %v6756_v40, 1 }
 0x5d5   : > { %v6749_v34 = vadd.f32 %v6748_v8, %v6747_v55 }
 0x5d6   : > { %v6758_v28 = vadd.f32 %v6757_v14, %v6756_v40 }
 0x5d7   : > { %v6769_v0 = vadd.f32 %v6768_v35, %v6749_v34 }
 0x5d8   : > { %v6770_v58 = vadd.f32 %v6768_v35, %v6758_v28 }
 0x5da   : > { %v6773_v50 = vcombine.low %v6769_v0, %v6770_v58 }
 0x5dc   : > { %v6780_v49 = vrot.slane %v6773_v50, %v6779_v11 }
 0x5de   : > { %v6787_v47 = vrot.slane %v6780_v49, %v6779_v11 }
 0x5e0   : > { %6793 = vst.msk [vmem:[%s411_s24] sm:$0x3] %vm6791_vm3, %v6787_v47 }
 0x5e1 PF: > { %s23_s17 = sadd.s32 1, %s7488_s17   ;;  %s11295_s15 = smov %s7484_s16 }
 0x5e2   : > { %p20_p5 = scmp.ge.s32.totalorder %s23_s17, 4   ;;  %s11296_s16 = smov %s11298_s8 }
 0x5e4   :  { %22 = sbr.rel (!%p20_p5) target bundleno = 3 (0x3), region = 98 }

</bundles_post_ra>
